<compile_context>
chip_gen: v5e
topology: v5e:2x2
jax: 0.10.0
libtpu: 0.0.40
codegen_flags: <defaults>
</compile_context>

<pallas_src>
import jax
import jax.numpy as jnp
from jax import lax
from jax.experimental import pallas as pl
from jax.experimental.pallas import tpu as pltpu

# ---------------- small synthetic config ----------------
B = 2          # batch
T = 8          # n_frames (seq_length)
C_IN = 3       # image channels
IMG = 16       # h = w
C_ENC = 16     # synthetic encoder conv channels
LATENT = 32    # latent_dim fed to LSTM
HID = 32       # LSTM hidden size == hidden_dim of prediction block
OUT = 256      # final Linear(hidden_dim, 256)
K_PATCH = 9 * C_IN
HW = IMG * IMG
N_FRAMES = B * T
BN_EPS = 1e-5


# ---------------- single fused kernel ----------------
def video_stream_kernel(patches_ref, pool_ref, conv_w_ref, conv_b_ref,
                        proj_w_ref, proj_b_ref,
                        wih_ref, bih_ref, whh_f_ref, whh_b_ref,
                        att_w_ref, att_b_ref,
                        fc1_w_ref, fc1_b_ref,
                        bn_g_ref, bn_b_ref, bn_mu_ref, bn_var_ref,
                        fc2_w_ref, fc2_b_ref,
                        o_ref):
    # ---- encoder: 3x3 same-conv (+bias) + ReLU, all N=T*B frames in one matmul ----
    # patches: (N*HW, K_PATCH) bf16, conv_w: (K_PATCH, C_ENC) bf16 -> f32 accumulate
    feat = jnp.dot(patches_ref[...], conv_w_ref[...],
                   preferred_element_type=jnp.float32) + conv_b_ref[...]     # (N*HW, C_ENC)
    feat = jnp.maximum(feat, 0.0)
    # global average pool per frame via a block-diagonal (1/HW) pooling matmul (MXU, no reshape)
    pooled = jnp.dot(pool_ref[...], feat,
                     preferred_element_type=jnp.float32)                     # (N, C_ENC)
    lat = jnp.dot(pooled, proj_w_ref[...],
                  preferred_element_type=jnp.float32) + proj_b_ref[...]
    lat = jnp.maximum(lat, 0.0)                                              # (T*B, LATENT) time-major

    # ---- bidirectional LSTM: input projection hoisted out of the recurrence ----
    # wih = concat(Wih_fwd, Wih_bwd), bih = concat(b_fwd, b_bwd)  (biases pre-folded b_ih+b_hh)
    gates_in = jnp.dot(lat, wih_ref[...],
                       preferred_element_type=jnp.float32) + bih_ref[...]    # (T*B, 8*HID)
    whh_f = whh_f_ref[...]                                                   # (HID, 4*HID)
    whh_b = whh_b_ref[...]

    def cell(gin, h, c, whh):
        # gin already contains x@Wih + bias; add the recurrent term only.
        g = gin + jnp.dot(h, whh, preferred_element_type=jnp.float32)        # (B, 4*HID)
        s = jax.nn.sigmoid(g)            # full-width EUP sigmoid over 4H lanes
        u = jnp.tanh(g)                  # full-width EUP tanh over 4H lanes
        i_g = s[:, 0:HID]
        f_g = s[:, HID:2 * HID]
        g_g = u[:, 2 * HID:3 * HID]
        o_g = s[:, 3 * HID:4 * HID]
        c_new = f_g * c + i_g * g_g
        h_new = o_g * jnp.tanh(c_new)
        return h_new, c_new

    h_f = jnp.zeros((B, HID), jnp.float32)
    c_f = jnp.zeros((B, HID), jnp.float32)
    h_b = jnp.zeros((B, HID), jnp.float32)
    c_b = jnp.zeros((B, HID), jnp.float32)
    hs_f = [None] * T
    hs_b = [None] * T
    # fully unrolled static time loop; forward and backward interleaved per step so the
    # scheduler can overlap the two independent recurrences on one TensorCore.
    for t in range(T):
        tb = T - 1 - t
        h_f, c_f = cell(gates_in[t * B:(t + 1) * B, 0:4 * HID], h_f, c_f, whh_f)
        hs_f[t] = h_f
        h_b, c_b = cell(gates_in[tb * B:(tb + 1) * B, 4 * HID:8 * HID], h_b, c_b, whh_b)
        hs_b[tb] = h_b

    # ---- attention: softmax(Linear(2H->1)) over the sequence, weighted sum ----
    att_wf = att_w_ref[:, 0:HID]                                             # (1, HID)
    att_wb = att_w_ref[:, HID:2 * HID]
    att_bias = att_b_ref[...]                                                # (1, 1)
    scores = [jnp.sum(hs_f[t] * att_wf, axis=-1, keepdims=True)
              + jnp.sum(hs_b[t] * att_wb, axis=-1, keepdims=True)
              + att_bias
              for t in range(T)]                                             # T x (B, 1)
    m = scores[0]
    for t in range(1, T):
        m = jnp.maximum(m, scores[t])
    es = [jnp.exp(scores[t] - m) for t in range(T)]
    z = es[0]
    for t in range(1, T):
        z = z + es[t]
    inv_z = pl.reciprocal(z, approx=True)                                    # EUP, off the VPU path
    ctx_f = jnp.zeros((B, HID), jnp.float32)
    ctx_b = jnp.zeros((B, HID), jnp.float32)
    for t in range(T):
        w_t = es[t] * inv_z                                                  # (B, 1)
        ctx_f = ctx_f + w_t * hs_f[t]
        ctx_b = ctx_b + w_t * hs_b[t]

    # ---- output head: Linear(2H->H) -> BatchNorm1d(eval) -> ReLU -> Linear(H->256) ----
    # concat(ctx_f, ctx_b) @ fc1_w  ==  ctx_f @ fc1_w[:H] + ctx_b @ fc1_w[H:]
    y = (jnp.dot(ctx_f, fc1_w_ref[0:HID, :], preferred_element_type=jnp.float32)
         + jnp.dot(ctx_b, fc1_w_ref[HID:2 * HID, :], preferred_element_type=jnp.float32)
         + fc1_b_ref[...])
    y = (bn_g_ref[...] * (y - bn_mu_ref[...]) * lax.rsqrt(bn_var_ref[...] + BN_EPS)
         + bn_b_ref[...])
    y = jnp.maximum(y, 0.0)
    o_ref[...] = jnp.dot(y, fc2_w_ref[...],
                         preferred_element_type=jnp.float32) + fc2_b_ref[...]


# ---------------- parameter init (deterministic, synthetic) ----------------
def init_params(key):
    ks = jax.random.split(key, 16)

    def w(k, shape, scale=0.1):
        return scale * jax.random.normal(k, shape, jnp.float32)

    wih_f = w(ks[4], (LATENT, 4 * HID))
    wih_b = w(ks[7], (LATENT, 4 * HID))
    b_f = w(ks[6], (1, 4 * HID))
    b_b = w(ks[9], (1, 4 * HID))
    # block-diagonal pooling matrix: pooled[n] = mean over the HW rows of frame n
    pool = jnp.repeat(jnp.eye(N_FRAMES, dtype=jnp.float32), HW, axis=1) / float(HW)

    p = {
        # encoder (weight layout: feature index = (kh*3+kw)*C_IN + cin  ->  C_ENC)
        'conv_w': w(ks[0], (K_PATCH, C_ENC)),
        'conv_b': w(ks[1], (1, C_ENC)),
        'proj_w': w(ks[2], (C_ENC, LATENT)),
        'proj_b': w(ks[3], (1, LATENT)),
        'pool': pool,                                              # (N, N*HW)
        # bidirectional LSTM: input weights/biases pre-concatenated (fwd | bwd), bias = b_ih+b_hh
        'wih_cat': jnp.concatenate([wih_f, wih_b], axis=1),        # (LATENT, 8*HID)
        'b_cat': jnp.concatenate([b_f, b_b], axis=1),              # (1, 8*HID)
        'whh_f': w(ks[5], (HID, 4 * HID)),
        'whh_b': w(ks[8], (HID, 4 * HID)),
        # attention Linear(2H -> 1), stored transposed as (1, 2H)
        'att_w': w(ks[10], (1, 2 * HID)),
        'att_b': w(ks[11], (1, 1)),
        # output head
        'fc1_w': w(ks[12], (2 * HID, HID)),
        'fc1_b': w(ks[13], (1, HID)),
        'bn_g': jnp.ones((1, HID), jnp.float32),
        'bn_b': jnp.zeros((1, HID), jnp.float32),
        'bn_mu': jnp.zeros((1, HID), jnp.float32),
        'bn_var': jnp.ones((1, HID), jnp.float32),
        'fc2_w': w(ks[14], (HID, OUT)),
        'fc2_b': w(ks[15], (1, OUT)),
    }
    return p


# ---------------- full forward (one pallas_call) ----------------
def video_stream_forward(x, p):
    bs, seq, c, h, wdt = x.shape
    n = bs * seq
    # glue: time-major frame order (row = t*B + b) so encoder rows feed LSTM timesteps directly;
    # NCHW -> NHWC, pad=1, im2col 3x3 patches flattened to a single lane-dense 2D slab.
    xf = jnp.transpose(x, (1, 0, 2, 3, 4)).reshape(n, c, h, wdt)
    xf = jnp.transpose(xf, (0, 2, 3, 1))                                     # (N, H, W, C)
    xp = jnp.pad(xf, ((0, 0), (1, 1), (1, 1), (0, 0)))
    patches = jnp.concatenate(
        [xp[:, kh:kh + h, kw:kw + wdt, :] for kh in range(3) for kw in range(3)],
        axis=-1)                                                             # (N, H, W, 9C)
    patches = patches.reshape(n * h * wdt, 9 * c).astype(jnp.bfloat16)       # bf16 MXU operand

    out = pl.pallas_call(
        video_stream_kernel,
        out_shape=jax.ShapeDtypeStruct((bs, OUT), jnp.float32),
    )(patches, p['pool'],
      p['conv_w'].astype(jnp.bfloat16), p['conv_b'],
      p['proj_w'], p['proj_b'],
      p['wih_cat'], p['b_cat'], p['whh_f'], p['whh_b'],
      p['att_w'], p['att_b'],
      p['fc1_w'], p['fc1_b'],
      p['bn_g'], p['bn_b'], p['bn_mu'], p['bn_var'],
      p['fc2_w'], p['fc2_b'])
    return out                                                               # (B, 256)


if __name__ == "__main__":
    key = jax.random.PRNGKey(0)
    kx, kp = jax.random.split(key)
    x = jax.random.normal(kx, (B, T, C_IN, IMG, IMG), jnp.float32)
    params = init_params(kp)

    out = jax.jit(video_stream_forward)(x, params)
    out = jax.block_until_ready(out)

    assert out.shape == (B, OUT), out.shape
    assert jnp.all(jnp.isfinite(out))
    print("KERNEL_OK")
</pallas_src>

<mosaic_0001>
module attributes {stable_mosaic.version = 11 : i64} {
  func.func @video_stream_kernel(%arg0: memref<4096x27xbf16, #tpu.memory_space<vmem>>, %arg1: memref<16x4096xf32, #tpu.memory_space<vmem>>, %arg2: memref<27x16xbf16, #tpu.memory_space<vmem>>, %arg3: memref<1x16xf32, #tpu.memory_space<vmem>>, %arg4: memref<16x32xf32, #tpu.memory_space<vmem>>, %arg5: memref<1x32xf32, #tpu.memory_space<vmem>>, %arg6: memref<32x256xf32, #tpu.memory_space<vmem>>, %arg7: memref<1x256xf32, #tpu.memory_space<vmem>>, %arg8: memref<32x128xf32, #tpu.memory_space<vmem>>, %arg9: memref<32x128xf32, #tpu.memory_space<vmem>>, %arg10: memref<1x64xf32, #tpu.memory_space<vmem>>, %arg11: memref<1x1xf32, #tpu.memory_space<vmem>>, %arg12: memref<64x32xf32, #tpu.memory_space<vmem>>, %arg13: memref<1x32xf32, #tpu.memory_space<vmem>>, %arg14: memref<1x32xf32, #tpu.memory_space<vmem>>, %arg15: memref<1x32xf32, #tpu.memory_space<vmem>>, %arg16: memref<1x32xf32, #tpu.memory_space<vmem>>, %arg17: memref<1x32xf32, #tpu.memory_space<vmem>>, %arg18: memref<32x256xf32, #tpu.memory_space<vmem>>, %arg19: memref<1x256xf32, #tpu.memory_space<vmem>>, %arg20: memref<2x256xf32, #tpu.memory_space<vmem>>) attributes {dimension_semantics = [], scalar_prefetch = 0 : i64, scratch_operands = 0 : i64, tpu.core_type = #tpu.core_type<tc>} {
    %c0 = arith.constant 0 : index
    %c0_0 = arith.constant 0 : index
    %0 = vector.load %arg0[%c0, %c0_0] : memref<4096x27xbf16, #tpu.memory_space<vmem>>, vector<4096x27xbf16>
    %c0_1 = arith.constant 0 : index
    %c0_2 = arith.constant 0 : index
    %1 = vector.load %arg2[%c0_1, %c0_2] : memref<27x16xbf16, #tpu.memory_space<vmem>>, vector<27x16xbf16>
    %cst = arith.constant dense<0.000000e+00> : vector<4096x16xf32>
    %2 = tpu.matmul %0, %1, %cst {dimension_numbers = #tpu.dot_dimension_numbers<[1], [0], [0], [1], [0, 0, 1, 1], [], []>} : vector<4096x27xbf16>, vector<27x16xbf16>, vector<4096x16xf32> -> vector<4096x16xf32>
    %c0_3 = arith.constant 0 : index
    %c0_4 = arith.constant 0 : index
    %3 = vector.load %arg3[%c0_3, %c0_4] : memref<1x16xf32, #tpu.memory_space<vmem>>, vector<1x16xf32>
    %4 = vector.broadcast %3 : vector<1x16xf32> to vector<4096x16xf32>
    %5 = arith.addf %2, %4 : vector<4096x16xf32>
    %cst_5 = arith.constant 0.000000e+00 : f32
    %6 = vector.broadcast %cst_5 : f32 to vector<4096x16xf32>
    %7 = arith.maximumf %5, %6 : vector<4096x16xf32>
    %c0_6 = arith.constant 0 : index
    %c0_7 = arith.constant 0 : index
    %8 = vector.load %arg1[%c0_6, %c0_7] : memref<16x4096xf32, #tpu.memory_space<vmem>>, vector<16x4096xf32>
    %cst_8 = arith.constant dense<0.000000e+00> : vector<16x16xf32>
    %9 = tpu.matmul %8, %7, %cst_8 {dimension_numbers = #tpu.dot_dimension_numbers<[1], [0], [0], [1], [0, 0, 1, 1], [], []>} : vector<16x4096xf32>, vector<4096x16xf32>, vector<16x16xf32> -> vector<16x16xf32>
    %c0_9 = arith.constant 0 : index
    %c0_10 = arith.constant 0 : index
    %10 = vector.load %arg4[%c0_9, %c0_10] : memref<16x32xf32, #tpu.memory_space<vmem>>, vector<16x32xf32>
    %cst_11 = arith.constant dense<0.000000e+00> : vector<16x32xf32>
    %11 = tpu.matmul %9, %10, %cst_11 {dimension_numbers = #tpu.dot_dimension_numbers<[1], [0], [0], [1], [0, 0, 1, 1], [], []>} : vector<16x16xf32>, vector<16x32xf32>, vector<16x32xf32> -> vector<16x32xf32>
    %c0_12 = arith.constant 0 : index
    %c0_13 = arith.constant 0 : index
    %12 = vector.load %arg5[%c0_12, %c0_13] : memref<1x32xf32, #tpu.memory_space<vmem>>, vector<1x32xf32>
    %13 = vector.broadcast %12 : vector<1x32xf32> to vector<16x32xf32>
    %14 = arith.addf %11, %13 : vector<16x32xf32>
    %cst_14 = arith.constant 0.000000e+00 : f32
    %15 = vector.broadcast %cst_14 : f32 to vector<16x32xf32>
    %16 = arith.maximumf %14, %15 : vector<16x32xf32>
    %c0_15 = arith.constant 0 : index
    %c0_16 = arith.constant 0 : index
    %17 = vector.load %arg6[%c0_15, %c0_16] : memref<32x256xf32, #tpu.memory_space<vmem>>, vector<32x256xf32>
    %cst_17 = arith.constant dense<0.000000e+00> : vector<16x256xf32>
    %18 = tpu.matmul %16, %17, %cst_17 {dimension_numbers = #tpu.dot_dimension_numbers<[1], [0], [0], [1], [0, 0, 1, 1], [], []>} : vector<16x32xf32>, vector<32x256xf32>, vector<16x256xf32> -> vector<16x256xf32>
    %c0_18 = arith.constant 0 : index
    %c0_19 = arith.constant 0 : index
    %19 = vector.load %arg7[%c0_18, %c0_19] : memref<1x256xf32, #tpu.memory_space<vmem>>, vector<1x256xf32>
    %20 = vector.broadcast %19 : vector<1x256xf32> to vector<16x256xf32>
    %21 = arith.addf %18, %20 : vector<16x256xf32>
    %c0_20 = arith.constant 0 : index
    %c0_21 = arith.constant 0 : index
    %22 = vector.load %arg8[%c0_20, %c0_21] : memref<32x128xf32, #tpu.memory_space<vmem>>, vector<32x128xf32>
    %c0_22 = arith.constant 0 : index
    %c0_23 = arith.constant 0 : index
    %23 = vector.load %arg9[%c0_22, %c0_23] : memref<32x128xf32, #tpu.memory_space<vmem>>, vector<32x128xf32>
    %cst_24 = arith.constant 0.000000e+00 : f32
    %24 = vector.broadcast %cst_24 : f32 to vector<2x32xf32>
    %cst_25 = arith.constant 0.000000e+00 : f32
    %25 = vector.broadcast %cst_25 : f32 to vector<2x32xf32>
    %cst_26 = arith.constant 0.000000e+00 : f32
    %26 = vector.broadcast %cst_26 : f32 to vector<2x32xf32>
    %cst_27 = arith.constant 0.000000e+00 : f32
    %27 = vector.broadcast %cst_27 : f32 to vector<2x32xf32>
    %28 = vector.extract_strided_slice %21 {offsets = [0, 0], sizes = [2, 128], strides = [1, 1]} : vector<16x256xf32> to vector<2x128xf32>
    %cst_28 = arith.constant dense<0.000000e+00> : vector<2x128xf32>
    %29 = tpu.matmul %24, %22, %cst_28 {dimension_numbers = #tpu.dot_dimension_numbers<[1], [0], [0], [1], [0, 0, 1, 1], [], []>} : vector<2x32xf32>, vector<32x128xf32>, vector<2x128xf32> -> vector<2x128xf32>
    %30 = arith.addf %28, %29 : vector<2x128xf32>
    %31 = arith.negf %30 : vector<2x128xf32>
    %32 = math.exp %31 : vector<2x128xf32>
    %cst_29 = arith.constant 1.000000e+00 : f32
    %33 = vector.broadcast %cst_29 : f32 to vector<2x128xf32>
    %34 = arith.addf %33, %32 : vector<2x128xf32>
    %35 = arith.divf %33, %34 : vector<2x128xf32>
    %36 = math.tanh %30 : vector<2x128xf32>
    %37 = vector.extract_strided_slice %35 {offsets = [0, 0], sizes = [2, 32], strides = [1, 1]} : vector<2x128xf32> to vector<2x32xf32>
    %38 = vector.extract_strided_slice %35 {offsets = [0, 32], sizes = [2, 32], strides = [1, 1]} : vector<2x128xf32> to vector<2x32xf32>
    %39 = vector.extract_strided_slice %36 {offsets = [0, 64], sizes = [2, 32], strides = [1, 1]} : vector<2x128xf32> to vector<2x32xf32>
    %40 = vector.extract_strided_slice %35 {offsets = [0, 96], sizes = [2, 32], strides = [1, 1]} : vector<2x128xf32> to vector<2x32xf32>
    %41 = arith.mulf %38, %25 : vector<2x32xf32>
    %42 = arith.mulf %37, %39 : vector<2x32xf32>
    %43 = arith.addf %41, %42 : vector<2x32xf32>
    %44 = math.tanh %43 : vector<2x32xf32>
    %45 = arith.mulf %40, %44 : vector<2x32xf32>
    %46 = vector.extract_strided_slice %21 {offsets = [14, 128], sizes = [2, 128], strides = [1, 1]} : vector<16x256xf32> to vector<2x128xf32>
    %cst_30 = arith.constant dense<0.000000e+00> : vector<2x128xf32>
    %47 = tpu.matmul %26, %23, %cst_30 {dimension_numbers = #tpu.dot_dimension_numbers<[1], [0], [0], [1], [0, 0, 1, 1], [], []>} : vector<2x32xf32>, vector<32x128xf32>, vector<2x128xf32> -> vector<2x128xf32>
    %48 = arith.addf %46, %47 : vector<2x128xf32>
    %49 = arith.negf %48 : vector<2x128xf32>
    %50 = math.exp %49 : vector<2x128xf32>
    %cst_31 = arith.constant 1.000000e+00 : f32
    %51 = vector.broadcast %cst_31 : f32 to vector<2x128xf32>
    %52 = arith.addf %51, %50 : vector<2x128xf32>
    %53 = arith.divf %51, %52 : vector<2x128xf32>
    %54 = math.tanh %48 : vector<2x128xf32>
    %55 = vector.extract_strided_slice %53 {offsets = [0, 0], sizes = [2, 32], strides = [1, 1]} : vector<2x128xf32> to vector<2x32xf32>
    %56 = vector.extract_strided_slice %53 {offsets = [0, 32], sizes = [2, 32], strides = [1, 1]} : vector<2x128xf32> to vector<2x32xf32>
    %57 = vector.extract_strided_slice %54 {offsets = [0, 64], sizes = [2, 32], strides = [1, 1]} : vector<2x128xf32> to vector<2x32xf32>
    %58 = vector.extract_strided_slice %53 {offsets = [0, 96], sizes = [2, 32], strides = [1, 1]} : vector<2x128xf32> to vector<2x32xf32>
    %59 = arith.mulf %56, %27 : vector<2x32xf32>
    %60 = arith.mulf %55, %57 : vector<2x32xf32>
    %61 = arith.addf %59, %60 : vector<2x32xf32>
    %62 = math.tanh %61 : vector<2x32xf32>
    %63 = arith.mulf %58, %62 : vector<2x32xf32>
    %64 = vector.extract_strided_slice %21 {offsets = [2, 0], sizes = [2, 128], strides = [1, 1]} : vector<16x256xf32> to vector<2x128xf32>
    %cst_32 = arith.constant dense<0.000000e+00> : vector<2x128xf32>
    %65 = tpu.matmul %45, %22, %cst_32 {dimension_numbers = #tpu.dot_dimension_numbers<[1], [0], [0], [1], [0, 0, 1, 1], [], []>} : vector<2x32xf32>, vector<32x128xf32>, vector<2x128xf32> -> vector<2x128xf32>
    %66 = arith.addf %64, %65 : vector<2x128xf32>
    %67 = arith.negf %66 : vector<2x128xf32>
    %68 = math.exp %67 : vector<2x128xf32>
    %cst_33 = arith.constant 1.000000e+00 : f32
    %69 = vector.broadcast %cst_33 : f32 to vector<2x128xf32>
    %70 = arith.addf %69, %68 : vector<2x128xf32>
    %71 = arith.divf %69, %70 : vector<2x128xf32>
    %72 = math.tanh %66 : vector<2x128xf32>
    %73 = vector.extract_strided_slice %71 {offsets = [0, 0], sizes = [2, 32], strides = [1, 1]} : vector<2x128xf32> to vector<2x32xf32>
    %74 = vector.extract_strided_slice %71 {offsets = [0, 32], sizes = [2, 32], strides = [1, 1]} : vector<2x128xf32> to vector<2x32xf32>
    %75 = vector.extract_strided_slice %72 {offsets = [0, 64], sizes = [2, 32], strides = [1, 1]} : vector<2x128xf32> to vector<2x32xf32>
    %76 = vector.extract_strided_slice %71 {offsets = [0, 96], sizes = [2, 32], strides = [1, 1]} : vector<2x128xf32> to vector<2x32xf32>
    %77 = arith.mulf %74, %43 : vector<2x32xf32>
    %78 = arith.mulf %73, %75 : vector<2x32xf32>
    %79 = arith.addf %77, %78 : vector<2x32xf32>
    %80 = math.tanh %79 : vector<2x32xf32>
    %81 = arith.mulf %76, %80 : vector<2x32xf32>
    %82 = vector.extract_strided_slice %21 {offsets = [12, 128], sizes = [2, 128], strides = [1, 1]} : vector<16x256xf32> to vector<2x128xf32>
    %cst_34 = arith.constant dense<0.000000e+00> : vector<2x128xf32>
    %83 = tpu.matmul %63, %23, %cst_34 {dimension_numbers = #tpu.dot_dimension_numbers<[1], [0], [0], [1], [0, 0, 1, 1], [], []>} : vector<2x32xf32>, vector<32x128xf32>, vector<2x128xf32> -> vector<2x128xf32>
    %84 = arith.addf %82, %83 : vector<2x128xf32>
    %85 = arith.negf %84 : vector<2x128xf32>
    %86 = math.exp %85 : vector<2x128xf32>
    %cst_35 = arith.constant 1.000000e+00 : f32
    %87 = vector.broadcast %cst_35 : f32 to vector<2x128xf32>
    %88 = arith.addf %87, %86 : vector<2x128xf32>
    %89 = arith.divf %87, %88 : vector<2x128xf32>
    %90 = math.tanh %84 : vector<2x128xf32>
    %91 = vector.extract_strided_slice %89 {offsets = [0, 0], sizes = [2, 32], strides = [1, 1]} : vector<2x128xf32> to vector<2x32xf32>
    %92 = vector.extract_strided_slice %89 {offsets = [0, 32], sizes = [2, 32], strides = [1, 1]} : vector<2x128xf32> to vector<2x32xf32>
    %93 = vector.extract_strided_slice %90 {offsets = [0, 64], sizes = [2, 32], strides = [1, 1]} : vector<2x128xf32> to vector<2x32xf32>
    %94 = vector.extract_strided_slice %89 {offsets = [0, 96], sizes = [2, 32], strides = [1, 1]} : vector<2x128xf32> to vector<2x32xf32>
    %95 = arith.mulf %92, %61 : vector<2x32xf32>
    %96 = arith.mulf %91, %93 : vector<2x32xf32>
    %97 = arith.addf %95, %96 : vector<2x32xf32>
    %98 = math.tanh %97 : vector<2x32xf32>
    %99 = arith.mulf %94, %98 : vector<2x32xf32>
    %100 = vector.extract_strided_slice %21 {offsets = [4, 0], sizes = [2, 128], strides = [1, 1]} : vector<16x256xf32> to vector<2x128xf32>
    %cst_36 = arith.constant dense<0.000000e+00> : vector<2x128xf32>
    %101 = tpu.matmul %81, %22, %cst_36 {dimension_numbers = #tpu.dot_dimension_numbers<[1], [0], [0], [1], [0, 0, 1, 1], [], []>} : vector<2x32xf32>, vector<32x128xf32>, vector<2x128xf32> -> vector<2x128xf32>
    %102 = arith.addf %100, %101 : vector<2x128xf32>
    %103 = arith.negf %102 : vector<2x128xf32>
    %104 = math.exp %103 : vector<2x128xf32>
    %cst_37 = arith.constant 1.000000e+00 : f32
    %105 = vector.broadcast %cst_37 : f32 to vector<2x128xf32>
    %106 = arith.addf %105, %104 : vector<2x128xf32>
    %107 = arith.divf %105, %106 : vector<2x128xf32>
    %108 = math.tanh %102 : vector<2x128xf32>
    %109 = vector.extract_strided_slice %107 {offsets = [0, 0], sizes = [2, 32], strides = [1, 1]} : vector<2x128xf32> to vector<2x32xf32>
    %110 = vector.extract_strided_slice %107 {offsets = [0, 32], sizes = [2, 32], strides = [1, 1]} : vector<2x128xf32> to vector<2x32xf32>
    %111 = vector.extract_strided_slice %108 {offsets = [0, 64], sizes = [2, 32], strides = [1, 1]} : vector<2x128xf32> to vector<2x32xf32>
    %112 = vector.extract_strided_slice %107 {offsets = [0, 96], sizes = [2, 32], strides = [1, 1]} : vector<2x128xf32> to vector<2x32xf32>
    %113 = arith.mulf %110, %79 : vector<2x32xf32>
    %114 = arith.mulf %109, %111 : vector<2x32xf32>
    %115 = arith.addf %113, %114 : vector<2x32xf32>
    %116 = math.tanh %115 : vector<2x32xf32>
    %117 = arith.mulf %112, %116 : vector<2x32xf32>
    %118 = vector.extract_strided_slice %21 {offsets = [10, 128], sizes = [2, 128], strides = [1, 1]} : vector<16x256xf32> to vector<2x128xf32>
    %cst_38 = arith.constant dense<0.000000e+00> : vector<2x128xf32>
    %119 = tpu.matmul %99, %23, %cst_38 {dimension_numbers = #tpu.dot_dimension_numbers<[1], [0], [0], [1], [0, 0, 1, 1], [], []>} : vector<2x32xf32>, vector<32x128xf32>, vector<2x128xf32> -> vector<2x128xf32>
    %120 = arith.addf %118, %119 : vector<2x128xf32>
    %121 = arith.negf %120 : vector<2x128xf32>
    %122 = math.exp %121 : vector<2x128xf32>
    %cst_39 = arith.constant 1.000000e+00 : f32
    %123 = vector.broadcast %cst_39 : f32 to vector<2x128xf32>
    %124 = arith.addf %123, %122 : vector<2x128xf32>
    %125 = arith.divf %123, %124 : vector<2x128xf32>
    %126 = math.tanh %120 : vector<2x128xf32>
    %127 = vector.extract_strided_slice %125 {offsets = [0, 0], sizes = [2, 32], strides = [1, 1]} : vector<2x128xf32> to vector<2x32xf32>
    %128 = vector.extract_strided_slice %125 {offsets = [0, 32], sizes = [2, 32], strides = [1, 1]} : vector<2x128xf32> to vector<2x32xf32>
    %129 = vector.extract_strided_slice %126 {offsets = [0, 64], sizes = [2, 32], strides = [1, 1]} : vector<2x128xf32> to vector<2x32xf32>
    %130 = vector.extract_strided_slice %125 {offsets = [0, 96], sizes = [2, 32], strides = [1, 1]} : vector<2x128xf32> to vector<2x32xf32>
    %131 = arith.mulf %128, %97 : vector<2x32xf32>
    %132 = arith.mulf %127, %129 : vector<2x32xf32>
    %133 = arith.addf %131, %132 : vector<2x32xf32>
    %134 = math.tanh %133 : vector<2x32xf32>
    %135 = arith.mulf %130, %134 : vector<2x32xf32>
    %136 = vector.extract_strided_slice %21 {offsets = [6, 0], sizes = [2, 128], strides = [1, 1]} : vector<16x256xf32> to vector<2x128xf32>
    %cst_40 = arith.constant dense<0.000000e+00> : vector<2x128xf32>
    %137 = tpu.matmul %117, %22, %cst_40 {dimension_numbers = #tpu.dot_dimension_numbers<[1], [0], [0], [1], [0, 0, 1, 1], [], []>} : vector<2x32xf32>, vector<32x128xf32>, vector<2x128xf32> -> vector<2x128xf32>
    %138 = arith.addf %136, %137 : vector<2x128xf32>
    %139 = arith.negf %138 : vector<2x128xf32>
    %140 = math.exp %139 : vector<2x128xf32>
    %cst_41 = arith.constant 1.000000e+00 : f32
    %141 = vector.broadcast %cst_41 : f32 to vector<2x128xf32>
    %142 = arith.addf %141, %140 : vector<2x128xf32>
    %143 = arith.divf %141, %142 : vector<2x128xf32>
    %144 = math.tanh %138 : vector<2x128xf32>
    %145 = vector.extract_strided_slice %143 {offsets = [0, 0], sizes = [2, 32], strides = [1, 1]} : vector<2x128xf32> to vector<2x32xf32>
    %146 = vector.extract_strided_slice %143 {offsets = [0, 32], sizes = [2, 32], strides = [1, 1]} : vector<2x128xf32> to vector<2x32xf32>
    %147 = vector.extract_strided_slice %144 {offsets = [0, 64], sizes = [2, 32], strides = [1, 1]} : vector<2x128xf32> to vector<2x32xf32>
    %148 = vector.extract_strided_slice %143 {offsets = [0, 96], sizes = [2, 32], strides = [1, 1]} : vector<2x128xf32> to vector<2x32xf32>
    %149 = arith.mulf %146, %115 : vector<2x32xf32>
    %150 = arith.mulf %145, %147 : vector<2x32xf32>
    %151 = arith.addf %149, %150 : vector<2x32xf32>
    %152 = math.tanh %151 : vector<2x32xf32>
    %153 = arith.mulf %148, %152 : vector<2x32xf32>
    %154 = vector.extract_strided_slice %21 {offsets = [8, 128], sizes = [2, 128], strides = [1, 1]} : vector<16x256xf32> to vector<2x128xf32>
    %cst_42 = arith.constant dense<0.000000e+00> : vector<2x128xf32>
    %155 = tpu.matmul %135, %23, %cst_42 {dimension_numbers = #tpu.dot_dimension_numbers<[1], [0], [0], [1], [0, 0, 1, 1], [], []>} : vector<2x32xf32>, vector<32x128xf32>, vector<2x128xf32> -> vector<2x128xf32>
    %156 = arith.addf %154, %155 : vector<2x128xf32>
    %157 = arith.negf %156 : vector<2x128xf32>
    %158 = math.exp %157 : vector<2x128xf32>
    %cst_43 = arith.constant 1.000000e+00 : f32
    %159 = vector.broadcast %cst_43 : f32 to vector<2x128xf32>
    %160 = arith.addf %159, %158 : vector<2x128xf32>
    %161 = arith.divf %159, %160 : vector<2x128xf32>
    %162 = math.tanh %156 : vector<2x128xf32>
    %163 = vector.extract_strided_slice %161 {offsets = [0, 0], sizes = [2, 32], strides = [1, 1]} : vector<2x128xf32> to vector<2x32xf32>
    %164 = vector.extract_strided_slice %161 {offsets = [0, 32], sizes = [2, 32], strides = [1, 1]} : vector<2x128xf32> to vector<2x32xf32>
    %165 = vector.extract_strided_slice %162 {offsets = [0, 64], sizes = [2, 32], strides = [1, 1]} : vector<2x128xf32> to vector<2x32xf32>
    %166 = vector.extract_strided_slice %161 {offsets = [0, 96], sizes = [2, 32], strides = [1, 1]} : vector<2x128xf32> to vector<2x32xf32>
    %167 = arith.mulf %164, %133 : vector<2x32xf32>
    %168 = arith.mulf %163, %165 : vector<2x32xf32>
    %169 = arith.addf %167, %168 : vector<2x32xf32>
    %170 = math.tanh %169 : vector<2x32xf32>
    %171 = arith.mulf %166, %170 : vector<2x32xf32>
    %172 = vector.extract_strided_slice %21 {offsets = [8, 0], sizes = [2, 128], strides = [1, 1]} : vector<16x256xf32> to vector<2x128xf32>
    %cst_44 = arith.constant dense<0.000000e+00> : vector<2x128xf32>
    %173 = tpu.matmul %153, %22, %cst_44 {dimension_numbers = #tpu.dot_dimension_numbers<[1], [0], [0], [1], [0, 0, 1, 1], [], []>} : vector<2x32xf32>, vector<32x128xf32>, vector<2x128xf32> -> vector<2x128xf32>
    %174 = arith.addf %172, %173 : vector<2x128xf32>
    %175 = arith.negf %174 : vector<2x128xf32>
    %176 = math.exp %175 : vector<2x128xf32>
    %cst_45 = arith.constant 1.000000e+00 : f32
    %177 = vector.broadcast %cst_45 : f32 to vector<2x128xf32>
    %178 = arith.addf %177, %176 : vector<2x128xf32>
    %179 = arith.divf %177, %178 : vector<2x128xf32>
    %180 = math.tanh %174 : vector<2x128xf32>
    %181 = vector.extract_strided_slice %179 {offsets = [0, 0], sizes = [2, 32], strides = [1, 1]} : vector<2x128xf32> to vector<2x32xf32>
    %182 = vector.extract_strided_slice %179 {offsets = [0, 32], sizes = [2, 32], strides = [1, 1]} : vector<2x128xf32> to vector<2x32xf32>
    %183 = vector.extract_strided_slice %180 {offsets = [0, 64], sizes = [2, 32], strides = [1, 1]} : vector<2x128xf32> to vector<2x32xf32>
    %184 = vector.extract_strided_slice %179 {offsets = [0, 96], sizes = [2, 32], strides = [1, 1]} : vector<2x128xf32> to vector<2x32xf32>
    %185 = arith.mulf %182, %151 : vector<2x32xf32>
    %186 = arith.mulf %181, %183 : vector<2x32xf32>
    %187 = arith.addf %185, %186 : vector<2x32xf32>
    %188 = math.tanh %187 : vector<2x32xf32>
    %189 = arith.mulf %184, %188 : vector<2x32xf32>
    %190 = vector.extract_strided_slice %21 {offsets = [6, 128], sizes = [2, 128], strides = [1, 1]} : vector<16x256xf32> to vector<2x128xf32>
    %cst_46 = arith.constant dense<0.000000e+00> : vector<2x128xf32>
    %191 = tpu.matmul %171, %23, %cst_46 {dimension_numbers = #tpu.dot_dimension_numbers<[1], [0], [0], [1], [0, 0, 1, 1], [], []>} : vector<2x32xf32>, vector<32x128xf32>, vector<2x128xf32> -> vector<2x128xf32>
    %192 = arith.addf %190, %191 : vector<2x128xf32>
    %193 = arith.negf %192 : vector<2x128xf32>
    %194 = math.exp %193 : vector<2x128xf32>
    %cst_47 = arith.constant 1.000000e+00 : f32
    %195 = vector.broadcast %cst_47 : f32 to vector<2x128xf32>
    %196 = arith.addf %195, %194 : vector<2x128xf32>
    %197 = arith.divf %195, %196 : vector<2x128xf32>
    %198 = math.tanh %192 : vector<2x128xf32>
    %199 = vector.extract_strided_slice %197 {offsets = [0, 0], sizes = [2, 32], strides = [1, 1]} : vector<2x128xf32> to vector<2x32xf32>
    %200 = vector.extract_strided_slice %197 {offsets = [0, 32], sizes = [2, 32], strides = [1, 1]} : vector<2x128xf32> to vector<2x32xf32>
    %201 = vector.extract_strided_slice %198 {offsets = [0, 64], sizes = [2, 32], strides = [1, 1]} : vector<2x128xf32> to vector<2x32xf32>
    %202 = vector.extract_strided_slice %197 {offsets = [0, 96], sizes = [2, 32], strides = [1, 1]} : vector<2x128xf32> to vector<2x32xf32>
    %203 = arith.mulf %200, %169 : vector<2x32xf32>
    %204 = arith.mulf %199, %201 : vector<2x32xf32>
    %205 = arith.addf %203, %204 : vector<2x32xf32>
    %206 = math.tanh %205 : vector<2x32xf32>
    %207 = arith.mulf %202, %206 : vector<2x32xf32>
    %208 = vector.extract_strided_slice %21 {offsets = [10, 0], sizes = [2, 128], strides = [1, 1]} : vector<16x256xf32> to vector<2x128xf32>
    %cst_48 = arith.constant dense<0.000000e+00> : vector<2x128xf32>
    %209 = tpu.matmul %189, %22, %cst_48 {dimension_numbers = #tpu.dot_dimension_numbers<[1], [0], [0], [1], [0, 0, 1, 1], [], []>} : vector<2x32xf32>, vector<32x128xf32>, vector<2x128xf32> -> vector<2x128xf32>
    %210 = arith.addf %208, %209 : vector<2x128xf32>
    %211 = arith.negf %210 : vector<2x128xf32>
    %212 = math.exp %211 : vector<2x128xf32>
    %cst_49 = arith.constant 1.000000e+00 : f32
    %213 = vector.broadcast %cst_49 : f32 to vector<2x128xf32>
    %214 = arith.addf %213, %212 : vector<2x128xf32>
    %215 = arith.divf %213, %214 : vector<2x128xf32>
    %216 = math.tanh %210 : vector<2x128xf32>
    %217 = vector.extract_strided_slice %215 {offsets = [0, 0], sizes = [2, 32], strides = [1, 1]} : vector<2x128xf32> to vector<2x32xf32>
    %218 = vector.extract_strided_slice %215 {offsets = [0, 32], sizes = [2, 32], strides = [1, 1]} : vector<2x128xf32> to vector<2x32xf32>
    %219 = vector.extract_strided_slice %216 {offsets = [0, 64], sizes = [2, 32], strides = [1, 1]} : vector<2x128xf32> to vector<2x32xf32>
    %220 = vector.extract_strided_slice %215 {offsets = [0, 96], sizes = [2, 32], strides = [1, 1]} : vector<2x128xf32> to vector<2x32xf32>
    %221 = arith.mulf %218, %187 : vector<2x32xf32>
    %222 = arith.mulf %217, %219 : vector<2x32xf32>
    %223 = arith.addf %221, %222 : vector<2x32xf32>
    %224 = math.tanh %223 : vector<2x32xf32>
    %225 = arith.mulf %220, %224 : vector<2x32xf32>
    %226 = vector.extract_strided_slice %21 {offsets = [4, 128], sizes = [2, 128], strides = [1, 1]} : vector<16x256xf32> to vector<2x128xf32>
    %cst_50 = arith.constant dense<0.000000e+00> : vector<2x128xf32>
    %227 = tpu.matmul %207, %23, %cst_50 {dimension_numbers = #tpu.dot_dimension_numbers<[1], [0], [0], [1], [0, 0, 1, 1], [], []>} : vector<2x32xf32>, vector<32x128xf32>, vector<2x128xf32> -> vector<2x128xf32>
    %228 = arith.addf %226, %227 : vector<2x128xf32>
    %229 = arith.negf %228 : vector<2x128xf32>
    %230 = math.exp %229 : vector<2x128xf32>
    %cst_51 = arith.constant 1.000000e+00 : f32
    %231 = vector.broadcast %cst_51 : f32 to vector<2x128xf32>
    %232 = arith.addf %231, %230 : vector<2x128xf32>
    %233 = arith.divf %231, %232 : vector<2x128xf32>
    %234 = math.tanh %228 : vector<2x128xf32>
    %235 = vector.extract_strided_slice %233 {offsets = [0, 0], sizes = [2, 32], strides = [1, 1]} : vector<2x128xf32> to vector<2x32xf32>
    %236 = vector.extract_strided_slice %233 {offsets = [0, 32], sizes = [2, 32], strides = [1, 1]} : vector<2x128xf32> to vector<2x32xf32>
    %237 = vector.extract_strided_slice %234 {offsets = [0, 64], sizes = [2, 32], strides = [1, 1]} : vector<2x128xf32> to vector<2x32xf32>
    %238 = vector.extract_strided_slice %233 {offsets = [0, 96], sizes = [2, 32], strides = [1, 1]} : vector<2x128xf32> to vector<2x32xf32>
    %239 = arith.mulf %236, %205 : vector<2x32xf32>
    %240 = arith.mulf %235, %237 : vector<2x32xf32>
    %241 = arith.addf %239, %240 : vector<2x32xf32>
    %242 = math.tanh %241 : vector<2x32xf32>
    %243 = arith.mulf %238, %242 : vector<2x32xf32>
    %244 = vector.extract_strided_slice %21 {offsets = [12, 0], sizes = [2, 128], strides = [1, 1]} : vector<16x256xf32> to vector<2x128xf32>
    %cst_52 = arith.constant dense<0.000000e+00> : vector<2x128xf32>
    %245 = tpu.matmul %225, %22, %cst_52 {dimension_numbers = #tpu.dot_dimension_numbers<[1], [0], [0], [1], [0, 0, 1, 1], [], []>} : vector<2x32xf32>, vector<32x128xf32>, vector<2x128xf32> -> vector<2x128xf32>
    %246 = arith.addf %244, %245 : vector<2x128xf32>
    %247 = arith.negf %246 : vector<2x128xf32>
    %248 = math.exp %247 : vector<2x128xf32>
    %cst_53 = arith.constant 1.000000e+00 : f32
    %249 = vector.broadcast %cst_53 : f32 to vector<2x128xf32>
    %250 = arith.addf %249, %248 : vector<2x128xf32>
    %251 = arith.divf %249, %250 : vector<2x128xf32>
    %252 = math.tanh %246 : vector<2x128xf32>
    %253 = vector.extract_strided_slice %251 {offsets = [0, 0], sizes = [2, 32], strides = [1, 1]} : vector<2x128xf32> to vector<2x32xf32>
    %254 = vector.extract_strided_slice %251 {offsets = [0, 32], sizes = [2, 32], strides = [1, 1]} : vector<2x128xf32> to vector<2x32xf32>
    %255 = vector.extract_strided_slice %252 {offsets = [0, 64], sizes = [2, 32], strides = [1, 1]} : vector<2x128xf32> to vector<2x32xf32>
    %256 = vector.extract_strided_slice %251 {offsets = [0, 96], sizes = [2, 32], strides = [1, 1]} : vector<2x128xf32> to vector<2x32xf32>
    %257 = arith.mulf %254, %223 : vector<2x32xf32>
    %258 = arith.mulf %253, %255 : vector<2x32xf32>
    %259 = arith.addf %257, %258 : vector<2x32xf32>
    %260 = math.tanh %259 : vector<2x32xf32>
    %261 = arith.mulf %256, %260 : vector<2x32xf32>
    %262 = vector.extract_strided_slice %21 {offsets = [2, 128], sizes = [2, 128], strides = [1, 1]} : vector<16x256xf32> to vector<2x128xf32>
    %cst_54 = arith.constant dense<0.000000e+00> : vector<2x128xf32>
    %263 = tpu.matmul %243, %23, %cst_54 {dimension_numbers = #tpu.dot_dimension_numbers<[1], [0], [0], [1], [0, 0, 1, 1], [], []>} : vector<2x32xf32>, vector<32x128xf32>, vector<2x128xf32> -> vector<2x128xf32>
    %264 = arith.addf %262, %263 : vector<2x128xf32>
    %265 = arith.negf %264 : vector<2x128xf32>
    %266 = math.exp %265 : vector<2x128xf32>
    %cst_55 = arith.constant 1.000000e+00 : f32
    %267 = vector.broadcast %cst_55 : f32 to vector<2x128xf32>
    %268 = arith.addf %267, %266 : vector<2x128xf32>
    %269 = arith.divf %267, %268 : vector<2x128xf32>
    %270 = math.tanh %264 : vector<2x128xf32>
    %271 = vector.extract_strided_slice %269 {offsets = [0, 0], sizes = [2, 32], strides = [1, 1]} : vector<2x128xf32> to vector<2x32xf32>
    %272 = vector.extract_strided_slice %269 {offsets = [0, 32], sizes = [2, 32], strides = [1, 1]} : vector<2x128xf32> to vector<2x32xf32>
    %273 = vector.extract_strided_slice %270 {offsets = [0, 64], sizes = [2, 32], strides = [1, 1]} : vector<2x128xf32> to vector<2x32xf32>
    %274 = vector.extract_strided_slice %269 {offsets = [0, 96], sizes = [2, 32], strides = [1, 1]} : vector<2x128xf32> to vector<2x32xf32>
    %275 = arith.mulf %272, %241 : vector<2x32xf32>
    %276 = arith.mulf %271, %273 : vector<2x32xf32>
    %277 = arith.addf %275, %276 : vector<2x32xf32>
    %278 = math.tanh %277 : vector<2x32xf32>
    %279 = arith.mulf %274, %278 : vector<2x32xf32>
    %280 = vector.extract_strided_slice %21 {offsets = [14, 0], sizes = [2, 128], strides = [1, 1]} : vector<16x256xf32> to vector<2x128xf32>
    %cst_56 = arith.constant dense<0.000000e+00> : vector<2x128xf32>
    %281 = tpu.matmul %261, %22, %cst_56 {dimension_numbers = #tpu.dot_dimension_numbers<[1], [0], [0], [1], [0, 0, 1, 1], [], []>} : vector<2x32xf32>, vector<32x128xf32>, vector<2x128xf32> -> vector<2x128xf32>
    %282 = arith.addf %280, %281 : vector<2x128xf32>
    %283 = arith.negf %282 : vector<2x128xf32>
    %284 = math.exp %283 : vector<2x128xf32>
    %cst_57 = arith.constant 1.000000e+00 : f32
    %285 = vector.broadcast %cst_57 : f32 to vector<2x128xf32>
    %286 = arith.addf %285, %284 : vector<2x128xf32>
    %287 = arith.divf %285, %286 : vector<2x128xf32>
    %288 = math.tanh %282 : vector<2x128xf32>
    %289 = vector.extract_strided_slice %287 {offsets = [0, 0], sizes = [2, 32], strides = [1, 1]} : vector<2x128xf32> to vector<2x32xf32>
    %290 = vector.extract_strided_slice %287 {offsets = [0, 32], sizes = [2, 32], strides = [1, 1]} : vector<2x128xf32> to vector<2x32xf32>
    %291 = vector.extract_strided_slice %288 {offsets = [0, 64], sizes = [2, 32], strides = [1, 1]} : vector<2x128xf32> to vector<2x32xf32>
    %292 = vector.extract_strided_slice %287 {offsets = [0, 96], sizes = [2, 32], strides = [1, 1]} : vector<2x128xf32> to vector<2x32xf32>
    %293 = arith.mulf %290, %259 : vector<2x32xf32>
    %294 = arith.mulf %289, %291 : vector<2x32xf32>
    %295 = arith.addf %293, %294 : vector<2x32xf32>
    %296 = math.tanh %295 : vector<2x32xf32>
    %297 = arith.mulf %292, %296 : vector<2x32xf32>
    %298 = vector.extract_strided_slice %21 {offsets = [0, 128], sizes = [2, 128], strides = [1, 1]} : vector<16x256xf32> to vector<2x128xf32>
    %cst_58 = arith.constant dense<0.000000e+00> : vector<2x128xf32>
    %299 = tpu.matmul %279, %23, %cst_58 {dimension_numbers = #tpu.dot_dimension_numbers<[1], [0], [0], [1], [0, 0, 1, 1], [], []>} : vector<2x32xf32>, vector<32x128xf32>, vector<2x128xf32> -> vector<2x128xf32>
    %300 = arith.addf %298, %299 : vector<2x128xf32>
    %301 = arith.negf %300 : vector<2x128xf32>
    %302 = math.exp %301 : vector<2x128xf32>
    %cst_59 = arith.constant 1.000000e+00 : f32
    %303 = vector.broadcast %cst_59 : f32 to vector<2x128xf32>
    %304 = arith.addf %303, %302 : vector<2x128xf32>
    %305 = arith.divf %303, %304 : vector<2x128xf32>
    %306 = math.tanh %300 : vector<2x128xf32>
    %307 = vector.extract_strided_slice %305 {offsets = [0, 0], sizes = [2, 32], strides = [1, 1]} : vector<2x128xf32> to vector<2x32xf32>
    %308 = vector.extract_strided_slice %305 {offsets = [0, 32], sizes = [2, 32], strides = [1, 1]} : vector<2x128xf32> to vector<2x32xf32>
    %309 = vector.extract_strided_slice %306 {offsets = [0, 64], sizes = [2, 32], strides = [1, 1]} : vector<2x128xf32> to vector<2x32xf32>
    %310 = vector.extract_strided_slice %305 {offsets = [0, 96], sizes = [2, 32], strides = [1, 1]} : vector<2x128xf32> to vector<2x32xf32>
    %311 = arith.mulf %308, %277 : vector<2x32xf32>
    %312 = arith.mulf %307, %309 : vector<2x32xf32>
    %313 = arith.addf %311, %312 : vector<2x32xf32>
    %314 = math.tanh %313 : vector<2x32xf32>
    %315 = arith.mulf %310, %314 : vector<2x32xf32>
    %c0_60 = arith.constant 0 : index
    %c0_61 = arith.constant 0 : index
    %316 = vector.load %arg10[%c0_60, %c0_61] : memref<1x64xf32, #tpu.memory_space<vmem>>, vector<1x32xf32>
    %c0_62 = arith.constant 0 : index
    %c32 = arith.constant 32 : index
    %317 = vector.load %arg10[%c0_62, %c32] : memref<1x64xf32, #tpu.memory_space<vmem>>, vector<1x32xf32>
    %c0_63 = arith.constant 0 : index
    %c0_64 = arith.constant 0 : index
    %318 = vector.load %arg11[%c0_63, %c0_64] : memref<1x1xf32, #tpu.memory_space<vmem>>, vector<1x1xf32>
    %319 = vector.broadcast %316 : vector<1x32xf32> to vector<2x32xf32>
    %320 = arith.mulf %45, %319 : vector<2x32xf32>
    %cst_65 = arith.constant dense<0.000000e+00> : vector<2xf32>
    %321 = vector.multi_reduction <add>, %320, %cst_65 [1] : vector<2x32xf32> to vector<2xf32>
    %322 = vector.shape_cast %321 : vector<2xf32> to vector<2x1xf32>
    %323 = vector.broadcast %317 : vector<1x32xf32> to vector<2x32xf32>
    %324 = arith.mulf %315, %323 : vector<2x32xf32>
    %cst_66 = arith.constant dense<0.000000e+00> : vector<2xf32>
    %325 = vector.multi_reduction <add>, %324, %cst_66 [1] : vector<2x32xf32> to vector<2xf32>
    %326 = vector.shape_cast %325 : vector<2xf32> to vector<2x1xf32>
    %327 = arith.addf %322, %326 : vector<2x1xf32>
    %328 = vector.broadcast %318 : vector<1x1xf32> to vector<2x1xf32>
    %329 = arith.addf %327, %328 : vector<2x1xf32>
    %330 = vector.broadcast %316 : vector<1x32xf32> to vector<2x32xf32>
    %331 = arith.mulf %81, %330 : vector<2x32xf32>
    %cst_67 = arith.constant dense<0.000000e+00> : vector<2xf32>
    %332 = vector.multi_reduction <add>, %331, %cst_67 [1] : vector<2x32xf32> to vector<2xf32>
    %333 = vector.shape_cast %332 : vector<2xf32> to vector<2x1xf32>
    %334 = vector.broadcast %317 : vector<1x32xf32> to vector<2x32xf32>
    %335 = arith.mulf %279, %334 : vector<2x32xf32>
    %cst_68 = arith.constant dense<0.000000e+00> : vector<2xf32>
    %336 = vector.multi_reduction <add>, %335, %cst_68 [1] : vector<2x32xf32> to vector<2xf32>
    %337 = vector.shape_cast %336 : vector<2xf32> to vector<2x1xf32>
    %338 = arith.addf %333, %337 : vector<2x1xf32>
    %339 = vector.broadcast %318 : vector<1x1xf32> to vector<2x1xf32>
    %340 = arith.addf %338, %339 : vector<2x1xf32>
    %341 = vector.broadcast %316 : vector<1x32xf32> to vector<2x32xf32>
    %342 = arith.mulf %117, %341 : vector<2x32xf32>
    %cst_69 = arith.constant dense<0.000000e+00> : vector<2xf32>
    %343 = vector.multi_reduction <add>, %342, %cst_69 [1] : vector<2x32xf32> to vector<2xf32>
    %344 = vector.shape_cast %343 : vector<2xf32> to vector<2x1xf32>
    %345 = vector.broadcast %317 : vector<1x32xf32> to vector<2x32xf32>
    %346 = arith.mulf %243, %345 : vector<2x32xf32>
    %cst_70 = arith.constant dense<0.000000e+00> : vector<2xf32>
    %347 = vector.multi_reduction <add>, %346, %cst_70 [1] : vector<2x32xf32> to vector<2xf32>
    %348 = vector.shape_cast %347 : vector<2xf32> to vector<2x1xf32>
    %349 = arith.addf %344, %348 : vector<2x1xf32>
    %350 = vector.broadcast %318 : vector<1x1xf32> to vector<2x1xf32>
    %351 = arith.addf %349, %350 : vector<2x1xf32>
    %352 = vector.broadcast %316 : vector<1x32xf32> to vector<2x32xf32>
    %353 = arith.mulf %153, %352 : vector<2x32xf32>
    %cst_71 = arith.constant dense<0.000000e+00> : vector<2xf32>
    %354 = vector.multi_reduction <add>, %353, %cst_71 [1] : vector<2x32xf32> to vector<2xf32>
    %355 = vector.shape_cast %354 : vector<2xf32> to vector<2x1xf32>
    %356 = vector.broadcast %317 : vector<1x32xf32> to vector<2x32xf32>
    %357 = arith.mulf %207, %356 : vector<2x32xf32>
    %cst_72 = arith.constant dense<0.000000e+00> : vector<2xf32>
    %358 = vector.multi_reduction <add>, %357, %cst_72 [1] : vector<2x32xf32> to vector<2xf32>
    %359 = vector.shape_cast %358 : vector<2xf32> to vector<2x1xf32>
    %360 = arith.addf %355, %359 : vector<2x1xf32>
    %361 = vector.broadcast %318 : vector<1x1xf32> to vector<2x1xf32>
    %362 = arith.addf %360, %361 : vector<2x1xf32>
    %363 = vector.broadcast %316 : vector<1x32xf32> to vector<2x32xf32>
    %364 = arith.mulf %189, %363 : vector<2x32xf32>
    %cst_73 = arith.constant dense<0.000000e+00> : vector<2xf32>
    %365 = vector.multi_reduction <add>, %364, %cst_73 [1] : vector<2x32xf32> to vector<2xf32>
    %366 = vector.shape_cast %365 : vector<2xf32> to vector<2x1xf32>
    %367 = vector.broadcast %317 : vector<1x32xf32> to vector<2x32xf32>
    %368 = arith.mulf %171, %367 : vector<2x32xf32>
    %cst_74 = arith.constant dense<0.000000e+00> : vector<2xf32>
    %369 = vector.multi_reduction <add>, %368, %cst_74 [1] : vector<2x32xf32> to vector<2xf32>
    %370 = vector.shape_cast %369 : vector<2xf32> to vector<2x1xf32>
    %371 = arith.addf %366, %370 : vector<2x1xf32>
    %372 = vector.broadcast %318 : vector<1x1xf32> to vector<2x1xf32>
    %373 = arith.addf %371, %372 : vector<2x1xf32>
    %374 = vector.broadcast %316 : vector<1x32xf32> to vector<2x32xf32>
    %375 = arith.mulf %225, %374 : vector<2x32xf32>
    %cst_75 = arith.constant dense<0.000000e+00> : vector<2xf32>
    %376 = vector.multi_reduction <add>, %375, %cst_75 [1] : vector<2x32xf32> to vector<2xf32>
    %377 = vector.shape_cast %376 : vector<2xf32> to vector<2x1xf32>
    %378 = vector.broadcast %317 : vector<1x32xf32> to vector<2x32xf32>
    %379 = arith.mulf %135, %378 : vector<2x32xf32>
    %cst_76 = arith.constant dense<0.000000e+00> : vector<2xf32>
    %380 = vector.multi_reduction <add>, %379, %cst_76 [1] : vector<2x32xf32> to vector<2xf32>
    %381 = vector.shape_cast %380 : vector<2xf32> to vector<2x1xf32>
    %382 = arith.addf %377, %381 : vector<2x1xf32>
    %383 = vector.broadcast %318 : vector<1x1xf32> to vector<2x1xf32>
    %384 = arith.addf %382, %383 : vector<2x1xf32>
    %385 = vector.broadcast %316 : vector<1x32xf32> to vector<2x32xf32>
    %386 = arith.mulf %261, %385 : vector<2x32xf32>
    %cst_77 = arith.constant dense<0.000000e+00> : vector<2xf32>
    %387 = vector.multi_reduction <add>, %386, %cst_77 [1] : vector<2x32xf32> to vector<2xf32>
    %388 = vector.shape_cast %387 : vector<2xf32> to vector<2x1xf32>
    %389 = vector.broadcast %317 : vector<1x32xf32> to vector<2x32xf32>
    %390 = arith.mulf %99, %389 : vector<2x32xf32>
    %cst_78 = arith.constant dense<0.000000e+00> : vector<2xf32>
    %391 = vector.multi_reduction <add>, %390, %cst_78 [1] : vector<2x32xf32> to vector<2xf32>
    %392 = vector.shape_cast %391 : vector<2xf32> to vector<2x1xf32>
    %393 = arith.addf %388, %392 : vector<2x1xf32>
    %394 = vector.broadcast %318 : vector<1x1xf32> to vector<2x1xf32>
    %395 = arith.addf %393, %394 : vector<2x1xf32>
    %396 = vector.broadcast %316 : vector<1x32xf32> to vector<2x32xf32>
    %397 = arith.mulf %297, %396 : vector<2x32xf32>
    %cst_79 = arith.constant dense<0.000000e+00> : vector<2xf32>
    %398 = vector.multi_reduction <add>, %397, %cst_79 [1] : vector<2x32xf32> to vector<2xf32>
    %399 = vector.shape_cast %398 : vector<2xf32> to vector<2x1xf32>
    %400 = vector.broadcast %317 : vector<1x32xf32> to vector<2x32xf32>
    %401 = arith.mulf %63, %400 : vector<2x32xf32>
    %cst_80 = arith.constant dense<0.000000e+00> : vector<2xf32>
    %402 = vector.multi_reduction <add>, %401, %cst_80 [1] : vector<2x32xf32> to vector<2xf32>
    %403 = vector.shape_cast %402 : vector<2xf32> to vector<2x1xf32>
    %404 = arith.addf %399, %403 : vector<2x1xf32>
    %405 = vector.broadcast %318 : vector<1x1xf32> to vector<2x1xf32>
    %406 = arith.addf %404, %405 : vector<2x1xf32>
    %407 = arith.maximumf %329, %340 : vector<2x1xf32>
    %408 = arith.maximumf %407, %351 : vector<2x1xf32>
    %409 = arith.maximumf %408, %362 : vector<2x1xf32>
    %410 = arith.maximumf %409, %373 : vector<2x1xf32>
    %411 = arith.maximumf %410, %384 : vector<2x1xf32>
    %412 = arith.maximumf %411, %395 : vector<2x1xf32>
    %413 = arith.maximumf %412, %406 : vector<2x1xf32>
    %414 = arith.subf %329, %413 : vector<2x1xf32>
    %415 = math.exp %414 : vector<2x1xf32>
    %416 = arith.subf %340, %413 : vector<2x1xf32>
    %417 = math.exp %416 : vector<2x1xf32>
    %418 = arith.subf %351, %413 : vector<2x1xf32>
    %419 = math.exp %418 : vector<2x1xf32>
    %420 = arith.subf %362, %413 : vector<2x1xf32>
    %421 = math.exp %420 : vector<2x1xf32>
    %422 = arith.subf %373, %413 : vector<2x1xf32>
    %423 = math.exp %422 : vector<2x1xf32>
    %424 = arith.subf %384, %413 : vector<2x1xf32>
    %425 = math.exp %424 : vector<2x1xf32>
    %426 = arith.subf %395, %413 : vector<2x1xf32>
    %427 = math.exp %426 : vector<2x1xf32>
    %428 = arith.subf %406, %413 : vector<2x1xf32>
    %429 = math.exp %428 : vector<2x1xf32>
    %430 = arith.addf %415, %417 : vector<2x1xf32>
    %431 = arith.addf %430, %419 : vector<2x1xf32>
    %432 = arith.addf %431, %421 : vector<2x1xf32>
    %433 = arith.addf %432, %423 : vector<2x1xf32>
    %434 = arith.addf %433, %425 : vector<2x1xf32>
    %435 = arith.addf %434, %427 : vector<2x1xf32>
    %436 = arith.addf %435, %429 : vector<2x1xf32>
    %437 = tpu.reciprocal %436 {approx = true} : vector<2x1xf32> -> vector<2x1xf32>
    %cst_81 = arith.constant 0.000000e+00 : f32
    %438 = vector.broadcast %cst_81 : f32 to vector<2x32xf32>
    %cst_82 = arith.constant 0.000000e+00 : f32
    %439 = vector.broadcast %cst_82 : f32 to vector<2x32xf32>
    %440 = arith.mulf %415, %437 : vector<2x1xf32>
    %441 = vector.broadcast %440 : vector<2x1xf32> to vector<2x32xf32>
    %442 = arith.mulf %441, %45 : vector<2x32xf32>
    %443 = arith.addf %438, %442 : vector<2x32xf32>
    %444 = vector.broadcast %440 : vector<2x1xf32> to vector<2x32xf32>
    %445 = arith.mulf %444, %315 : vector<2x32xf32>
    %446 = arith.addf %439, %445 : vector<2x32xf32>
    %447 = arith.mulf %417, %437 : vector<2x1xf32>
    %448 = vector.broadcast %447 : vector<2x1xf32> to vector<2x32xf32>
    %449 = arith.mulf %448, %81 : vector<2x32xf32>
    %450 = arith.addf %443, %449 : vector<2x32xf32>
    %451 = vector.broadcast %447 : vector<2x1xf32> to vector<2x32xf32>
    %452 = arith.mulf %451, %279 : vector<2x32xf32>
    %453 = arith.addf %446, %452 : vector<2x32xf32>
    %454 = arith.mulf %419, %437 : vector<2x1xf32>
    %455 = vector.broadcast %454 : vector<2x1xf32> to vector<2x32xf32>
    %456 = arith.mulf %455, %117 : vector<2x32xf32>
    %457 = arith.addf %450, %456 : vector<2x32xf32>
    %458 = vector.broadcast %454 : vector<2x1xf32> to vector<2x32xf32>
    %459 = arith.mulf %458, %243 : vector<2x32xf32>
    %460 = arith.addf %453, %459 : vector<2x32xf32>
    %461 = arith.mulf %421, %437 : vector<2x1xf32>
    %462 = vector.broadcast %461 : vector<2x1xf32> to vector<2x32xf32>
    %463 = arith.mulf %462, %153 : vector<2x32xf32>
    %464 = arith.addf %457, %463 : vector<2x32xf32>
    %465 = vector.broadcast %461 : vector<2x1xf32> to vector<2x32xf32>
    %466 = arith.mulf %465, %207 : vector<2x32xf32>
    %467 = arith.addf %460, %466 : vector<2x32xf32>
    %468 = arith.mulf %423, %437 : vector<2x1xf32>
    %469 = vector.broadcast %468 : vector<2x1xf32> to vector<2x32xf32>
    %470 = arith.mulf %469, %189 : vector<2x32xf32>
    %471 = arith.addf %464, %470 : vector<2x32xf32>
    %472 = vector.broadcast %468 : vector<2x1xf32> to vector<2x32xf32>
    %473 = arith.mulf %472, %171 : vector<2x32xf32>
    %474 = arith.addf %467, %473 : vector<2x32xf32>
    %475 = arith.mulf %425, %437 : vector<2x1xf32>
    %476 = vector.broadcast %475 : vector<2x1xf32> to vector<2x32xf32>
    %477 = arith.mulf %476, %225 : vector<2x32xf32>
    %478 = arith.addf %471, %477 : vector<2x32xf32>
    %479 = vector.broadcast %475 : vector<2x1xf32> to vector<2x32xf32>
    %480 = arith.mulf %479, %135 : vector<2x32xf32>
    %481 = arith.addf %474, %480 : vector<2x32xf32>
    %482 = arith.mulf %427, %437 : vector<2x1xf32>
    %483 = vector.broadcast %482 : vector<2x1xf32> to vector<2x32xf32>
    %484 = arith.mulf %483, %261 : vector<2x32xf32>
    %485 = arith.addf %478, %484 : vector<2x32xf32>
    %486 = vector.broadcast %482 : vector<2x1xf32> to vector<2x32xf32>
    %487 = arith.mulf %486, %99 : vector<2x32xf32>
    %488 = arith.addf %481, %487 : vector<2x32xf32>
    %489 = arith.mulf %429, %437 : vector<2x1xf32>
    %490 = vector.broadcast %489 : vector<2x1xf32> to vector<2x32xf32>
    %491 = arith.mulf %490, %297 : vector<2x32xf32>
    %492 = arith.addf %485, %491 : vector<2x32xf32>
    %493 = vector.broadcast %489 : vector<2x1xf32> to vector<2x32xf32>
    %494 = arith.mulf %493, %63 : vector<2x32xf32>
    %495 = arith.addf %488, %494 : vector<2x32xf32>
    %c0_83 = arith.constant 0 : index
    %c0_84 = arith.constant 0 : index
    %496 = vector.load %arg12[%c0_83, %c0_84] : memref<64x32xf32, #tpu.memory_space<vmem>>, vector<32x32xf32>
    %cst_85 = arith.constant dense<0.000000e+00> : vector<2x32xf32>
    %497 = tpu.matmul %492, %496, %cst_85 {dimension_numbers = #tpu.dot_dimension_numbers<[1], [0], [0], [1], [0, 0, 1, 1], [], []>} : vector<2x32xf32>, vector<32x32xf32>, vector<2x32xf32> -> vector<2x32xf32>
    %c32_86 = arith.constant 32 : index
    %c0_87 = arith.constant 0 : index
    %498 = vector.load %arg12[%c32_86, %c0_87] : memref<64x32xf32, #tpu.memory_space<vmem>>, vector<32x32xf32>
    %cst_88 = arith.constant dense<0.000000e+00> : vector<2x32xf32>
    %499 = tpu.matmul %495, %498, %cst_88 {dimension_numbers = #tpu.dot_dimension_numbers<[1], [0], [0], [1], [0, 0, 1, 1], [], []>} : vector<2x32xf32>, vector<32x32xf32>, vector<2x32xf32> -> vector<2x32xf32>
    %500 = arith.addf %497, %499 : vector<2x32xf32>
    %c0_89 = arith.constant 0 : index
    %c0_90 = arith.constant 0 : index
    %501 = vector.load %arg13[%c0_89, %c0_90] : memref<1x32xf32, #tpu.memory_space<vmem>>, vector<1x32xf32>
    %502 = vector.broadcast %501 : vector<1x32xf32> to vector<2x32xf32>
    %503 = arith.addf %500, %502 : vector<2x32xf32>
    %c0_91 = arith.constant 0 : index
    %c0_92 = arith.constant 0 : index
    %504 = vector.load %arg14[%c0_91, %c0_92] : memref<1x32xf32, #tpu.memory_space<vmem>>, vector<1x32xf32>
    %c0_93 = arith.constant 0 : index
    %c0_94 = arith.constant 0 : index
    %505 = vector.load %arg16[%c0_93, %c0_94] : memref<1x32xf32, #tpu.memory_space<vmem>>, vector<1x32xf32>
    %506 = vector.broadcast %505 : vector<1x32xf32> to vector<2x32xf32>
    %507 = arith.subf %503, %506 : vector<2x32xf32>
    %508 = vector.broadcast %504 : vector<1x32xf32> to vector<2x32xf32>
    %509 = arith.mulf %508, %507 : vector<2x32xf32>
    %c0_95 = arith.constant 0 : index
    %c0_96 = arith.constant 0 : index
    %510 = vector.load %arg17[%c0_95, %c0_96] : memref<1x32xf32, #tpu.memory_space<vmem>>, vector<1x32xf32>
    %cst_97 = arith.constant 9.99999974E-6 : f32
    %511 = vector.broadcast %cst_97 : f32 to vector<1x32xf32>
    %512 = arith.addf %510, %511 : vector<1x32xf32>
    %513 = math.rsqrt %512 : vector<1x32xf32>
    %514 = vector.broadcast %513 : vector<1x32xf32> to vector<2x32xf32>
    %515 = arith.mulf %509, %514 : vector<2x32xf32>
    %c0_98 = arith.constant 0 : index
    %c0_99 = arith.constant 0 : index
    %516 = vector.load %arg15[%c0_98, %c0_99] : memref<1x32xf32, #tpu.memory_space<vmem>>, vector<1x32xf32>
    %517 = vector.broadcast %516 : vector<1x32xf32> to vector<2x32xf32>
    %518 = arith.addf %515, %517 : vector<2x32xf32>
    %cst_100 = arith.constant 0.000000e+00 : f32
    %519 = vector.broadcast %cst_100 : f32 to vector<2x32xf32>
    %520 = arith.maximumf %518, %519 : vector<2x32xf32>
    %c0_101 = arith.constant 0 : index
    %c0_102 = arith.constant 0 : index
    %521 = vector.load %arg18[%c0_101, %c0_102] : memref<32x256xf32, #tpu.memory_space<vmem>>, vector<32x256xf32>
    %cst_103 = arith.constant dense<0.000000e+00> : vector<2x256xf32>
    %522 = tpu.matmul %520, %521, %cst_103 {dimension_numbers = #tpu.dot_dimension_numbers<[1], [0], [0], [1], [0, 0, 1, 1], [], []>} : vector<2x32xf32>, vector<32x256xf32>, vector<2x256xf32> -> vector<2x256xf32>
    %c0_104 = arith.constant 0 : index
    %c0_105 = arith.constant 0 : index
    %523 = vector.load %arg19[%c0_104, %c0_105] : memref<1x256xf32, #tpu.memory_space<vmem>>, vector<1x256xf32>
    %524 = vector.broadcast %523 : vector<1x256xf32> to vector<2x256xf32>
    %525 = arith.addf %522, %524 : vector<2x256xf32>
    %c0_106 = arith.constant 0 : index
    %c0_107 = arith.constant 0 : index
    %526 = vector.load %arg20[%c0_106, %c0_107] : memref<2x256xf32, #tpu.memory_space<vmem>>, vector<2x256xf32>
    tpu.vector_store %arg20[%c0_106, %c0_107], %525 {strides = array<i32>} : memref<2x256xf32, #tpu.memory_space<vmem>>, vector<2x256xf32>,
    return
  }
}

</mosaic_0001>

<bundles_post_ra>
// kernel: video_stream_forward.1
= control target key start
LH: loop header
LB: loop body
LE: loop exit
PB: predicated region body
PF: predicated region fallthrough
CT: control target
= control target key end

     0   :  { %s12574_s0 = inlined_call_operand.vmem [shape: bf16[4096,27], index: 0, kind: input, shape index: {}]   ;;  %s12575_s1 = inlined_call_operand.vmem [shape: f32[16,4096], index: 1, kind: input, shape index: {}]   ;;  %s12576_s2 = inlined_call_operand.vmem [shape: bf16[27,16], index: 2, kind: input, shape index: {}]   ;;  %s12577_s3 = inlined_call_operand.vmem [shape: f32[1,16], index: 3, kind: input, shape index: {}]   ;;  %s12578_s4 = inlined_call_operand.vmem [shape: f32[16,32], index: 4, kind: input, shape index: {}]   ;;  %s12579_s5 = inlined_call_operand.vmem [shape: f32[1,32], index: 5, kind: input, shape index: {}]   ;;  %s12580_s6 = inlined_call_operand.vmem [shape: f32[32,256], index: 6, kind: input, shape index: {}]   ;;  %s12581_s7 = inlined_call_operand.vmem [shape: f32[1,256], index: 7, kind: input, shape index: {}]   ;;  %s12582_s8 = inlined_call_operand.vmem [shape: f32[32,128], index: 8, kind: input, shape index: {}]   ;;  %s12583_s9 = inlined_call_operand.vmem [shape: f32[32,128], index: 9, kind: input, shape index: {}]   ;;  %s12584_s10 = inlined_call_operand.vmem [shape: f32[1,64], index: 10, kind: input, shape index: {}]   ;;  %s12585_s11 = inlined_call_operand.<no memory space> [shape: f32[1,1], index: 11, kind: input, shape index: {}]   ;;  %s12586_s12 = inlined_call_operand.vmem [shape: f32[64,32], index: 12, kind: input, shape index: {}]   ;;  %s12587_s13 = inlined_call_operand.vmem [shape: f32[1,32], index: 13, kind: input, shape index: {}]   ;;  %s12588_s14 = inlined_call_operand.vmem [shape: f32[1,32], index: 14, kind: input, shape index: {}]   ;;  %s12589_s15 = inlined_call_operand.vmem [shape: f32[1,32], index: 15, kind: input, shape index: {}]   ;;  %s12590_s16 = inlined_call_operand.vmem [shape: f32[1,32], index: 16, kind: input, shape index: {}]   ;;  %s12591_s17 = inlined_call_operand.vmem [shape: f32[1,32], index: 17, kind: input, shape index: {}]   ;;  %s12592_s18 = inlined_call_operand.vmem [shape: f32[32,256], index: 18, kind: input, shape index: {}]   ;;  %s12593_s19 = inlined_call_operand.vmem [shape: f32[1,256], index: 19, kind: input, shape index: {}]   ;;  %s12594_s20 = inlined_call_operand.hbm [shape: f32[2,256], index: 20, kind: output, shape index: {}]  }
   0x1   :  { %12600 = sst [smem:[#allocation252_spill]] %s12574_s0  ;;  %v25_v0 = vstv %s12585_s11 }
   0x2   :  { %12601 = sst [smem:[#allocation253_spill]] %s12575_s1  ;;  %26 = vst [vmem:[#allocation2] sm:$0x1] %v25_v0 }
   0x3   :  { %12602 = sst [smem:[#allocation254_spill]] %s12576_s2 }
   0x4   :  { %12603 = sst [smem:[#allocation255_spill]] %s12577_s3 }
   0x5   :  { %12604 = sst [smem:[#allocation256_spill]] %s12578_s4 }
   0x6   :  { %s12605_s2 = sld [smem:[#allocation254_spill]]  ;;  %vm2649_vm0 = vcmask 1044480   ;;  %vm2650_vm1 = vcmask 1045504   ;;  %v8790_v4 = vmov 65535  }
   0x7   :  { %v2651_v5 = vsel %vm2649_vm0, 4294967295, %v8790_v4 }
   0x8   :  { %v2652_v6 = vsel %vm2650_vm1, %v2651_v5, 0 }
   0xc   :  { %v8031_v1 = vld [vmem:[%s12605_s2 + $0x8] sm:$0xf]  ;;  %v8586_v2 = vld [vmem:[%s12605_s2 + $0x8] sm:$0x30] }
   0xd   :  { %v8032_v3 = vor.u32 %v8586_v2, %v8031_v1 }
   0xf   :  { %v2654_v7 = vand.u32 %v8032_v3, %v2652_v6 }
  0x10   :  { %27 = vsyncpa [#allocation4], 0  ;;  %v8585_v8 = vld [vmem:[%s12605_s2] sm:$0xff]  ;;  %s12606_s4 = sld [smem:[#allocation252_spill]]  ;;  %vm1880_vm2 = vcmask 220160   ;;  %vm5263_vm3 = vcmask 130048  }
  0x11   :  { %2662 = vmatpush.bf16.msra.mxu0 %v2654_v7  ;;  %8587 = vmatpush.bf16.msra.mxu1 %v2654_v7  ;;  %s12607_s29 = sld [smem:[#allocation255_spill]]  ;;  %vm5309_vm4 = vcmask 261120   ;;  %s8793_s28 = smov 32  }
  0x12   :  { %8588 = vmatpush.bf16.msra.mxu2 %v2654_v7  ;;  %8589 = vmatpush.bf16.msra.mxu3 %v2654_v7  ;;  %s12798_s21 = sld [smem:[#allocation253_spill]] }
  0x13   :  { %s13107_s26 = sld [smem:[#allocation256_spill]] }
  0x15   :  { %2663 = vmatpush.bf16.msra.mxu0 %v8585_v8  ;;  %8590 = vmatpush.bf16.msra.mxu1 %v8585_v8 }
  0x16   :  { %v8329_v9 = vld [vmem:[%s12606_s4] sm:$0xff]  ;;  %8591 = vmatpush.bf16.msra.mxu2 %v8585_v8  ;;  %8592 = vmatpush.bf16.msra.mxu3 %v8585_v8  ;;  %v8330_v10 = vld [vmem:[%s12606_s4 + $0x8] sm:$0xff]  ;;  %v8331_v11 = vld [vmem:[%s12606_s4 + $0x10] sm:$0xff] }
  0x17   :  { %v8332_v12 = vld [vmem:[%s12606_s4 + $0x18] sm:$0xff]  ;;  %v8333_v13 = vld [vmem:[%s12606_s4 + $0x20] sm:$0xff]  ;;  %v8334_v14 = vld [vmem:[%s12606_s4 + $0x28] sm:$0xff] }
  0x18   :  { %8033 = vmatmul.msk.bf16.vlgmr.msra.gmra.mxu0 %vm1880_vm2, %v8329_v9  ;;  %v8335_v15 = vld [vmem:[%s12606_s4 + $0x30] sm:$0xff]  ;;  %v8413_v16 = vld [vmem:[%s12606_s4 + $0x2a0] sm:$0xff]  ;;  %v8336_v17 = vld [vmem:[%s12606_s4 + $0x38] sm:$0xff] }
  0x19   :  { %8117 = vmatmul.msk.bf16.vlgmr.msra.gmra.mxu1 %vm1880_vm2, %v8413_v16  ;;  %v8414_v18 = vld [vmem:[%s12606_s4 + $0x2a8] sm:$0xff]  ;;  %v8337_v19 = vld [vmem:[%s12606_s4 + $0x40] sm:$0xff]  ;;  %v8415_v22 = vld [vmem:[%s12606_s4 + $0x2b0] sm:$0xff] }
  0x1a   :  { %v8338_v23 = vld [vmem:[%s12606_s4 + $0x48] sm:$0xff]  ;;  %v8416_v26 = vld [vmem:[%s12606_s4 + $0x2b8] sm:$0xff]  ;;  %v8339_v27 = vld [vmem:[%s12606_s4 + $0x50] sm:$0xff] }
  0x1b   :  { %v8417_v30 = vld [vmem:[%s12606_s4 + $0x2c0] sm:$0xff]  ;;  %v8468_v31 = vld [vmem:[%s12606_s4 + $0x458] sm:$0xff]  ;;  %v8418_v35 = vld [vmem:[%s12606_s4 + $0x2c8] sm:$0xff] }
  0x1c   :  { %8172 = vmatmul.msk.bf16.vlgmr.msra.gmra.mxu2 %vm1880_vm2, %v8468_v31  ;;  %v8340_v32 = vld [vmem:[%s12606_s4 + $0x58] sm:$0xff]  ;;  %v8469_v36 = vld [vmem:[%s12606_s4 + $0x460] sm:$0xff]  ;;  %v8419_v40 = vld [vmem:[%s12606_s4 + $0x2d0] sm:$0xff] }
  0x1d   :  { %v8341_v37 = vld [vmem:[%s12606_s4 + $0x60] sm:$0xff]  ;;  %v8470_v41 = vld [vmem:[%s12606_s4 + $0x468] sm:$0xff]  ;;  %v8420_v45 = vld [vmem:[%s12606_s4 + $0x2d8] sm:$0xff] }
  0x1e   :  { %v8342_v42 = vld [vmem:[%s12606_s4 + $0x68] sm:$0xff]  ;;  %v8471_v46 = vld [vmem:[%s12606_s4 + $0x470] sm:$0xff]  ;;  %v8421_v50 = vld [vmem:[%s12606_s4 + $0x2e0] sm:$0xff] }
  0x1f   :  { %v8343_v47 = vld [vmem:[%s12606_s4 + $0x70] sm:$0xff]  ;;  %v8472_v51 = vld [vmem:[%s12606_s4 + $0x478] sm:$0xff]  ;;  %v9051_v54 = vld [vmem:[%s12607_s29] ss:$0 sm:$0xff] }
  0x20   :  { %v8344_v52 = vld [vmem:[%s12606_s4 + $0x78] sm:$0xff]  ;;  %v8422_v60 = vld [vmem:[%s12606_s4 + $0x2e8] sm:$0xff]  ;;  %v8473_v61 = vld [vmem:[%s12606_s4 + $0x480] sm:$0xff] }
  0x21   :  { %v8345_v2 = vld [vmem:[%s12606_s4 + $0x80] sm:$0xff]  ;;  %v8423_v16 = vld [vmem:[%s12606_s4 + $0x2f0] sm:$0xff] }
  0x28   :  { %8034 = vmatmul.msk.bf16.gmra.mxu0 %vm1880_vm2, %v8330_v10 }
  0x29   :  { %8118 = vmatmul.msk.bf16.gmra.mxu1 %vm1880_vm2, %v8414_v18 }
  0x2c   :  { %8173 = vmatmul.msk.bf16.gmra.mxu2 %vm1880_vm2, %v8469_v36 }
  0x38   :  { %8035 = vmatmul.msk.bf16.gmra.mxu0 %vm1880_vm2, %v8331_v11 }
  0x39   :  { %8119 = vmatmul.msk.bf16.gmra.mxu1 %vm1880_vm2, %v8415_v22 }
  0x3c   :  { %8174 = vmatmul.msk.bf16.gmra.mxu2 %vm1880_vm2, %v8470_v41  ;;  %v8425_v41 = vld [vmem:[%s12606_s4 + $0x300] sm:$0xff] }
  0x48   :  { %8036 = vmatmul.msk.bf16.gmra.mxu0 %vm1880_vm2, %v8332_v12 }
  0x49   :  { %8120 = vmatmul.msk.bf16.gmra.mxu1 %vm1880_vm2, %v8416_v26 }
  0x4c   :  { %8175 = vmatmul.msk.bf16.gmra.mxu2 %vm1880_vm2, %v8471_v46 }
  0x58   :  { %8037 = vmatmul.msk.bf16.gmra.mxu0 %vm1880_vm2, %v8333_v13 }
  0x59   :  { %8121 = vmatmul.msk.bf16.gmra.mxu1 %vm1880_vm2, %v8417_v30 }
  0x5c   :  { %8176 = vmatmul.msk.bf16.gmra.mxu2 %vm1880_vm2, %v8472_v51  ;;  %v8349_v51 = vld [vmem:[%s12606_s4 + $0xa0] sm:$0xff] }
  0x68   :  { %8038 = vmatmul.msk.bf16.gmra.mxu0 %vm1880_vm2, %v8334_v14 }
  0x69   :  { %8122 = vmatmul.msk.bf16.gmra.mxu1 %vm1880_vm2, %v8418_v35 }
  0x6c   :  { %8177 = vmatmul.msk.bf16.gmra.mxu2 %vm1880_vm2, %v8473_v61 }
  0x78   :  { %8039 = vmatmul.msk.bf16.gmra.mxu0 %vm1880_vm2, %v8335_v15  ;;  %v8474_v15 = vld [vmem:[%s12606_s4 + $0x488] sm:$0xff] }
  0x79   :  { %8123 = vmatmul.msk.bf16.gmra.mxu1 %vm1880_vm2, %v8419_v40  ;;  %v8476_v40 = vld [vmem:[%s12606_s4 + $0x498] sm:$0xff] }
  0x7c   :  { %8178 = vmatmul.msk.bf16.gmra.mxu2 %vm1880_vm2, %v8474_v15  ;;  %v8530_v15 = vld [vmem:[%s12606_s4 + $0x648] sm:$0xff] }
  0x88   :  { %8040 = vmatmul.msk.bf16.gmra.mxu0 %vm1880_vm2, %v8336_v17 }
  0x89   :  { %8124 = vmatmul.msk.bf16.gmra.mxu1 %vm1880_vm2, %v8420_v45 }
  0x95   :  { %v8957_v20 = vpop.f32.mrf.mxu0 }
  0x98   :  { %8041 = vmatmul.msk.bf16.gmra.mxu0 %vm1880_vm2, %v8337_v19 }
  0x99   :  { %8125 = vmatmul.msk.bf16.gmra.mxu1 %vm1880_vm2, %v8421_v50 }
  0x9d   :  { %v8960_v21 = vpop.f32.mrf.mxu0 }
  0x9e   :  { %v2668_v31 = vadd.f32 %v9051_v54, %v8960_v21  ;;  %v8424_v21 = vld [vmem:[%s12606_s4 + $0x2f8] sm:$0xff] }
  0xa5   :  { %v8969_v24 = vpop.f32.mrf.mxu0 }
  0xa8   :  { %8042 = vmatmul.msk.bf16.gmra.mxu0 %vm1880_vm2, %v8338_v23 }
  0xa9   :  { %8126 = vmatmul.msk.bf16.gmra.mxu1 %vm1880_vm2, %v8422_v60  ;;  %v8350_v60 = vld [vmem:[%s12606_s4 + $0xa8] sm:$0xff] }
  0xad   :  { %v8972_v25 = vpop.f32.mrf.mxu0 }
  0xae   :  { %v2673_v23 = vadd.f32 %v9051_v54, %v8972_v25 }
  0xb0   :  { %v3948_v25 = vmax.f32 %v2673_v23, 0.0 }
  0xb5   :  { %v8981_v28 = vpop.f32.mrf.mxu0 }
  0xb6   :  { %v2676_v19 = vadd.f32 %v9051_v54, %v8981_v28  ;;  %v2671_v28 = vadd.f32 %v9051_v54, %v8969_v24  ;;  %v8475_v24 = vld [vmem:[%s12606_s4 + $0x490] sm:$0xff] }
  0xb7   :  { %8179 = vmatmul.msk.bf16.gmra.mxu2 %vm1880_vm2, %v8475_v24 }
  0xb8   :  { %8043 = vmatmul.msk.bf16.gmra.mxu0 %vm1880_vm2, %v8339_v27  ;;  %v8346_v27 = vld [vmem:[%s12606_s4 + $0x88] sm:$0xff]  ;;  %v3949_v30 = vmax.f32 %v2676_v19, 0.0 }
  0xb9   :  { %8127 = vmatmul.msk.bf16.gmra.mxu1 %vm1880_vm2, %v8423_v16  ;;  %v8352_v16 = vld [vmem:[%s12606_s4 + $0xb8] sm:$0xff] }
  0xbd   :  { %v8984_v29 = vpop.f32.mrf.mxu0 }
  0xbe   :  { %v2678_v17 = vadd.f32 %v9051_v54, %v8984_v29 }
  0xc0   :  { %v3950_v26 = vmax.f32 %v2678_v17, 0.0 }
  0xc5   :  { %v8997_v33 = vpop.f32.mrf.mxu0 }
  0xc6   :  { %v2681_v13 = vadd.f32 %v9051_v54, %v8997_v33  ;;  %v3947_v33 = vmax.f32 %v2671_v28, 0.0 }
  0xc7   :  { %8180 = vmatmul.msk.bf16.gmra.mxu2 %vm1880_vm2, %v8476_v40 }
  0xc8   :  { %8044 = vmatmul.msk.bf16.gmra.mxu0 %vm1880_vm2, %v8340_v32  ;;  %v3951_v22 = vmax.f32 %v2681_v13, 0.0  ;;  %v2666_v32 = vadd.f32 %v9051_v54, %v8957_v20  ;;  %v8347_v20 = vld [vmem:[%s12606_s4 + $0x90] sm:$0xff] }
  0xc9   :  { %8128 = vmatmul.msk.bf16.gmra.mxu1 %vm1880_vm2, %v8424_v21 }
  0xca   :  { %v3945_v36 = vmax.f32 %v2666_v32, 0.0  ;;  %v8481_v32 = vld [vmem:[%s12606_s4 + $0x4c0] sm:$0xff] }
  0xcd   :  { %v2682_v34 = vpop.f32.mrf.mxu0 }
  0xce   :  { %v2683_v10 = vadd.f32 %v9051_v54, %v2682_v34  ;;  %v3946_v34 = vmax.f32 %v2668_v31, 0.0  ;;  %v8430_v31 = vld [vmem:[%s12606_s4 + $0x328] sm:$0xff] }
  0xd0   :  { %v3952_v18 = vmax.f32 %v2683_v10, 0.0 }
  0xd5   :  { %v2685_v38 = vpop.f32.mrf.mxu0 }
  0xd6   :  { %v2686_v8 = vadd.f32 %v9051_v54, %v2685_v38  ;;  %v9122_v38 = vpop.f32.mrf.mxu1 }
  0xd8   :  { %8045 = vmatmul.msk.bf16.gmra.mxu0 %vm1880_vm2, %v8341_v37  ;;  %v3953_v14 = vmax.f32 %v2686_v8, 0.0  ;;  %v9210_v8 = vpop.f32.mrf.mxu2 }
  0xd9   :  { %12608 = vst [vmem:[#allocation6_spill] sm:$0xff] %v9210_v8 }
  0xdd   :  { %v2687_v39 = vpop.f32.mrf.mxu0 }
  0xde   :  { %v2688_v6 = vadd.f32 %v9051_v54, %v2687_v39 }
  0xe0   :  { %v3954_v11 = vmax.f32 %v2688_v6, 0.0  ;;  %v9217_v13 = vpop.f32.mrf.mxu2 }
  0xe1   :  { %12609 = vst [vmem:[#allocation7_spill] sm:$0xff] %v9217_v13 }
  0xe5   :  { %v2690_v43 = vpop.f32.mrf.mxu0 }
  0xe6   :  { %v2691_v4 = vadd.f32 %v9051_v54, %v2690_v43  ;;  %v8348_v43 = vld [vmem:[%s12606_s4 + $0x98] sm:$0xff] }
  0xe8   :  { %8046 = vmatmul.msk.bf16.gmra.mxu0 %vm1880_vm2, %v8342_v42  ;;  %v3955_v9 = vmax.f32 %v2691_v4, 0.0  ;;  %v9132_v42 = vpop.f32.mrf.mxu1  ;;  %8129 = vmatmul.msk.bf16.gmra.mxu1 %vm1880_vm2, %v8425_v41  ;;  %v9234_v19 = vpop.f32.mrf.mxu2 }
  0xe9   :  { %12610 = vst [vmem:[#allocation8_spill] sm:$0xff] %v9234_v19 }
  0xed   :  { %v2692_v44 = vpop.f32.mrf.mxu0 }
  0xee   :  { %v2693_v0 = vadd.f32 %v9051_v54, %v2692_v44 }
  0xf0   :  { %v3956_v7 = vmax.f32 %v2693_v0, 0.0  ;;  %v9142_v45 = vpop.f32.mrf.mxu1  ;;  %v8479_v0 = vld [vmem:[%s12606_s4 + $0x4b0] sm:$0xff] }
  0xf5   :  { %v2695_v48 = vpop.f32.mrf.mxu0 }
  0xf6   :  { %v2696_v62 = vadd.f32 %v9051_v54, %v2695_v48  ;;  %v8527_v48 = vld [vmem:[%s12606_s4 + $0x630] sm:$0xff] }
  0xf7   :  { %8231 = vmatmul.msk.bf16.vlgmr.msra.gmra.mxu3 %vm1880_vm2, %v8527_v48 }
  0xf8   :  { %8047 = vmatmul.msk.bf16.gmra.mxu0 %vm1880_vm2, %v8343_v47  ;;  %v3957_v5 = vmax.f32 %v2696_v62, 0.0  ;;  %v8477_v47 = vld [vmem:[%s12606_s4 + $0x4a0] sm:$0xff]  ;;  %v9155_v50 = vpop.f32.mrf.mxu1 }
  0xf9   :  { %8181 = vmatmul.msk.bf16.gmra.mxu2 %vm1880_vm2, %v8477_v47 }
  0xfd   :  { %v2697_v49 = vpop.f32.mrf.mxu0 }
  0xfe   :  { %v2698_v58 = vadd.f32 %v9051_v54, %v2697_v49  ;;  %v8426_v49 = vld [vmem:[%s12606_s4 + $0x308] sm:$0xff] }
  0xff   :  { %8130 = vmatmul.msk.bf16.gmra.mxu1 %vm1880_vm2, %v8426_v49 }
 0x100   :  { %v3958_v1 = vmax.f32 %v2698_v58, 0.0  ;;  %v8427_v58 = vld [vmem:[%s12606_s4 + $0x310] sm:$0xff] }
 0x105   :  { %v2700_v53 = vpop.f32.mrf.mxu0 }
 0x106   :  { %v2701_v56 = vadd.f32 %v9051_v54, %v2700_v53  ;;  %v9166_v53 = vpop.f32.mrf.mxu1 }
 0x108   :  { %8048 = vmatmul.msk.bf16.gmra.mxu0 %vm1880_vm2, %v8344_v52  ;;  %v3959_v63 = vmax.f32 %v2701_v56, 0.0  ;;  %v8478_v56 = vld [vmem:[%s12606_s4 + $0x4a8] sm:$0xff] }
 0x109   :  { %8182 = vmatmul.msk.bf16.gmra.mxu2 %vm1880_vm2, %v8478_v56 }
 0x10d   :  { %v2702_v55 = vpop.f32.mrf.mxu0 }
 0x10e   :  { %v2703_v57 = vadd.f32 %v9051_v54, %v2702_v55 }
 0x110   :  { %v3960_v59 = vmax.f32 %v2703_v57, 0.0  ;;  %v8528_v57 = vld [vmem:[%s12606_s4 + $0x638] sm:$0xff] }
 0x111   :  { %8232 = vmatmul.msk.bf16.gmra.mxu3 %vm1880_vm2, %v8528_v57 }
 0x112   :  { %4521 = vmatpush.msrb.mxu1 %v3960_v59  ;;  %v9179_v59 = vpop.f32.mrf.mxu1 }
 0x113   :  { %8131 = vmatmul.msk.bf16.gmra.mxu1 %vm1880_vm2, %v8427_v58 }
 0x114   :  { %4522 = vmatpush.msrb.mxu1 %v3959_v63 }
 0x115   :  { %v9069_v3 = vpop.f32.mrf.mxu0 }
 0x116   :  { %4523 = vmatpush.msrb.mxu1 %v3958_v1  ;;  %v8529_v1 = vld [vmem:[%s12606_s4 + $0x640] sm:$0xff] }
 0x118   :  { %8049 = vmatmul.msk.bf16.gmra.mxu0 %vm1880_vm2, %v8345_v2  ;;  %4524 = vmatpush.msrb.mxu1 %v3957_v5  ;;  %v8428_v2 = vld [vmem:[%s12606_s4 + $0x318] sm:$0xff]  ;;  %v8351_v5 = vld [vmem:[%s12606_s4 + $0xb0] sm:$0xff] }
 0x119   :  { %8183 = vmatmul.msk.bf16.gmra.mxu2 %vm1880_vm2, %v8479_v0  ;;  %v8532_v0 = vld [vmem:[%s12606_s4 + $0x658] sm:$0xff] }
 0x11a   :  { %4525 = vmatpush.msrb.mxu1 %v3956_v7  ;;  %v9188_v62 = vpop.f32.mrf.mxu1 }
 0x11c   :  { %4526 = vmatpush.msrb.mxu1 %v3955_v9 }
 0x11d   :  { %v9076_v12 = vpop.f32.mrf.mxu0 }
 0x11e   :  { %4527 = vmatpush.msrb.mxu1 %v3954_v11  ;;  %v8429_v11 = vld [vmem:[%s12606_s4 + $0x320] sm:$0xff] }
 0x120   :  { %4528 = vmatpush.msrb.mxu1 %v3953_v14  ;;  %v8480_v14 = vld [vmem:[%s12606_s4 + $0x4b8] sm:$0xff] }
 0x121   :  { %8233 = vmatmul.msk.bf16.gmra.mxu3 %vm1880_vm2, %v8529_v1 }
 0x122   :  { %4529 = vmatpush.msrb.mxu1 %v3952_v18  ;;  %v9199_v4 = vpop.f32.mrf.mxu1 }
 0x123   :  { %8132 = vmatmul.msk.bf16.gmra.mxu1 %vm1880_vm2, %v8428_v2 }
 0x124   :  { %4530 = vmatpush.msrb.mxu1 %v3951_v22 }
 0x125   :  { %v9097_v29 = vpop.f32.mrf.mxu0 }
 0x126   :  { %4531 = vmatpush.msrb.mxu1 %v3950_v26 }
 0x128   :  { %8050 = vmatmul.msk.bf16.gmra.mxu0 %vm1880_vm2, %v8346_v27  ;;  %4532 = vmatpush.msrb.mxu1 %v3949_v30 }
 0x129   :  { %8184 = vmatmul.msk.bf16.gmra.mxu2 %vm1880_vm2, %v8480_v14  ;;  %v8354_v14 = vld [vmem:[%s12606_s4 + $0xc8] sm:$0xff] }
 0x12a   :  { %4533 = vmatpush.msrb.mxu1 %v3948_v25  ;;  %v9208_v7 = vpop.f32.mrf.mxu1  ;;  %v9244_v25 = vpop.f32.mrf.mxu2 }
 0x12b   :  { %12611 = vst [vmem:[#allocation9_spill] sm:$0xff] %v9244_v25 }
 0x12c   :  { %4534 = vmatpush.msrb.mxu1 %v3947_v33  ;;  %v8531_v33 = vld [vmem:[%s12606_s4 + $0x650] sm:$0xff] }
 0x12d   :  { %v9106_v35 = vpop.f32.mrf.mxu0 }
 0x12e   :  { %4535 = vmatpush.msrb.mxu1 %v3946_v34 }
 0x130   :  { %4536 = vmatpush.msrb.mxu1 %v3945_v36 }
 0x131   :  { %8234 = vmatmul.msk.bf16.gmra.mxu3 %vm1880_vm2, %v8530_v15 }
 0x132   :  { %v9212_v10 = vpop.f32.mrf.mxu1 }
 0x133   :  { %8133 = vmatmul.msk.bf16.gmra.mxu1 %vm1880_vm2, %v8429_v11 }
 0x135   :  { %v9119_v37 = vpop.f32.mrf.mxu0 }
 0x138   :  { %8051 = vmatmul.msk.bf16.gmra.mxu0 %vm1880_vm2, %v8347_v20  ;;  %v8353_v20 = vld [vmem:[%s12606_s4 + $0xc0] sm:$0xff] }
 0x139   :  { %8185 = vmatmul.msk.bf16.gmra.mxu2 %vm1880_vm2, %v8481_v32  ;;  %v8432_v32 = vld [vmem:[%s12606_s4 + $0x338] sm:$0xff] }
 0x13a   :  { %v9232_v18 = vpop.f32.mrf.mxu1 }
 0x13d   :  { %v9124_v39 = vpop.f32.mrf.mxu0 }
 0x13e   :  { %v2718_v1 = vadd.f32 %v9051_v54, %v9124_v39  ;;  %v2713_v39 = vadd.f32 %v9051_v54, %v9106_v35 }
 0x140   :  { %v3966_v11 = vmax.f32 %v2718_v1, 0.0  ;;  %v3964_v35 = vmax.f32 %v2713_v39, 0.0  ;;  %v8485_v1 = vld [vmem:[%s12606_s4 + $0x4e0] sm:$0xff] }
 0x141   :  { %8235 = vmatmul.msk.bf16.gmra.mxu3 %vm1880_vm2, %v8531_v33 }
 0x142   :  { %v9239_v30 = vpop.f32.mrf.mxu1 }
 0x143   :  { %8134 = vmatmul.msk.bf16.gmra.mxu1 %vm1880_vm2, %v8430_v31 }
 0x145   :  { %v9139_v44 = vpop.f32.mrf.mxu0 }
 0x148   :  { %8052 = vmatmul.msk.bf16.gmra.mxu0 %vm1880_vm2, %v8348_v43 }
 0x14a   :  { %v9266_v49 = vpop.f32.mrf.mxu1 }
 0x14d   :  { %v9144_v46 = vpop.f32.mrf.mxu0 }
 0x14e   :  { %v2723_v58 = vadd.f32 %v9051_v54, %v9144_v46  ;;  %v8482_v46 = vld [vmem:[%s12606_s4 + $0x4c8] sm:$0xff] }
 0x150   :  { %v3968_v2 = vmax.f32 %v2723_v58, 0.0  ;;  %v8356_v58 = vld [vmem:[%s12606_s4 + $0xd8] sm:$0xff] }
 0x151   :  { %8236 = vmatmul.msk.bf16.gmra.mxu3 %vm1880_vm2, %v8532_v0 }
 0x155   :  { %v9163_v52 = vpop.f32.mrf.mxu0 }
 0x156   :  { %v2726_v56 = vadd.f32 %v9051_v54, %v9163_v52  ;;  %v8431_v52 = vld [vmem:[%s12606_s4 + $0x330] sm:$0xff] }
 0x158   :  { %8053 = vmatmul.msk.bf16.gmra.mxu0 %vm1880_vm2, %v8349_v51  ;;  %v9268_v51 = vpop.f32.mrf.mxu2 }
 0x159   :  { %12612 = vst [vmem:[#allocation10_spill] sm:$0xff] %v9268_v51 }
 0x15d   :  { %v9168_v55 = vpop.f32.mrf.mxu0 }
 0x15e   :  { %v2728_v47 = vadd.f32 %v9051_v54, %v9168_v55  ;;  %v2721_v55 = vadd.f32 %v9051_v54, %v9139_v44  ;;  %v9289_v44 = vpop.f32.mrf.mxu1  ;;  %8135 = vmatmul.msk.bf16.gmra.mxu1 %vm1880_vm2, %v8431_v52  ;;  %v8535_v52 = vld [vmem:[%s12606_s4 + $0x670] sm:$0xff] }
 0x165   :  { %v2730_v61 = vpop.f32.mrf.mxu0 }
 0x166   :  { %v2731_v41 = vadd.f32 %v9051_v54, %v2730_v61 }
 0x168   :  { %8054 = vmatmul.msk.bf16.gmra.mxu0 %vm1880_vm2, %v8350_v60  ;;  %v3971_v57 = vmax.f32 %v2731_v41, 0.0  ;;  %v3970_v60 = vmax.f32 %v2728_v47, 0.0  ;;  %v8433_v47 = vld [vmem:[%s12606_s4 + $0x340] sm:$0xff] }
 0x16d   :  { %v2732_v63 = vpop.f32.mrf.mxu0 }
 0x16e   :  { %v2733_v24 = vadd.f32 %v9051_v54, %v2732_v63  ;;  %v3969_v63 = vmax.f32 %v2726_v56, 0.0 }
 0x170   :  { %v3972_v48 = vmax.f32 %v2733_v24, 0.0 }
 0x175   :  { %v2735_v6 = vpop.f32.mrf.mxu0 }
 0x176   :  { %v2736_v34 = vadd.f32 %v9051_v54, %v2735_v6  ;;  %v2716_v6 = vadd.f32 %v9051_v54, %v9119_v37  ;;  %v2711_v37 = vadd.f32 %v9051_v54, %v9097_v29 }
 0x178   :  { %8055 = vmatmul.msk.bf16.gmra.mxu0 %vm1880_vm2, %v8351_v5  ;;  %v3973_v43 = vmax.f32 %v2736_v34, 0.0  ;;  %v9291_v5 = vpop.f32.mrf.mxu2  ;;  %8186 = vmatmul.msk.bf16.gmra.mxu2 %vm1880_vm2, %v8482_v46  ;;  %v8434_v46 = vld [vmem:[%s12606_s4 + $0x348] sm:$0xff] }
 0x179   :  { %12613 = vst [vmem:[#allocation11_spill] sm:$0xff] %v9291_v5 }
 0x17d   :  { %v2737_v9 = vpop.f32.mrf.mxu0 }
 0x17e   :  { %v2738_v27 = vadd.f32 %v9051_v54, %v2737_v9  ;;  %v3967_v9 = vmax.f32 %v2721_v55, 0.0 }
 0x180   :  { %v3974_v21 = vmax.f32 %v2738_v27, 0.0  ;;  %v3963_v27 = vmax.f32 %v2711_v37, 0.0 }
 0x185   :  { %v2740_v17 = vpop.f32.mrf.mxu0 }
 0x186   :  { %v2741_v23 = vadd.f32 %v9051_v54, %v2740_v17  ;;  %v2708_v17 = vadd.f32 %v9051_v54, %v9076_v12  ;;  %v8533_v12 = vld [vmem:[%s12606_s4 + $0x660] sm:$0xff] }
 0x187   :  { %8237 = vmatmul.msk.bf16.gmra.mxu3 %vm1880_vm2, %v8533_v12 }
 0x188   :  { %8056 = vmatmul.msk.bf16.gmra.mxu0 %vm1880_vm2, %v8352_v16  ;;  %v3975_v36 = vmax.f32 %v2741_v23, 0.0  ;;  %v3965_v16 = vmax.f32 %v2716_v6, 0.0  ;;  %v9312_v23 = vpop.f32.mrf.mxu2  ;;  %v3962_v29 = vmax.f32 %v2708_v17, 0.0  ;;  %v8435_v17 = vld [vmem:[%s12606_s4 + $0x350] sm:$0xff] }
 0x189   :  { %12614 = vst [vmem:[#allocation12_spill] sm:$0xff] %v9312_v23 }
 0x18d   :  { %v2742_v22 = vpop.f32.mrf.mxu0 }
 0x18e   :  { %v2743_v26 = vadd.f32 %v9051_v54, %v2742_v22  ;;  %v9310_v22 = vpop.f32.mrf.mxu1 }
 0x190   :  { %v3976_v28 = vmax.f32 %v2743_v26, 0.0  ;;  %v2706_v26 = vadd.f32 %v9051_v54, %v9069_v3  ;;  %v8483_v3 = vld [vmem:[%s12606_s4 + $0x4d0] sm:$0xff]  ;;  %v9329_v34 = vpop.f32.mrf.mxu2 }
 0x191   :  { %12615 = vst [vmem:[#allocation13_spill] sm:$0xff] %v9329_v34  ;;  %8187 = vmatmul.msk.bf16.gmra.mxu2 %vm1880_vm2, %v8483_v3 }
 0x192   :  { %4544 = vmatpush.msrb.mxu2 %v3976_v28  ;;  %v3961_v31 = vmax.f32 %v2706_v26, 0.0 }
 0x194   :  { %4545 = vmatpush.msrb.mxu2 %v3975_v36  ;;  %v8355_v36 = vld [vmem:[%s12606_s4 + $0xd0] sm:$0xff] }
 0x195   :  { %v9260_v40 = vpop.f32.mrf.mxu0 }
 0x196   :  { %4546 = vmatpush.msrb.mxu2 %v3974_v21  ;;  %v9327_v33 = vpop.f32.mrf.mxu1  ;;  %8136 = vmatmul.msk.bf16.gmra.mxu1 %vm1880_vm2, %v8432_v32 }
 0x198   :  { %8057 = vmatmul.msk.bf16.gmra.mxu0 %vm1880_vm2, %v8353_v20  ;;  %4547 = vmatpush.msrb.mxu2 %v3973_v43  ;;  %v9342_v20 = vpop.f32.mrf.mxu2  ;;  %v8534_v43 = vld [vmem:[%s12606_s4 + $0x668] sm:$0xff] }
 0x199   :  { %12616 = vst [vmem:[#allocation14_spill] sm:$0xff] %v9342_v20  ;;  %8238 = vmatmul.msk.bf16.gmra.mxu3 %vm1880_vm2, %v8534_v43  ;;  %v8436_v43 = vld [vmem:[%s12606_s4 + $0x358] sm:$0xff] }
 0x19a   :  { %4548 = vmatpush.msrb.mxu2 %v3972_v48  ;;  %v8484_v48 = vld [vmem:[%s12606_s4 + $0x4d8] sm:$0xff] }
 0x19c   :  { %4549 = vmatpush.msrb.mxu2 %v3971_v57 }
 0x19d   :  { %v9274_v61 = vpop.f32.mrf.mxu0 }
 0x19e   :  { %4550 = vmatpush.msrb.mxu2 %v3970_v60  ;;  %v9340_v21 = vpop.f32.mrf.mxu1 }
 0x1a0   :  { %4551 = vmatpush.msrb.mxu2 %v3969_v63  ;;  %v9357_v57 = vpop.f32.mrf.mxu2 }
 0x1a1   :  { %12617 = vst [vmem:[#allocation15_spill] sm:$0xff] %v9357_v57  ;;  %8188 = vmatmul.msk.bf16.gmra.mxu2 %vm1880_vm2, %v8484_v48 }
 0x1a2   :  { %4552 = vmatpush.msrb.mxu2 %v3968_v2 }
 0x1a4   :  { %4553 = vmatpush.msrb.mxu2 %v3967_v9  ;;  %v8357_v9 = vld [vmem:[%s12606_s4 + $0xe0] sm:$0xff] }
 0x1a5   :  { %v9303_v15 = vpop.f32.mrf.mxu0 }
 0x1a6   :  { %4554 = vmatpush.msrb.mxu2 %v3966_v11  ;;  %v9355_v56 = vpop.f32.mrf.mxu1  ;;  %8137 = vmatmul.msk.bf16.gmra.mxu1 %vm1880_vm2, %v8433_v47  ;;  %v8487_v47 = vld [vmem:[%s12606_s4 + $0x4f0] sm:$0xff] }
 0x1a8   :  { %8058 = vmatmul.msk.bf16.gmra.mxu0 %vm1880_vm2, %v8354_v14  ;;  %4555 = vmatpush.msrb.mxu2 %v3965_v16  ;;  %v9370_v63 = vpop.f32.mrf.mxu2  ;;  %v8536_v16 = vld [vmem:[%s12606_s4 + $0x678] sm:$0xff] }
 0x1a9   :  { %12618 = vst [vmem:[#allocation16_spill] sm:$0xff] %v9370_v63  ;;  %8239 = vmatmul.msk.bf16.gmra.mxu3 %vm1880_vm2, %v8535_v52  ;;  %v8359_v52 = vld [vmem:[%s12606_s4 + $0xf0] sm:$0xff] }
 0x1aa   :  { %4556 = vmatpush.msrb.mxu2 %v3964_v35  ;;  %v8486_v35 = vld [vmem:[%s12606_s4 + $0x4e8] sm:$0xff] }
 0x1ac   :  { %4557 = vmatpush.msrb.mxu2 %v3963_v27 }
 0x1ad   :  { %v9316_v28 = vpop.f32.mrf.mxu0 }
 0x1ae   :  { %4558 = vmatpush.msrb.mxu2 %v3962_v29  ;;  %v9368_v55 = vpop.f32.mrf.mxu1  ;;  %v8358_v29 = vld [vmem:[%s12606_s4 + $0xe8] sm:$0xff] }
 0x1b0   :  { %4559 = vmatpush.msrb.mxu2 %v3961_v31  ;;  %v9385_v6 = vpop.f32.mrf.mxu2 }
 0x1b1   :  { %12619 = vst [vmem:[#allocation17_spill] sm:$0xff] %v9385_v6  ;;  %8189 = vmatmul.msk.bf16.gmra.mxu2 %vm1880_vm2, %v8485_v1 }
 0x1b5   :  { %v9337_v24 = vpop.f32.mrf.mxu0 }
 0x1b6   :  { %v9383_v2 = vpop.f32.mrf.mxu1  ;;  %8138 = vmatmul.msk.bf16.gmra.mxu1 %vm1880_vm2, %v8434_v46 }
 0x1b8   :  { %8059 = vmatmul.msk.bf16.gmra.mxu0 %vm1880_vm2, %v8355_v36  ;;  %v9398_v14 = vpop.f32.mrf.mxu2  ;;  %v8537_v36 = vld [vmem:[%s12606_s4 + $0x680] sm:$0xff] }
 0x1b9   :  { %12620 = vst [vmem:[#allocation18_spill] sm:$0xff] %v9398_v14  ;;  %8240 = vmatmul.msk.bf16.gmra.mxu3 %vm1880_vm2, %v8536_v16  ;;  %v9474_v14 = vpop.f32.mrf.mxu3 }
 0x1ba   :  { %12630 = vst [vmem:[#allocation28_spill] sm:$0xff] %v9474_v14  ;;  %v8489_v14 = vld [vmem:[%s12606_s4 + $0x500] sm:$0xff] }
 0x1bd   :  { %v9344_v41 = vpop.f32.mrf.mxu0 }
 0x1be   :  { %v9396_v11 = vpop.f32.mrf.mxu1 }
 0x1c0   :  { %v9413_v27 = vpop.f32.mrf.mxu2 }
 0x1c1   :  { %12621 = vst [vmem:[#allocation19_spill] sm:$0xff] %v9413_v27  ;;  %8190 = vmatmul.msk.bf16.gmra.mxu2 %vm1880_vm2, %v8486_v35  ;;  %v8437_v35 = vld [vmem:[%s12606_s4 + $0x360] sm:$0xff] }
 0x1c5   :  { %v9365_v60 = vpop.f32.mrf.mxu0 }
 0x1c6   :  { %v9411_v26 = vpop.f32.mrf.mxu1  ;;  %8139 = vmatmul.msk.bf16.gmra.mxu1 %vm1880_vm2, %v8435_v17 }
 0x1c8   :  { %8060 = vmatmul.msk.bf16.gmra.mxu0 %vm1880_vm2, %v8356_v58  ;;  %v9424_v32 = vpop.f32.mrf.mxu2 }
 0x1c9   :  { %12622 = vst [vmem:[#allocation20_spill] sm:$0xff] %v9424_v32  ;;  %8241 = vmatmul.msk.bf16.gmra.mxu3 %vm1880_vm2, %v8537_v36  ;;  %v8488_v36 = vld [vmem:[%s12606_s4 + $0x4f8] sm:$0xff] }
 0x1cd   :  { %v9372_v0 = vpop.f32.mrf.mxu0 }
 0x1ce   :  { %v9422_v12 = vpop.f32.mrf.mxu1 }
 0x1d0   :  { %v9437_v58 = vpop.f32.mrf.mxu2 }
 0x1d1   :  { %12623 = vst [vmem:[#allocation21_spill] sm:$0xff] %v9437_v58  ;;  %8191 = vmatmul.msk.bf16.gmra.mxu2 %vm1880_vm2, %v8487_v47  ;;  %v8360_v47 = vld [vmem:[%s12606_s4 + $0xf8] sm:$0xff] }
 0x1d5   :  { %v9393_v39 = vpop.f32.mrf.mxu0 }
 0x1d6   :  { %v9435_v48 = vpop.f32.mrf.mxu1  ;;  %8140 = vmatmul.msk.bf16.gmra.mxu1 %vm1880_vm2, %v8436_v43  ;;  %v8538_v43 = vld [vmem:[%s12606_s4 + $0x688] sm:$0xff] }
 0x1d8   :  { %8061 = vmatmul.msk.bf16.gmra.mxu0 %vm1880_vm2, %v8357_v9  ;;  %v9448_v9 = vpop.f32.mrf.mxu2 }
 0x1d9   :  { %12625 = vst [vmem:[#allocation23_spill] sm:$0xff] %v9448_v9  ;;  %8242 = vmatmul.msk.bf16.gmra.mxu3 %vm1880_vm2, %v8538_v43 }
 0x1dd   :  { %v9400_v37 = vpop.f32.mrf.mxu0 }
 0x1de   :  { %v9446_v1 = vpop.f32.mrf.mxu1 }
 0x1df   :  { %12624 = vst [vmem:[#allocation22_spill] sm:$0xff] %v9446_v1 }
 0x1e5   :  { %v2770_v31 = vpop.f32.mrf.mxu0 }
 0x1e6   :  { %v9450_v17 = vpop.f32.mrf.mxu1  ;;  %8141 = vmatmul.msk.bf16.gmra.mxu1 %vm1880_vm2, %v8437_v35 }
 0x1e7   :  { %12626 = vst [vmem:[#allocation24_spill] sm:$0xff] %v9450_v17 }
 0x1e8   :  { %8062 = vmatmul.msk.bf16.gmra.mxu0 %vm1880_vm2, %v8358_v29  ;;  %v9455_v29 = vpop.f32.mrf.mxu2  ;;  %8192 = vmatmul.msk.bf16.gmra.mxu2 %vm1880_vm2, %v8488_v36 }
 0x1e9   :  { %12627 = vst [vmem:[#allocation25_spill] sm:$0xff] %v9455_v29  ;;  %v9489_v29 = vpop.f32.mrf.mxu3 }
 0x1ea   :  { %12633 = vst [vmem:[#allocation31_spill] sm:$0xff] %v9489_v29  ;;  %v8361_v29 = vld [vmem:[%s12606_s4 + $0x100] sm:$0xff] }
 0x1ed   :  { %v2772_v3 = vpop.f32.mrf.mxu0 }
 0x1ee   :  { %v9470_v63 = vpop.f32.mrf.mxu1 }
 0x1ef   :  { %12628 = vst [vmem:[#allocation26_spill] sm:$0xff] %v9470_v63 }
 0x1f0   :  { %v9472_v6 = vpop.f32.mrf.mxu2 }
 0x1f1   :  { %12629 = vst [vmem:[#allocation27_spill] sm:$0xff] %v9472_v6 }
 0x1f5   :  { %v2775_v46 = vpop.f32.mrf.mxu0 }
 0x1f6   :  { %v9479_v58 = vpop.f32.mrf.mxu1 }
 0x1f7   :  { %12631 = vst [vmem:[#allocation29_spill] sm:$0xff] %v9479_v58 }
 0x1f8   :  { %8063 = vmatmul.msk.bf16.gmra.mxu0 %vm1880_vm2, %v8359_v52  ;;  %v9484_v9 = vpop.f32.mrf.mxu2  ;;  %8193 = vmatmul.msk.bf16.gmra.mxu2 %vm1880_vm2, %v8489_v14 }
 0x1f9   :  { %12632 = vst [vmem:[#allocation30_spill] sm:$0xff] %v9484_v9 }
 0x1fd   :  { %v2777_v16 = vpop.f32.mrf.mxu0 }
 0x1fe   :  { %v2778_v36 = vadd.f32 %v9051_v54, %v2777_v16  ;;  %v2776_v16 = vadd.f32 %v9051_v54, %v2775_v46  ;;  %v2771_v46 = vadd.f32 %v9051_v54, %v2770_v31 }
 0x200   :  { %v3990_v6 = vmax.f32 %v2778_v36, 0.0  ;;  %v9510_v36 = vpop.f32.mrf.mxu2 }
 0x201   :  { %12635 = vst [vmem:[#allocation33_spill] sm:$0xff] %v9510_v36 }
 0x205   :  { %v2780_v52 = vpop.f32.mrf.mxu0 }
 0x206   :  { %v2781_v43 = vadd.f32 %v9051_v54, %v2780_v52 }
 0x208   :  { %8064 = vmatmul.msk.bf16.gmra.mxu0 %vm1880_vm2, %v8360_v47  ;;  %v8438_v47 = vld [vmem:[%s12606_s4 + $0x368] sm:$0xff]  ;;  %v3991_v52 = vmax.f32 %v2781_v43, 0.0  ;;  %v3989_v43 = vmax.f32 %v2776_v16, 0.0 }
 0x209   :  { %8142 = vmatmul.msk.bf16.gmra.mxu1 %vm1880_vm2, %v8438_v47  ;;  %v9512_v47 = vpop.f32.mrf.mxu3 }
 0x20a   :  { %12636 = vst [vmem:[#allocation34_spill] sm:$0xff] %v9512_v47 }
 0x20d   :  { %v2782_v27 = vpop.f32.mrf.mxu0 }
 0x20e   :  { %v2783_v35 = vadd.f32 %v9051_v54, %v2782_v27  ;;  %v8539_v27 = vld [vmem:[%s12606_s4 + $0x690] sm:$0xff] }
 0x20f   :  { %8243 = vmatmul.msk.bf16.gmra.mxu3 %vm1880_vm2, %v8539_v27  ;;  %v2766_v27 = vadd.f32 %v9051_v54, %v9393_v39 }
 0x210   :  { %v3992_v32 = vmax.f32 %v2783_v35, 0.0  ;;  %v2773_v35 = vadd.f32 %v9051_v54, %v2772_v3  ;;  %v9508_v3 = vpop.f32.mrf.mxu1 }
 0x211   :  { %12634 = vst [vmem:[#allocation32_spill] sm:$0xff] %v9508_v3  ;;  %v3985_v16 = vmax.f32 %v2766_v27, 0.0 }
 0x212   :  { %4567 = vmatpush.msrb.mxu3 %v3992_v32  ;;  %v2768_v32 = vadd.f32 %v9051_v54, %v9400_v37  ;;  %v3988_v14 = vmax.f32 %v2773_v35, 0.0  ;;  %v2758_v35 = vadd.f32 %v9051_v54, %v9344_v41  ;;  %v8540_v41 = vld [vmem:[%s12606_s4 + $0x698] sm:$0xff] }
 0x214   :  { %4568 = vmatpush.msrb.mxu3 %v3991_v52  ;;  %v3987_v52 = vmax.f32 %v2771_v46, 0.0  ;;  %v3986_v37 = vmax.f32 %v2768_v32, 0.0  ;;  %v9529_v46 = vpop.f32.mrf.mxu2  ;;  %v8490_v32 = vld [vmem:[%s12606_s4 + $0x508] sm:$0xff] }
 0x215   :  { %v9501_v9 = vpop.f32.mrf.mxu0  ;;  %12638 = vst [vmem:[#allocation36_spill] sm:$0xff] %v9529_v46  ;;  %8194 = vmatmul.msk.bf16.gmra.mxu2 %vm1880_vm2, %v8490_v32 }
 0x216   :  { %4569 = vmatpush.msrb.mxu3 %v3990_v6  ;;  %v2763_v6 = vadd.f32 %v9051_v54, %v9372_v0  ;;  %v8439_v0 = vld [vmem:[%s12606_s4 + $0x370] sm:$0xff] }
 0x218   :  { %8065 = vmatmul.msk.bf16.gmra.mxu0 %vm1880_vm2, %v8361_v29  ;;  %4570 = vmatpush.msrb.mxu3 %v3989_v43  ;;  %v2761_v29 = vadd.f32 %v9051_v54, %v9365_v60  ;;  %v3984_v43 = vmax.f32 %v2763_v6, 0.0  ;;  %v9524_v39 = vpop.f32.mrf.mxu1  ;;  %v9534_v60 = vpop.f32.mrf.mxu3  ;;  %v3982_v6 = vmax.f32 %v2758_v35, 0.0 }
 0x219   :  { %12637 = vst [vmem:[#allocation35_spill] sm:$0xff] %v9524_v39  ;;  %8143 = vmatmul.msk.bf16.gmra.mxu1 %vm1880_vm2, %v8439_v0 }
 0x21a   :  { %4571 = vmatpush.msrb.mxu3 %v3988_v14  ;;  %12639 = vst [vmem:[#allocation37_spill] sm:$0xff] %v9534_v60  ;;  %v2756_v14 = vadd.f32 %v9051_v54, %v9337_v24  ;;  %v3983_v27 = vmax.f32 %v2761_v29, 0.0  ;;  %v2751_v24 = vadd.f32 %v9051_v54, %v9303_v15 }
 0x21c   :  { %4572 = vmatpush.msrb.mxu3 %v3987_v52  ;;  %v2753_v52 = vadd.f32 %v9051_v54, %v9316_v28  ;;  %v3981_v29 = vmax.f32 %v2756_v14, 0.0  ;;  %v9558_v0 = vpop.f32.mrf.mxu2 }
 0x21d   :  { %v9518_v31 = vpop.f32.mrf.mxu0  ;;  %12641 = vst [vmem:[#allocation39_spill] sm:$0xff] %v9558_v0 }
 0x21e   :  { %4573 = vmatpush.msrb.mxu3 %v3986_v37  ;;  %v8362_v37 = vld [vmem:[%s12606_s4 + $0x108] sm:$0xff]  ;;  %v3980_v28 = vmax.f32 %v2753_v52, 0.0  ;;  %v8440_v52 = vld [vmem:[%s12606_s4 + $0x378] sm:$0xff] }
 0x21f   :  { %8244 = vmatmul.msk.bf16.gmra.mxu3 %vm1880_vm2, %v8540_v41  ;;  %v2746_v41 = vadd.f32 %v9051_v54, %v9260_v40  ;;  %v8491_v40 = vld [vmem:[%s12606_s4 + $0x510] sm:$0xff] }
 0x220   :  { %4574 = vmatpush.msrb.mxu3 %v3985_v16  ;;  %v9556_v35 = vpop.f32.mrf.mxu1  ;;  %v9560_v32 = vpop.f32.mrf.mxu3 }
 0x221   :  { %12640 = vst [vmem:[#allocation38_spill] sm:$0xff] %v9556_v35 }
 0x222   :  { %4575 = vmatpush.msrb.mxu3 %v3984_v43  ;;  %v2748_v43 = vadd.f32 %v9051_v54, %v9274_v61  ;;  %12642 = vst [vmem:[#allocation40_spill] sm:$0xff] %v9560_v32  ;;  %v3977_v61 = vmax.f32 %v2746_v41, 0.0 }
 0x224   :  { %4576 = vmatpush.msrb.mxu3 %v3983_v27  ;;  %v3979_v27 = vmax.f32 %v2751_v24, 0.0  ;;  %v3978_v15 = vmax.f32 %v2748_v43, 0.0  ;;  %v8363_v43 = vld [vmem:[%s12606_s4 + $0x110] sm:$0xff] }
 0x225   :  { %v9548_v16 = vpop.f32.mrf.mxu0 }
 0x226   :  { %4577 = vmatpush.msrb.mxu3 %v3982_v6 }
 0x228   :  { %8066 = vmatmul.msk.bf16.gmra.mxu0 %vm1880_vm2, %v8362_v37  ;;  %4578 = vmatpush.msrb.mxu3 %v3981_v29  ;;  %v9566_v6 = vpop.f32.mrf.mxu1  ;;  %v9571_v37 = vpop.f32.mrf.mxu2  ;;  %v8541_v29 = vld [vmem:[%s12606_s4 + $0x6a0] sm:$0xff] }
 0x229   :  { %12643 = vst [vmem:[#allocation41_spill] sm:$0xff] %v9566_v6  ;;  %v9576_v24 = vpop.f32.mrf.mxu3  ;;  %8144 = vmatmul.msk.bf16.gmra.mxu1 %vm1880_vm2, %v8440_v52  ;;  %8195 = vmatmul.msk.bf16.gmra.mxu2 %vm1880_vm2, %v8491_v40  ;;  %v8441_v40 = vld [vmem:[%s12606_s4 + $0x380] sm:$0xff] }
 0x22a   :  { %4579 = vmatpush.msrb.mxu3 %v3980_v28  ;;  %12644 = vst [vmem:[#allocation42_spill] sm:$0xff] %v9571_v37 }
 0x22b   :  { %12645 = vst [vmem:[#allocation43_spill] sm:$0xff] %v9576_v24  ;;  %v8542_v24 = vld [vmem:[%s12606_s4 + $0x6a8] sm:$0xff] }
 0x22c   :  { %4580 = vmatpush.msrb.mxu3 %v3979_v27 }
 0x22d   :  { %v9564_v14 = vpop.f32.mrf.mxu0 }
 0x22e   :  { %4581 = vmatpush.msrb.mxu3 %v3978_v15 }
 0x22f   :  { %8245 = vmatmul.msk.bf16.gmra.mxu3 %vm1880_vm2, %v8541_v29  ;;  %v8492_v29 = vld [vmem:[%s12606_s4 + $0x518] sm:$0xff] }
 0x230   :  { %4582 = vmatpush.msrb.mxu3 %v3977_v61  ;;  %v9590_v41 = vpop.f32.mrf.mxu1  ;;  %v9592_v27 = vpop.f32.mrf.mxu2 }
 0x231   :  { %12646 = vst [vmem:[#allocation44_spill] sm:$0xff] %v9590_v41  ;;  %v9594_v15 = vpop.f32.mrf.mxu3 }
 0x232   :  { %12647 = vst [vmem:[#allocation45_spill] sm:$0xff] %v9592_v27 }
 0x233   :  { %12648 = vst [vmem:[#allocation46_spill] sm:$0xff] %v9594_v15  ;;  %v8364_v15 = vld [vmem:[%s12606_s4 + $0x118] sm:$0xff] }
 0x235   :  { %v9586_v28 = vpop.f32.mrf.mxu0 }
 0x238   :  { %8067 = vmatmul.msk.bf16.gmra.mxu0 %vm1880_vm2, %v8363_v43  ;;  %v9598_v52 = vpop.f32.mrf.mxu1  ;;  %v9603_v32 = vpop.f32.mrf.mxu2 }
 0x239   :  { %12649 = vst [vmem:[#allocation47_spill] sm:$0xff] %v9598_v52  ;;  %v9608_v43 = vpop.f32.mrf.mxu3  ;;  %8145 = vmatmul.msk.bf16.gmra.mxu1 %vm1880_vm2, %v8441_v40  ;;  %8196 = vmatmul.msk.bf16.gmra.mxu2 %vm1880_vm2, %v8492_v29  ;;  %v8442_v29 = vld [vmem:[%s12606_s4 + $0x388] sm:$0xff] }
 0x23a   :  { %12650 = vst [vmem:[#allocation48_spill] sm:$0xff] %v9603_v32 }
 0x23b   :  { %12651 = vst [vmem:[#allocation49_spill] sm:$0xff] %v9608_v43 }
 0x23d   :  { %v9596_v61 = vpop.f32.mrf.mxu0 }
 0x23f   :  { %8246 = vmatmul.msk.bf16.gmra.mxu3 %vm1880_vm2, %v8542_v24  ;;  %v8493_v24 = vld [vmem:[%s12606_s4 + $0x520] sm:$0xff] }
 0x240   :  { %v9622_v60 = vpop.f32.mrf.mxu1  ;;  %v9624_v43 = vpop.f32.mrf.mxu2 }
 0x241   :  { %12652 = vst [vmem:[#allocation50_spill] sm:$0xff] %v9622_v60  ;;  %v9626_v36 = vpop.f32.mrf.mxu3 }
 0x242   :  { %12653 = vst [vmem:[#allocation51_spill] sm:$0xff] %v9624_v43  ;;  %v8365_v43 = vld [vmem:[%s12606_s4 + $0x120] sm:$0xff] }
 0x243   :  { %12654 = vst [vmem:[#allocation52_spill] sm:$0xff] %v9626_v36  ;;  %v8543_v36 = vld [vmem:[%s12606_s4 + $0x6b0] sm:$0xff] }
 0x245   :  { %v9618_v47 = vpop.f32.mrf.mxu0 }
 0x248   :  { %8068 = vmatmul.msk.bf16.gmra.mxu0 %vm1880_vm2, %v8364_v15  ;;  %v9630_v40 = vpop.f32.mrf.mxu1  ;;  %v9635_v0 = vpop.f32.mrf.mxu2 }
 0x249   :  { %12655 = vst [vmem:[#allocation53_spill] sm:$0xff] %v9630_v40  ;;  %v9640_v15 = vpop.f32.mrf.mxu3  ;;  %8146 = vmatmul.msk.bf16.gmra.mxu1 %vm1880_vm2, %v8442_v29  ;;  %8197 = vmatmul.msk.bf16.gmra.mxu2 %vm1880_vm2, %v8493_v24  ;;  %v8443_v24 = vld [vmem:[%s12606_s4 + $0x390] sm:$0xff] }
 0x24a   :  { %12656 = vst [vmem:[#allocation54_spill] sm:$0xff] %v9635_v0 }
 0x24b   :  { %12657 = vst [vmem:[#allocation55_spill] sm:$0xff] %v9640_v15 }
 0x24d   :  { %v9628_v46 = vpop.f32.mrf.mxu0 }
 0x24f   :  { %8247 = vmatmul.msk.bf16.gmra.mxu3 %vm1880_vm2, %v8543_v36  ;;  %v8494_v36 = vld [vmem:[%s12606_s4 + $0x528] sm:$0xff] }
 0x250   :  { %v9654_v0 = vpop.f32.mrf.mxu1  ;;  %v9656_v15 = vpop.f32.mrf.mxu2 }
 0x251   :  { %12658 = vst [vmem:[#allocation56_spill] sm:$0xff] %v9654_v0  ;;  %v9658_v27 = vpop.f32.mrf.mxu3 }
 0x252   :  { %12659 = vst [vmem:[#allocation57_spill] sm:$0xff] %v9656_v15  ;;  %v8366_v15 = vld [vmem:[%s12606_s4 + $0x128] sm:$0xff] }
 0x253   :  { %12660 = vst [vmem:[#allocation58_spill] sm:$0xff] %v9658_v27  ;;  %v8544_v27 = vld [vmem:[%s12606_s4 + $0x6b8] sm:$0xff] }
 0x255   :  { %v9650_v37 = vpop.f32.mrf.mxu0 }
 0x258   :  { %8069 = vmatmul.msk.bf16.gmra.mxu0 %vm1880_vm2, %v8365_v43  ;;  %v9662_v29 = vpop.f32.mrf.mxu1  ;;  %v9667_v1 = vpop.f32.mrf.mxu2 }
 0x259   :  { %12661 = vst [vmem:[#allocation59_spill] sm:$0xff] %v9662_v29  ;;  %v9672_v43 = vpop.f32.mrf.mxu3  ;;  %8147 = vmatmul.msk.bf16.gmra.mxu1 %vm1880_vm2, %v8443_v24  ;;  %8198 = vmatmul.msk.bf16.gmra.mxu2 %vm1880_vm2, %v8494_v36  ;;  %v8444_v24 = vld [vmem:[%s12606_s4 + $0x398] sm:$0xff] }
 0x25a   :  { %12662 = vst [vmem:[#allocation60_spill] sm:$0xff] %v9667_v1 }
 0x25b   :  { %12663 = vst [vmem:[#allocation61_spill] sm:$0xff] %v9672_v43 }
 0x25d   :  { %v9660_v32 = vpop.f32.mrf.mxu0 }
 0x25f   :  { %8248 = vmatmul.msk.bf16.gmra.mxu3 %vm1880_vm2, %v8544_v27  ;;  %v8495_v27 = vld [vmem:[%s12606_s4 + $0x530] sm:$0xff] }
 0x260   :  { %v9684_v1 = vpop.f32.mrf.mxu1  ;;  %v9686_v43 = vpop.f32.mrf.mxu2 }
 0x261   :  { %12664 = vst [vmem:[#allocation62_spill] sm:$0xff] %v9684_v1  ;;  %v9688_v63 = vpop.f32.mrf.mxu3 }
 0x262   :  { %12665 = vst [vmem:[#allocation63_spill] sm:$0xff] %v9686_v43  ;;  %v8545_v43 = vld [vmem:[%s12606_s4 + $0x6c0] sm:$0xff] }
 0x263   :  { %12666 = vst [vmem:[#allocation64_spill] sm:$0xff] %v9688_v63  ;;  %v8367_v63 = vld [vmem:[%s12606_s4 + $0x130] sm:$0xff] }
 0x265   :  { %v2810_v17 = vpop.f32.mrf.mxu0 }
 0x268   :  { %8070 = vmatmul.msk.bf16.gmra.mxu0 %vm1880_vm2, %v8366_v15  ;;  %v9690_v3 = vpop.f32.mrf.mxu1  ;;  %v9695_v36 = vpop.f32.mrf.mxu2 }
 0x269   :  { %12667 = vst [vmem:[#allocation65_spill] sm:$0xff] %v9690_v3  ;;  %v9700_v15 = vpop.f32.mrf.mxu3  ;;  %8148 = vmatmul.msk.bf16.gmra.mxu1 %vm1880_vm2, %v8444_v24  ;;  %8199 = vmatmul.msk.bf16.gmra.mxu2 %vm1880_vm2, %v8495_v27  ;;  %v8445_v24 = vld [vmem:[%s12606_s4 + $0x3a0] sm:$0xff]  ;;  %v8554_v3 = vld [vmem:[%s12606_s4 + $0x708] sm:$0xff] }
 0x26a   :  { %12668 = vst [vmem:[#allocation66_spill] sm:$0xff] %v9695_v36 }
 0x26b   :  { %12669 = vst [vmem:[#allocation67_spill] sm:$0xff] %v9700_v15 }
 0x26d   :  { %v2812_v58 = vpop.f32.mrf.mxu0 }
 0x26f   :  { %8249 = vmatmul.msk.bf16.gmra.mxu3 %vm1880_vm2, %v8545_v43  ;;  %v8496_v43 = vld [vmem:[%s12606_s4 + $0x538] sm:$0xff] }
 0x270   :  { %v9712_v36 = vpop.f32.mrf.mxu1  ;;  %v9714_v15 = vpop.f32.mrf.mxu2 }
 0x271   :  { %12670 = vst [vmem:[#allocation68_spill] sm:$0xff] %v9712_v36  ;;  %v9716_v35 = vpop.f32.mrf.mxu3 }
 0x272   :  { %12671 = vst [vmem:[#allocation69_spill] sm:$0xff] %v9714_v15  ;;  %v8546_v15 = vld [vmem:[%s12606_s4 + $0x6c8] sm:$0xff] }
 0x273   :  { %12672 = vst [vmem:[#allocation70_spill] sm:$0xff] %v9716_v35  ;;  %v8368_v35 = vld [vmem:[%s12606_s4 + $0x138] sm:$0xff] }
 0x275   :  { %v2815_v39 = vpop.f32.mrf.mxu0 }
 0x278   :  { %8071 = vmatmul.msk.bf16.gmra.mxu0 %vm1880_vm2, %v8367_v63  ;;  %v9718_v41 = vpop.f32.mrf.mxu1  ;;  %v9723_v27 = vpop.f32.mrf.mxu2 }
 0x279   :  { %12673 = vst [vmem:[#allocation71_spill] sm:$0xff] %v9718_v41  ;;  %v9728_v63 = vpop.f32.mrf.mxu3  ;;  %8149 = vmatmul.msk.bf16.gmra.mxu1 %vm1880_vm2, %v8445_v24  ;;  %8200 = vmatmul.msk.bf16.gmra.mxu2 %vm1880_vm2, %v8496_v43 }
 0x27a   :  { %12674 = vst [vmem:[#allocation72_spill] sm:$0xff] %v9723_v27 }
 0x27b   :  { %12675 = vst [vmem:[#allocation73_spill] sm:$0xff] %v9728_v63 }
 0x27d   :  { %v2817_v6 = vpop.f32.mrf.mxu0 }
 0x27e   :  { %v2818_v60 = vadd.f32 %v9051_v54, %v2817_v6  ;;  %v2816_v6 = vadd.f32 %v9051_v54, %v2815_v39  ;;  %v2811_v39 = vadd.f32 %v9051_v54, %v2810_v17  ;;  %v2803_v17 = vadd.f32 %v9051_v54, %v9628_v46 }
 0x27f   :  { %8250 = vmatmul.msk.bf16.gmra.mxu3 %vm1880_vm2, %v8546_v15 }
 0x280   :  { %v9740_v27 = vpop.f32.mrf.mxu1  ;;  %v9742_v63 = vpop.f32.mrf.mxu2 }
 0x281   :  { %12676 = vst [vmem:[#allocation74_spill] sm:$0xff] %v9740_v27  ;;  %v9744_v41 = vpop.f32.mrf.mxu3 }
 0x282   :  { %12677 = vst [vmem:[#allocation75_spill] sm:$0xff] %v9742_v63 }
 0x283   :  { %12678 = vst [vmem:[#allocation76_spill] sm:$0xff] %v9744_v41  ;;  %v8497_v41 = vld [vmem:[%s12606_s4 + $0x540] sm:$0xff] }
 0x285   :  { %v2820_v36 = vpop.f32.mrf.mxu0 }
 0x286   :  { %v2821_v24 = vadd.f32 %v9051_v54, %v2820_v36 }
 0x288   :  { %8072 = vmatmul.msk.bf16.gmra.mxu0 %vm1880_vm2, %v8368_v35  ;;  %v9749_v0 = vpop.f32.mrf.mxu1  ;;  %v8446_v35 = vld [vmem:[%s12606_s4 + $0x3a8] sm:$0xff]  ;;  %v9754_v15 = vpop.f32.mrf.mxu2  ;;  %v4007_v36 = vmax.f32 %v2821_v24, 0.0  ;;  %v4005_v24 = vmax.f32 %v2816_v6, 0.0 }
 0x289   :  { %12679 = vst [vmem:[#allocation77_spill] sm:$0xff] %v9749_v0  ;;  %v9759_v63 = vpop.f32.mrf.mxu3  ;;  %8150 = vmatmul.msk.bf16.gmra.mxu1 %vm1880_vm2, %v8446_v35  ;;  %8201 = vmatmul.msk.bf16.gmra.mxu2 %vm1880_vm2, %v8497_v41 }
 0x28a   :  { %12680 = vst [vmem:[#allocation78_spill] sm:$0xff] %v9754_v15  ;;  %v4006_v15 = vmax.f32 %v2818_v60, 0.0 }
 0x28b   :  { %12681 = vst [vmem:[#allocation79_spill] sm:$0xff] %v9759_v63  ;;  %v8369_v63 = vld [vmem:[%s12606_s4 + $0x140] sm:$0xff] }
 0x28d   :  { %v2822_v52 = vpop.f32.mrf.mxu0 }
 0x28e   :  { %v2823_v43 = vadd.f32 %v9051_v54, %v2822_v52  ;;  %v8547_v52 = vld [vmem:[%s12606_s4 + $0x6d0] sm:$0xff] }
 0x28f   :  { %8251 = vmatmul.msk.bf16.gmra.mxu3 %vm1880_vm2, %v8547_v52  ;;  %v2806_v52 = vadd.f32 %v9051_v54, %v9650_v37 }
 0x290   :  { %v4008_v40 = vmax.f32 %v2823_v43, 0.0  ;;  %v2813_v43 = vadd.f32 %v9051_v54, %v2812_v58  ;;  %v9778_v58 = vpop.f32.mrf.mxu1  ;;  %v9780_v60 = vpop.f32.mrf.mxu2 }
 0x291   :  { %12682 = vst [vmem:[#allocation80_spill] sm:$0xff] %v9778_v58  ;;  %v9782_v35 = vpop.f32.mrf.mxu3  ;;  %v4001_v6 = vmax.f32 %v2806_v52, 0.0  ;;  %v8551_v58 = vld [vmem:[%s12606_s4 + $0x6f0] sm:$0xff] }
 0x292   :  { %4590 = vmatpush.msra.mxu1 %v4008_v40  ;;  %v2808_v40 = vadd.f32 %v9051_v54, %v9660_v32  ;;  %v4004_v41 = vmax.f32 %v2813_v43, 0.0  ;;  %12683 = vst [vmem:[#allocation81_spill] sm:$0xff] %v9780_v60  ;;  %v9795_v43 = vld [vmem:[%s12607_s29] ss:$0 sm:$0xff]  ;;  %v8372_v60 = vld [vmem:[%s12606_s4 + $0x158] sm:$0xff] }
 0x293   :  { %12684 = vst [vmem:[#allocation82_spill] sm:$0xff] %v9782_v35  ;;  %v2798_v37 = vadd.f32 %v9795_v43, %v9596_v61  ;;  %v8548_v61 = vld [vmem:[%s12606_s4 + $0x6d8] sm:$0xff] }
 0x294   :  { %4591 = vmatpush.msra.mxu1 %v4007_v36  ;;  %v4003_v36 = vmax.f32 %v2811_v39, 0.0  ;;  %v4000_v39 = vmax.f32 %v2803_v17, 0.0 }
 0x295   :  { %v9771_v27 = vpop.f32.mrf.mxu0  ;;  %v3998_v17 = vmax.f32 %v2798_v37, 0.0 }
 0x296   :  { %4592 = vmatpush.msra.mxu1 %v4006_v15  ;;  %v4002_v15 = vmax.f32 %v2808_v40, 0.0 }
 0x298   :  { %8073 = vmatmul.msk.bf16.gmra.mxu0 %vm1880_vm2, %v8369_v63  ;;  %4593 = vmatpush.msra.mxu1 %v4005_v24  ;;  %v2801_v63 = vadd.f32 %v9051_v54, %v9618_v47  ;;  %v9799_v46 = vpop.f32.mrf.mxu1  ;;  %v8447_v24 = vld [vmem:[%s12606_s4 + $0x3b0] sm:$0xff]  ;;  %v9804_v40 = vpop.f32.mrf.mxu2  ;;  %v8498_v54 = vld [vmem:[%s12606_s4 + $0x548] sm:$0xff] }
 0x299   :  { %12685 = vst [vmem:[#allocation83_spill] sm:$0xff] %v9799_v46  ;;  %v9809_v47 = vpop.f32.mrf.mxu3  ;;  %8151 = vmatmul.msk.bf16.gmra.mxu1 %vm1880_vm2, %v8447_v24  ;;  %8202 = vmatmul.msk.bf16.gmra.mxu2 %vm1880_vm2, %v8498_v54  ;;  %v8373_v46 = vld [vmem:[%s12606_s4 + $0x160] sm:$0xff] }
 0x29a   :  { %4594 = vmatpush.msra.mxu1 %v4004_v41  ;;  %12686 = vst [vmem:[#allocation84_spill] sm:$0xff] %v9804_v40  ;;  %v2796_v41 = vadd.f32 %v9795_v43, %v9586_v28  ;;  %v3999_v52 = vmax.f32 %v2801_v63, 0.0  ;;  %v2791_v28 = vadd.f32 %v9795_v43, %v9548_v16 }
 0x29b   :  { %12687 = vst [vmem:[#allocation85_spill] sm:$0xff] %v9809_v47  ;;  %v8550_v47 = vld [vmem:[%s12606_s4 + $0x6e8] sm:$0xff] }
 0x29c   :  { %4595 = vmatpush.msra.mxu1 %v4003_v36  ;;  %v2793_v36 = vadd.f32 %v9795_v43, %v9564_v14  ;;  %v3997_v63 = vmax.f32 %v2796_v41, 0.0 }
 0x29d   :  { %v9788_v32 = vpop.f32.mrf.mxu0 }
 0x29e   :  { %4596 = vmatpush.msra.mxu1 %v4002_v15  ;;  %v8370_v15 = vld [vmem:[%s12606_s4 + $0x148] sm:$0xff]  ;;  %v3996_v24 = vmax.f32 %v2793_v36, 0.0 }
 0x29f   :  { %8252 = vmatmul.msk.bf16.gmra.mxu3 %vm1880_vm2, %v8548_v61  ;;  %v2786_v61 = vadd.f32 %v9795_v43, %v9501_v9  ;;  %v8499_v9 = vld [vmem:[%s12606_s4 + $0x550] sm:$0xff] }
 0x2a0   :  { %4597 = vmatpush.msra.mxu1 %v4001_v6  ;;  %v9831_v14 = vpop.f32.mrf.mxu1  ;;  %v9833_v37 = vpop.f32.mrf.mxu2 }
 0x2a1   :  { %12688 = vst [vmem:[#allocation86_spill] sm:$0xff] %v9831_v14  ;;  %v9835_v54 = vpop.f32.mrf.mxu3 }
 0x2a2   :  { %4598 = vmatpush.msra.mxu1 %v4000_v39  ;;  %v2788_v39 = vadd.f32 %v9795_v43, %v9518_v31  ;;  %12689 = vst [vmem:[#allocation87_spill] sm:$0xff] %v9833_v37  ;;  %v3993_v31 = vmax.f32 %v2786_v61, 0.0 }
 0x2a3   :  { %12690 = vst [vmem:[#allocation88_spill] sm:$0xff] %v9835_v54 }
 0x2a4   :  { %4599 = vmatpush.msra.mxu1 %v3999_v52  ;;  %v3995_v52 = vmax.f32 %v2791_v28, 0.0  ;;  %v3994_v16 = vmax.f32 %v2788_v39, 0.0  ;;  %v8371_v39 = vld [vmem:[%s12606_s4 + $0x150] sm:$0xff] }
 0x2a5   :  { %v9823_v6 = vpop.f32.mrf.mxu0 }
 0x2a6   :  { %4600 = vmatpush.msra.mxu1 %v3998_v17  ;;  %v8448_v17 = vld [vmem:[%s12606_s4 + $0x3b8] sm:$0xff] }
 0x2a8   :  { %8074 = vmatmul.msk.bf16.gmra.mxu0 %vm1880_vm2, %v8370_v15  ;;  %4601 = vmatpush.msra.mxu1 %v3997_v63  ;;  %v9841_v36 = vpop.f32.mrf.mxu1  ;;  %v9846_v15 = vpop.f32.mrf.mxu2  ;;  %v8549_v63 = vld [vmem:[%s12606_s4 + $0x6e0] sm:$0xff] }
 0x2a9   :  { %12691 = vst [vmem:[#allocation89_spill] sm:$0xff] %v9841_v36  ;;  %v9851_v28 = vpop.f32.mrf.mxu3  ;;  %8152 = vmatmul.msk.bf16.gmra.mxu1 %vm1880_vm2, %v8448_v17  ;;  %8203 = vmatmul.msk.bf16.gmra.mxu2 %vm1880_vm2, %v8499_v9  ;;  %v8449_v9 = vld [vmem:[%s12606_s4 + $0x3c0] sm:$0xff] }
 0x2aa   :  { %4602 = vmatpush.msra.mxu1 %v3996_v24  ;;  %12692 = vst [vmem:[#allocation90_spill] sm:$0xff] %v9846_v15 }
 0x2ab   :  { %12693 = vst [vmem:[#allocation91_spill] sm:$0xff] %v9851_v28  ;;  %v8374_v28 = vld [vmem:[%s12606_s4 + $0x168] sm:$0xff] }
 0x2ac   :  { %4603 = vmatpush.msra.mxu1 %v3995_v52 }
 0x2ad   :  { %v9839_v41 = vpop.f32.mrf.mxu0 }
 0x2ae   :  { %4604 = vmatpush.msra.mxu1 %v3994_v16 }
 0x2af   :  { %8253 = vmatmul.msk.bf16.gmra.mxu3 %vm1880_vm2, %v8549_v63  ;;  %v8500_v63 = vld [vmem:[%s12606_s4 + $0x558] sm:$0xff] }
 0x2b0   :  { %4605 = vmatpush.msra.mxu1 %v3993_v31  ;;  %v9865_v61 = vpop.f32.mrf.mxu1  ;;  %v9867_v52 = vpop.f32.mrf.mxu2 }
 0x2b1   :  { %12694 = vst [vmem:[#allocation92_spill] sm:$0xff] %v9865_v61  ;;  %v9869_v16 = vpop.f32.mrf.mxu3 }
 0x2b2   :  { %12695 = vst [vmem:[#allocation93_spill] sm:$0xff] %v9867_v52 }
 0x2b3   :  { %12696 = vst [vmem:[#allocation94_spill] sm:$0xff] %v9869_v16 }
 0x2b5   :  { %v9861_v24 = vpop.f32.mrf.mxu0 }
 0x2b8   :  { %8075 = vmatmul.msk.bf16.gmra.mxu0 %vm1880_vm2, %v8371_v39  ;;  %v9873_v17 = vpop.f32.mrf.mxu1  ;;  %v9878_v35 = vpop.f32.mrf.mxu2 }
 0x2b9   :  { %12697 = vst [vmem:[#allocation95_spill] sm:$0xff] %v9873_v17  ;;  %v9883_v39 = vpop.f32.mrf.mxu3  ;;  %8153 = vmatmul.msk.bf16.gmra.mxu1 %vm1880_vm2, %v8449_v9  ;;  %8204 = vmatmul.msk.bf16.gmra.mxu2 %vm1880_vm2, %v8500_v63  ;;  %v8450_v63 = vld [vmem:[%s12606_s4 + $0x3c8] sm:$0xff] }
 0x2ba   :  { %12698 = vst [vmem:[#allocation96_spill] sm:$0xff] %v9878_v35 }
 0x2bb   :  { %12699 = vst [vmem:[#allocation97_spill] sm:$0xff] %v9883_v39 }
 0x2bd   :  { %v9871_v31 = vpop.f32.mrf.mxu0 }
 0x2bf   :  { %8254 = vmatmul.msk.bf16.gmra.mxu3 %vm1880_vm2, %v8550_v47 }
 0x2c0   :  { %v9897_v37 = vpop.f32.mrf.mxu1  ;;  %v9899_v15 = vpop.f32.mrf.mxu2 }
 0x2c1   :  { %12700 = vst [vmem:[#allocation98_spill] sm:$0xff] %v9897_v37  ;;  %v9901_v52 = vpop.f32.mrf.mxu3 }
 0x2c2   :  { %12701 = vst [vmem:[#allocation99_spill] sm:$0xff] %v9899_v15 }
 0x2c3   :  { %12702 = vst [vmem:[#allocation100_spill] sm:$0xff] %v9901_v52 }
 0x2c5   :  { %v9893_v40 = vpop.f32.mrf.mxu0 }
 0x2c8   :  { %8076 = vmatmul.msk.bf16.gmra.mxu0 %vm1880_vm2, %v8372_v60  ;;  %v9905_v9 = vpop.f32.mrf.mxu1  ;;  %v9910_v0 = vpop.f32.mrf.mxu2  ;;  %v8501_v60 = vld [vmem:[%s12606_s4 + $0x560] sm:$0xff] }
 0x2c9   :  { %12703 = vst [vmem:[#allocation101_spill] sm:$0xff] %v9905_v9  ;;  %v9915_v47 = vpop.f32.mrf.mxu3  ;;  %8154 = vmatmul.msk.bf16.gmra.mxu1 %vm1880_vm2, %v8450_v63  ;;  %8205 = vmatmul.msk.bf16.gmra.mxu2 %vm1880_vm2, %v8501_v60  ;;  %v8451_v60 = vld [vmem:[%s12606_s4 + $0x3d0] sm:$0xff]  ;;  %v8552_v9 = vld [vmem:[%s12606_s4 + $0x6f8] sm:$0xff] }
 0x2ca   :  { %12704 = vst [vmem:[#allocation102_spill] sm:$0xff] %v9910_v0 }
 0x2cb   :  { %12705 = vst [vmem:[#allocation103_spill] sm:$0xff] %v9915_v47 }
 0x2cd   :  { %v9903_v35 = vpop.f32.mrf.mxu0 }
 0x2cf   :  { %8255 = vmatmul.msk.bf16.gmra.mxu3 %vm1880_vm2, %v8551_v58  ;;  %v8502_v58 = vld [vmem:[%s12606_s4 + $0x568] sm:$0xff] }
 0x2d0   :  { %v9929_v36 = vpop.f32.mrf.mxu1  ;;  %v9931_v61 = vpop.f32.mrf.mxu2 }
 0x2d1   :  { %12706 = vst [vmem:[#allocation104_spill] sm:$0xff] %v9929_v36  ;;  %v9933_v17 = vpop.f32.mrf.mxu3 }
 0x2d2   :  { %12707 = vst [vmem:[#allocation105_spill] sm:$0xff] %v9931_v61 }
 0x2d3   :  { %12708 = vst [vmem:[#allocation106_spill] sm:$0xff] %v9933_v17 }
 0x2d5   :  { %v9925_v14 = vpop.f32.mrf.mxu0 }
 0x2d8   :  { %8077 = vmatmul.msk.bf16.gmra.mxu0 %vm1880_vm2, %v8373_v46  ;;  %v9937_v63 = vpop.f32.mrf.mxu1  ;;  %v9942_v54 = vpop.f32.mrf.mxu2 }
 0x2d9   :  { %12709 = vst [vmem:[#allocation107_spill] sm:$0xff] %v9937_v63  ;;  %v9947_v46 = vpop.f32.mrf.mxu3  ;;  %8155 = vmatmul.msk.bf16.gmra.mxu1 %vm1880_vm2, %v8451_v60  ;;  %8206 = vmatmul.msk.bf16.gmra.mxu2 %vm1880_vm2, %v8502_v58  ;;  %v8452_v60 = vld [vmem:[%s12606_s4 + $0x3d8] sm:$0xff] }
 0x2da   :  { %12710 = vst [vmem:[#allocation108_spill] sm:$0xff] %v9942_v54 }
 0x2db   :  { %12711 = vst [vmem:[#allocation109_spill] sm:$0xff] %v9947_v46 }
 0x2dd   :  { %v9935_v37 = vpop.f32.mrf.mxu0 }
 0x2df   :  { %8256 = vmatmul.msk.bf16.gmra.mxu3 %vm1880_vm2, %v8552_v9  ;;  %v8503_v9 = vld [vmem:[%s12606_s4 + $0x570] sm:$0xff] }
 0x2e0   :  { %v9959_v16 = vpop.f32.mrf.mxu1  ;;  %v9961_v63 = vpop.f32.mrf.mxu2 }
 0x2e1   :  { %12712 = vst [vmem:[#allocation110_spill] sm:$0xff] %v9959_v16  ;;  %v9963_v39 = vpop.f32.mrf.mxu3  ;;  %v8553_v16 = vld [vmem:[%s12606_s4 + $0x700] sm:$0xff] }
 0x2e2   :  { %12713 = vst [vmem:[#allocation111_spill] sm:$0xff] %v9961_v63 }
 0x2e3   :  { %12714 = vst [vmem:[#allocation112_spill] sm:$0xff] %v9963_v39 }
 0x2e5   :  { %v2850_v36 = vpop.f32.mrf.mxu0 }
 0x2e8   :  { %8078 = vmatmul.msk.bf16.gmra.mxu0 %vm1880_vm2, %v8374_v28  ;;  %v9965_v47 = vpop.f32.mrf.mxu1  ;;  %v9970_v58 = vpop.f32.mrf.mxu2 }
 0x2e9   :  { %12715 = vst [vmem:[#allocation113_spill] sm:$0xff] %v9965_v47  ;;  %v9975_v28 = vpop.f32.mrf.mxu3  ;;  %8156 = vmatmul.msk.bf16.gmra.mxu1 %vm1880_vm2, %v8452_v60  ;;  %8207 = vmatmul.msk.bf16.gmra.mxu2 %vm1880_vm2, %v8503_v9  ;;  %v8375_v47 = vld [vmem:[%s12606_s4 + $0x170] sm:$0xff]  ;;  %v8453_v60 = vld [vmem:[%s12606_s4 + $0x3e0] sm:$0xff] }
 0x2ea   :  { %12716 = vst [vmem:[#allocation114_spill] sm:$0xff] %v9970_v58 }
 0x2eb   :  { %12717 = vst [vmem:[#allocation115_spill] sm:$0xff] %v9975_v28 }
 0x2ed   :  { %v2852_v52 = vpop.f32.mrf.mxu0 }
 0x2ef   :  { %8257 = vmatmul.msk.bf16.gmra.mxu3 %vm1880_vm2, %v8553_v16  ;;  %v8504_v16 = vld [vmem:[%s12606_s4 + $0x578] sm:$0xff] }
 0x2f0   :  { %v9987_v46 = vpop.f32.mrf.mxu1  ;;  %v9989_v39 = vpop.f32.mrf.mxu2 }
 0x2f1   :  { %12718 = vst [vmem:[#allocation116_spill] sm:$0xff] %v9987_v46  ;;  %v9991_v28 = vpop.f32.mrf.mxu3 }
 0x2f2   :  { %12719 = vst [vmem:[#allocation117_spill] sm:$0xff] %v9989_v39 }
 0x2f3   :  { %12720 = vst [vmem:[#allocation118_spill] sm:$0xff] %v9991_v28  ;;  %v8376_v28 = vld [vmem:[%s12606_s4 + $0x178] sm:$0xff] }
 0x2f5   :  { %v2855_v17 = vpop.f32.mrf.mxu0 }
 0x2f8   :  { %8079 = vmatmul.msk.bf16.gmra.mxu0 %vm1880_vm2, %v8375_v47  ;;  %v9993_v1 = vpop.f32.mrf.mxu1  ;;  %v9998_v9 = vpop.f32.mrf.mxu2 }
 0x2f9   :  { %12721 = vst [vmem:[#allocation119_spill] sm:$0xff] %v9993_v1  ;;  %v10003_v47 = vpop.f32.mrf.mxu3  ;;  %8157 = vmatmul.msk.bf16.gmra.mxu1 %vm1880_vm2, %v8453_v60  ;;  %8208 = vmatmul.msk.bf16.gmra.mxu2 %vm1880_vm2, %v8504_v16 }
 0x2fa   :  { %12722 = vst [vmem:[#allocation120_spill] sm:$0xff] %v9998_v9 }
 0x2fb   :  { %12723 = vst [vmem:[#allocation121_spill] sm:$0xff] %v10003_v47 }
 0x2fd   :  { %v2857_v29 = vpop.f32.mrf.mxu0 }
 0x2fe   :  { %v2858_v63 = vadd.f32 %v9795_v43, %v2857_v29  ;;  %v2856_v29 = vadd.f32 %v9795_v43, %v2855_v17  ;;  %v2851_v17 = vadd.f32 %v9795_v43, %v2850_v36  ;;  %v2843_v36 = vadd.f32 %v9795_v43, %v9903_v35  ;;  %v8455_v35 = vld [vmem:[%s12606_s4 + $0x3f0] sm:$0xff] }
 0x2ff   :  { %8258 = vmatmul.msk.bf16.gmra.mxu3 %vm1880_vm2, %v8554_v3  ;;  %v8454_v3 = vld [vmem:[%s12606_s4 + $0x3e8] sm:$0xff] }
 0x300   :  { %v10015_v0 = vpop.f32.mrf.mxu1  ;;  %v10017_v47 = vpop.f32.mrf.mxu2 }
 0x301   :  { %12724 = vst [vmem:[#allocation122_spill] sm:$0xff] %v10015_v0  ;;  %v10019_v61 = vpop.f32.mrf.mxu3 }
 0x302   :  { %12725 = vst [vmem:[#allocation123_spill] sm:$0xff] %v10017_v47  ;;  %v4022_v47 = vmax.f32 %v2858_v63, 0.0 }
 0x303   :  { %12726 = vst [vmem:[#allocation124_spill] sm:$0xff] %v10019_v61  ;;  %v8505_v61 = vld [vmem:[%s12606_s4 + $0x580] sm:$0xff] }
 0x305   :  { %v2860_v15 = vpop.f32.mrf.mxu0 }
 0x306   :  { %v2861_v60 = vadd.f32 %v9795_v43, %v2860_v15 }
 0x308   :  { %8080 = vmatmul.msk.bf16.gmra.mxu0 %vm1880_vm2, %v8376_v28  ;;  %v10024_v39 = vpop.f32.mrf.mxu1  ;;  %v10029_v28 = vpop.f32.mrf.mxu2  ;;  %v4023_v15 = vmax.f32 %v2861_v60, 0.0  ;;  %v4021_v60 = vmax.f32 %v2856_v29, 0.0 }
 0x309   :  { %12727 = vst [vmem:[#allocation125_spill] sm:$0xff] %v10029_v28  ;;  %v10034_v9 = vpop.f32.mrf.mxu3  ;;  %8158 = vmatmul.msk.bf16.gmra.mxu1 %vm1880_vm2, %v8454_v3  ;;  %8209 = vmatmul.msk.bf16.gmra.mxu2 %vm1880_vm2, %v8505_v61 }
 0x30a   :  { %12728 = vst [vmem:[#allocation126_spill] sm:$0xff] %v10034_v9  ;;  %v8377_v9 = vld [vmem:[%s12606_s4 + $0x180] sm:$0xff] }
 0x30d   :  { %v2862_v54 = vpop.f32.mrf.mxu0 }
 0x30e   :  { %v2863_v16 = vadd.f32 %v9795_v43, %v2862_v54  ;;  %v8555_v54 = vld [vmem:[%s12606_s4 + $0x710] sm:$0xff] }
 0x30f   :  { %8259 = vmatmul.msk.bf16.gmra.mxu3 %vm1880_vm2, %v8555_v54  ;;  %v2846_v54 = vadd.f32 %v9795_v43, %v9925_v14 }
 0x310   :  { %v4024_v58 = vmax.f32 %v2863_v16, 0.0  ;;  %v2853_v16 = vadd.f32 %v9795_v43, %v2852_v52  ;;  %v10053_v52 = vpop.f32.mrf.mxu1  ;;  %v10055_v63 = vpop.f32.mrf.mxu2 }
 0x311   :  { %12729 = vst [vmem:[#allocation127_spill] sm:$0xff] %v10055_v63  ;;  %v10057_v3 = vpop.f32.mrf.mxu3  ;;  %v4017_v29 = vmax.f32 %v2846_v54, 0.0 }
 0x312   :  { %4613 = vmatpush.msra.mxu2 %v4024_v58  ;;  %v2848_v58 = vadd.f32 %v9795_v43, %v9935_v37  ;;  %v4020_v61 = vmax.f32 %v2853_v16, 0.0  ;;  %12730 = vst [vmem:[#allocation128_spill] sm:$0xff] %v10057_v3  ;;  %v2838_v16 = vadd.f32 %v9795_v43, %v9871_v31  ;;  %v8556_v31 = vld [vmem:[%s12606_s4 + $0x718] sm:$0xff] }
 0x314   :  { %4614 = vmatpush.msra.mxu2 %v4023_v15  ;;  %v4019_v15 = vmax.f32 %v2851_v17, 0.0 }
 0x315   :  { %v10046_v28 = vpop.f32.mrf.mxu0 }
 0x316   :  { %4615 = vmatpush.msra.mxu2 %v4022_v47  ;;  %v4018_v47 = vmax.f32 %v2848_v58, 0.0  ;;  %v8506_v58 = vld [vmem:[%s12606_s4 + $0x588] sm:$0xff] }
 0x318   :  { %8081 = vmatmul.msk.bf16.gmra.mxu0 %vm1880_vm2, %v8377_v9  ;;  %4616 = vmatpush.msra.mxu2 %v4021_v60  ;;  %v2841_v9 = vadd.f32 %v9795_v43, %v9893_v40  ;;  %v4016_v60 = vmax.f32 %v2843_v36, 0.0  ;;  %v10069_v14 = vpop.f32.mrf.mxu1  ;;  %v10074_v17 = vpop.f32.mrf.mxu2  ;;  %v4014_v36 = vmax.f32 %v2838_v16, 0.0 }
 0x319   :  { %12731 = vst [vmem:[#allocation129_spill] sm:$0xff] %v10074_v17  ;;  %v10079_v40 = vpop.f32.mrf.mxu3  ;;  %8159 = vmatmul.msk.bf16.gmra.mxu1 %vm1880_vm2, %v8455_v35  ;;  %8210 = vmatmul.msk.bf16.gmra.mxu2 %vm1880_vm2, %v8506_v58 }
 0x31a   :  { %4617 = vmatpush.msra.mxu2 %v4020_v61  ;;  %12732 = vst [vmem:[#allocation130_spill] sm:$0xff] %v10079_v40  ;;  %v2836_v61 = vadd.f32 %v9795_v43, %v9861_v24  ;;  %v4015_v54 = vmax.f32 %v2841_v9, 0.0  ;;  %v2831_v24 = vadd.f32 %v9795_v43, %v9823_v6 }
 0x31c   :  { %4618 = vmatpush.msra.mxu2 %v4019_v15  ;;  %v2833_v15 = vadd.f32 %v9795_v43, %v9839_v41  ;;  %v4013_v9 = vmax.f32 %v2836_v61, 0.0 }
 0x31d   :  { %v10063_v37 = vpop.f32.mrf.mxu0 }
 0x31e   :  { %4619 = vmatpush.msra.mxu2 %v4018_v47  ;;  %v8378_v47 = vld [vmem:[%s12606_s4 + $0x188] sm:$0xff]  ;;  %v4012_v35 = vmax.f32 %v2833_v15, 0.0 }
 0x31f   :  { %8260 = vmatmul.msk.bf16.gmra.mxu3 %vm1880_vm2, %v8556_v31  ;;  %v2826_v31 = vadd.f32 %v9795_v43, %v9771_v27  ;;  %v8507_v27 = vld [vmem:[%s12606_s4 + $0x590] sm:$0xff] }
 0x320   :  { %4620 = vmatpush.msra.mxu2 %v4017_v29  ;;  %v10101_v41 = vpop.f32.mrf.mxu1  ;;  %v10103_v16 = vpop.f32.mrf.mxu2 }
 0x321   :  { %12733 = vst [vmem:[#allocation131_spill] sm:$0xff] %v10103_v16  ;;  %v10105_v58 = vpop.f32.mrf.mxu3 }
 0x322   :  { %4621 = vmatpush.msra.mxu2 %v4016_v60  ;;  %v2828_v60 = vadd.f32 %v9795_v43, %v9788_v32  ;;  %12734 = vst [vmem:[#allocation132_spill] sm:$0xff] %v10105_v58  ;;  %v4009_v32 = vmax.f32 %v2826_v31, 0.0 }
 0x324   :  { %4622 = vmatpush.msra.mxu2 %v4015_v54  ;;  %v4011_v54 = vmax.f32 %v2831_v24, 0.0  ;;  %v4010_v6 = vmax.f32 %v2828_v60, 0.0  ;;  %v8379_v60 = vld [vmem:[%s12606_s4 + $0x190] sm:$0xff] }
 0x325   :  { %v10093_v29 = vpop.f32.mrf.mxu0 }
 0x326   :  { %4623 = vmatpush.msra.mxu2 %v4014_v36  ;;  %v8456_v36 = vld [vmem:[%s12606_s4 + $0x3f8] sm:$0xff] }
 0x328   :  { %8082 = vmatmul.msk.bf16.gmra.mxu0 %vm1880_vm2, %v8378_v47  ;;  %4624 = vmatpush.msra.mxu2 %v4013_v9  ;;  %v10111_v15 = vpop.f32.mrf.mxu1  ;;  %v10116_v47 = vpop.f32.mrf.mxu2  ;;  %v8557_v9 = vld [vmem:[%s12606_s4 + $0x720] sm:$0xff] }
 0x329   :  { %12735 = vst [vmem:[#allocation133_spill] sm:$0xff] %v10116_v47  ;;  %v10121_v24 = vpop.f32.mrf.mxu3  ;;  %8160 = vmatmul.msk.bf16.gmra.mxu1 %vm1880_vm2, %v8456_v36  ;;  %8211 = vmatmul.msk.bf16.gmra.mxu2 %vm1880_vm2, %v8507_v27  ;;  %v8457_v27 = vld [vmem:[%s12606_s4 + $0x400] sm:$0xff] }
 0x32a   :  { %4625 = vmatpush.msra.mxu2 %v4012_v35  ;;  %12736 = vst [vmem:[#allocation134_spill] sm:$0xff] %v10121_v24  ;;  %v8558_v24 = vld [vmem:[%s12606_s4 + $0x728] sm:$0xff] }
 0x32c   :  { %4626 = vmatpush.msra.mxu2 %v4011_v54 }
 0x32d   :  { %v10109_v61 = vpop.f32.mrf.mxu0 }
 0x32e   :  { %4627 = vmatpush.msra.mxu2 %v4010_v6 }
 0x32f   :  { %8261 = vmatmul.msk.bf16.gmra.mxu3 %vm1880_vm2, %v8557_v9  ;;  %v8508_v9 = vld [vmem:[%s12606_s4 + $0x598] sm:$0xff] }
 0x330   :  { %4628 = vmatpush.msra.mxu2 %v4009_v32  ;;  %v10135_v31 = vpop.f32.mrf.mxu1  ;;  %v10137_v54 = vpop.f32.mrf.mxu2 }
 0x331   :  { %12737 = vst [vmem:[#allocation135_spill] sm:$0xff] %v10137_v54  ;;  %v10139_v6 = vpop.f32.mrf.mxu3 }
 0x332   :  { %12738 = vst [vmem:[#allocation136_spill] sm:$0xff] %v10139_v6  ;;  %v8380_v6 = vld [vmem:[%s12606_s4 + $0x198] sm:$0xff] }
 0x335   :  { %v10131_v35 = vpop.f32.mrf.mxu0 }
 0x338   :  { %8083 = vmatmul.msk.bf16.gmra.mxu0 %vm1880_vm2, %v8379_v60  ;;  %v10143_v36 = vpop.f32.mrf.mxu1  ;;  %v10148_v58 = vpop.f32.mrf.mxu2 }
 0x339   :  { %12739 = vst [vmem:[#allocation137_spill] sm:$0xff] %v10148_v58  ;;  %v10153_v60 = vpop.f32.mrf.mxu3  ;;  %8161 = vmatmul.msk.bf16.gmra.mxu1 %vm1880_vm2, %v8457_v27  ;;  %8212 = vmatmul.msk.bf16.gmra.mxu2 %vm1880_vm2, %v8508_v9  ;;  %v8458_v9 = vld [vmem:[%s12606_s4 + $0x408] sm:$0xff] }
 0x33a   :  { %12740 = vst [vmem:[#allocation138_spill] sm:$0xff] %v10153_v60 }
 0x33d   :  { %v10141_v32 = vpop.f32.mrf.mxu0 }
 0x33f   :  { %8262 = vmatmul.msk.bf16.gmra.mxu3 %vm1880_vm2, %v8558_v24  ;;  %v8509_v24 = vld [vmem:[%s12606_s4 + $0x5a0] sm:$0xff] }
 0x340   :  { %v10167_v40 = vpop.f32.mrf.mxu1  ;;  %v10169_v60 = vpop.f32.mrf.mxu2 }
 0x341   :  { %12741 = vst [vmem:[#allocation139_spill] sm:$0xff] %v10169_v60  ;;  %v10171_v63 = vpop.f32.mrf.mxu3  ;;  %v8381_v60 = vld [vmem:[%s12606_s4 + $0x1a0] sm:$0xff] }
 0x342   :  { %12742 = vst [vmem:[#allocation140_spill] sm:$0xff] %v10171_v63  ;;  %v8559_v63 = vld [vmem:[%s12606_s4 + $0x730] sm:$0xff] }
 0x345   :  { %v10163_v3 = vpop.f32.mrf.mxu0 }
 0x348   :  { %8084 = vmatmul.msk.bf16.gmra.mxu0 %vm1880_vm2, %v8380_v6  ;;  %v10175_v27 = vpop.f32.mrf.mxu1  ;;  %v10180_v16 = vpop.f32.mrf.mxu2 }
 0x349   :  { %12743 = vst [vmem:[#allocation141_spill] sm:$0xff] %v10180_v16  ;;  %v10185_v6 = vpop.f32.mrf.mxu3  ;;  %8162 = vmatmul.msk.bf16.gmra.mxu1 %vm1880_vm2, %v8458_v9  ;;  %8213 = vmatmul.msk.bf16.gmra.mxu2 %vm1880_vm2, %v8509_v24  ;;  %v8459_v24 = vld [vmem:[%s12606_s4 + $0x410] sm:$0xff] }
 0x34a   :  { %12744 = vst [vmem:[#allocation142_spill] sm:$0xff] %v10185_v6 }
 0x34d   :  { %v10173_v17 = vpop.f32.mrf.mxu0 }
 0x34f   :  { %8263 = vmatmul.msk.bf16.gmra.mxu3 %vm1880_vm2, %v8559_v63  ;;  %v8510_v63 = vld [vmem:[%s12606_s4 + $0x5a8] sm:$0xff] }
 0x350   :  { %v10199_v16 = vpop.f32.mrf.mxu1  ;;  %v10201_v6 = vpop.f32.mrf.mxu2 }
 0x351   :  { %12745 = vst [vmem:[#allocation143_spill] sm:$0xff] %v10201_v6  ;;  %v10203_v54 = vpop.f32.mrf.mxu3  ;;  %v8382_v6 = vld [vmem:[%s12606_s4 + $0x1a8] sm:$0xff] }
 0x352   :  { %12746 = vst [vmem:[#allocation144_spill] sm:$0xff] %v10203_v54  ;;  %v8560_v54 = vld [vmem:[%s12606_s4 + $0x738] sm:$0xff] }
 0x355   :  { %v10195_v47 = vpop.f32.mrf.mxu0 }
 0x358   :  { %8085 = vmatmul.msk.bf16.gmra.mxu0 %vm1880_vm2, %v8381_v60  ;;  %v10207_v9 = vpop.f32.mrf.mxu1  ;;  %v10212_v8 = vpop.f32.mrf.mxu2 }
 0x359   :  { %12747 = vst [vmem:[#allocation145_spill] sm:$0xff] %v10212_v8  ;;  %v10217_v60 = vpop.f32.mrf.mxu3  ;;  %8163 = vmatmul.msk.bf16.gmra.mxu1 %vm1880_vm2, %v8459_v24  ;;  %8214 = vmatmul.msk.bf16.gmra.mxu2 %vm1880_vm2, %v8510_v63  ;;  %v8460_v24 = vld [vmem:[%s12606_s4 + $0x418] sm:$0xff] }
 0x35a   :  { %12748 = vst [vmem:[#allocation146_spill] sm:$0xff] %v10217_v60 }
 0x35d   :  { %v10205_v58 = vpop.f32.mrf.mxu0 }
 0x35f   :  { %8264 = vmatmul.msk.bf16.gmra.mxu3 %vm1880_vm2, %v8560_v54  ;;  %v8511_v54 = vld [vmem:[%s12606_s4 + $0x5b0] sm:$0xff] }
 0x360   :  { %v10229_v8 = vpop.f32.mrf.mxu1  ;;  %v10231_v60 = vpop.f32.mrf.mxu2 }
 0x361   :  { %12749 = vst [vmem:[#allocation147_spill] sm:$0xff] %v10231_v60  ;;  %v10233_v19 = vpop.f32.mrf.mxu3  ;;  %v8561_v60 = vld [vmem:[%s12606_s4 + $0x740] sm:$0xff] }
 0x362   :  { %12750 = vst [vmem:[#allocation148_spill] sm:$0xff] %v10233_v19  ;;  %v8383_v19 = vld [vmem:[%s12606_s4 + $0x1b0] sm:$0xff] }
 0x365   :  { %v2890_v13 = vpop.f32.mrf.mxu0 }
 0x368   :  { %8086 = vmatmul.msk.bf16.gmra.mxu0 %vm1880_vm2, %v8382_v6  ;;  %v10235_v51 = vpop.f32.mrf.mxu1  ;;  %v10240_v63 = vpop.f32.mrf.mxu2 }
 0x369   :  { %12751 = vst [vmem:[#allocation149_spill] sm:$0xff] %v10240_v63  ;;  %v10245_v6 = vpop.f32.mrf.mxu3  ;;  %8164 = vmatmul.msk.bf16.gmra.mxu1 %vm1880_vm2, %v8460_v24  ;;  %8215 = vmatmul.msk.bf16.gmra.mxu2 %vm1880_vm2, %v8511_v54  ;;  %v8461_v24 = vld [vmem:[%s12606_s4 + $0x420] sm:$0xff] }
 0x36a   :  { %12752 = vst [vmem:[#allocation150_spill] sm:$0xff] %v10245_v6 }
 0x36d   :  { %v2892_v25 = vpop.f32.mrf.mxu0 }
 0x36f   :  { %8265 = vmatmul.msk.bf16.gmra.mxu3 %vm1880_vm2, %v8561_v60  ;;  %v8512_v60 = vld [vmem:[%s12606_s4 + $0x5b8] sm:$0xff] }
 0x370   :  { %v10257_v63 = vpop.f32.mrf.mxu1  ;;  %v10259_v6 = vpop.f32.mrf.mxu2 }
 0x371   :  { %12753 = vst [vmem:[#allocation151_spill] sm:$0xff] %v10257_v63  ;;  %v10261_v23 = vpop.f32.mrf.mxu3 }
 0x372   :  { %12754 = vst [vmem:[#allocation152_spill] sm:$0xff] %v10259_v6  ;;  %v8562_v6 = vld [vmem:[%s12606_s4 + $0x748] sm:$0xff] }
 0x373   :  { %12755 = vst [vmem:[#allocation153_spill] sm:$0xff] %v10261_v23  ;;  %v8384_v23 = vld [vmem:[%s12606_s4 + $0x1b8] sm:$0xff] }
 0x375   :  { %v2895_v5 = vpop.f32.mrf.mxu0 }
 0x378   :  { %8087 = vmatmul.msk.bf16.gmra.mxu0 %vm1880_vm2, %v8383_v19  ;;  %v10263_v20 = vpop.f32.mrf.mxu1  ;;  %v10268_v54 = vpop.f32.mrf.mxu2 }
 0x379   :  { %12756 = vst [vmem:[#allocation154_spill] sm:$0xff] %v10263_v20  ;;  %v10273_v19 = vpop.f32.mrf.mxu3  ;;  %8165 = vmatmul.msk.bf16.gmra.mxu1 %vm1880_vm2, %v8461_v24  ;;  %8216 = vmatmul.msk.bf16.gmra.mxu2 %vm1880_vm2, %v8512_v60 }
 0x37a   :  { %12757 = vst [vmem:[#allocation155_spill] sm:$0xff] %v10268_v54 }
 0x37b   :  { %12758 = vst [vmem:[#allocation156_spill] sm:$0xff] %v10273_v19 }
 0x37d   :  { %v2897_v34 = vpop.f32.mrf.mxu0 }
 0x37e   :  { %v2898_v46 = vadd.f32 %v9795_v43, %v2897_v34  ;;  %v2896_v34 = vadd.f32 %v9795_v43, %v2895_v5  ;;  %v2891_v5 = vadd.f32 %v9795_v43, %v2890_v13  ;;  %v2883_v13 = vadd.f32 %v9795_v43, %v10173_v17  ;;  %v8463_v17 = vld [vmem:[%s12606_s4 + $0x430] sm:$0xff] }
 0x37f   :  { %8266 = vmatmul.msk.bf16.gmra.mxu3 %vm1880_vm2, %v8562_v6 }
 0x380   :  { %v10285_v54 = vpop.f32.mrf.mxu1  ;;  %v10287_v19 = vpop.f32.mrf.mxu2 }
 0x381   :  { %12759 = vst [vmem:[#allocation157_spill] sm:$0xff] %v10285_v54  ;;  %v10289_v20 = vpop.f32.mrf.mxu3 }
 0x382   :  { %12760 = vst [vmem:[#allocation158_spill] sm:$0xff] %v10287_v19 }
 0x383   :  { %12761 = vst [vmem:[#allocation159_spill] sm:$0xff] %v10289_v20  ;;  %v8513_v20 = vld [vmem:[%s12606_s4 + $0x5c0] sm:$0xff] }
 0x385   :  { %v2900_v63 = vpop.f32.mrf.mxu0 }
 0x386   :  { %v2901_v24 = vadd.f32 %v9795_v43, %v2900_v63 }
 0x388   :  { %8088 = vmatmul.msk.bf16.gmra.mxu0 %vm1880_vm2, %v8384_v23  ;;  %v10294_v0 = vpop.f32.mrf.mxu1  ;;  %v8462_v23 = vld [vmem:[%s12606_s4 + $0x428] sm:$0xff]  ;;  %v10299_v6 = vpop.f32.mrf.mxu2  ;;  %v4039_v63 = vmax.f32 %v2901_v24, 0.0  ;;  %v4037_v24 = vmax.f32 %v2896_v34, 0.0 }
 0x389   :  { %12762 = vst [vmem:[#allocation160_spill] sm:$0xff] %v10294_v0  ;;  %v10304_v19 = vpop.f32.mrf.mxu3  ;;  %8166 = vmatmul.msk.bf16.gmra.mxu1 %vm1880_vm2, %v8462_v23  ;;  %8217 = vmatmul.msk.bf16.gmra.mxu2 %vm1880_vm2, %v8513_v20 }
 0x38a   :  { %12763 = vst [vmem:[#allocation161_spill] sm:$0xff] %v10299_v6  ;;  %v4038_v6 = vmax.f32 %v2898_v46, 0.0 }
 0x38b   :  { %12764 = vst [vmem:[#allocation162_spill] sm:$0xff] %v10304_v19  ;;  %v8385_v19 = vld [vmem:[%s12606_s4 + $0x1c0] sm:$0xff] }
 0x38d   :  { %v2902_v57 = vpop.f32.mrf.mxu0 }
 0x38e   :  { %v2903_v60 = vadd.f32 %v9795_v43, %v2902_v57  ;;  %v8563_v57 = vld [vmem:[%s12606_s4 + $0x750] sm:$0xff] }
 0x38f   :  { %8267 = vmatmul.msk.bf16.gmra.mxu3 %vm1880_vm2, %v8563_v57  ;;  %v2886_v57 = vadd.f32 %v9795_v43, %v10195_v47 }
 0x390   :  { %v4040_v1 = vmax.f32 %v2903_v60, 0.0  ;;  %v2893_v60 = vadd.f32 %v9795_v43, %v2892_v25  ;;  %v10323_v25 = vpop.f32.mrf.mxu1  ;;  %v10325_v46 = vpop.f32.mrf.mxu2 }
 0x391   :  { %12765 = vst [vmem:[#allocation163_spill] sm:$0xff] %v10323_v25  ;;  %v10327_v23 = vpop.f32.mrf.mxu3  ;;  %v4033_v34 = vmax.f32 %v2886_v57, 0.0 }
 0x392   :  { %4636 = vmatpush.msra.mxu3 %v4040_v1  ;;  %v2888_v1 = vadd.f32 %v9795_v43, %v10205_v58  ;;  %v4036_v20 = vmax.f32 %v2893_v60, 0.0  ;;  %12766 = vst [vmem:[#allocation164_spill] sm:$0xff] %v10325_v46  ;;  %v2878_v60 = vadd.f32 %v9795_v43, %v10141_v32  ;;  %v8564_v32 = vld [vmem:[%s12606_s4 + $0x758] sm:$0xff] }
 0x393   :  { %12767 = vst [vmem:[#allocation165_spill] sm:$0xff] %v10327_v23 }
 0x394   :  { %4637 = vmatpush.msra.mxu3 %v4039_v63  ;;  %v4035_v63 = vmax.f32 %v2891_v5, 0.0 }
 0x395   :  { %v10316_v54 = vpop.f32.mrf.mxu0 }
 0x396   :  { %4638 = vmatpush.msra.mxu3 %v4038_v6  ;;  %v4034_v6 = vmax.f32 %v2888_v1, 0.0  ;;  %v8514_v1 = vld [vmem:[%s12606_s4 + $0x5c8] sm:$0xff] }
 0x398   :  { %8089 = vmatmul.msk.bf16.gmra.mxu0 %vm1880_vm2, %v8385_v19  ;;  %4639 = vmatpush.msra.mxu3 %v4037_v24  ;;  %v2881_v19 = vadd.f32 %v9795_v43, %v10163_v3  ;;  %v4032_v24 = vmax.f32 %v2883_v13, 0.0  ;;  %v10339_v47 = vpop.f32.mrf.mxu1  ;;  %v10344_v5 = vpop.f32.mrf.mxu2  ;;  %v4030_v13 = vmax.f32 %v2878_v60, 0.0 }
 0x399   :  { %12768 = vst [vmem:[#allocation166_spill] sm:$0xff] %v10339_v47  ;;  %v10349_v3 = vpop.f32.mrf.mxu3  ;;  %8167 = vmatmul.msk.bf16.gmra.mxu1 %vm1880_vm2, %v8463_v17  ;;  %8218 = vmatmul.msk.bf16.gmra.mxu2 %vm1880_vm2, %v8514_v1 }
 0x39a   :  { %4640 = vmatpush.msra.mxu3 %v4036_v20  ;;  %12769 = vst [vmem:[#allocation167_spill] sm:$0xff] %v10344_v5  ;;  %v2876_v20 = vadd.f32 %v9795_v43, %v10131_v35  ;;  %v4031_v57 = vmax.f32 %v2881_v19, 0.0  ;;  %v2871_v35 = vadd.f32 %v9795_v43, %v10093_v29 }
 0x39b   :  { %12770 = vst [vmem:[#allocation168_spill] sm:$0xff] %v10349_v3 }
 0x39c   :  { %4641 = vmatpush.msra.mxu3 %v4035_v63  ;;  %v2873_v63 = vadd.f32 %v9795_v43, %v10109_v61  ;;  %v4029_v19 = vmax.f32 %v2876_v20, 0.0 }
 0x39d   :  { %v10333_v58 = vpop.f32.mrf.mxu0 }
 0x39e   :  { %4642 = vmatpush.msra.mxu3 %v4034_v6  ;;  %v8386_v6 = vld [vmem:[%s12606_s4 + $0x1c8] sm:$0xff]  ;;  %v4028_v17 = vmax.f32 %v2873_v63, 0.0 }
 0x39f   :  { %8268 = vmatmul.msk.bf16.gmra.mxu3 %vm1880_vm2, %v8564_v32  ;;  %v2866_v32 = vadd.f32 %v9795_v43, %v10046_v28  ;;  %v8515_v28 = vld [vmem:[%s12606_s4 + $0x5d0] sm:$0xff] }
 0x3a0   :  { %4643 = vmatpush.msra.mxu3 %v4033_v34  ;;  %v10371_v61 = vpop.f32.mrf.mxu1  ;;  %v10373_v60 = vpop.f32.mrf.mxu2 }
 0x3a1   :  { %12771 = vst [vmem:[#allocation169_spill] sm:$0xff] %v10371_v61  ;;  %v10375_v1 = vpop.f32.mrf.mxu3 }
 0x3a2   :  { %4644 = vmatpush.msra.mxu3 %v4032_v24  ;;  %v2868_v24 = vadd.f32 %v9795_v43, %v10063_v37  ;;  %12772 = vst [vmem:[#allocation170_spill] sm:$0xff] %v10373_v60  ;;  %v4025_v37 = vmax.f32 %v2866_v32, 0.0 }
 0x3a3   :  { %12773 = vst [vmem:[#allocation171_spill] sm:$0xff] %v10375_v1 }
 0x3a4   :  { %4645 = vmatpush.msra.mxu3 %v4031_v57  ;;  %v4027_v57 = vmax.f32 %v2871_v35, 0.0  ;;  %v4026_v29 = vmax.f32 %v2868_v24, 0.0  ;;  %v8387_v24 = vld [vmem:[%s12606_s4 + $0x1d0] sm:$0xff] }
 0x3a5   :  { %v10363_v34 = vpop.f32.mrf.mxu0 }
 0x3a6   :  { %4646 = vmatpush.msra.mxu3 %v4030_v13  ;;  %v8464_v13 = vld [vmem:[%s12606_s4 + $0x438] sm:$0xff] }
 0x3a8   :  { %8090 = vmatmul.msk.bf16.gmra.mxu0 %vm1880_vm2, %v8386_v6  ;;  %4647 = vmatpush.msra.mxu3 %v4029_v19  ;;  %v10381_v63 = vpop.f32.mrf.mxu1  ;;  %v10386_v6 = vpop.f32.mrf.mxu2  ;;  %v8565_v19 = vld [vmem:[%s12606_s4 + $0x760] sm:$0xff] }
 0x3a9   :  { %12774 = vst [vmem:[#allocation172_spill] sm:$0xff] %v10381_v63  ;;  %v10391_v35 = vpop.f32.mrf.mxu3  ;;  %8168 = vmatmul.msk.bf16.gmra.mxu1 %vm1880_vm2, %v8464_v13  ;;  %8219 = vmatmul.msk.bf16.gmra.mxu2 %vm1880_vm2, %v8515_v28  ;;  %v8465_v28 = vld [vmem:[%s12606_s4 + $0x440] sm:$0xff] }
 0x3aa   :  { %4648 = vmatpush.msra.mxu3 %v4028_v17  ;;  %12775 = vst [vmem:[#allocation173_spill] sm:$0xff] %v10386_v6 }
 0x3ab   :  { %12776 = vst [vmem:[#allocation174_spill] sm:$0xff] %v10391_v35  ;;  %v8566_v35 = vld [vmem:[%s12606_s4 + $0x768] sm:$0xff] }
 0x3ac   :  { %4649 = vmatpush.msra.mxu3 %v4027_v57 }
 0x3ad   :  { %v10379_v20 = vpop.f32.mrf.mxu0 }
 0x3ae   :  { %4650 = vmatpush.msra.mxu3 %v4026_v29 }
 0x3af   :  { %8269 = vmatmul.msk.bf16.gmra.mxu3 %vm1880_vm2, %v8565_v19  ;;  %v8516_v19 = vld [vmem:[%s12606_s4 + $0x5d8] sm:$0xff] }
 0x3b0   :  { %4651 = vmatpush.msra.mxu3 %v4025_v37  ;;  %v10405_v32 = vpop.f32.mrf.mxu1  ;;  %v10407_v57 = vpop.f32.mrf.mxu2 }
 0x3b1   :  { %12777 = vst [vmem:[#allocation175_spill] sm:$0xff] %v10405_v32  ;;  %v10409_v29 = vpop.f32.mrf.mxu3 }
 0x3b2   :  { %12778 = vst [vmem:[#allocation176_spill] sm:$0xff] %v10407_v57 }
 0x3b3   :  { %12779 = vst [vmem:[#allocation177_spill] sm:$0xff] %v10409_v29  ;;  %v8388_v29 = vld [vmem:[%s12606_s4 + $0x1d8] sm:$0xff] }
 0x3b5   :  { %v10401_v17 = vpop.f32.mrf.mxu0 }
 0x3b8   :  { %8091 = vmatmul.msk.bf16.gmra.mxu0 %vm1880_vm2, %v8387_v24  ;;  %v10413_v13 = vpop.f32.mrf.mxu1  ;;  %v10418_v1 = vpop.f32.mrf.mxu2 }
 0x3b9   :  { %12780 = vst [vmem:[#allocation178_spill] sm:$0xff] %v10413_v13  ;;  %v10423_v24 = vpop.f32.mrf.mxu3  ;;  %8169 = vmatmul.msk.bf16.gmra.mxu1 %vm1880_vm2, %v8465_v28  ;;  %8220 = vmatmul.msk.bf16.gmra.mxu2 %vm1880_vm2, %v8516_v19  ;;  %v8466_v19 = vld [vmem:[%s12606_s4 + $0x448] sm:$0xff] }
 0x3ba   :  { %12781 = vst [vmem:[#allocation179_spill] sm:$0xff] %v10418_v1 }
 0x3bb   :  { %12782 = vst [vmem:[#allocation180_spill] sm:$0xff] %v10423_v24 }
 0x3bd   :  { %v10411_v37 = vpop.f32.mrf.mxu0 }
 0x3bf   :  { %8270 = vmatmul.msk.bf16.gmra.mxu3 %vm1880_vm2, %v8566_v35  ;;  %v8517_v35 = vld [vmem:[%s12606_s4 + $0x5e0] sm:$0xff] }
 0x3c0   :  { %v10437_v3 = vpop.f32.mrf.mxu1  ;;  %v10439_v24 = vpop.f32.mrf.mxu2 }
 0x3c1   :  { %12783 = vst [vmem:[#allocation181_spill] sm:$0xff] %v10437_v3  ;;  %v10441_v46 = vpop.f32.mrf.mxu3  ;;  %v8570_v3 = vld [vmem:[%s12606_s4 + $0x788] sm:$0xff] }
 0x3c2   :  { %12784 = vst [vmem:[#allocation182_spill] sm:$0xff] %v10439_v24  ;;  %v8389_v24 = vld [vmem:[%s12606_s4 + $0x1e0] sm:$0xff] }
 0x3c3   :  { %12785 = vst [vmem:[#allocation183_spill] sm:$0xff] %v10441_v46  ;;  %v8567_v46 = vld [vmem:[%s12606_s4 + $0x770] sm:$0xff] }
 0x3c5   :  { %v10433_v23 = vpop.f32.mrf.mxu0 }
 0x3c8   :  { %8092 = vmatmul.msk.bf16.gmra.mxu0 %vm1880_vm2, %v8388_v29  ;;  %v10445_v28 = vpop.f32.mrf.mxu1  ;;  %v10450_v60 = vpop.f32.mrf.mxu2 }
 0x3c9   :  { %12786 = vst [vmem:[#allocation184_spill] sm:$0xff] %v10445_v28  ;;  %v10455_v29 = vpop.f32.mrf.mxu3  ;;  %8170 = vmatmul.msk.bf16.gmra.mxu1 %vm1880_vm2, %v8466_v19  ;;  %8221 = vmatmul.msk.bf16.gmra.mxu2 %vm1880_vm2, %v8517_v35  ;;  %v8467_v19 = vld [vmem:[%s12606_s4 + $0x450] sm:$0xff] }
 0x3ca   :  { %12787 = vst [vmem:[#allocation185_spill] sm:$0xff] %v10450_v60 }
 0x3cb   :  { %12788 = vst [vmem:[#allocation186_spill] sm:$0xff] %v10455_v29 }
 0x3cd   :  { %v10443_v5 = vpop.f32.mrf.mxu0 }
 0x3cf   :  { %8271 = vmatmul.msk.bf16.gmra.mxu3 %vm1880_vm2, %v8567_v46  ;;  %v8518_v46 = vld [vmem:[%s12606_s4 + $0x5e8] sm:$0xff] }
 0x3d0   :  { %v10469_v60 = vpop.f32.mrf.mxu1  ;;  %v10471_v29 = vpop.f32.mrf.mxu2 }
 0x3d1   :  { %12789 = vst [vmem:[#allocation187_spill] sm:$0xff] %v10469_v60  ;;  %v10473_v57 = vpop.f32.mrf.mxu3 }
 0x3d2   :  { %12790 = vst [vmem:[#allocation188_spill] sm:$0xff] %v10471_v29  ;;  %v8390_v29 = vld [vmem:[%s12606_s4 + $0x1e8] sm:$0xff] }
 0x3d3   :  { %12791 = vst [vmem:[#allocation189_spill] sm:$0xff] %v10473_v57  ;;  %v8568_v57 = vld [vmem:[%s12606_s4 + $0x778] sm:$0xff] }
 0x3d5   :  { %v10465_v6 = vpop.f32.mrf.mxu0 }
 0x3d8   :  { %8093 = vmatmul.msk.bf16.gmra.mxu0 %vm1880_vm2, %v8389_v24  ;;  %v10480_v35 = vpop.f32.mrf.mxu2  ;;  %v10485_v0 = vpop.f32.mrf.mxu1 }
 0x3d9   :  { %12792 = vst [vmem:[#allocation190_spill] sm:$0xff] %v10480_v35  ;;  %v10487_v24 = vpop.f32.mrf.mxu3  ;;  %8171 = vmatmul.msk.bf16.gmra.mxu1 %vm1880_vm2, %v8467_v19  ;;  %8222 = vmatmul.msk.bf16.gmra.mxu2 %vm1880_vm2, %v8518_v46  ;;  %v8519_v19 = vld [vmem:[%s12606_s4 + $0x5f0] sm:$0xff]  ;;  %v4457_v46 = vld [vmem:[%s12798_s21] sm:$0xff] }
 0x3da   :  { %12793 = vst [vmem:[#allocation191_spill] sm:$0xff] %v10485_v0 }
 0x3db   :  { %12794 = vst [vmem:[#allocation192_spill] sm:$0xff] %v10487_v24 }
 0x3dd   :  { %v10475_v1 = vpop.f32.mrf.mxu0 }
 0x3df   :  { %8272 = vmatmul.msk.bf16.gmra.mxu3 %vm1880_vm2, %v8568_v57 }
 0x3e0   :  { %v10499_v25 = vpop.f32.mrf.mxu2  ;;  %v10511_v63 = vpop.f32.mrf.mxu1 }
 0x3e1   :  { %12795 = vst [vmem:[#allocation193_spill] sm:$0xff] %v10499_v25  ;;  %v10501_v24 = vpop.f32.mrf.mxu3 }
 0x3e2   :  { %12796 = vst [vmem:[#allocation194_spill] sm:$0xff] %v10501_v24  ;;  %v8391_v24 = vld [vmem:[%s12606_s4 + $0x1f0] sm:$0xff] }
 0x3e3   :  { %12799 = vst [vmem:[#allocation196_spill] sm:$0xff] %v10511_v63 }
 0x3e5   :  { %v2930_v35 = vpop.f32.mrf.mxu0 }
 0x3e8   :  { %8094 = vmatmul.msk.bf16.gmra.mxu0 %vm1880_vm2, %v8390_v29  ;;  %v10503_v61 = vpop.f32.mrf.mxu2  ;;  %v8569_v29 = vld [vmem:[%s12606_s4 + $0x780] sm:$0xff] }
 0x3e9   :  { %12797 = vst [vmem:[#allocation195_spill] sm:$0xff] %v10503_v61  ;;  %v10513_v57 = vpop.f32.mrf.mxu3  ;;  %8223 = vmatmul.msk.bf16.gmra.mxu2 %vm1880_vm2, %v8519_v19  ;;  %4537 = vmatmul.f32.vlgmr.msrb.gmra.mxu1 %v4457_v46  ;;  %v8520_v19 = vld [vmem:[%s12606_s4 + $0x5f8] sm:$0xff] }
 0x3ea   :  { %12800 = vst [vmem:[#allocation197_spill] sm:$0xff] %v10513_v57 }
 0x3ed   :  { %v2932_v47 = vpop.f32.mrf.mxu0 }
 0x3ef   :  { %8273 = vmatmul.msk.bf16.gmra.mxu3 %vm1880_vm2, %v8569_v29 }
 0x3f0   :  { %v10524_v61 = vpop.f32.mrf.mxu2 }
 0x3f1   :  { %12801 = vst [vmem:[#allocation198_spill] sm:$0xff] %v10524_v61  ;;  %v10526_v32 = vpop.f32.mrf.mxu3 }
 0x3f2   :  { %12802 = vst [vmem:[#allocation199_spill] sm:$0xff] %v10526_v32 }
 0x3f5   :  { %v2935_v25 = vpop.f32.mrf.mxu0 }
 0x3f8   :  { %8095 = vmatmul.msk.bf16.gmra.mxu0 %vm1880_vm2, %v8391_v24  ;;  %v10528_v13 = vpop.f32.mrf.mxu2  ;;  %v8392_v24 = vld [vmem:[%s12606_s4 + $0x1f8] sm:$0xff] }
 0x3f9   :  { %12803 = vst [vmem:[#allocation200_spill] sm:$0xff] %v10528_v13  ;;  %v10533_v46 = vpop.f32.mrf.mxu3  ;;  %8224 = vmatmul.msk.bf16.gmra.mxu2 %vm1880_vm2, %v8520_v19 }
 0x3fa   :  { %12804 = vst [vmem:[#allocation201_spill] sm:$0xff] %v10533_v46 }
 0x3fd   :  { %v2937_v57 = vpop.f32.mrf.mxu0 }
 0x3fe   :  { %v2938_v19 = vadd.f32 %v9795_v43, %v2937_v57 }
 0x3ff   :  { %8274 = vmatmul.msk.bf16.gmra.mxu3 %vm1880_vm2, %v8570_v3  ;;  %v8521_v3 = vld [vmem:[%s12606_s4 + $0x600] sm:$0xff] }
 0x400   :  { %v10544_v32 = vpop.f32.mrf.mxu2  ;;  %v4054_v57 = vmax.f32 %v2938_v19, 0.0  ;;  %v2926_v19 = vadd.f32 %v9795_v43, %v10465_v6 }
 0x401   :  { %12805 = vst [vmem:[#allocation202_spill] sm:$0xff] %v10544_v32  ;;  %v10546_v61 = vpop.f32.mrf.mxu3 }
 0x402   :  { %12806 = vst [vmem:[#allocation203_spill] sm:$0xff] %v10546_v61  ;;  %v2936_v61 = vadd.f32 %v9795_v43, %v2935_v25  ;;  %v2928_v25 = vadd.f32 %v9795_v43, %v10475_v1 }
 0x405   :  { %v2940_v29 = vpop.f32.mrf.mxu0 }
 0x406   :  { %v2941_v13 = vadd.f32 %v9795_v43, %v2940_v29 }
 0x408   :  { %8096 = vmatmul.msk.bf16.gmra.mxu0 %vm1880_vm2, %v8392_v24  ;;  %v10551_v0 = vpop.f32.mrf.mxu2  ;;  %v8571_v24 = vld [vmem:[%s12606_s4 + $0x790] sm:$0xff]  ;;  %v4055_v29 = vmax.f32 %v2941_v13, 0.0 }
 0x409   :  { %12807 = vst [vmem:[#allocation204_spill] sm:$0xff] %v10551_v0  ;;  %v10556_v63 = vpop.f32.mrf.mxu3  ;;  %8225 = vmatmul.msk.bf16.gmra.mxu2 %vm1880_vm2, %v8521_v3  ;;  %v4053_v0 = vmax.f32 %v2936_v61, 0.0  ;;  %v2923_v61 = vadd.f32 %v9795_v43, %v10443_v5  ;;  %v8522_v5 = vld [vmem:[%s12606_s4 + $0x608] sm:$0xff] }
 0x40a   :  { %12808 = vst [vmem:[#allocation205_spill] sm:$0xff] %v10556_v63  ;;  %v2931_v63 = vadd.f32 %v9795_v43, %v2930_v35  ;;  %v4050_v35 = vmax.f32 %v2928_v25, 0.0 }
 0x40b   :  { %v4048_v6 = vmax.f32 %v2923_v61, 0.0 }
 0x40c   :  { %v4051_v3 = vmax.f32 %v2931_v63, 0.0 }
 0x40d   :  { %v2942_v46 = vpop.f32.mrf.mxu0 }
 0x40e   :  { %v2943_v28 = vadd.f32 %v9795_v43, %v2942_v46  ;;  %v8393_v46 = vld [vmem:[%s12606_s4 + $0x200] sm:$0xff] }
 0x40f   :  { %8275 = vmatmul.msk.bf16.gmra.mxu3 %vm1880_vm2, %v8571_v24 }
 0x410   :  { %v4056_v60 = vmax.f32 %v2943_v28, 0.0  ;;  %v2933_v28 = vadd.f32 %v9795_v43, %v2932_v47  ;;  %v10574_v47 = vpop.f32.mrf.mxu2 }
 0x411   :  { %12809 = vst [vmem:[#allocation206_spill] sm:$0xff] %v10574_v47  ;;  %v10576_v13 = vpop.f32.mrf.mxu3 }
 0x412   :  { %4659 = vmatpush.msrb.mxu1 %v4056_v60  ;;  %v4052_v60 = vmax.f32 %v2933_v28, 0.0  ;;  %12810 = vst [vmem:[#allocation207_spill] sm:$0xff] %v10576_v13 }
 0x414   :  { %4660 = vmatpush.msrb.mxu1 %v4055_v29  ;;  %v4049_v29 = vmax.f32 %v2926_v19, 0.0 }
 0x415   :  { %v10567_v32 = vpop.f32.mrf.mxu0 }
 0x416   :  { %4661 = vmatpush.msrb.mxu1 %v4054_v57  ;;  %v8572_v57 = vld [vmem:[%s12606_s4 + $0x798] sm:$0xff] }
 0x418   :  { %8097 = vmatmul.msk.bf16.gmra.mxu0 %vm1880_vm2, %v8393_v46  ;;  %4662 = vmatpush.msrb.mxu1 %v4053_v0  ;;  %v10587_v0 = vld [vmem:[%s12607_s29] ss:$0 sm:$0xff]  ;;  %v10593_v43 = vpop.f32.mrf.mxu2 }
 0x419   :  { %v2921_v1 = vadd.f32 %v10587_v0, %v10433_v23  ;;  %v2918_v63 = vadd.f32 %v10587_v0, %v10411_v37  ;;  %12811 = vst [vmem:[#allocation208_spill] sm:$0xff] %v10593_v43  ;;  %v10598_v28 = vpop.f32.mrf.mxu3  ;;  %v2916_v23 = vadd.f32 %v10587_v0, %v10401_v17  ;;  %8226 = vmatmul.msk.bf16.gmra.mxu2 %vm1880_vm2, %v8522_v5 }
 0x41a   :  { %4663 = vmatpush.msrb.mxu1 %v4052_v60  ;;  %12812 = vst [vmem:[#allocation209_spill] sm:$0xff] %v10598_v28  ;;  %v2913_v37 = vadd.f32 %v10587_v0, %v10379_v20  ;;  %v8394_v60 = vld [vmem:[%s12606_s4 + $0x208] sm:$0xff]  ;;  %v2911_v17 = vadd.f32 %v10587_v0, %v10363_v34  ;;  %v2908_v61 = vadd.f32 %v10587_v0, %v10333_v58 }
 0x41b   :  { %v4047_v46 = vmax.f32 %v2921_v1, 0.0  ;;  %v4046_v25 = vmax.f32 %v2918_v63, 0.0 }
 0x41c   :  { %4664 = vmatpush.msrb.mxu1 %v4051_v3  ;;  %v4045_v3 = vmax.f32 %v2916_v23, 0.0  ;;  %v4043_v63 = vmax.f32 %v2911_v17, 0.0 }
 0x41d   :  { %v10582_v24 = vpop.f32.mrf.mxu0 }
 0x41e   :  { %4665 = vmatpush.msrb.mxu1 %v4050_v35  ;;  %v4044_v35 = vmax.f32 %v2913_v37, 0.0 }
 0x41f   :  { %8276 = vmatmul.msk.bf16.gmra.mxu3 %vm1880_vm2, %v8572_v57  ;;  %v8523_v57 = vld [vmem:[%s12606_s4 + $0x610] sm:$0xff] }
 0x420   :  { %4666 = vmatpush.msrb.mxu1 %v4049_v29  ;;  %v10619_v20 = vpop.f32.mrf.mxu2  ;;  %v2906_v29 = vadd.f32 %v10587_v0, %v10316_v54  ;;  %v8573_v54 = vld [vmem:[%s12606_s4 + $0x7a0] sm:$0xff] }
 0x421   :  { %12813 = vst [vmem:[#allocation210_spill] sm:$0xff] %v10619_v20  ;;  %v10621_v1 = vpop.f32.mrf.mxu3 }
 0x422   :  { %4667 = vmatpush.msrb.mxu1 %v4048_v6  ;;  %12814 = vst [vmem:[#allocation211_spill] sm:$0xff] %v10621_v1  ;;  %v4042_v6 = vmax.f32 %v2908_v61, 0.0  ;;  %v4041_v5 = vmax.f32 %v2906_v29, 0.0  ;;  %v8524_v61 = vld [vmem:[%s12606_s4 + $0x618] sm:$0xff]  ;;  %v8574_v29 = vld [vmem:[%s12606_s4 + $0x7a8] sm:$0xff] }
 0x424   :  { %4668 = vmatpush.msrb.mxu1 %v4047_v46  ;;  %v8395_v46 = vld [vmem:[%s12606_s4 + $0x210] sm:$0xff] }
 0x425   :  { %v10611_v19 = vpop.f32.mrf.mxu0 }
 0x426   :  { %4669 = vmatpush.msrb.mxu1 %v4046_v25 }
 0x428   :  { %8098 = vmatmul.msk.bf16.gmra.mxu0 %vm1880_vm2, %v8394_v60  ;;  %4670 = vmatpush.msrb.mxu1 %v4045_v3  ;;  %v10627_v58 = vpop.f32.mrf.mxu2 }
 0x429   :  { %12815 = vst [vmem:[#allocation212_spill] sm:$0xff] %v10627_v58  ;;  %v10632_v23 = vpop.f32.mrf.mxu3  ;;  %8227 = vmatmul.msk.bf16.gmra.mxu2 %vm1880_vm2, %v8523_v57  ;;  %v8526_v58 = vld [vmem:[%s12606_s4 + $0x628] sm:$0xff] }
 0x42a   :  { %4671 = vmatpush.msrb.mxu1 %v4044_v35  ;;  %12816 = vst [vmem:[#allocation213_spill] sm:$0xff] %v10632_v23 }
 0x42c   :  { %4672 = vmatpush.msrb.mxu1 %v4043_v63  ;;  %v8396_v63 = vld [vmem:[%s12606_s4 + $0x218] sm:$0xff] }
 0x42d   :  { %v10625_v34 = vpop.f32.mrf.mxu0 }
 0x42e   :  { %4673 = vmatpush.msrb.mxu1 %v4042_v6 }
 0x42f   :  { %8277 = vmatmul.msk.bf16.gmra.mxu3 %vm1880_vm2, %v8573_v54 }
 0x430   :  { %4674 = vmatpush.msrb.mxu1 %v4041_v5  ;;  %v10645_v25 = vpop.f32.mrf.mxu2 }
 0x431   :  { %12817 = vst [vmem:[#allocation214_spill] sm:$0xff] %v10645_v25  ;;  %v10647_v60 = vpop.f32.mrf.mxu3 }
 0x432   :  { %12818 = vst [vmem:[#allocation215_spill] sm:$0xff] %v10647_v60  ;;  %v4458_v60 = vld [vmem:[%s12798_s21 + $0x8] sm:$0xff] }
 0x435   :  { %v10641_v37 = vpop.f32.mrf.mxu0 }
 0x438   :  { %8099 = vmatmul.msk.bf16.gmra.mxu0 %vm1880_vm2, %v8395_v46  ;;  %v10651_v3 = vpop.f32.mrf.mxu2 }
 0x439   :  { %12819 = vst [vmem:[#allocation216_spill] sm:$0xff] %v10651_v3  ;;  %v10656_v35 = vpop.f32.mrf.mxu3  ;;  %8228 = vmatmul.msk.bf16.gmra.mxu2 %vm1880_vm2, %v8524_v61  ;;  %v8525_v61 = vld [vmem:[%s12606_s4 + $0x620] sm:$0xff]  ;;  %v8576_v3 = vld [vmem:[%s12606_s4 + $0x7b8] sm:$0xff] }
 0x43a   :  { %12820 = vst [vmem:[#allocation217_spill] sm:$0xff] %v10656_v35 }
 0x43d   :  { %v10649_v17 = vpop.f32.mrf.mxu0 }
 0x43f   :  { %8278 = vmatmul.msk.bf16.gmra.mxu3 %vm1880_vm2, %v8574_v29  ;;  %v8575_v29 = vld [vmem:[%s12606_s4 + $0x7b0] sm:$0xff] }
 0x440   :  { %v10669_v5 = vpop.f32.mrf.mxu2 }
 0x441   :  { %12821 = vst [vmem:[#allocation218_spill] sm:$0xff] %v10669_v5  ;;  %v10671_v57 = vpop.f32.mrf.mxu3 }
 0x442   :  { %12822 = vst [vmem:[#allocation219_spill] sm:$0xff] %v10671_v57 }
 0x445   :  { %v10665_v6 = vpop.f32.mrf.mxu0 }
 0x448   :  { %8100 = vmatmul.msk.bf16.gmra.mxu0 %vm1880_vm2, %v8396_v63  ;;  %v10675_v46 = vpop.f32.mrf.mxu2  ;;  %v8397_v63 = vld [vmem:[%s12606_s4 + $0x220] sm:$0xff] }
 0x449   :  { %12823 = vst [vmem:[#allocation220_spill] sm:$0xff] %v10675_v46  ;;  %v10680_v13 = vpop.f32.mrf.mxu3  ;;  %8229 = vmatmul.msk.bf16.gmra.mxu2 %vm1880_vm2, %v8525_v61 }
 0x44a   :  { %12824 = vst [vmem:[#allocation221_spill] sm:$0xff] %v10680_v13 }
 0x44d   :  { %v10673_v54 = vpop.f32.mrf.mxu0 }
 0x44f   :  { %8279 = vmatmul.msk.bf16.gmra.mxu3 %vm1880_vm2, %v8575_v29  ;;  %v8398_v29 = vld [vmem:[%s12606_s4 + $0x228] sm:$0xff] }
 0x450   :  { %v10693_v47 = vpop.f32.mrf.mxu2 }
 0x451   :  { %12825 = vst [vmem:[#allocation222_spill] sm:$0xff] %v10693_v47  ;;  %v10695_v43 = vpop.f32.mrf.mxu3 }
 0x452   :  { %12826 = vst [vmem:[#allocation223_spill] sm:$0xff] %v10695_v43 }
 0x455   :  { %v10689_v28 = vpop.f32.mrf.mxu0 }
 0x458   :  { %8101 = vmatmul.msk.bf16.gmra.mxu0 %vm1880_vm2, %v8397_v63  ;;  %v10700_v61 = vpop.f32.mrf.mxu2 }
 0x459   :  { %12827 = vst [vmem:[#allocation224_spill] sm:$0xff] %v10700_v61  ;;  %v10702_v25 = vpop.f32.mrf.mxu3  ;;  %8230 = vmatmul.msk.bf16.gmra.mxu2 %vm1880_vm2, %v8526_v58  ;;  %v8577_v58 = vld [vmem:[%s12606_s4 + $0x7c0] sm:$0xff] }
 0x45a   :  { %12828 = vst [vmem:[#allocation225_spill] sm:$0xff] %v10702_v25 }
 0x45d   :  { %v2967_v20 = vpop.f32.mrf.mxu0 }
 0x45f   :  { %8280 = vmatmul.msk.bf16.gmra.mxu3 %vm1880_vm2, %v8576_v3  ;;  %v8399_v3 = vld [vmem:[%s12606_s4 + $0x230] sm:$0xff] }
 0x460   :  { %v10718_v35 = vpop.f32.mrf.mxu2 }
 0x461   :  { %v10713_v1 = vpop.f32.mrf.mxu3  ;;  %12830 = vst [vmem:[#allocation227_spill] sm:$0xff] %v10718_v35 }
 0x462   :  { %12829 = vst [vmem:[#allocation226_spill] sm:$0xff] %v10713_v1  ;;  %v8578_v1 = vld [vmem:[%s12606_s4 + $0x7c8] sm:$0xff] }
 0x465   :  { %v2970_v63 = vpop.f32.mrf.mxu0 }
 0x468   :  { %8102 = vmatmul.msk.bf16.gmra.mxu0 %vm1880_vm2, %v8398_v29 }
 0x469   :  { %v10720_v57 = vpop.f32.mrf.mxu3  ;;  %4560 = vmatmul.f32.vlgmr.msrb.gmra.mxu2 %v4458_v60  ;;  %v8400_v60 = vld [vmem:[%s12606_s4 + $0x238] sm:$0xff] }
 0x46a   :  { %12831 = vst [vmem:[#allocation228_spill] sm:$0xff] %v10720_v57 }
 0x46d   :  { %v2972_v23 = vpop.f32.mrf.mxu0 }
 0x46f   :  { %8281 = vmatmul.msk.bf16.gmra.mxu3 %vm1880_vm2, %v8577_v58  ;;  %v10742_v58 = vpop.f32.mrf.mxu2 }
 0x470   :  { %12834 = vst [vmem:[#allocation231_spill] sm:$0xff] %v10742_v58 }
 0x471   :  { %v10730_v13 = vpop.f32.mrf.mxu3 }
 0x472   :  { %12832 = vst [vmem:[#allocation229_spill] sm:$0xff] %v10730_v13 }
 0x475   :  { %v2975_v29 = vpop.f32.mrf.mxu0 }
 0x478   :  { %8103 = vmatmul.msk.bf16.gmra.mxu0 %vm1880_vm2, %v8399_v3  ;;  %v4490_v3 = vld [vmem:[%s12798_s21 + $0x108] sm:$0xff] }
 0x479   :  { %v10732_v25 = vpop.f32.mrf.mxu3  ;;  %4563 = vmatmul.f32.gmra.mxu2 %v4490_v3  ;;  %v8579_v3 = vld [vmem:[%s12606_s4 + $0x7d0] sm:$0xff] }
 0x47a   :  { %12833 = vst [vmem:[#allocation230_spill] sm:$0xff] %v10732_v25 }
 0x47d   :  { %v2977_v43 = vpop.f32.mrf.mxu0 }
 0x47e   :  { %v2978_v47 = vadd.f32 %v10587_v0, %v2977_v43  ;;  %v2973_v43 = vadd.f32 %v10587_v0, %v2972_v23 }
 0x47f   :  { %8282 = vmatmul.msk.bf16.gmra.mxu3 %vm1880_vm2, %v8578_v1  ;;  %v10752_v1 = vpop.f32.mrf.mxu2 }
 0x481   :  { %v10747_v13 = vpop.f32.mrf.mxu3 }
 0x482   :  { %12835 = vst [vmem:[#allocation232_spill] sm:$0xff] %v10747_v13 }
 0x485   :  { %v2980_v57 = vpop.f32.mrf.mxu0 }
 0x486   :  { %v2981_v5 = vadd.f32 %v10587_v0, %v2980_v57  ;;  %v2976_v57 = vadd.f32 %v10587_v0, %v2975_v29  ;;  %v2968_v29 = vadd.f32 %v10587_v0, %v2967_v20  ;;  %v2961_v20 = vadd.f32 %v10587_v0, %v10665_v6 }
 0x487   :  { %v2953_v6 = vadd.f32 %v10587_v0, %v10625_v34 }
 0x488   :  { %8104 = vmatmul.msk.bf16.gmra.mxu0 %vm1880_vm2, %v8400_v60  ;;  %v4461_v60 = vld [vmem:[%s12798_s21 + $0x20] sm:$0xff]  ;;  %v4071_v13 = vmax.f32 %v2981_v5, 0.0  ;;  %v4068_v5 = vmax.f32 %v2973_v43, 0.0 }
 0x489   :  { %4629 = vmatmul.f32.vlgmr.msra.gmra.mxu2 %v4461_v60  ;;  %v10757_v35 = vpop.f32.mrf.mxu3  ;;  %v2971_v60 = vadd.f32 %v10587_v0, %v2970_v63 }
 0x48a   :  { %12836 = vst [vmem:[#allocation233_spill] sm:$0xff] %v10757_v35  ;;  %v4069_v35 = vmax.f32 %v2976_v57, 0.0 }
 0x48b   :  { %v4067_v23 = vmax.f32 %v2971_v60, 0.0 }
 0x48d   :  { %v2982_v25 = vpop.f32.mrf.mxu0 }
 0x48e   :  { %v2983_v46 = vadd.f32 %v10587_v0, %v2982_v25  ;;  %v4070_v25 = vmax.f32 %v2978_v47, 0.0 }
 0x48f   :  { %8283 = vmatmul.msk.bf16.gmra.mxu3 %vm1880_vm2, %v8579_v3  ;;  %v4066_v3 = vmax.f32 %v2968_v29, 0.0 }
 0x490   :  { %v4072_v61 = vmax.f32 %v2983_v46, 0.0  ;;  %v8401_v46 = vld [vmem:[%s12606_s4 + $0x240] sm:$0xff] }
 0x491   :  { %v10773_v47 = vpop.f32.mrf.mxu3 }
 0x492   :  { %4682 = vmatpush.msrb.mxu2 %v4072_v61  ;;  %v2963_v61 = vadd.f32 %v10587_v0, %v10673_v54  ;;  %v8580_v54 = vld [vmem:[%s12606_s4 + $0x7d8] sm:$0xff] }
 0x494   :  { %4683 = vmatpush.msrb.mxu2 %v4071_v13  ;;  %v2966_v13 = vadd.f32 %v10587_v0, %v10689_v28  ;;  %v4064_v43 = vmax.f32 %v2963_v61, 0.0  ;;  %v2946_v61 = vadd.f32 %v10587_v0, %v10567_v32 }
 0x495   :  { %v10767_v58 = vpop.f32.mrf.mxu0 }
 0x496   :  { %4684 = vmatpush.msrb.mxu2 %v4070_v25  ;;  %v4065_v57 = vmax.f32 %v2966_v13, 0.0  ;;  %v2956_v25 = vadd.f32 %v10587_v0, %v10641_v37  ;;  %v2948_v37 = vadd.f32 %v10587_v0, %v10582_v24 }
 0x498   :  { %8105 = vmatmul.msk.bf16.gmra.mxu0 %vm1880_vm2, %v8401_v46  ;;  %4685 = vmatpush.msrb.mxu2 %v4069_v35  ;;  %v2958_v35 = vadd.f32 %v10587_v0, %v10649_v17  ;;  %v4063_v46 = vmax.f32 %v2961_v20, 0.0  ;;  %v8402_v17 = vld [vmem:[%s12606_s4 + $0x248] sm:$0xff]  ;;  %v4061_v13 = vmax.f32 %v2956_v25, 0.0  ;;  %v3103_v20 = vadd.f32 %v10587_v0, %v9199_v4 }
 0x499   :  { %v10785_v28 = vpop.f32.mrf.mxu3  ;;  %v3096_v25 = vadd.f32 %v10587_v0, %v9166_v53  ;;  %v3091_v53 = vadd.f32 %v10587_v0, %v9142_v45 }
 0x49a   :  { %4686 = vmatpush.msrb.mxu2 %v4068_v5  ;;  %v4062_v60 = vmax.f32 %v2958_v35, 0.0  ;;  %v2951_v5 = vadd.f32 %v10587_v0, %v10611_v19  ;;  %v4058_v19 = vmax.f32 %v2948_v37, 0.0  ;;  %v4057_v35 = vmax.f32 %v2946_v61, 0.0 }
 0x49b   :  { %v4120_v32 = vmax.f32 %v3103_v20, 0.0  ;;  %v4115_v61 = vmax.f32 %v3091_v53, 0.0 }
 0x49c   :  { %4687 = vmatpush.msrb.mxu2 %v4067_v23  ;;  %v4060_v23 = vmax.f32 %v2953_v6, 0.0  ;;  %v3093_v6 = vadd.f32 %v10587_v0, %v9155_v50  ;;  %v3088_v50 = vadd.f32 %v10587_v0, %v9132_v42 }
 0x49d   :  { %v10779_v63 = vpop.f32.mrf.mxu0 }
 0x49e   :  { %4688 = vmatpush.msrb.mxu2 %v4066_v3  ;;  %v4059_v3 = vmax.f32 %v2951_v5, 0.0  ;;  %v4116_v37 = vmax.f32 %v3093_v6, 0.0 }
 0x49f   :  { %8284 = vmatmul.msk.bf16.gmra.mxu3 %vm1880_vm2, %v8580_v54  ;;  %v3098_v54 = vadd.f32 %v10587_v0, %v9179_v59  ;;  %v8403_v59 = vld [vmem:[%s12606_s4 + $0x250] sm:$0xff] }
 0x4a0   :  { %4689 = vmatpush.msrb.mxu2 %v4065_v57  ;;  %v3101_v57 = vadd.f32 %v10587_v0, %v9188_v62  ;;  %v8581_v62 = vld [vmem:[%s12606_s4 + $0x7e0] sm:$0xff] }
 0x4a1   :  { %v10805_v34 = vpop.f32.mrf.mxu3 }
 0x4a2   :  { %4690 = vmatpush.msrb.mxu2 %v4064_v43  ;;  %12837 = vst [vmem:[#allocation234_spill] sm:$0xff] %v10805_v34  ;;  %v10815_v43 = vpop.f32.mrf.mxu1  ;;  %v4119_v4 = vmax.f32 %v3101_v57, 0.0  ;;  %v4459_v34 = vld [vmem:[%s12798_s21 + $0x10] sm:$0xff] }
 0x4a4   :  { %4691 = vmatpush.msrb.mxu2 %v4063_v46 }
 0x4a5   :  { %v10797_v29 = vpop.f32.mrf.mxu0 }
 0x4a6   :  { %4692 = vmatpush.msrb.mxu2 %v4062_v60  ;;  %v4118_v60 = vmax.f32 %v3098_v54, 0.0 }
 0x4a8   :  { %8106 = vmatmul.msk.bf16.gmra.mxu0 %vm1880_vm2, %v8402_v17  ;;  %4693 = vmatpush.msrb.mxu2 %v4061_v13  ;;  %v4117_v17 = vmax.f32 %v3096_v25, 0.0 }
 0x4a9   :  { %v10821_v46 = vpop.f32.mrf.mxu3 }
 0x4aa   :  { %4694 = vmatpush.msrb.mxu2 %v4060_v23  ;;  %12838 = vst [vmem:[#allocation235_spill] sm:$0xff] %v10821_v46  ;;  %v10836_v13 = vpop.f32.mrf.mxu1  ;;  %v3086_v23 = vadd.f32 %v10587_v0, %v9122_v38  ;;  %v8404_v38 = vld [vmem:[%s12606_s4 + $0x258] sm:$0xff] }
 0x4ab   :  { %12839 = vst [vmem:[#allocation236_spill] sm:$0xff] %v10836_v13 }
 0x4ac   :  { %4695 = vmatpush.msrb.mxu2 %v4059_v3  ;;  %v4114_v3 = vmax.f32 %v3088_v50, 0.0  ;;  %v4113_v20 = vmax.f32 %v3086_v23, 0.0 }
 0x4ad   :  { %v10813_v24 = vpop.f32.mrf.mxu0 }
 0x4ae   :  { %4696 = vmatpush.msrb.mxu2 %v4058_v19 }
 0x4af   :  { %8285 = vmatmul.msk.bf16.gmra.mxu3 %vm1880_vm2, %v8581_v62 }
 0x4b0   :  { %4697 = vmatpush.msrb.mxu2 %v4057_v35  ;;  %v8582_v35 = vld [vmem:[%s12606_s4 + $0x7e8] sm:$0xff] }
 0x4b1   :  { %v10843_v45 = vpop.f32.mrf.mxu3 }
 0x4b2   :  { %4751 = vmatpush.msra.mxu2 %v4120_v32  ;;  %12840 = vst [vmem:[#allocation237_spill] sm:$0xff] %v10843_v45  ;;  %v10847_v57 = vpop.f32.mrf.mxu1  ;;  %v8407_v45 = vld [vmem:[%s12606_s4 + $0x270] sm:$0xff] }
 0x4b3   :  { %12841 = vst [vmem:[#allocation238_spill] sm:$0xff] %v10847_v57 }
 0x4b4   :  { %4752 = vmatpush.msra.mxu2 %v4119_v4 }
 0x4b5   :  { %v10833_v5 = vpop.f32.mrf.mxu0 }
 0x4b6   :  { %4753 = vmatpush.msra.mxu2 %v4118_v60  ;;  %v8583_v60 = vld [vmem:[%s12606_s4 + $0x7f0] sm:$0xff] }
 0x4b8   :  { %4754 = vmatpush.msra.mxu2 %v4117_v17  ;;  %8107 = vmatmul.msk.bf16.gmra.mxu0 %vm1880_vm2, %v8403_v59  ;;  %v8405_v59 = vld [vmem:[%s12606_s4 + $0x260] sm:$0xff] }
 0x4b9   :  { %v10849_v42 = vpop.f32.mrf.mxu3 }
 0x4ba   :  { %4755 = vmatpush.msra.mxu2 %v4116_v37  ;;  %12842 = vst [vmem:[#allocation239_spill] sm:$0xff] %v10849_v42  ;;  %v10860_v32 = vpop.f32.mrf.mxu1 }
 0x4bb   :  { %12843 = vst [vmem:[#allocation240_spill] sm:$0xff] %v10860_v32 }
 0x4bc   :  { %4756 = vmatpush.msra.mxu2 %v4115_v61  ;;  %v8584_v61 = vld [vmem:[%s12606_s4 + $0x7f8] sm:$0xff] }
 0x4bd   :  { %v10845_v19 = vpop.f32.mrf.mxu0 }
 0x4be   :  { %4757 = vmatpush.msra.mxu2 %v4114_v3 }
 0x4bf   :  { %8286 = vmatmul.msk.bf16.gmra.mxu3 %vm1880_vm2, %v8582_v35 }
 0x4c0   :  { %4758 = vmatpush.msra.mxu2 %v4113_v20  ;;  %v8406_v20 = vld [vmem:[%s12606_s4 + $0x268] sm:$0xff] }
 0x4c1   :  { %v10863_v25 = vpop.f32.mrf.mxu3 }
 0x4c2   :  { %12844 = vst [vmem:[#allocation241_spill] sm:$0xff] %v10863_v25  ;;  %v10867_v62 = vpop.f32.mrf.mxu1 }
 0x4c3   :  { %12845 = vst [vmem:[#allocation242_spill] sm:$0xff] %v10867_v62 }
 0x4c5   :  { %v10857_v54 = vpop.f32.mrf.mxu0 }
 0x4c8   :  { %8108 = vmatmul.msk.bf16.gmra.mxu0 %vm1880_vm2, %v8404_v38 }
 0x4c9   :  { %v10869_v6 = vpop.f32.mrf.mxu3 }
 0x4ca   :  { %12846 = vst [vmem:[#allocation243_spill] sm:$0xff] %v10869_v6  ;;  %v10878_v17 = vpop.f32.mrf.mxu1  ;;  %v8408_v6 = vld [vmem:[%s12606_s4 + $0x278] sm:$0xff] }
 0x4cb   :  { %12847 = vst [vmem:[#allocation244_spill] sm:$0xff] %v10878_v17 }
 0x4cd   :  { %v10865_v4 = vpop.f32.mrf.mxu0 }
 0x4cf   :  { %8287 = vmatmul.msk.bf16.gmra.mxu3 %vm1880_vm2, %v8583_v60 }
 0x4d1   :  { %v10881_v50 = vpop.f32.mrf.mxu3 }
 0x4d2   :  { %12848 = vst [vmem:[#allocation245_spill] sm:$0xff] %v10881_v50  ;;  %v10883_v23 = vpop.f32.mrf.mxu1 }
 0x4d3   :  { %12849 = vst [vmem:[#allocation246_spill] sm:$0xff] %v10883_v23 }
 0x4d5   :  { %v3005_v53 = vpop.f32.mrf.mxu0 }
 0x4d8   :  { %8109 = vmatmul.msk.bf16.gmra.mxu0 %vm1880_vm2, %v8405_v59 }
 0x4d9   :  { %v10888_v3 = vpop.f32.mrf.mxu3 }
 0x4da   :  { %12850 = vst [vmem:[#allocation247_spill] sm:$0xff] %v10888_v3  ;;  %v10894_v38 = vpop.f32.mrf.mxu1 }
 0x4db   :  { %12851 = vst [vmem:[#allocation248_spill] sm:$0xff] %v10894_v38 }
 0x4dd   :  { %v3007_v37 = vpop.f32.mrf.mxu0 }
 0x4df   :  { %8288 = vmatmul.msk.bf16.gmra.mxu3 %vm1880_vm2, %v8584_v61 }
 0x4e1   :  { %v10902_v46 = vpop.f32.mrf.mxu3 }
 0x4e2   :  { %v10897_v59 = vpop.f32.mrf.mxu1  ;;  %12852 = vst [vmem:[#allocation249_spill] sm:$0xff] %v10902_v46 }
 0x4e5   :  { %v3010_v35 = vpop.f32.mrf.mxu0 }
 0x4e8   :  { %8110 = vmatmul.msk.bf16.gmra.mxu0 %vm1880_vm2, %v8406_v20 }
 0x4e9   :  { %v10916_v3 = vpop.f32.mrf.mxu3 }
 0x4ea   :  { %v10907_v61 = vpop.f32.mrf.mxu1  ;;  %12853 = vst [vmem:[#allocation250_spill] sm:$0xff] %v10916_v3 }
 0x4ed   :  { %v3012_v60 = vpop.f32.mrf.mxu0 }
 0x4ef   :  { %4583 = vmatmul.f32.vlgmr.msrb.gmra.mxu3 %v4459_v34  ;;  %v4491_v34 = vld [vmem:[%s12798_s21 + $0x110] sm:$0xff] }
 0x4f1   :  { %v10926_v17 = vpop.f32.mrf.mxu3 }
 0x4f2   :  { %v10910_v25 = vpop.f32.mrf.mxu1  ;;  %12854 = vst [vmem:[#allocation251_spill] sm:$0xff] %v10926_v17 }
 0x4f5   :  { %v3015_v42 = vpop.f32.mrf.mxu0 }
 0x4f6   :  { %v3016_v3 = vadd.f32 %v10587_v0, %v3015_v42  ;;  %v3008_v42 = vadd.f32 %v10587_v0, %v3007_v37  ;;  %v3001_v37 = vadd.f32 %v10587_v0, %v10857_v54  ;;  %v8410_v54 = vld [vmem:[%s12606_s4 + $0x288] sm:$0xff] }
 0x4f7   :  { %4586 = vmatmul.f32.gmra.mxu3 %v4491_v34 }
 0x4f8   :  { %8111 = vmatmul.msk.bf16.gmra.mxu0 %vm1880_vm2, %v8407_v45  ;;  %v4085_v17 = vmax.f32 %v3016_v3, 0.0 }
 0x4fa   :  { %v10921_v46 = vpop.f32.mrf.mxu1 }
 0x4fd   :  { %v3017_v20 = vpop.f32.mrf.mxu0 }
 0x4fe   :  { %v3018_v32 = vadd.f32 %v10587_v0, %v3017_v20 }
 0x500   :  { %v4086_v38 = vmax.f32 %v3018_v32, 0.0 }
 0x502   :  { %v10932_v34 = vpop.f32.mrf.mxu1 }
 0x505   :  { %v3020_v50 = vpop.f32.mrf.mxu0 }
 0x506   :  { %v3021_v13 = vadd.f32 %v10587_v0, %v3020_v50  ;;  %v3013_v50 = vadd.f32 %v10587_v0, %v3012_v60  ;;  %v4082_v60 = vmax.f32 %v3008_v42, 0.0 }
 0x508   :  { %8112 = vmatmul.msk.bf16.gmra.mxu0 %vm1880_vm2, %v8408_v6  ;;  %v4462_v6 = vld [vmem:[%s12798_s21 + $0x28] sm:$0xff]  ;;  %v4087_v23 = vmax.f32 %v3021_v13, 0.0  ;;  %v4084_v13 = vmax.f32 %v3013_v50, 0.0  ;;  %v2993_v50 = vadd.f32 %v10587_v0, %v10813_v24  ;;  %v2988_v24 = vadd.f32 %v10587_v0, %v10779_v63 }
 0x509   :  { %4652 = vmatmul.f32.vlgmr.msra.gmra.mxu3 %v4462_v6  ;;  %v3141_v63 = vadd.f32 %v10587_v0, %v9422_v12 }
 0x50d   :  { %v3022_v45 = vpop.f32.mrf.mxu0 }
 0x50e   :  { %v3023_v57 = vadd.f32 %v10587_v0, %v3022_v45  ;;  %v3011_v45 = vadd.f32 %v10587_v0, %v3010_v35  ;;  %v10948_v35 = vpop.f32.mrf.mxu1 }
 0x510   :  { %v4088_v62 = vmax.f32 %v3023_v57, 0.0  ;;  %v8409_v57 = vld [vmem:[%s12606_s4 + $0x280] sm:$0xff]  ;;  %v4083_v32 = vmax.f32 %v3011_v45, 0.0 }
 0x512   :  { %4705 = vmatpush.msrb.mxu3 %v4088_v62  ;;  %v3006_v62 = vadd.f32 %v10587_v0, %v3005_v53 }
 0x514   :  { %4706 = vmatpush.msrb.mxu3 %v4087_v23  ;;  %v3003_v23 = vadd.f32 %v10587_v0, %v10865_v4  ;;  %v4081_v3 = vmax.f32 %v3006_v62, 0.0  ;;  %v4079_v4 = vmax.f32 %v3001_v37, 0.0  ;;  %v4076_v62 = vmax.f32 %v2993_v50, 0.0 }
 0x515   :  { %v10938_v20 = vpop.f32.mrf.mxu0  ;;  %v4074_v37 = vmax.f32 %v2988_v24, 0.0  ;;  %v4135_v50 = vmax.f32 %v3141_v63, 0.0  ;;  %v3118_v63 = vadd.f32 %v10587_v0, %v9289_v44 }
 0x516   :  { %4707 = vmatpush.msrb.mxu3 %v4086_v38  ;;  %v4080_v53 = vmax.f32 %v3003_v23, 0.0  ;;  %v2996_v38 = vadd.f32 %v10587_v0, %v10833_v5  ;;  %v4494_v5 = vld [vmem:[%s12798_s21 + $0x128] sm:$0xff] }
 0x518   :  { %8113 = vmatmul.msk.bf16.gmra.mxu0 %vm1880_vm2, %v8409_v57  ;;  %4708 = vmatpush.msrb.mxu3 %v4085_v17  ;;  %v2998_v17 = vadd.f32 %v10587_v0, %v10845_v19  ;;  %v2991_v19 = vadd.f32 %v10587_v0, %v10797_v29  ;;  %v4077_v42 = vmax.f32 %v2996_v38, 0.0  ;;  %v2986_v29 = vadd.f32 %v10587_v0, %v10767_v58  ;;  %v4465_v58 = vld [vmem:[%s12798_s21 + $0x40] sm:$0xff] }
 0x51a   :  { %4709 = vmatpush.msrb.mxu3 %v4084_v13  ;;  %v4078_v57 = vmax.f32 %v2998_v17, 0.0  ;;  %v10965_v13 = vpop.f32.mrf.mxu1  ;;  %v4075_v23 = vmax.f32 %v2991_v19, 0.0  ;;  %v4073_v17 = vmax.f32 %v2986_v29, 0.0  ;;  %v3131_v19 = vadd.f32 %v10587_v0, %v9368_v55 }
 0x51b   :  { %v3123_v29 = vadd.f32 %v10587_v0, %v9327_v33 }
 0x51c   :  { %4710 = vmatpush.msrb.mxu3 %v4083_v32  ;;  %v10973_v32 = vpop.f32.mrf.mxu3 }
 0x51d   :  { %v10946_v6 = vpop.f32.mrf.mxu0  ;;  %4655 = vmatmul.f32.gmra.mxu3 %v4494_v5 }
 0x51e   :  { %4711 = vmatpush.msrb.mxu3 %v4082_v60  ;;  %v3143_v60 = vadd.f32 %v10587_v0, %v9435_v48  ;;  %v3136_v48 = vadd.f32 %v10587_v0, %v9396_v11  ;;  %v3128_v11 = vadd.f32 %v10587_v0, %v9355_v56 }
 0x520   :  { %4712 = vmatpush.msrb.mxu3 %v4081_v3  ;;  %v4136_v38 = vmax.f32 %v3143_v60, 0.0  ;;  %v4130_v55 = vmax.f32 %v3128_v11, 0.0  ;;  %v3121_v60 = vadd.f32 %v10587_v0, %v9310_v22  ;;  %v8412_v22 = vld [vmem:[%s12606_s4 + $0x298] sm:$0xff] }
 0x522   :  { %4713 = vmatpush.msrb.mxu3 %v4080_v53  ;;  %v3138_v53 = vadd.f32 %v10587_v0, %v9411_v26  ;;  %v10992_v12 = vpop.f32.mrf.mxu1  ;;  %v4127_v33 = vmax.f32 %v3121_v60, 0.0 }
 0x524   :  { %4714 = vmatpush.msrb.mxu3 %v4079_v4  ;;  %v10988_v4 = vpop.f32.mrf.mxu3  ;;  %v4134_v26 = vmax.f32 %v3138_v53, 0.0  ;;  %v3113_v53 = vadd.f32 %v10587_v0, %v9239_v30  ;;  %v3108_v30 = vadd.f32 %v10587_v0, %v9212_v10  ;;  %v3261_v10 = vadd.f32 %v10587_v0, %v10229_v8 }
 0x525   :  { %v10961_v45 = vpop.f32.mrf.mxu0  ;;  %v3256_v8 = vadd.f32 %v10587_v0, %v10199_v16  ;;  %v3248_v16 = vadd.f32 %v10587_v0, %v10143_v36 }
 0x526   :  { %4715 = vmatpush.msrb.mxu3 %v4078_v57  ;;  %v3133_v57 = vadd.f32 %v10587_v0, %v9383_v2  ;;  %v3126_v2 = vadd.f32 %v10587_v0, %v9340_v21  ;;  %v4128_v21 = vmax.f32 %v3123_v29, 0.0  ;;  %v4122_v11 = vmax.f32 %v3108_v30, 0.0 }
 0x527   :  { %v4183_v60 = vmax.f32 %v3261_v10, 0.0  ;;  %v12855_v10 = vld [vmem:[#allocation122_spill] sm:$0xff] }
 0x528   :  { %8114 = vmatmul.msk.bf16.gmra.mxu0 %vm1880_vm2, %v8410_v54  ;;  %4716 = vmatpush.msrb.mxu3 %v4077_v42  ;;  %v8411_v54 = vld [vmem:[%s12606_s4 + $0x290] sm:$0xff]  ;;  %v4133_v42 = vmax.f32 %v3136_v48, 0.0  ;;  %v4132_v24 = vmax.f32 %v3133_v57, 0.0  ;;  %v4129_v56 = vmax.f32 %v3126_v2, 0.0  ;;  %v4124_v57 = vmax.f32 %v3113_v53, 0.0 }
 0x52a   :  { %4717 = vmatpush.msrb.mxu3 %v4076_v62  ;;  %v4131_v62 = vmax.f32 %v3131_v19, 0.0 }
 0x52c   :  { %4718 = vmatpush.msrb.mxu3 %v4075_v23  ;;  %v11010_v23 = vpop.f32.mrf.mxu1 }
 0x52d   :  { %v10981_v3 = vpop.f32.mrf.mxu0 }
 0x52e   :  { %4719 = vmatpush.msrb.mxu3 %v4074_v37 }
 0x530   :  { %4720 = vmatpush.msrb.mxu3 %v4073_v17  ;;  %v3116_v17 = vadd.f32 %v10587_v0, %v9266_v49  ;;  %v4497_v49 = vld [vmem:[%s12798_s21 + $0x140] sm:$0xff] }
 0x531   :  { %4721 = vmatmul.f32.vlgmr.msrb.gmra.mxu3 %v4465_v58  ;;  %v3111_v58 = vadd.f32 %v10587_v0, %v9232_v18  ;;  %v11039_v18 = vpop.f32.mrf.mxu2 }
 0x532   :  { %4774 = vmatpush.msra.mxu3 %v4136_v38  ;;  %v4126_v38 = vmax.f32 %v3118_v63, 0.0  ;;  %v4125_v44 = vmax.f32 %v3116_v17, 0.0  ;;  %v4181_v17 = vmax.f32 %v3256_v8, 0.0 }
 0x533   :  { %v4123_v19 = vmax.f32 %v3111_v58, 0.0 }
 0x534   :  { %4775 = vmatpush.msra.mxu3 %v4135_v50  ;;  %v11029_v50 = vpop.f32.mrf.mxu1 }
 0x535   :  { %v11001_v5 = vpop.f32.mrf.mxu0 }
 0x536   :  { %4776 = vmatpush.msra.mxu3 %v4134_v26  ;;  %v11036_v26 = vpop.f32.mrf.mxu3 }
 0x538   :  { %4777 = vmatpush.msra.mxu3 %v4133_v42  ;;  %8115 = vmatmul.msk.bf16.gmra.mxu0 %vm1880_vm2, %v8411_v54  ;;  %v3106_v54 = vadd.f32 %v10587_v0, %v9208_v7  ;;  %v3263_v42 = vadd.f32 %v10587_v0, %v10235_v51  ;;  %v4468_v7 = vld [vmem:[%s12798_s21 + $0x58] sm:$0xff] }
 0x539   :  { %4724 = vmatmul.f32.gmra.mxu3 %v4497_v49  ;;  %v3241_v49 = vadd.f32 %v10587_v0, %v10101_v41 }
 0x53a   :  { %4778 = vmatpush.msra.mxu3 %v4132_v24  ;;  %v4121_v24 = vmax.f32 %v3106_v54, 0.0  ;;  %v4184_v29 = vmax.f32 %v3263_v42, 0.0  ;;  %v3236_v54 = vadd.f32 %v10587_v0, %v10053_v52  ;;  %v3233_v42 = vadd.f32 %v10587_v0, %v10024_v39  ;;  %v4500_v52 = vld [vmem:[%s12798_s21 + $0x158] sm:$0xff] }
 0x53c   :  { %4779 = vmatpush.msra.mxu3 %v4131_v62  ;;  %v3258_v62 = vadd.f32 %v10587_v0, %v10207_v9  ;;  %v3253_v9 = vadd.f32 %v10587_v0, %v10175_v27  ;;  %v4172_v8 = vmax.f32 %v3233_v42, 0.0 }
 0x53d   :  { %v11014_v37 = vpop.f32.mrf.mxu0 }
 0x53e   :  { %4780 = vmatpush.msra.mxu3 %v4130_v55  ;;  %v11054_v55 = vpop.f32.mrf.mxu1  ;;  %v11056_v51 = vpop.f32.mrf.mxu3  ;;  %v4182_v63 = vmax.f32 %v3258_v62, 0.0  ;;  %v4180_v53 = vmax.f32 %v3253_v9, 0.0 }
 0x540   :  { %4781 = vmatpush.msra.mxu3 %v4129_v56  ;;  %v11060_v56 = vpop.f32.mrf.mxu2 }
 0x542   :  { %4782 = vmatpush.msra.mxu3 %v4128_v21  ;;  %v3251_v21 = vadd.f32 %v10587_v0, %v10167_v40  ;;  %v3243_v40 = vadd.f32 %v10587_v0, %v10111_v15 }
 0x544   :  { %4783 = vmatpush.msra.mxu3 %v4127_v33 }
 0x545   :  { %v11027_v48 = vpop.f32.mrf.mxu0 }
 0x546   :  { %4784 = vmatpush.msra.mxu3 %v4126_v38  ;;  %v3246_v38 = vadd.f32 %v10587_v0, %v10135_v31  ;;  %v11074_v58 = vpop.f32.mrf.mxu1  ;;  %v3238_v31 = vadd.f32 %v10587_v0, %v10069_v14  ;;  %v4173_v14 = vmax.f32 %v3236_v54, 0.0  ;;  %v11101_v39 = vpop.f32.mrf.mxu3 }
 0x548   :  { %4785 = vmatpush.msra.mxu3 %v4125_v44  ;;  %8116 = vmatmul.msk.bf16.gmra.mxu0 %vm1880_vm2, %v8412_v22  ;;  %v4179_v22 = vmax.f32 %v3251_v21, 0.0  ;;  %v11072_v27 = vpop.f32.mrf.mxu2  ;;  %v4178_v44 = vmax.f32 %v3248_v16, 0.0  ;;  %v4177_v36 = vmax.f32 %v3246_v38, 0.0  ;;  %v4174_v41 = vmax.f32 %v3238_v31, 0.0 }
 0x54a   :  { %4786 = vmatpush.msra.mxu3 %v4124_v57  ;;  %v4176_v57 = vmax.f32 %v3243_v40, 0.0 }
 0x54c   :  { %4787 = vmatpush.msra.mxu3 %v4123_v19  ;;  %v4175_v19 = vmax.f32 %v3241_v49, 0.0  ;;  %v12860_v49 = vld [vmem:[#allocation13_spill] sm:$0xff] }
 0x54d   :  { %v11047_v2 = vpop.f32.mrf.mxu0 }
 0x54e   :  { %4788 = vmatpush.msra.mxu3 %v4122_v11  ;;  %v11090_v11 = vpop.f32.mrf.mxu1  ;;  %v11121_v42 = vpop.f32.mrf.mxu3 }
 0x54f   :  { %12861 = vst [vmem:[#allocation122_spill] sm:$0xff] %v11121_v42 }
 0x550   :  { %4789 = vmatpush.msra.mxu3 %v4121_v24  ;;  %v11086_v15 = vpop.f32.mrf.mxu2  ;;  %v3231_v24 = vadd.f32 %v10587_v0, %v12855_v10 }
 0x551   :  { %4790 = vmatmul.f32.vlgmr.msra.gmra.mxu3 %v4468_v7 }
 0x552   :  { %4843 = vmatpush.msrb.mxu3 %v4184_v29  ;;  %v12856_v29 = vld [vmem:[#allocation119_spill] sm:$0xff] }
 0x553   :  { %v3228_v7 = vadd.f32 %v10587_v0, %v12856_v29  ;;  %v12863_v29 = vld [vmem:[#allocation11_spill] sm:$0xff] }
 0x554   :  { %4844 = vmatpush.msrb.mxu3 %v4183_v60  ;;  %v12857_v60 = vld [vmem:[#allocation116_spill] sm:$0xff] }
 0x555   :  { %v11066_v33 = vpop.f32.mrf.mxu0  ;;  %v3226_v9 = vadd.f32 %v10587_v0, %v12857_v60  ;;  %v4170_v38 = vmax.f32 %v3228_v7, 0.0  ;;  %v3373_v7 = vadd.f32 %v10587_v0, %v12863_v29  ;;  %v12864_v60 = vld [vmem:[#allocation10_spill] sm:$0xff] }
 0x556   :  { %4845 = vmatpush.msrb.mxu3 %v4182_v63  ;;  %v4171_v63 = vmax.f32 %v3231_v24, 0.0  ;;  %v3355_v54 = vpop.f32.mrf.mxu1 }
 0x558   :  { %4846 = vmatpush.msrb.mxu3 %v4181_v17  ;;  %v11105_v21 = vpop.f32.mrf.mxu2  ;;  %v12858_v17 = vld [vmem:[#allocation15_spill] sm:$0xff] }
 0x559   :  { %4793 = vmatmul.f32.gmra.mxu3 %v4500_v52  ;;  %v3383_v16 = vadd.f32 %v10587_v0, %v12858_v17  ;;  %v4460_v52 = vld [vmem:[%s12798_s21 + $0x18] sm:$0xff] }
 0x55a   :  { %4847 = vmatpush.msrb.mxu3 %v4180_v53  ;;  %v4489_v53 = vld [vmem:[%s12798_s21 + $0x100] sm:$0xff] }
 0x55b   :  { %4540 = vmatmul.f32.gmra.mxu1 %v4489_v53  ;;  %v4232_v31 = vmax.f32 %v3383_v16, 0.0  ;;  %v12865_v17 = vld [vmem:[#allocation9_spill] sm:$0xff]  ;;  %v4228_v53 = vmax.f32 %v3373_v7, 0.0 }
 0x55c   :  { %4848 = vmatpush.msrb.mxu3 %v4179_v22  ;;  %v12859_v22 = vld [vmem:[#allocation14_spill] sm:$0xff]  ;;  %v3368_v16 = vadd.f32 %v10587_v0, %v12865_v17 }
 0x55d   :  { %v11080_v30 = vpop.f32.mrf.mxu0  ;;  %v3381_v40 = vadd.f32 %v10587_v0, %v12859_v22  ;;  %v12866_v22 = vld [vmem:[#allocation8_spill] sm:$0xff] }
 0x55e   :  { %4849 = vmatpush.msrb.mxu3 %v4178_v44  ;;  %v4169_v44 = vmax.f32 %v3226_v9, 0.0  ;;  %v3371_v9 = vadd.f32 %v10587_v0, %v12864_v60  ;;  %v3356_v60 = vadd.f32 %v10587_v0, %v3355_v54  ;;  %v3351_v54 = vadd.f32 %v10587_v0, %v11074_v58 }
 0x55f   :  { %v4231_v24 = vmax.f32 %v3381_v40, 0.0  ;;  %v3366_v40 = vadd.f32 %v10587_v0, %v12866_v22 }
 0x560   :  { %4850 = vmatpush.msrb.mxu3 %v4177_v36  ;;  %v3378_v36 = vadd.f32 %v10587_v0, %v12860_v49  ;;  %v3357_v49 = vpop.f32.mrf.mxu1 }
 0x561   :  { %v4225_v29 = vmax.f32 %v3366_v40, 0.0  ;;  %v3358_v7 = vadd.f32 %v10587_v0, %v3357_v49  ;;  %v3348_v49 = vadd.f32 %v10587_v0, %v11054_v55  ;;  %v4463_v55 = vld [vmem:[%s12798_s21 + $0x30] sm:$0xff] }
 0x562   :  { %4851 = vmatpush.msrb.mxu3 %v4176_v57 }
 0x563   :  { %4606 = vmatmul.f32.vlgmr.msra.gmra.mxu1 %v4460_v52 }
 0x564   :  { %4852 = vmatpush.msrb.mxu3 %v4175_v19  ;;  %v4471_v19 = vld [vmem:[%s12798_s21 + $0x70] sm:$0xff] }
 0x565   :  { %v11094_v62 = vpop.f32.mrf.mxu0 }
 0x566   :  { %4853 = vmatpush.msrb.mxu3 %v4174_v41  ;;  %v12862_v41 = vld [vmem:[#allocation12_spill] sm:$0xff] }
 0x567   :  { %v3376_v10 = vadd.f32 %v10587_v0, %v12862_v41 }
 0x568   :  { %4854 = vmatpush.msrb.mxu3 %v4173_v14  ;;  %v11125_v14 = vpop.f32.mrf.mxu2 }
 0x56a   :  { %4855 = vmatpush.msrb.mxu3 %v4172_v8  ;;  %v4230_v8 = vmax.f32 %v3378_v36, 0.0 }
 0x56c   :  { %4856 = vmatpush.msrb.mxu3 %v4171_v63  ;;  %v4229_v63 = vmax.f32 %v3376_v10, 0.0  ;;  %v4226_v10 = vmax.f32 %v3368_v16, 0.0  ;;  %v3353_v16 = vadd.f32 %v10587_v0, %v11090_v11  ;;  %v4493_v11 = vld [vmem:[%s12798_s21 + $0x120] sm:$0xff] }
 0x56d   :  { %v11116_v57 = vpop.f32.mrf.mxu0  ;;  %4632 = vmatmul.f32.gmra.mxu2 %v4493_v11  ;;  %v12874_v11 = vld [vmem:[#allocation131_spill] sm:$0xff] }
 0x56e   :  { %4857 = vmatpush.msrb.mxu3 %v4170_v38 }
 0x570   :  { %4858 = vmatpush.msrb.mxu3 %v4169_v44  ;;  %v4227_v44 = vmax.f32 %v3371_v9, 0.0  ;;  %v11140_v36 = vpop.f32.mrf.mxu2 }
 0x571   :  { %4859 = vmatmul.f32.vlgmr.msrb.gmra.mxu3 %v4471_v19  ;;  %v12868_v19 = vld [vmem:[#allocation7_spill] sm:$0xff] }
 0x572   :  { %4912 = vmatpush.msra.mxu3 %v4232_v31  ;;  %v11142_v31 = vpop.f32.mrf.mxu3  ;;  %v3363_v41 = vadd.f32 %v10587_v0, %v12868_v19  ;;  %v4220_v19 = vmax.f32 %v3353_v16, 0.0  ;;  %v12873_v16 = vld [vmem:[#allocation133_spill] sm:$0xff] }
 0x573   :  { %12867 = vst [vmem:[#allocation119_spill] sm:$0xff] %v11142_v31 }
 0x574   :  { %4913 = vmatpush.msra.mxu3 %v4231_v24  ;;  %v12869_v24 = vld [vmem:[#allocation6_spill] sm:$0xff] }
 0x575   :  { %v11136_v38 = vpop.f32.mrf.mxu0  ;;  %v3361_v52 = vadd.f32 %v10587_v0, %v12869_v24  ;;  %v4219_v24 = vmax.f32 %v3351_v54, 0.0 }
 0x576   :  { %4914 = vmatpush.msra.mxu3 %v4230_v8  ;;  %v4224_v8 = vmax.f32 %v3363_v41, 0.0  ;;  %v4503_v41 = vld [vmem:[%s12798_s21 + $0x170] sm:$0xff] }
 0x577   :  { %v4223_v17 = vmax.f32 %v3361_v52, 0.0  ;;  %v4218_v52 = vmax.f32 %v3348_v49, 0.0  ;;  %v4474_v49 = vld [vmem:[%s12798_s21 + $0x88] sm:$0xff] }
 0x578   :  { %4915 = vmatpush.msra.mxu3 %v4229_v63  ;;  %v4492_v63 = vld [vmem:[%s12798_s21 + $0x118] sm:$0xff]  ;;  %v11155_v22 = vpop.f32.mrf.mxu2 }
 0x579   :  { %4609 = vmatmul.f32.gmra.mxu1 %v4492_v63  ;;  %4862 = vmatmul.f32.gmra.mxu3 %v4503_v41  ;;  %v12872_v63 = vld [vmem:[#allocation135_spill] sm:$0xff] }
 0x57a   :  { %4916 = vmatpush.msra.mxu3 %v4228_v53  ;;  %v4222_v53 = vmax.f32 %v3358_v7, 0.0  ;;  %v11157_v40 = vpop.f32.mrf.mxu3  ;;  %v12871_v7 = vld [vmem:[#allocation137_spill] sm:$0xff] }
 0x57b   :  { %12870 = vst [vmem:[#allocation116_spill] sm:$0xff] %v11157_v40  ;;  %v12972_v40 = vld [vmem:[#allocation68_spill] sm:$0xff] }
 0x57c   :  { %4917 = vmatpush.msra.mxu3 %v4227_v44  ;;  %v4221_v44 = vmax.f32 %v3356_v60, 0.0 }
 0x57d   :  { %v3057_v9 = vpop.f32.mrf.mxu0 }
 0x57e   :  { %4918 = vmatpush.msra.mxu3 %v4226_v10  ;;  %v3346_v10 = vadd.f32 %v10587_v0, %v11029_v50 }
 0x580   :  { %4919 = vmatpush.msra.mxu3 %v4225_v29  ;;  %v11177_v29 = vld [vmem:[%s12607_s29] ss:$0 sm:$0xff]  ;;  %v11181_v50 = vpop.f32.mrf.mxu2  ;;  %v4217_v60 = vmax.f32 %v3346_v10, 0.0 }
 0x581   :  { %4675 = vmatmul.f32.vlgmr.msrb.gmra.mxu1 %v4463_v55  ;;  %v3503_v0 = vadd.f32 %v11177_v29, %v12871_v7  ;;  %v3496_v41 = vadd.f32 %v11177_v29, %v12874_v11  ;;  %v12875_v7 = vld [vmem:[#allocation129_spill] sm:$0xff] }
 0x582   :  { %4920 = vmatpush.msra.mxu3 %v4224_v8  ;;  %v11183_v8 = vpop.f32.mrf.mxu3 }
 0x583   :  { %v4280_v54 = vmax.f32 %v3503_v0, 0.0  ;;  %v3493_v0 = vadd.f32 %v11177_v29, %v12875_v7 }
 0x584   :  { %4921 = vmatpush.msra.mxu3 %v4223_v17  ;;  %v3501_v17 = vadd.f32 %v11177_v29, %v12872_v63  ;;  %v3058_v63 = vadd.f32 %v11177_v29, %v3057_v9 }
 0x585   :  { %v3060_v58 = vpop.f32.mrf.mxu0  ;;  %v4276_v9 = vmax.f32 %v3493_v0, 0.0 }
 0x586   :  { %4922 = vmatpush.msra.mxu3 %v4222_v53  ;;  %v3498_v53 = vadd.f32 %v11177_v29, %v12873_v16  ;;  %v4279_v10 = vmax.f32 %v3501_v17, 0.0 }
 0x588   :  { %4923 = vmatpush.msra.mxu3 %v4221_v44  ;;  %v4464_v44 = vld [vmem:[%s12798_s21 + $0x38] sm:$0xff]  ;;  %v11205_v17 = vpop.f32.mrf.mxu2 }
 0x589   :  { %4698 = vmatmul.f32.vlgmr.msrb.gmra.mxu2 %v4464_v44  ;;  %v12876_v44 = vld [vmem:[#allocation127_spill] sm:$0xff] }
 0x58a   :  { %4924 = vmatpush.msra.mxu3 %v4220_v19 }
 0x58c   :  { %4925 = vmatpush.msra.mxu3 %v4219_v24  ;;  %v3061_v24 = vadd.f32 %v11177_v29, %v3060_v58  ;;  %v11207_v58 = vpop.f32.mrf.mxu3 }
 0x58d   :  { %v3062_v19 = vpop.f32.mrf.mxu0 }
 0x58e   :  { %4926 = vmatpush.msra.mxu3 %v4218_v52  ;;  %v3063_v55 = vadd.f32 %v11177_v29, %v3062_v19  ;;  %v4495_v52 = vld [vmem:[%s12798_s21 + $0x130] sm:$0xff]  ;;  %v4277_v19 = vmax.f32 %v3496_v41, 0.0  ;;  %v4103_v11 = vmax.f32 %v3061_v24, 0.0 }
 0x58f   :  { %4678 = vmatmul.f32.gmra.mxu1 %v4495_v52  ;;  %v12877_v52 = vld [vmem:[#allocation125_spill] sm:$0xff] }
 0x590   :  { %4927 = vmatpush.msra.mxu3 %v4217_v60  ;;  %v4278_v60 = vmax.f32 %v3498_v53, 0.0  ;;  %v4104_v16 = vmax.f32 %v3063_v55, 0.0  ;;  %v3488_v53 = vadd.f32 %v11177_v29, %v12877_v52  ;;  %v4102_v55 = vmax.f32 %v3058_v63, 0.0 }
 0x591   :  { %4928 = vmatmul.f32.vlgmr.msra.gmra.mxu3 %v4474_v49  ;;  %v3056_v49 = vadd.f32 %v11177_v29, %v11136_v38  ;;  %v3051_v38 = vadd.f32 %v11177_v29, %v11094_v62  ;;  %v3046_v52 = vadd.f32 %v11177_v29, %v11066_v33  ;;  %v3041_v33 = vadd.f32 %v11177_v29, %v11027_v48 }
 0x592   :  { %4981 = vmatpush.msrb.mxu3 %v4280_v54  ;;  %v3491_v54 = vadd.f32 %v11177_v29, %v12876_v44  ;;  %4728 = vmatpush.msra.mxu1 %v4104_v16  ;;  %v12878_v44 = vld [vmem:[#allocation123_spill] sm:$0xff]  ;;  %v4274_v16 = vmax.f32 %v3488_v53, 0.0  ;;  %v12881_v53 = vld [vmem:[#allocation114_spill] sm:$0xff] }
 0x593   :  { %v3486_v41 = vadd.f32 %v11177_v29, %v12878_v44  ;;  %v4101_v24 = vmax.f32 %v3056_v49, 0.0 }
 0x594   :  { %4982 = vmatpush.msrb.mxu3 %v4279_v10  ;;  %v3053_v10 = vadd.f32 %v11177_v29, %v11116_v57  ;;  %4729 = vmatpush.msra.mxu1 %v4103_v11  ;;  %v4275_v42 = vmax.f32 %v3491_v54, 0.0  ;;  %v3048_v57 = vadd.f32 %v11177_v29, %v11080_v30  ;;  %v11229_v11 = vpop.f32.mrf.mxu3  ;;  %v12880_v54 = vld [vmem:[#allocation117_spill] sm:$0xff]  ;;  %v3478_v30 = vadd.f32 %v11177_v29, %v12881_v53 }
 0x595   :  { %v11217_v7 = vpop.f32.mrf.mxu0  ;;  %v3481_v62 = vadd.f32 %v11177_v29, %v12880_v54  ;;  %v4273_v49 = vmax.f32 %v3486_v41, 0.0  ;;  %v4095_v53 = vmax.f32 %v3041_v33, 0.0  ;;  %v12886_v33 = vld [vmem:[#allocation99_spill] sm:$0xff] }
 0x596   :  { %4983 = vmatpush.msrb.mxu3 %v4278_v60  ;;  %4730 = vmatpush.msra.mxu1 %v4102_v55  ;;  %v12879_v60 = vld [vmem:[#allocation120_spill] sm:$0xff]  ;;  %v4100_v63 = vmax.f32 %v3053_v10, 0.0  ;;  %v4098_v55 = vmax.f32 %v3048_v57, 0.0 }
 0x597   :  { %v3483_v0 = vadd.f32 %v11177_v29, %v12879_v60  ;;  %v4271_v60 = vmax.f32 %v3481_v62, 0.0  ;;  %v12884_v62 = vld [vmem:[#allocation105_spill] sm:$0xff] }
 0x598   :  { %4984 = vmatpush.msrb.mxu3 %v4277_v19  ;;  %4731 = vmatpush.msra.mxu1 %v4101_v24  ;;  %v11227_v19 = vpop.f32.mrf.mxu2  ;;  %v12882_v24 = vld [vmem:[#allocation111_spill] sm:$0xff]  ;;  %v3471_v48 = vadd.f32 %v11177_v29, %v12884_v62 }
 0x599   :  { %v4272_v10 = vmax.f32 %v3483_v0, 0.0  ;;  %v3476_v41 = vadd.f32 %v11177_v29, %v12882_v24  ;;  %v3033_v24 = vadd.f32 %v11177_v29, %v10981_v3  ;;  %v3621_v3 = vadd.f32 %v11177_v29, %v11155_v22  ;;  %v12887_v22 = vld [vmem:[#allocation65_spill] sm:$0xff] }
 0x59a   :  { %4985 = vmatpush.msrb.mxu3 %v4276_v9  ;;  %v4099_v9 = vmax.f32 %v3051_v38, 0.0  ;;  %4732 = vmatpush.msra.mxu1 %v4100_v63  ;;  %v4097_v38 = vmax.f32 %v3046_v52, 0.0  ;;  %v4270_v63 = vmax.f32 %v3478_v30, 0.0  ;;  %v4506_v30 = vld [vmem:[%s12798_s21 + $0x188] sm:$0xff] }
 0x59b   :  { %v4269_v52 = vmax.f32 %v3476_v41, 0.0  ;;  %4931 = vmatmul.f32.gmra.mxu3 %v4506_v30  ;;  %v4327_v30 = vmax.f32 %v3621_v3, 0.0  ;;  %v12890_v3 = vld [vmem:[#allocation56_spill] sm:$0xff] }
 0x59c   :  { %4986 = vmatpush.msrb.mxu3 %v4275_v42  ;;  %v3043_v42 = vadd.f32 %v11177_v29, %v11047_v2  ;;  %4733 = vmatpush.msra.mxu1 %v4099_v9  ;;  %v3038_v2 = vadd.f32 %v11177_v29, %v11014_v37  ;;  %v3036_v9 = vadd.f32 %v11177_v29, %v11001_v5  ;;  %v4496_v37 = vld [vmem:[%s12798_s21 + $0x138] sm:$0xff] }
 0x59d   :  { %v11239_v44 = vpop.f32.mrf.mxu0  ;;  %4701 = vmatmul.f32.gmra.mxu2 %v4496_v37  ;;  %v3183_v37 = vadd.f32 %v11177_v29, %v12887_v22  ;;  %v3608_v22 = vadd.f32 %v11177_v29, %v11072_v27  ;;  %v3603_v27 = vadd.f32 %v11177_v29, %v11039_v18  ;;  %v12895_v18 = vld [vmem:[#allocation41_spill] sm:$0xff] }
 0x59e   :  { %4987 = vmatpush.msrb.mxu3 %v4274_v16  ;;  %4734 = vmatpush.msra.mxu1 %v4098_v55  ;;  %v12883_v16 = vld [vmem:[#allocation108_spill] sm:$0xff]  ;;  %v4096_v57 = vmax.f32 %v3043_v42, 0.0  ;;  %v4094_v41 = vmax.f32 %v3038_v2, 0.0 }
 0x59f   :  { %v3473_v0 = vadd.f32 %v11177_v29, %v12883_v16  ;;  %v4267_v16 = vmax.f32 %v3471_v48, 0.0 }
 0x5a0   :  { %4988 = vmatpush.msrb.mxu3 %v4273_v49  ;;  %4735 = vmatpush.msra.mxu1 %v4097_v38  ;;  %v11249_v54 = vpop.f32.mrf.mxu2  ;;  %v11251_v49 = vpop.f32.mrf.mxu3  ;;  %v3466_v38 = vadd.f32 %v11177_v29, %v12886_v33 }
 0x5a1   :  { %v4268_v55 = vmax.f32 %v3473_v0, 0.0  ;;  %v3031_v0 = vadd.f32 %v11177_v29, %v10961_v45  ;;  %v3026_v45 = vadd.f32 %v11177_v29, %v10938_v20 }
 0x5a2   :  { %4989 = vmatpush.msrb.mxu3 %v4272_v10  ;;  %4736 = vmatpush.msra.mxu1 %v4096_v57  ;;  %v12885_v10 = vld [vmem:[#allocation102_spill] sm:$0xff]  ;;  %v3028_v57 = vadd.f32 %v11177_v29, %v10946_v6  ;;  %v3618_v6 = vadd.f32 %v11177_v29, %v11140_v36  ;;  %v12889_v36 = vld [vmem:[#allocation59_spill] sm:$0xff] }
 0x5a3   :  { %v3468_v42 = vadd.f32 %v11177_v29, %v12885_v10  ;;  %v4477_v10 = vld [vmem:[%s12798_s21 + $0xa0] sm:$0xff]  ;;  %v3178_v33 = vadd.f32 %v11177_v29, %v12889_v36  ;;  %v4322_v36 = vmax.f32 %v3608_v22, 0.0 }
 0x5a4   :  { %4990 = vmatpush.msrb.mxu3 %v4271_v60  ;;  %4737 = vmatpush.msra.mxu1 %v4095_v53  ;;  %v3623_v60 = vadd.f32 %v11177_v29, %v11181_v50  ;;  %v4092_v50 = vmax.f32 %v3033_v24, 0.0  ;;  %v4265_v53 = vmax.f32 %v3466_v38, 0.0  ;;  %v3616_v24 = vadd.f32 %v11177_v29, %v11125_v14 }
 0x5a5   :  { %v11267_v5 = vpop.f32.mrf.mxu0  ;;  %v4266_v2 = vmax.f32 %v3468_v42, 0.0  ;;  %v4090_v42 = vmax.f32 %v3028_v57, 0.0  ;;  %v4152_v38 = vmax.f32 %v3183_v37, 0.0 }
 0x5a6   :  { %4991 = vmatpush.msrb.mxu3 %v4270_v63  ;;  %v4093_v63 = vmax.f32 %v3036_v9, 0.0  ;;  %4738 = vmatpush.msra.mxu1 %v4094_v41  ;;  %v4091_v9 = vmax.f32 %v3031_v0, 0.0  ;;  %v4326_v0 = vmax.f32 %v3618_v6, 0.0  ;;  %v12892_v6 = vld [vmem:[#allocation50_spill] sm:$0xff] }
 0x5a8   :  { %4992 = vmatpush.msrb.mxu3 %v4269_v52  ;;  %4739 = vmatpush.msra.mxu1 %v4093_v63  ;;  %v11279_v62 = vpop.f32.mrf.mxu2  ;;  %v4328_v52 = vmax.f32 %v3623_v60, 0.0  ;;  %v11281_v48 = vpop.f32.mrf.mxu3  ;;  %v4089_v60 = vmax.f32 %v3026_v45, 0.0  ;;  %v4466_v63 = vld [vmem:[%s12798_s21 + $0x48] sm:$0xff] }
 0x5aa   :  { %4993 = vmatpush.msrb.mxu3 %v4268_v55  ;;  %4740 = vmatpush.msra.mxu1 %v4092_v50  ;;  %v12888_v55 = vld [vmem:[#allocation62_spill] sm:$0xff]  ;;  %v3611_v50 = vadd.f32 %v11177_v29, %v11086_v15 }
 0x5ab   :  { %v3181_v20 = vadd.f32 %v11177_v29, %v12888_v55 }
 0x5ac   :  { %4994 = vmatpush.msrb.mxu3 %v4267_v16  ;;  %4741 = vmatpush.msra.mxu1 %v4091_v9  ;;  %v3613_v16 = vadd.f32 %v11177_v29, %v11105_v21  ;;  %v4150_v9 = vmax.f32 %v3178_v33, 0.0  ;;  %v4498_v33 = vld [vmem:[%s12798_s21 + $0x148] sm:$0xff] }
 0x5ad   :  { %v11296_v41 = vpop.f32.mrf.mxu0  ;;  %v4151_v57 = vmax.f32 %v3181_v20, 0.0  ;;  %v12893_v20 = vld [vmem:[#allocation47_spill] sm:$0xff] }
 0x5ae   :  { %4995 = vmatpush.msrb.mxu3 %v4266_v2  ;;  %4742 = vmatpush.msra.mxu1 %v4090_v42  ;;  %v3176_v2 = vadd.f32 %v11177_v29, %v12890_v3  ;;  %v4324_v37 = vmax.f32 %v3613_v16, 0.0  ;;  %v4323_v42 = vmax.f32 %v3611_v50, 0.0  ;;  %v12896_v50 = vld [vmem:[#allocation231_spill] sm:$0xff] }
 0x5b0   :  { %4996 = vmatpush.msrb.mxu3 %v4265_v53  ;;  %4743 = vmatpush.msra.mxu1 %v4089_v60  ;;  %v11305_v14 = vpop.f32.mrf.mxu2  ;;  %v11311_v21 = vpop.f32.mrf.mxu3  ;;  %v12891_v53 = vld [vmem:[#allocation53_spill] sm:$0xff]  ;;  %v4149_v15 = vmax.f32 %v3176_v2, 0.0  ;;  %v3163_v2 = vadd.f32 %v11177_v29, %v12895_v18 }
 0x5b1   :  { %4997 = vmatmul.f32.vlgmr.msrb.gmra.mxu3 %v4477_v10  ;;  %4744 = vmatmul.f32.vlgmr.msra.gmra.mxu1 %v4466_v63  ;;  %v3173_v45 = vadd.f32 %v11177_v29, %v12891_v53  ;;  %v3606_v10 = vadd.f32 %v11177_v29, %v11060_v56  ;;  %v3601_v63 = vadd.f32 %v11177_v29, %v10752_v1  ;;  %v4320_v53 = vmax.f32 %v3603_v27, 0.0  ;;  %v12903_v18 = vld [vmem:[#allocation29_spill] sm:$0xff] }
 0x5b2   :  { %5050 = vmatpush.msra.mxu3 %v4328_v52  ;;  %v4325_v52 = vmax.f32 %v3616_v24, 0.0  ;;  %4797 = vmatpush.msrb.mxu1 %v4152_v38  ;;  %v3168_v24 = vadd.f32 %v11177_v29, %v12893_v20  ;;  %v12894_v38 = vld [vmem:[#allocation44_spill] sm:$0xff]  ;;  %v4144_v20 = vmax.f32 %v3163_v2, 0.0  ;;  %v3153_v2 = vadd.f32 %v11177_v29, %v12903_v18  ;;  %v12910_v18 = vld [vmem:[#allocation22_spill] sm:$0xff] }
 0x5b3   :  { %v4148_v60 = vmax.f32 %v3173_v45, 0.0  ;;  %v3166_v16 = vadd.f32 %v11177_v29, %v12894_v38  ;;  %v4321_v3 = vmax.f32 %v3606_v10, 0.0  ;;  %v12899_v10 = vld [vmem:[#allocation35_spill] sm:$0xff] }
 0x5b4   :  { %5051 = vmatpush.msra.mxu3 %v4327_v30  ;;  %4798 = vmatpush.msrb.mxu1 %v4151_v57  ;;  %v3171_v30 = vadd.f32 %v11177_v29, %v12892_v6  ;;  %v4146_v57 = vmax.f32 %v3168_v24, 0.0  ;;  %v12900_v24 = vld [vmem:[#allocation224_spill] sm:$0xff] }
 0x5b5   :  { %v11321_v55 = vpop.f32.mrf.mxu0  ;;  %v4145_v1 = vmax.f32 %v3166_v16, 0.0  ;;  %v12902_v16 = vld [vmem:[#allocation222_spill] sm:$0xff] }
 0x5b6   :  { %5052 = vmatpush.msra.mxu3 %v4326_v0  ;;  %4799 = vmatpush.msrb.mxu1 %v4150_v9  ;;  %v4147_v0 = vmax.f32 %v3171_v30, 0.0  ;;  %v12897_v9 = vld [vmem:[#allocation38_spill] sm:$0xff]  ;;  %v4319_v30 = vmax.f32 %v3601_v63, 0.0 }
 0x5b7   :  { %v3161_v22 = vadd.f32 %v11177_v29, %v12897_v9  ;;  %v4509_v9 = vld [vmem:[%s12798_s21 + $0x1a0] sm:$0xff] }
 0x5b8   :  { %5053 = vmatpush.msra.mxu3 %v4325_v52  ;;  %4800 = vmatpush.msrb.mxu1 %v4149_v15  ;;  %v11330_v56 = vpop.f32.mrf.mxu2  ;;  %v3598_v52 = vadd.f32 %v11177_v29, %v12896_v50  ;;  %v11340_v45 = vpop.f32.mrf.mxu3  ;;  %v12904_v50 = vld [vmem:[#allocation220_spill] sm:$0xff] }
 0x5b9   :  { %4747 = vmatmul.f32.gmra.mxu1 %v4498_v33  ;;  %v4143_v38 = vmax.f32 %v3161_v22, 0.0  ;;  %5000 = vmatmul.f32.gmra.mxu3 %v4509_v9  ;;  %v12905_v22 = vld [vmem:[#allocation26_spill] sm:$0xff] }
 0x5ba   :  { %5054 = vmatpush.msra.mxu3 %v4324_v37  ;;  %4801 = vmatpush.msrb.mxu1 %v4148_v60  ;;  %v12898_v37 = vld [vmem:[#allocation227_spill] sm:$0xff]  ;;  %v3593_v60 = vadd.f32 %v11177_v29, %v12900_v24  ;;  %v4318_v27 = vmax.f32 %v3598_v52, 0.0  ;;  %v3588_v52 = vadd.f32 %v11177_v29, %v12904_v50  ;;  %v12907_v24 = vld [vmem:[#allocation130_spill] sm:$0xff] }
 0x5bb   :  { %v3596_v6 = vadd.f32 %v11177_v29, %v12898_v37  ;;  %v12911_v50 = vld [vmem:[#allocation126_spill] sm:$0xff] }
 0x5bc   :  { %5055 = vmatpush.msra.mxu3 %v4323_v42  ;;  %4802 = vmatpush.msrb.mxu1 %v4147_v0  ;;  %v3158_v42 = vadd.f32 %v11177_v29, %v12899_v10  ;;  %v3591_v0 = vadd.f32 %v11177_v29, %v12902_v16  ;;  %v4314_v16 = vmax.f32 %v3588_v52, 0.0 }
 0x5bd   :  { %v11346_v15 = vpop.f32.mrf.mxu0  ;;  %v4317_v63 = vmax.f32 %v3596_v6, 0.0  ;;  %v12906_v6 = vld [vmem:[#allocation218_spill] sm:$0xff] }
 0x5be   :  { %5056 = vmatpush.msra.mxu3 %v4322_v36  ;;  %4803 = vmatpush.msrb.mxu1 %v4146_v57  ;;  %v12901_v36 = vld [vmem:[#allocation32_spill] sm:$0xff]  ;;  %v4142_v57 = vmax.f32 %v3158_v42, 0.0  ;;  %v4315_v10 = vmax.f32 %v3591_v0, 0.0  ;;  %v3146_v0 = vadd.f32 %v11177_v29, %v12910_v18 }
 0x5bf   :  { %v3156_v33 = vadd.f32 %v11177_v29, %v12901_v36 }
 0x5c0   :  { %5057 = vmatpush.msra.mxu3 %v4321_v3  ;;  %4804 = vmatpush.msrb.mxu1 %v4145_v1  ;;  %v11356_v3 = vpop.f32.mrf.mxu2  ;;  %v3151_v1 = vadd.f32 %v11177_v29, %v12905_v22 }
 0x5c1   :  { %v4141_v37 = vmax.f32 %v3156_v33, 0.0  ;;  %v12909_v33 = vld [vmem:[#allocation128_spill] sm:$0xff] }
 0x5c2   :  { %5058 = vmatpush.msra.mxu3 %v4320_v53  ;;  %4805 = vmatpush.msrb.mxu1 %v4144_v20  ;;  %v4316_v53 = vmax.f32 %v3593_v60, 0.0  ;;  %v11369_v20 = vpop.f32.mrf.mxu3  ;;  %v3743_v60 = vadd.f32 %v11177_v29, %v12907_v24 }
 0x5c4   :  { %5059 = vmatpush.msra.mxu3 %v4319_v30  ;;  %4806 = vmatpush.msrb.mxu1 %v4143_v38  ;;  %v3586_v30 = vadd.f32 %v11177_v29, %v12906_v6  ;;  %v4140_v38 = vmax.f32 %v3153_v2, 0.0  ;;  %v4376_v22 = vmax.f32 %v3743_v60, 0.0  ;;  %v3303_v2 = vadd.f32 %v11177_v29, %v10815_v43  ;;  %v4480_v6 = vld [vmem:[%s12798_s21 + $0xb8] sm:$0xff] }
 0x5c5   :  { %v3080_v42 = vpop.f32.mrf.mxu0 }
 0x5c6   :  { %5060 = vmatpush.msra.mxu3 %v4318_v27  ;;  %4807 = vmatpush.msrb.mxu1 %v4142_v57  ;;  %v12908_v27 = vld [vmem:[#allocation24_spill] sm:$0xff]  ;;  %v4139_v57 = vmax.f32 %v3151_v1, 0.0  ;;  %v4313_v9 = vmax.f32 %v3586_v30, 0.0  ;;  %v4137_v30 = vmax.f32 %v3146_v0, 0.0  ;;  %v3081_v18 = vadd.f32 %v11177_v29, %v3080_v42  ;;  %v4469_v0 = vld [vmem:[%s12798_s21 + $0x60] sm:$0xff] }
 0x5c7   :  { %v3148_v36 = vadd.f32 %v11177_v29, %v12908_v27  ;;  %v12913_v27 = vld [vmem:[#allocation124_spill] sm:$0xff]  ;;  %v3078_v42 = vadd.f32 %v11177_v29, %v11346_v15 }
 0x5c8   :  { %5061 = vmatpush.msra.mxu3 %v4317_v63  ;;  %4808 = vmatpush.msrb.mxu1 %v4141_v37  ;;  %v3741_v63 = vadd.f32 %v11177_v29, %v12909_v33  ;;  %v11383_v37 = vpop.f32.mrf.mxu2  ;;  %v3736_v60 = vadd.f32 %v11177_v29, %v12913_v27  ;;  %v4200_v33 = vmax.f32 %v3303_v2, 0.0  ;;  %v12918_v27 = vld [vmem:[#allocation184_spill] sm:$0xff] }
 0x5c9   :  { %v4138_v52 = vmax.f32 %v3148_v36, 0.0  ;;  %v12914_v36 = vld [vmem:[#allocation191_spill] sm:$0xff] }
 0x5ca   :  { %5062 = vmatpush.msra.mxu3 %v4316_v53  ;;  %v3738_v53 = vadd.f32 %v11177_v29, %v12911_v50  ;;  %4809 = vmatpush.msrb.mxu1 %v4140_v38  ;;  %v4375_v1 = vmax.f32 %v3741_v63, 0.0 }
 0x5cc   :  { %5063 = vmatpush.msra.mxu3 %v4315_v10  ;;  %4810 = vmatpush.msrb.mxu1 %v4139_v57  ;;  %v12912_v10 = vld [vmem:[#allocation196_spill] sm:$0xff]  ;;  %v4374_v38 = vmax.f32 %v3738_v53, 0.0  ;;  %v12915_v57 = vld [vmem:[#allocation121_spill] sm:$0xff]  ;;  %v11401_v53 = vpop.f32.mrf.mxu3 }
 0x5cd   :  { %v3301_v24 = vadd.f32 %v11177_v29, %v12912_v10  ;;  %v3082_v43 = vpop.f32.mrf.mxu0  ;;  %v3733_v50 = vadd.f32 %v11177_v29, %v12915_v57  ;;  %v4373_v10 = vmax.f32 %v3736_v60, 0.0  ;;  %v4111_v57 = vmax.f32 %v3081_v18, 0.0 }
 0x5ce   :  { %5064 = vmatpush.msra.mxu3 %v4314_v16  ;;  %4811 = vmatpush.msrb.mxu1 %v4138_v52  ;;  %v3298_v16 = vadd.f32 %v11177_v29, %v12914_v36  ;;  %v3083_v63 = vadd.f32 %v11177_v29, %v3082_v43  ;;  %v3076_v36 = vadd.f32 %v11177_v29, %v11321_v55 }
 0x5cf   :  { %v4199_v52 = vmax.f32 %v3301_v24, 0.0  ;;  %v12919_v24 = vld [vmem:[#allocation115_spill] sm:$0xff] }
 0x5d0   :  { %5065 = vmatpush.msra.mxu3 %v4313_v9  ;;  %4812 = vmatpush.msrb.mxu1 %v4137_v30  ;;  %v12916_v9 = vld [vmem:[#allocation187_spill] sm:$0xff]  ;;  %v4112_v2 = vmax.f32 %v3083_v63, 0.0  ;;  %v3293_v30 = vadd.f32 %v11177_v29, %v12918_v27  ;;  %v4198_v43 = vmax.f32 %v3298_v16, 0.0  ;;  %v3728_v15 = vadd.f32 %v11177_v29, %v12919_v24  ;;  %v12921_v16 = vld [vmem:[#allocation112_spill] sm:$0xff] }
 0x5d1   :  { %5066 = vmatmul.f32.vlgmr.msra.gmra.mxu3 %v4480_v6  ;;  %v12917_v6 = vld [vmem:[#allocation118_spill] sm:$0xff]  ;;  %4813 = vmatmul.f32.vlgmr.msrb.gmra.mxu1 %v4469_v0  ;;  %v3073_v0 = vadd.f32 %v11177_v29, %v11296_v41  ;;  %v3726_v55 = vadd.f32 %v11177_v29, %v12921_v16 }
 0x5d2   :  { %5119 = vmatpush.msrb.mxu3 %v4376_v22  ;;  %v3296_v22 = vadd.f32 %v11177_v29, %v12916_v9  ;;  %4866 = vmatpush.msra.mxu1 %v4200_v33  ;;  %v4372_v33 = vmax.f32 %v3733_v50, 0.0  ;;  %v4110_v9 = vmax.f32 %v3078_v42, 0.0  ;;  %v4501_v41 = vld [vmem:[%s12798_s21 + $0x160] sm:$0xff]  ;;  %v4370_v27 = vmax.f32 %v3728_v15, 0.0  ;;  %v12926_v15 = vld [vmem:[#allocation172_spill] sm:$0xff] }
 0x5d3   :  { %4759 = vmatpush.msra.mxu2 %v4112_v2  ;;  %v12922_v2 = vld [vmem:[#allocation178_spill] sm:$0xff]  ;;  %v12923_v42 = vld [vmem:[#allocation109_spill] sm:$0xff] }
 0x5d4   :  { %5120 = vmatpush.msrb.mxu3 %v4375_v1  ;;  %v3731_v1 = vadd.f32 %v11177_v29, %v12917_v6  ;;  %4867 = vmatpush.msra.mxu1 %v4199_v52  ;;  %v4197_v60 = vmax.f32 %v3296_v22, 0.0  ;;  %v11421_v52 = vpop.f32.mrf.mxu2  ;;  %v3288_v50 = vadd.f32 %v11177_v29, %v12922_v2  ;;  %v4196_v6 = vmax.f32 %v3293_v30, 0.0 }
 0x5d5   :  { %4760 = vmatpush.msra.mxu2 %v4111_v57  ;;  %v3071_v22 = vadd.f32 %v11177_v29, %v11267_v5  ;;  %v3068_v30 = vadd.f32 %v11177_v29, %v11239_v44  ;;  %v4108_v5 = vmax.f32 %v3073_v0, 0.0  ;;  %v12927_v44 = vld [vmem:[#allocation103_spill] sm:$0xff] }
 0x5d6   :  { %5121 = vmatpush.msrb.mxu3 %v4374_v38  ;;  %v12920_v38 = vld [vmem:[#allocation181_spill] sm:$0xff]  ;;  %4868 = vmatpush.msra.mxu1 %v4198_v43  ;;  %v4371_v18 = vmax.f32 %v3731_v1, 0.0  ;;  %v3723_v1 = vadd.f32 %v11177_v29, %v12923_v42  ;;  %v12924_v43 = vld [vmem:[#allocation175_spill] sm:$0xff]  ;;  %v4194_v16 = vmax.f32 %v3288_v50, 0.0  ;;  %v3718_v0 = vadd.f32 %v11177_v29, %v12927_v44  ;;  %v12930_v50 = vld [vmem:[#allocation100_spill] sm:$0xff] }
 0x5d7   :  { %v3291_v63 = vadd.f32 %v11177_v29, %v12920_v38  ;;  %4761 = vmatpush.msra.mxu2 %v4110_v9  ;;  %v3286_v57 = vadd.f32 %v11177_v29, %v12924_v43  ;;  %v4369_v38 = vmax.f32 %v3726_v55, 0.0  ;;  %v3283_v9 = vadd.f32 %v11177_v29, %v12926_v15  ;;  %v12928_v55 = vld [vmem:[#allocation113_spill] sm:$0xff]  ;;  %v12931_v43 = vld [vmem:[#allocation110_spill] sm:$0xff] }
 0x5d8   :  { %5122 = vmatpush.msrb.mxu3 %v4373_v10  ;;  %v4109_v10 = vmax.f32 %v3076_v36, 0.0  ;;  %4869 = vmatpush.msra.mxu1 %v4197_v60  ;;  %v12925_v36 = vld [vmem:[#allocation106_spill] sm:$0xff]  ;;  %v11438_v60 = vpop.f32.mrf.mxu3  ;;  %v4368_v2 = vmax.f32 %v3723_v1, 0.0 }
 0x5d9   :  { %v4195_v24 = vmax.f32 %v3291_v63, 0.0  ;;  %4816 = vmatmul.f32.gmra.mxu1 %v4501_v41  ;;  %v3066_v63 = vadd.f32 %v11177_v29, %v11217_v7  ;;  %v4193_v42 = vmax.f32 %v3286_v57, 0.0  ;;  %v3716_v7 = vadd.f32 %v11177_v29, %v12930_v50  ;;  %v12932_v1 = vld [vmem:[#allocation166_spill] sm:$0xff]  ;;  %v4467_v57 = vld [vmem:[%s12798_s21 + $0x50] sm:$0xff] }
 0x5da   :  { %5123 = vmatpush.msrb.mxu3 %v4372_v33  ;;  %4762 = vmatpush.msra.mxu2 %v4109_v10  ;;  %v3721_v33 = vadd.f32 %v11177_v29, %v12925_v36  ;;  %v12929_v10 = vld [vmem:[#allocation169_spill] sm:$0xff]  ;;  %v4192_v36 = vmax.f32 %v3283_v9, 0.0 }
 0x5db   :  { %4870 = vmatpush.msra.mxu1 %v4196_v6  ;;  %v3223_v6 = vadd.f32 %v11177_v29, %v12928_v55  ;;  %v3281_v41 = vadd.f32 %v11177_v29, %v12929_v10  ;;  %v12935_v55 = vld [vmem:[#allocation163_spill] sm:$0xff]  ;;  %v12936_v10 = vld [vmem:[#allocation94_spill] sm:$0xff] }
 0x5dc   :  { %5124 = vmatpush.msrb.mxu3 %v4371_v18  ;;  %v4107_v18 = vmax.f32 %v3071_v22, 0.0  ;;  %4763 = vmatpush.msra.mxu2 %v4108_v5  ;;  %v4367_v22 = vmax.f32 %v3721_v33, 0.0  ;;  %v3278_v5 = vadd.f32 %v11177_v29, %v12932_v1  ;;  %v11461_v33 = vpop.f32.mrf.mxu2  ;;  %v3276_v9 = vadd.f32 %v11177_v29, %v12935_v55 }
 0x5dd   :  { %4871 = vmatpush.msra.mxu1 %v4195_v24  ;;  %v3221_v24 = vadd.f32 %v11177_v29, %v12931_v43  ;;  %v12938_v43 = vld [vmem:[#allocation160_spill] sm:$0xff] }
 0x5de   :  { %5125 = vmatpush.msrb.mxu3 %v4370_v27  ;;  %v4106_v27 = vmax.f32 %v3068_v30, 0.0  ;;  %4764 = vmatpush.msra.mxu2 %v4107_v18  ;;  %v12933_v30 = vld [vmem:[#allocation97_spill] sm:$0xff]  ;;  %v12934_v18 = vld [vmem:[#allocation107_spill] sm:$0xff]  ;;  %v3273_v1 = vadd.f32 %v11177_v29, %v12938_v43  ;;  %v4189_v55 = vmax.f32 %v3276_v9, 0.0  ;;  %v3863_v43 = vadd.f32 %v11177_v29, %v10785_v28 }
 0x5df   :  { %4872 = vmatpush.msra.mxu1 %v4194_v16  ;;  %v3713_v15 = vadd.f32 %v11177_v29, %v12933_v30  ;;  %v4366_v16 = vmax.f32 %v3718_v0, 0.0  ;;  %v3218_v44 = vadd.f32 %v11177_v29, %v12934_v18  ;;  %v12937_v0 = vld [vmem:[#allocation104_spill] sm:$0xff]  ;;  %v12939_v30 = vld [vmem:[#allocation91_spill] sm:$0xff]  ;;  %v12941_v18 = vld [vmem:[#allocation157_spill] sm:$0xff] }
 0x5e0   :  { %5126 = vmatpush.msrb.mxu3 %v4369_v38  ;;  %v4105_v38 = vmax.f32 %v3066_v63, 0.0  ;;  %4765 = vmatpush.msra.mxu2 %v4106_v27  ;;  %v4191_v63 = vmax.f32 %v3281_v41, 0.0  ;;  %v4365_v27 = vmax.f32 %v3716_v7, 0.0  ;;  %v3216_v50 = vadd.f32 %v11177_v29, %v12937_v0  ;;  %v12940_v7 = vld [vmem:[#allocation101_spill] sm:$0xff] }
 0x5e1   :  { %4873 = vmatpush.msra.mxu1 %v4193_v42  ;;  %v3711_v42 = vadd.f32 %v11177_v29, %v12936_v10  ;;  %v3708_v41 = vadd.f32 %v11177_v29, %v12939_v30  ;;  %v12943_v10 = vld [vmem:[#allocation98_spill] sm:$0xff]  ;;  %v4188_v0 = vmax.f32 %v3273_v1, 0.0  ;;  %v3861_v1 = vadd.f32 %v11177_v29, %v10773_v47 }
 0x5e2   :  { %5127 = vmatpush.msrb.mxu3 %v4368_v2  ;;  %v4168_v2 = vmax.f32 %v3223_v6, 0.0  ;;  %4766 = vmatpush.msra.mxu2 %v4105_v38  ;;  %v4190_v6 = vmax.f32 %v3278_v5, 0.0  ;;  %v11475_v38 = vpop.f32.mrf.mxu3  ;;  %v12942_v5 = vld [vmem:[#allocation88_spill] sm:$0xff] }
 0x5e3   :  { %4874 = vmatpush.msra.mxu1 %v4192_v36  ;;  %4767 = vmatmul.f32.vlgmr.msra.gmra.mxu2 %v4467_v57  ;;  %v4364_v36 = vmax.f32 %v3713_v15, 0.0  ;;  %v3213_v57 = vadd.f32 %v11177_v29, %v12940_v7  ;;  %v3211_v15 = vadd.f32 %v11177_v29, %v12943_v10  ;;  %v4362_v9 = vmax.f32 %v3708_v41, 0.0  ;;  %v12946_v7 = vld [vmem:[#allocation151_spill] sm:$0xff]  ;;  %v12949_v10 = vld [vmem:[#allocation233_spill] sm:$0xff] }
 0x5e4   :  { %5128 = vmatpush.msrb.mxu3 %v4367_v22  ;;  %v4167_v22 = vmax.f32 %v3221_v24, 0.0  ;;  %4820 = vmatpush.msrb.mxu2 %v4168_v2  ;;  %v3271_v24 = vadd.f32 %v11177_v29, %v12941_v18  ;;  %v3706_v2 = vadd.f32 %v11177_v29, %v12942_v5  ;;  %v11498_v41 = vpop.f32.mrf.mxu2  ;;  %v12947_v18 = vld [vmem:[#allocation48_spill] sm:$0xff] }
 0x5e5   :  { %4875 = vmatpush.msra.mxu1 %v4191_v63  ;;  %v4363_v63 = vmax.f32 %v3711_v42, 0.0  ;;  %v12945_v42 = vld [vmem:[#allocation95_spill] sm:$0xff]  ;;  %v12948_v5 = vld [vmem:[#allocation92_spill] sm:$0xff] }
 0x5e6   :  { %5129 = vmatpush.msrb.mxu3 %v4366_v16  ;;  %v4166_v16 = vmax.f32 %v3218_v44, 0.0  ;;  %4821 = vmatpush.msrb.mxu2 %v4167_v22  ;;  %v4499_v44 = vld [vmem:[%s12798_s21 + $0x150] sm:$0xff]  ;;  %v12944_v22 = vld [vmem:[#allocation154_spill] sm:$0xff]  ;;  %v3208_v30 = vadd.f32 %v11177_v29, %v12945_v42  ;;  %v4361_v28 = vmax.f32 %v3706_v2, 0.0  ;;  %v3858_v2 = vadd.f32 %v11177_v29, %v12949_v10 }
 0x5e7   :  { %4876 = vmatpush.msra.mxu1 %v4190_v6  ;;  %v3268_v6 = vadd.f32 %v11177_v29, %v12944_v22  ;;  %v4423_v42 = vmax.f32 %v3861_v1, 0.0  ;;  %v12955_v1 = vld [vmem:[#allocation230_spill] sm:$0xff] }
 0x5e8   :  { %5130 = vmatpush.msrb.mxu3 %v4365_v27  ;;  %v4165_v27 = vmax.f32 %v3216_v50, 0.0  ;;  %4822 = vmatpush.msrb.mxu2 %v4166_v16  ;;  %v4187_v50 = vmax.f32 %v3271_v24, 0.0  ;;  %v3266_v16 = vadd.f32 %v11177_v29, %v12946_v7  ;;  %v4163_v24 = vmax.f32 %v3211_v15, 0.0  ;;  %v12952_v15 = vld [vmem:[#allocation232_spill] sm:$0xff] }
 0x5e9   :  { %4877 = vmatpush.msra.mxu1 %v4189_v55  ;;  %v3423_v55 = vadd.f32 %v11177_v29, %v12947_v18  ;;  %v4186_v47 = vmax.f32 %v3268_v6, 0.0  ;;  %v4162_v22 = vmax.f32 %v3208_v30, 0.0  ;;  %v12954_v18 = vld [vmem:[#allocation86_spill] sm:$0xff]  ;;  %v4472_v30 = vld [vmem:[%s12798_s21 + $0x78] sm:$0xff] }
 0x5ea   :  { %5131 = vmatpush.msrb.mxu3 %v4364_v36  ;;  %v4164_v36 = vmax.f32 %v3213_v57, 0.0  ;;  %4823 = vmatpush.msrb.mxu2 %v4165_v27  ;;  %v3206_v57 = vadd.f32 %v11177_v29, %v12948_v5  ;;  %v12950_v27 = vld [vmem:[#allocation45_spill] sm:$0xff]  ;;  %v4185_v7 = vmax.f32 %v3266_v16, 0.0  ;;  %v11512_v6 = vpop.f32.mrf.mxu3  ;;  %v3201_v5 = vadd.f32 %v11177_v29, %v12954_v18  ;;  %v12960_v18 = vld [vmem:[#allocation80_spill] sm:$0xff] }
 0x5eb   :  { %4878 = vmatpush.msra.mxu1 %v4188_v0  ;;  %4770 = vmatmul.f32.gmra.mxu2 %v4499_v44  ;;  %v3421_v0 = vadd.f32 %v11177_v29, %v12950_v27  ;;  %v12951_v44 = vld [vmem:[#allocation89_spill] sm:$0xff]  ;;  %v3853_v16 = vadd.f32 %v11177_v29, %v12955_v1  ;;  %v3196_v1 = vadd.f32 %v11177_v29, %v12960_v18 }
 0x5ec   :  { %5132 = vmatpush.msrb.mxu3 %v4363_v63  ;;  %v4424_v63 = vmax.f32 %v3863_v43, 0.0  ;;  %4824 = vmatpush.msrb.mxu2 %v4164_v36  ;;  %v3856_v43 = vadd.f32 %v11177_v29, %v12952_v15  ;;  %v12953_v36 = vld [vmem:[#allocation42_spill] sm:$0xff]  ;;  %v4161_v10 = vmax.f32 %v3206_v57, 0.0  ;;  %v12958_v57 = vld [vmem:[#allocation229_spill] sm:$0xff] }
 0x5ed   :  { %4879 = vmatpush.msra.mxu1 %v4187_v50  ;;  %v3418_v50 = vadd.f32 %v11177_v29, %v12953_v36  ;;  %v4247_v27 = vmax.f32 %v3421_v0, 0.0  ;;  %v12959_v36 = vld [vmem:[#allocation36_spill] sm:$0xff]  ;;  %v4159_v0 = vmax.f32 %v3201_v5, 0.0  ;;  %v12964_v5 = vld [vmem:[#allocation226_spill] sm:$0xff] }
 0x5ee   :  { %5133 = vmatpush.msrb.mxu3 %v4362_v9  ;;  %v3203_v9 = vadd.f32 %v11177_v29, %v12951_v44  ;;  %4825 = vmatpush.msrb.mxu2 %v4163_v24  ;;  %v4422_v24 = vmax.f32 %v3858_v2, 0.0  ;;  %v3413_v2 = vadd.f32 %v11177_v29, %v12959_v36 }
 0x5ef   :  { %4880 = vmatpush.msra.mxu1 %v4186_v47 }
 0x5f0   :  { %5134 = vmatpush.msrb.mxu3 %v4361_v28  ;;  %v4248_v28 = vmax.f32 %v3423_v55, 0.0  ;;  %4826 = vmatpush.msrb.mxu2 %v4162_v22  ;;  %v12957_v55 = vld [vmem:[#allocation83_spill] sm:$0xff]  ;;  %v4160_v15 = vmax.f32 %v3203_v9, 0.0  ;;  %v3851_v22 = vadd.f32 %v11177_v29, %v12958_v57  ;;  %v4244_v18 = vmax.f32 %v3413_v2, 0.0 }
 0x5f1   :  { %4881 = vmatpush.msra.mxu1 %v4185_v7  ;;  %v3198_v44 = vadd.f32 %v11177_v29, %v12957_v55  ;;  %v4246_v7 = vmax.f32 %v3418_v50, 0.0  ;;  %v12963_v50 = vld [vmem:[#allocation77_spill] sm:$0xff] }
 0x5f2   :  { %5188 = vmatpush.msra.mxu3 %v4424_v63  ;;  %v12956_v63 = vld [vmem:[#allocation39_spill] sm:$0xff]  ;;  %4827 = vmatpush.msrb.mxu2 %v4161_v10  ;;  %v11535_v10 = vpop.f32.mrf.mxu1  ;;  %v3193_v57 = vadd.f32 %v11177_v29, %v12963_v50 }
 0x5f3   :  { %v3416_v47 = vadd.f32 %v11177_v29, %v12956_v63  ;;  %4935 = vmatpush.msrb.mxu1 %v4248_v28  ;;  %v12961_v63 = vld [vmem:[#allocation228_spill] sm:$0xff]  ;;  %v4420_v28 = vmax.f32 %v3853_v16, 0.0  ;;  %v4158_v36 = vmax.f32 %v3198_v44, 0.0  ;;  %v12965_v16 = vld [vmem:[#allocation30_spill] sm:$0xff]  ;;  %v12967_v44 = vld [vmem:[#allocation225_spill] sm:$0xff] }
 0x5f4   :  { %5189 = vmatpush.msra.mxu3 %v4423_v42  ;;  %v4421_v42 = vmax.f32 %v3856_v43, 0.0  ;;  %4882 = vmatmul.f32.vlgmr.msra.gmra.mxu1 %v4472_v30  ;;  %v3848_v9 = vadd.f32 %v11177_v29, %v12961_v63  ;;  %v11537_v43 = vpop.f32.mrf.mxu2  ;;  %v12962_v30 = vld [vmem:[#allocation33_spill] sm:$0xff]  ;;  %v12966_v63 = vld [vmem:[#allocation74_spill] sm:$0xff] }
 0x5f5   :  { %4828 = vmatpush.msrb.mxu2 %v4160_v15  ;;  %4936 = vmatpush.msrb.mxu1 %v4247_v27  ;;  %v4245_v55 = vmax.f32 %v3416_v47, 0.0  ;;  %v3846_v27 = vadd.f32 %v11177_v29, %v12964_v5  ;;  %v4419_v15 = vmax.f32 %v3851_v22, 0.0  ;;  %v3191_v31 = vadd.f32 %v11177_v29, %v12966_v63  ;;  %v4504_v47 = vld [vmem:[%s12798_s21 + $0x178] sm:$0xff]  ;;  %v11554_v22 = vpop.f32.mrf.mxu3  ;;  %v12969_v5 = vld [vmem:[#allocation71_spill] sm:$0xff] }
 0x5f6   :  { %5190 = vmatpush.msra.mxu3 %v4422_v24  ;;  %v3411_v24 = vadd.f32 %v11177_v29, %v12962_v30  ;;  %v4157_v30 = vmax.f32 %v3196_v1, 0.0  ;;  %v3188_v1 = vadd.f32 %v11177_v29, %v12969_v5  ;;  %v12973_v5 = vld [vmem:[#allocation221_spill] sm:$0xff] }
 0x5f7   :  { %4829 = vmatpush.msrb.mxu2 %v4159_v0  ;;  %4937 = vmatpush.msrb.mxu1 %v4246_v7  ;;  %v3843_v7 = vadd.f32 %v11177_v29, %v12967_v44  ;;  %v4418_v0 = vmax.f32 %v3848_v9, 0.0  ;;  %v4417_v63 = vmax.f32 %v3846_v27, 0.0  ;;  %v12971_v9 = vld [vmem:[#allocation25_spill] sm:$0xff] }
 0x5f8   :  { %5191 = vmatpush.msra.mxu3 %v4421_v42  ;;  %v3408_v42 = vadd.f32 %v11177_v29, %v12965_v16  ;;  %v4243_v50 = vmax.f32 %v3411_v24, 0.0  ;;  %v4155_v24 = vmax.f32 %v3191_v31, 0.0 }
 0x5f9   :  { %4830 = vmatpush.msrb.mxu2 %v4158_v36  ;;  %4938 = vmatpush.msrb.mxu1 %v4245_v55  ;;  %v4156_v36 = vmax.f32 %v3193_v57, 0.0  ;;  %v12970_v55 = vld [vmem:[#allocation223_spill] sm:$0xff]  ;;  %v3838_v57 = vadd.f32 %v11177_v29, %v12973_v5  ;;  %v12978_v5 = vld [vmem:[#allocation20_spill] sm:$0xff] }
 0x5fa   :  { %5192 = vmatpush.msra.mxu3 %v4420_v28  ;;  %v12968_v28 = vld [vmem:[#allocation27_spill] sm:$0xff]  ;;  %v3841_v16 = vadd.f32 %v11177_v29, %v12970_v55  ;;  %v4242_v44 = vmax.f32 %v3408_v42, 0.0  ;;  %v3343_v55 = vadd.f32 %v11177_v29, %v11010_v23 }
 0x5fb   :  { %v3406_v2 = vadd.f32 %v11177_v29, %v12968_v28  ;;  %4831 = vmatpush.msrb.mxu2 %v4157_v30  ;;  %4939 = vmatpush.msrb.mxu1 %v4244_v18  ;;  %v3186_v28 = vadd.f32 %v11177_v29, %v12972_v40  ;;  %v4416_v18 = vmax.f32 %v3843_v7, 0.0  ;;  %v12974_v30 = vld [vmem:[#allocation23_spill] sm:$0xff]  ;;  %v12976_v7 = vld [vmem:[#allocation21_spill] sm:$0xff] }
 0x5fc   :  { %5193 = vmatpush.msra.mxu3 %v4419_v15  ;;  %4885 = vmatmul.f32.gmra.mxu1 %v4504_v47  ;;  %v3403_v15 = vadd.f32 %v11177_v29, %v12971_v9  ;;  %v3401_v27 = vadd.f32 %v11177_v29, %v12974_v30  ;;  %v4154_v47 = vmax.f32 %v3188_v1, 0.0  ;;  %v12975_v42 = vld [vmem:[#allocation219_spill] sm:$0xff]  ;;  %v4415_v40 = vmax.f32 %v3841_v16, 0.0  ;;  %v12977_v16 = vld [vmem:[#allocation217_spill] sm:$0xff] }
 0x5fd   :  { %4832 = vmatpush.msrb.mxu2 %v4156_v36  ;;  %4940 = vmatpush.msrb.mxu1 %v4243_v50  ;;  %v3836_v31 = vadd.f32 %v11177_v29, %v12975_v42  ;;  %v11574_v50 = vpop.f32.mrf.mxu1  ;;  %v11576_v36 = vpop.f32.mrf.mxu2  ;;  %v3341_v1 = vadd.f32 %v11177_v29, %v10992_v12  ;;  %v4470_v23 = vld [vmem:[%s12798_s21 + $0x68] sm:$0xff] }
 0x5fe   :  { %5194 = vmatpush.msra.mxu3 %v4418_v0  ;;  %v4241_v0 = vmax.f32 %v3406_v2, 0.0  ;;  %v4240_v9 = vmax.f32 %v3403_v15, 0.0  ;;  %v4153_v2 = vmax.f32 %v3186_v28, 0.0  ;;  %v4239_v30 = vmax.f32 %v3401_v27, 0.0  ;;  %v12979_v12 = vld [vmem:[#allocation215_spill] sm:$0xff]  ;;  %v11593_v42 = vpop.f32.mrf.mxu3 }
 0x5ff   :  { %4833 = vmatpush.msrb.mxu2 %v4155_v24  ;;  %4941 = vmatpush.msrb.mxu1 %v4242_v44  ;;  %v3833_v44 = vadd.f32 %v11177_v29, %v12977_v16  ;;  %v4414_v24 = vmax.f32 %v3838_v57, 0.0  ;;  %v3338_v15 = vadd.f32 %v11177_v29, %v10965_v13  ;;  %v4216_v28 = vmax.f32 %v3343_v55, 0.0  ;;  %v12980_v57 = vld [vmem:[#allocation19_spill] sm:$0xff]  ;;  %v11602_v13 = vld [vmem:[%s12607_s29] ss:$0 sm:$0xff] }
 0x600   :  { %5195 = vmatpush.msra.mxu3 %v4417_v63  ;;  %v3398_v63 = vadd.f32 %v11177_v29, %v12976_v7  ;;  %v3336_v27 = vadd.f32 %v11177_v29, %v10948_v35  ;;  %v4215_v16 = vmax.f32 %v3341_v1, 0.0  ;;  %v12981_v55 = vld [vmem:[#allocation213_spill] sm:$0xff]  ;;  %v3333_v35 = vadd.f32 %v11602_v13, %v10932_v34  ;;  %v12983_v1 = vld [vmem:[#allocation211_spill] sm:$0xff] }
 0x601   :  { %4834 = vmatpush.msrb.mxu2 %v4154_v47  ;;  %4942 = vmatpush.msrb.mxu1 %v4241_v0  ;;  %v3831_v0 = vadd.f32 %v11177_v29, %v12979_v12  ;;  %v4413_v47 = vmax.f32 %v3836_v31, 0.0  ;;  %v3828_v31 = vadd.f32 %v11602_v13, %v12981_v55  ;;  %v3331_v12 = vadd.f32 %v11602_v13, %v10921_v46  ;;  %v4502_v34 = vld [vmem:[%s12798_s21 + $0x168] sm:$0xff] }
 0x602   :  { %5196 = vmatpush.msra.mxu3 %v4416_v18  ;;  %v3396_v18 = vadd.f32 %v11177_v29, %v12978_v5  ;;  %v4238_v7 = vmax.f32 %v3398_v63, 0.0  ;;  %v3328_v46 = vadd.f32 %v11602_v13, %v10910_v25 }
 0x603   :  { %4835 = vmatpush.msrb.mxu2 %v4153_v2  ;;  %4943 = vmatpush.msrb.mxu1 %v4240_v9  ;;  %v4412_v9 = vmax.f32 %v3833_v44, 0.0  ;;  %v12982_v2 = vld [vmem:[#allocation18_spill] sm:$0xff]  ;;  %v4411_v5 = vmax.f32 %v3831_v0, 0.0 }
 0x604   :  { %5197 = vmatpush.msra.mxu3 %v4415_v40  ;;  %4836 = vmatmul.f32.vlgmr.msrb.gmra.mxu2 %v4470_v23  ;;  %v3393_v40 = vadd.f32 %v11177_v29, %v12980_v57  ;;  %v3391_v23 = vadd.f32 %v11602_v13, %v12982_v2  ;;  %v4237_v63 = vmax.f32 %v3396_v18, 0.0  ;;  %v4214_v29 = vmax.f32 %v3338_v15, 0.0  ;;  %v12985_v57 = vld [vmem:[#allocation16_spill] sm:$0xff] }
 0x605   :  { %4889 = vmatpush.msra.mxu2 %v4216_v28  ;;  %4944 = vmatpush.msrb.mxu1 %v4239_v30  ;;  %v12984_v30 = vld [vmem:[#allocation17_spill] sm:$0xff]  ;;  %v4410_v18 = vmax.f32 %v3828_v31, 0.0  ;;  %v11619_v15 = vpop.f32.mrf.mxu1  ;;  %v11621_v0 = vpop.f32.mrf.mxu2  ;;  %v3326_v2 = vadd.f32 %v11602_v13, %v10907_v61 }
 0x606   :  { %5198 = vmatpush.msra.mxu3 %v4414_v24  ;;  %v3826_v24 = vadd.f32 %v11602_v13, %v12983_v1  ;;  %v3388_v28 = vadd.f32 %v11602_v13, %v12984_v30  ;;  %v4236_v44 = vmax.f32 %v3393_v40, 0.0  ;;  %v4235_v40 = vmax.f32 %v3391_v23, 0.0  ;;  %v12987_v23 = vld [vmem:[#allocation176_spill] sm:$0xff]  ;;  %v11633_v25 = vpop.f32.mrf.mxu3 }
 0x607   :  { %4890 = vmatpush.msra.mxu2 %v4215_v16  ;;  %4945 = vmatpush.msrb.mxu1 %v4238_v7  ;;  %v3386_v7 = vadd.f32 %v11602_v13, %v12985_v57  ;;  %v12986_v16 = vld [vmem:[#allocation179_spill] sm:$0xff]  ;;  %v3323_v1 = vadd.f32 %v11602_v13, %v10897_v59  ;;  %v12991_v57 = vld [vmem:[#allocation246_spill] sm:$0xff] }
 0x608   :  { %5199 = vmatpush.msra.mxu3 %v4413_v47  ;;  %v4213_v47 = vmax.f32 %v3336_v27, 0.0  ;;  %v4212_v27 = vmax.f32 %v3333_v35, 0.0  ;;  %v3543_v55 = vadd.f32 %v11602_v13, %v12986_v16  ;;  %v4234_v31 = vmax.f32 %v3388_v28, 0.0  ;;  %v4475_v28 = vld [vmem:[%s12798_s21 + $0x90] sm:$0xff] }
 0x609   :  { %4891 = vmatpush.msra.mxu2 %v4214_v29  ;;  %4946 = vmatpush.msrb.mxu1 %v4237_v63  ;;  %v4211_v63 = vmax.f32 %v3331_v12, 0.0  ;;  %v3541_v29 = vadd.f32 %v11602_v13, %v12987_v23  ;;  %v4233_v35 = vmax.f32 %v3386_v7, 0.0  ;;  %v3318_v7 = vadd.f32 %v11602_v13, %v12991_v57  ;;  %v12994_v23 = vld [vmem:[#allocation164_spill] sm:$0xff] }
 0x60a   :  { %5200 = vmatpush.msra.mxu3 %v4412_v9  ;;  %v4409_v9 = vmax.f32 %v3826_v24, 0.0  ;;  %v4210_v24 = vmax.f32 %v3328_v46, 0.0  ;;  %v4296_v61 = vmax.f32 %v3543_v55, 0.0  ;;  %v12992_v46 = vld [vmem:[#allocation167_spill] sm:$0xff] }
 0x60b   :  { %4892 = vmatpush.msra.mxu2 %v4213_v47  ;;  %4947 = vmatpush.msrb.mxu1 %v4236_v44  ;;  %v12989_v44 = vld [vmem:[#allocation248_spill] sm:$0xff]  ;;  %v4209_v47 = vmax.f32 %v3326_v2, 0.0 }
 0x60c   :  { %5201 = vmatpush.msra.mxu3 %v4411_v5  ;;  %4839 = vmatmul.f32.gmra.mxu2 %v4502_v34  ;;  %v12988_v5 = vld [vmem:[#allocation173_spill] sm:$0xff]  ;;  %v3321_v12 = vadd.f32 %v11602_v13, %v12989_v44  ;;  %v12990_v34 = vld [vmem:[#allocation170_spill] sm:$0xff] }
 0x60d   :  { %4893 = vmatpush.msra.mxu2 %v4212_v27  ;;  %4948 = vmatpush.msrb.mxu1 %v4235_v40  ;;  %v3538_v30 = vadd.f32 %v11602_v13, %v12988_v5  ;;  %v3536_v59 = vadd.f32 %v11602_v13, %v12990_v34  ;;  %v4208_v40 = vmax.f32 %v3323_v1, 0.0  ;;  %v3533_v27 = vadd.f32 %v11602_v13, %v12992_v46  ;;  %v4610_v55 = vpop.f32.mrf.mxu1  ;;  %v12995_v1 = vld [vmem:[#allocation242_spill] sm:$0xff] }
 0x60e   :  { %5202 = vmatpush.msra.mxu3 %v4410_v18  ;;  %v4295_v18 = vmax.f32 %v3541_v29, 0.0  ;;  %v3531_v29 = vadd.f32 %v11602_v13, %v12994_v23  ;;  %v4206_v5 = vmax.f32 %v3318_v7, 0.0  ;;  %v11660_v44 = vpop.f32.mrf.mxu3 }
 0x60f   :  { %4894 = vmatpush.msra.mxu2 %v4211_v63  ;;  %4949 = vmatpush.msrb.mxu1 %v4234_v31  ;;  %v4294_v16 = vmax.f32 %v3538_v30, 0.0  ;;  %v12993_v31 = vld [vmem:[#allocation244_spill] sm:$0xff]  ;;  %v4207_v63 = vmax.f32 %v3321_v12, 0.0  ;;  %v12996_v30 = vld [vmem:[#allocation161_spill] sm:$0xff] }
 0x610   :  { %5203 = vmatpush.msra.mxu3 %v4409_v9  ;;  %v11650_v9 = vpop.f32.mrf.mxu2  ;;  %v3316_v2 = vadd.f32 %v11602_v13, %v12993_v31  ;;  %v4507_v12 = vld [vmem:[%s12798_s21 + $0x190] sm:$0xff]  ;;  %v4291_v7 = vmax.f32 %v3531_v29, 0.0 }
 0x611   :  { %4895 = vmatpush.msra.mxu2 %v4210_v24  ;;  %4950 = vmatpush.msrb.mxu1 %v4233_v35  ;;  %v4293_v35 = vmax.f32 %v3536_v59, 0.0  ;;  %v3313_v24 = vadd.f32 %v11602_v13, %v12995_v1  ;;  %v13000_v31 = vld [vmem:[#allocation155_spill] sm:$0xff]  ;;  %v13002_v29 = vld [vmem:[#allocation152_spill] sm:$0xff] }
 0x612   :  { %4951 = vmatmul.f32.vlgmr.msrb.gmra.mxu1 %v4475_v28  ;;  %v4292_v28 = vmax.f32 %v3533_v27, 0.0  ;;  %v4205_v59 = vmax.f32 %v3316_v2, 0.0  ;;  %v13001_v2 = vld [vmem:[#allocation236_spill] sm:$0xff] }
 0x613   :  { %5004 = vmatpush.msra.mxu1 %v4296_v61  ;;  %4896 = vmatpush.msra.mxu2 %v4209_v47  ;;  %v3528_v61 = vadd.f32 %v11602_v13, %v12996_v30  ;;  %v12997_v47 = vld [vmem:[#allocation240_spill] sm:$0xff]  ;;  %v4204_v27 = vmax.f32 %v3313_v24, 0.0 }
 0x614   :  { %v3311_v34 = vadd.f32 %v11602_v13, %v12997_v47  ;;  %v13004_v47 = vld [vmem:[#allocation149_spill] sm:$0xff] }
 0x615   :  { %5005 = vmatpush.msra.mxu1 %v4295_v18  ;;  %4897 = vmatpush.msra.mxu2 %v4208_v40  ;;  %v12998_v18 = vld [vmem:[#allocation158_spill] sm:$0xff]  ;;  %v4290_v23 = vmax.f32 %v3528_v61, 0.0  ;;  %v11679_v24 = vpop.f32.mrf.mxu1 }
 0x616   :  { %v3526_v57 = vadd.f32 %v11602_v13, %v12998_v18  ;;  %v12999_v40 = vld [vmem:[#allocation238_spill] sm:$0xff]  ;;  %v4203_v1 = vmax.f32 %v3311_v34, 0.0  ;;  %v13005_v18 = vld [vmem:[#allocation93_spill] sm:$0xff] }
 0x617   :  { %5006 = vmatpush.msra.mxu1 %v4294_v16  ;;  %4898 = vmatpush.msra.mxu2 %v4207_v63  ;;  %v3308_v46 = vadd.f32 %v11602_v13, %v12999_v40  ;;  %v4565_v16 = vadd.f32 %v11621_v0, %v11574_v50  ;;  %v3523_v63 = vadd.f32 %v11602_v13, %v13000_v31  ;;  %v13003_v50 = vld [vmem:[#allocation96_spill] sm:$0xff]  ;;  %v4473_v40 = vld [vmem:[%s12798_s21 + $0x80] sm:$0xff] }
 0x618   :  { %v4289_v30 = vmax.f32 %v3526_v57, 0.0  ;;  %v3463_v0 = vadd.f32 %v11602_v13, %v13003_v50 }
 0x619   :  { %5007 = vmatpush.msra.mxu1 %v4293_v35  ;;  %4899 = vmatpush.msra.mxu2 %v4206_v5  ;;  %v3306_v35 = vadd.f32 %v11602_v13, %v13001_v2  ;;  %v3521_v5 = vadd.f32 %v11602_v13, %v13002_v29  ;;  %v4588_v61 = vadd.f32 %v11633_v25, %v4565_v16  ;;  %v4288_v34 = vmax.f32 %v3523_v63, 0.0  ;;  %v4656_v25 = vpop.f32.mrf.mxu3  ;;  %v13007_v16 = vld [vmem:[#allocation90_spill] sm:$0xff] }
 0x61a   :  { %4954 = vmatmul.f32.gmra.mxu1 %v4507_v12  ;;  %v4202_v12 = vmax.f32 %v3308_v46, 0.0  ;;  %v4264_v63 = vmax.f32 %v3463_v0, 0.0 }
 0x61b   :  { %5008 = vmatpush.msra.mxu1 %v4292_v28  ;;  %4900 = vmatpush.msra.mxu2 %v4205_v59  ;;  %v4633_v28 = vpop.f32.mrf.mxu2  ;;  %v3518_v59 = vadd.f32 %v11602_v13, %v13004_v47  ;;  %v4201_v57 = vmax.f32 %v3306_v35, 0.0  ;;  %v4287_v31 = vmax.f32 %v3521_v5, 0.0  ;;  %v4611_v2 = vadd.f32 %v4610_v55, %v4588_v61  ;;  %v13010_v5 = vld [vmem:[#allocation143_spill] sm:$0xff] }
 0x61c   :  { %v3511_v47 = vadd.f32 %v11602_v13, %v13010_v5 }
 0x61d   :  { %5009 = vmatpush.msra.mxu1 %v4291_v7  ;;  %4901 = vmatpush.msra.mxu2 %v4204_v27  ;;  %v3461_v7 = vadd.f32 %v11602_v13, %v13005_v18  ;;  %v13006_v27 = vld [vmem:[#allocation147_spill] sm:$0xff]  ;;  %v4286_v29 = vmax.f32 %v3518_v59, 0.0  ;;  %v13011_v18 = vld [vmem:[#allocation84_spill] sm:$0xff]  ;;  %v4634_v61 = vadd.f32 %v4633_v28, %v4611_v2 }
 0x61e   :  { %v3516_v46 = vadd.f32 %v11602_v13, %v13006_v27  ;;  %v3453_v55 = vadd.f32 %v11602_v13, %v13011_v18  ;;  %v4679_v27 = vpop.f32.mrf.mxu1  ;;  %v4283_v2 = vmax.f32 %v3511_v47, 0.0  ;;  %v13017_v18 = vld [vmem:[#allocation34_spill] sm:$0xff] }
 0x61f   :  { %5010 = vmatpush.msra.mxu1 %v4290_v23  ;;  %4902 = vmatpush.msra.mxu2 %v4203_v1  ;;  %v3458_v23 = vadd.f32 %v11602_v13, %v13007_v16  ;;  %v13008_v1 = vld [vmem:[#allocation145_spill] sm:$0xff]  ;;  %v4657_v5 = vadd.f32 %v4656_v25, %v4634_v61  ;;  %v13020_v25 = vld [vmem:[#allocation72_spill] sm:$0xff] }
 0x620   :  { %v3513_v35 = vadd.f32 %v11602_v13, %v13008_v1  ;;  %v13015_v1 = vld [vmem:[#allocation37_spill] sm:$0xff]  ;;  %v3443_v61 = vadd.f32 %v11602_v13, %v13020_v25  ;;  %v13024_v25 = vld [vmem:[#allocation63_spill] sm:$0xff] }
 0x621   :  { %5011 = vmatpush.msra.mxu1 %v4289_v30  ;;  %4903 = vmatpush.msra.mxu2 %v4202_v12  ;;  %v13009_v30 = vld [vmem:[#allocation87_spill] sm:$0xff]  ;;  %v4263_v12 = vmax.f32 %v3461_v7, 0.0  ;;  %v4262_v0 = vmax.f32 %v3458_v23, 0.0  ;;  %v13013_v7 = vld [vmem:[#allocation81_spill] sm:$0xff] }
 0x622   :  { %v3456_v50 = vadd.f32 %v11602_v13, %v13009_v30  ;;  %v3451_v16 = vadd.f32 %v11602_v13, %v13013_v7  ;;  %v13014_v23 = vld [vmem:[#allocation139_spill] sm:$0xff] }
 0x623   :  { %5012 = vmatpush.msra.mxu1 %v4288_v34  ;;  %4904 = vmatpush.msra.mxu2 %v4201_v57  ;;  %v4285_v34 = vmax.f32 %v3516_v46, 0.0  ;;  %v13012_v57 = vld [vmem:[#allocation141_spill] sm:$0xff]  ;;  %v3506_v28 = vadd.f32 %v11602_v13, %v13014_v23  ;;  %v13019_v7 = vld [vmem:[#allocation31_spill] sm:$0xff] }
 0x624   :  { %4905 = vmatmul.f32.vlgmr.msra.gmra.mxu2 %v4473_v40  ;;  %v3508_v59 = vadd.f32 %v11602_v13, %v13012_v57  ;;  %v4284_v40 = vmax.f32 %v3513_v35, 0.0  ;;  %v4505_v46 = vld [vmem:[%s12798_s21 + $0x180] sm:$0xff]  ;;  %v3663_v35 = vadd.f32 %v11602_v13, %v13015_v1  ;;  %v13018_v57 = vld [vmem:[#allocation75_spill] sm:$0xff]  ;;  %v3658_v23 = vadd.f32 %v11602_v13, %v13019_v7 }
 0x625   :  { %5013 = vmatpush.msra.mxu1 %v4287_v31  ;;  %4958 = vmatpush.msrb.mxu2 %v4264_v63  ;;  %v11705_v31 = vpop.f32.mrf.mxu2  ;;  %v4261_v63 = vmax.f32 %v3456_v50, 0.0  ;;  %v3446_v47 = vadd.f32 %v11602_v13, %v13018_v57  ;;  %v4281_v1 = vmax.f32 %v3506_v28, 0.0  ;;  %v4256_v57 = vmax.f32 %v3443_v61, 0.0 }
 0x626   :  { %v4282_v50 = vmax.f32 %v3508_v59, 0.0 }
 0x627   :  { %5014 = vmatpush.msra.mxu1 %v4286_v29  ;;  %4959 = vmatpush.msrb.mxu2 %v4263_v12  ;;  %v13016_v29 = vld [vmem:[#allocation78_spill] sm:$0xff]  ;;  %v4260_v12 = vmax.f32 %v3453_v55, 0.0  ;;  %v4344_v55 = vmax.f32 %v3663_v35, 0.0  ;;  %v4257_v35 = vmax.f32 %v3446_v47, 0.0  ;;  %v3436_v47 = vadd.f32 %v11602_v13, %v13024_v25 }
 0x628   :  { %v3448_v30 = vadd.f32 %v11602_v13, %v13016_v29 }
 0x629   :  { %5015 = vmatpush.msra.mxu1 %v4285_v34  ;;  %4960 = vmatpush.msrb.mxu2 %v4262_v0  ;;  %v11718_v34 = vpop.f32.mrf.mxu3  ;;  %v3661_v0 = vadd.f32 %v11602_v13, %v13017_v18  ;;  %v13022_v18 = vld [vmem:[#allocation69_spill] sm:$0xff] }
 0x62a   :  { %v4258_v59 = vmax.f32 %v3448_v30, 0.0  ;;  %v3441_v28 = vadd.f32 %v11602_v13, %v13022_v18  ;;  %v3646_v18 = vadd.f32 %v11602_v13, %v11421_v52 }
 0x62b   :  { %5016 = vmatpush.msra.mxu1 %v4284_v40  ;;  %4961 = vmatpush.msrb.mxu2 %v4261_v63  ;;  %v4259_v40 = vmax.f32 %v3451_v16, 0.0  ;;  %v4680_v63 = vadd.f32 %v4679_v27, %v4657_v5  ;;  %v13021_v16 = vld [vmem:[#allocation28_spill] sm:$0xff]  ;;  %v13023_v27 = vld [vmem:[#allocation66_spill] sm:$0xff] }
 0x62c   :  { %4908 = vmatmul.f32.gmra.mxu2 %v4505_v46  ;;  %v4478_v46 = vld [vmem:[%s12798_s21 + $0xa8] sm:$0xff]  ;;  %v3656_v29 = vadd.f32 %v11602_v13, %v13021_v16  ;;  %v3438_v5 = vadd.f32 %v11602_v13, %v13023_v27  ;;  %v4337_v25 = vmax.f32 %v3646_v18, 0.0 }
 0x62d   :  { %5017 = vmatpush.msra.mxu1 %v4283_v2  ;;  %4962 = vmatpush.msrb.mxu2 %v4260_v12  ;;  %v4702_v2 = vpop.f32.mrf.mxu2  ;;  %v4343_v12 = vmax.f32 %v3661_v0, 0.0  ;;  %v13032_v18 = vld [vmem:[#allocation210_spill] sm:$0xff] }
 0x62e   :  { %v11735_v30 = vpop.f32.mrf.mxu1  ;;  %v4703_v0 = vadd.f32 %v4702_v2, %v4680_v63  ;;  %v4510_v2 = vld [vmem:[%s12798_s21 + $0x1a8] sm:$0xff] }
 0x62f   :  { %5018 = vmatpush.msra.mxu1 %v4282_v50  ;;  %4963 = vmatpush.msrb.mxu2 %v4259_v40  ;;  %v4342_v50 = vmax.f32 %v3658_v23, 0.0  ;;  %v3653_v40 = vadd.f32 %v11602_v13, %v11537_v43  ;;  %v3651_v23 = vadd.f32 %v11602_v13, %v11498_v41  ;;  %v3648_v43 = vadd.f32 %v11602_v13, %v11461_v33 }
 0x631   :  { %5019 = vmatpush.msra.mxu1 %v4281_v1  ;;  %4964 = vmatpush.msrb.mxu2 %v4258_v59  ;;  %v4725_v7 = vpop.f32.mrf.mxu3  ;;  %v4341_v1 = vmax.f32 %v3656_v29, 0.0  ;;  %v13025_v59 = vld [vmem:[#allocation60_spill] sm:$0xff]  ;;  %v4340_v16 = vmax.f32 %v3653_v40, 0.0  ;;  %v13026_v29 = vld [vmem:[#allocation57_spill] sm:$0xff] }
 0x632   :  { %5020 = vmatmul.f32.vlgmr.msra.gmra.mxu1 %v4478_v46  ;;  %v3433_v61 = vadd.f32 %v11602_v13, %v13025_v59  ;;  %v4254_v46 = vmax.f32 %v3438_v5, 0.0  ;;  %v4726_v63 = vadd.f32 %v4725_v7, %v4703_v0  ;;  %v3431_v41 = vadd.f32 %v11602_v13, %v13026_v29  ;;  %v13028_v0 = vld [vmem:[#allocation51_spill] sm:$0xff] }
 0x633   :  { %5073 = vmatpush.msrb.mxu1 %v4344_v55  ;;  %4965 = vmatpush.msrb.mxu2 %v4257_v35  ;;  %v4255_v55 = vmax.f32 %v3441_v28, 0.0  ;;  %v4339_v28 = vmax.f32 %v3651_v23, 0.0  ;;  %v13027_v35 = vld [vmem:[#allocation54_spill] sm:$0xff]  ;;  %v3643_v5 = vadd.f32 %v11602_v13, %v11383_v37  ;;  %v3426_v52 = vadd.f32 %v11602_v13, %v13028_v0 }
 0x634   :  { %v3428_v33 = vadd.f32 %v11602_v13, %v13027_v35  ;;  %v4252_v27 = vmax.f32 %v3433_v61, 0.0  ;;  %v4251_v7 = vmax.f32 %v3431_v41, 0.0  ;;  %v3638_v37 = vadd.f32 %v11602_v13, %v11330_v56 }
 0x635   :  { %5074 = vmatpush.msrb.mxu1 %v4343_v12  ;;  %4966 = vmatpush.msrb.mxu2 %v4256_v57  ;;  %v4253_v12 = vmax.f32 %v3436_v47, 0.0  ;;  %v4338_v57 = vmax.f32 %v3648_v43, 0.0  ;;  %v4336_v59 = vmax.f32 %v3643_v5, 0.0  ;;  %v4249_v61 = vmax.f32 %v3426_v52, 0.0  ;;  %v13034_v52 = vld [vmem:[#allocation206_spill] sm:$0xff] }
 0x636   :  { %v4250_v47 = vmax.f32 %v3428_v33, 0.0  ;;  %v3633_v41 = vadd.f32 %v11602_v13, %v11279_v62  ;;  %v3631_v35 = vadd.f32 %v11602_v13, %v11249_v54 }
 0x637   :  { %5075 = vmatpush.msrb.mxu1 %v4342_v50  ;;  %4967 = vmatpush.msrb.mxu2 %v4255_v55  ;;  %v4748_v50 = vpop.f32.mrf.mxu1  ;;  %v13029_v55 = vld [vmem:[#allocation216_spill] sm:$0xff] }
 0x638   :  { %v11760_v40 = vadd.f32 %v4748_v50, %v4726_v63  ;;  %v3583_v23 = vadd.f32 %v11602_v13, %v13029_v55  ;;  %v4476_v63 = vld [vmem:[%s12798_s21 + $0x98] sm:$0xff]  ;;  %v4562_v50 = vadd.f32 %v11576_v36, %v11535_v10  ;;  %v4332_v0 = vmax.f32 %v3633_v41, 0.0  ;;  %v4481_v41 = vld [vmem:[%s12798_s21 + $0xc0] sm:$0xff] }
 0x639   :  { %5076 = vmatpush.msrb.mxu1 %v4341_v1  ;;  %4968 = vmatpush.msrb.mxu2 %v4254_v46  ;;  %v3641_v1 = vadd.f32 %v11602_v13, %v11356_v3  ;;  %v13030_v46 = vld [vmem:[#allocation214_spill] sm:$0xff]  ;;  %v3636_v3 = vadd.f32 %v11602_v13, %v11305_v14  ;;  %v3576_v14 = vadd.f32 %v11602_v13, %v13032_v18  ;;  %v4508_v10 = vld [vmem:[%s12798_s21 + $0x198] sm:$0xff] }
 0x63a   :  { %5023 = vmatmul.f32.gmra.mxu1 %v4510_v2  ;;  %v3581_v43 = vadd.f32 %v11602_v13, %v13030_v46  ;;  %v13031_v2 = vld [vmem:[#allocation212_spill] sm:$0xff]  ;;  %v4312_v29 = vmax.f32 %v3583_v23, 0.0  ;;  %v13038_v46 = vld [vmem:[#allocation202_spill] sm:$0xff] }
 0x63b   :  { %5077 = vmatpush.msrb.mxu1 %v4340_v16  ;;  %4969 = vmatpush.msrb.mxu2 %v4253_v12  ;;  %v4335_v16 = vmax.f32 %v3641_v1, 0.0  ;;  %v3578_v56 = vadd.f32 %v11602_v13, %v13031_v2  ;;  %v4334_v12 = vmax.f32 %v3638_v37, 0.0  ;;  %v4333_v33 = vmax.f32 %v3636_v3, 0.0  ;;  %v13035_v36 = vld [vmem:[#allocation168_spill] sm:$0xff] }
 0x63c   :  { %v4309_v54 = vmax.f32 %v3576_v14, 0.0  ;;  %v3626_v1 = vadd.f32 %v11602_v13, %v11205_v17  ;;  %v13036_v55 = vld [vmem:[#allocation204_spill] sm:$0xff]  ;;  %v13037_v17 = vld [vmem:[#allocation165_spill] sm:$0xff] }
 0x63d   :  { %5078 = vmatpush.msrb.mxu1 %v4339_v28  ;;  %4970 = vmatpush.msrb.mxu2 %v4252_v27  ;;  %v4311_v28 = vmax.f32 %v3581_v43, 0.0  ;;  %v13033_v27 = vld [vmem:[#allocation208_spill] sm:$0xff]  ;;  %v4310_v5 = vmax.f32 %v3578_v56, 0.0  ;;  %v3568_v23 = vadd.f32 %v11602_v13, %v13036_v55  ;;  %v3566_v43 = vadd.f32 %v11602_v13, %v13038_v46  ;;  %v13047_v55 = vld [vmem:[#allocation150_spill] sm:$0xff] }
 0x63e   :  { %v3573_v62 = vadd.f32 %v11602_v13, %v13033_v27 }
 0x63f   :  { %5079 = vmatpush.msrb.mxu1 %v4338_v57  ;;  %4971 = vmatpush.msrb.mxu2 %v4251_v7  ;;  %v3628_v57 = vadd.f32 %v11602_v13, %v11227_v19  ;;  %v3571_v7 = vadd.f32 %v11602_v13, %v13034_v52  ;;  %v3783_v19 = vadd.f32 %v11602_v13, %v13035_v36  ;;  %v4306_v14 = vmax.f32 %v3568_v23, 0.0  ;;  %v13044_v52 = vld [vmem:[#allocation195_spill] sm:$0xff]  ;;  %v13046_v36 = vld [vmem:[#allocation193_spill] sm:$0xff] }
 0x640   :  { %v4308_v37 = vmax.f32 %v3573_v62, 0.0  ;;  %v13043_v62 = vld [vmem:[#allocation156_spill] sm:$0xff]  ;;  %v3768_v23 = vadd.f32 %v11602_v13, %v13047_v55 }
 0x641   :  { %5080 = vmatpush.msrb.mxu1 %v4337_v25  ;;  %4972 = vmatpush.msrb.mxu2 %v4250_v47  ;;  %v4331_v25 = vmax.f32 %v3631_v35, 0.0  ;;  %v4585_v47 = vadd.f32 %v11593_v42, %v4562_v50  ;;  %v4307_v3 = vmax.f32 %v3571_v7, 0.0  ;;  %v4512_v42 = vld [vmem:[%s12798_s21 + $0x1b8] sm:$0xff]  ;;  %v4392_v56 = vmax.f32 %v3783_v19, 0.0  ;;  %v13042_v50 = vld [vmem:[#allocation198_spill] sm:$0xff] }
 0x642   :  { %5069 = vmatmul.f32.gmra.mxu3 %v4512_v42  ;;  %v3561_v27 = vadd.f32 %v11602_v13, %v13042_v50  ;;  %v3558_v7 = vadd.f32 %v11602_v13, %v13044_v52  ;;  %v3556_v19 = vadd.f32 %v11602_v13, %v13046_v36  ;;  %v13050_v42 = vld [vmem:[#allocation188_spill] sm:$0xff]  ;;  %v13054_v50 = vld [vmem:[#allocation182_spill] sm:$0xff] }
 0x643   :  { %5081 = vmatpush.msrb.mxu1 %v4336_v59  ;;  %4973 = vmatpush.msrb.mxu2 %v4249_v61  ;;  %v4330_v59 = vmax.f32 %v3628_v57, 0.0  ;;  %v3781_v61 = vadd.f32 %v11602_v13, %v13037_v17  ;;  %v13048_v17 = vld [vmem:[#allocation190_spill] sm:$0xff] }
 0x644   :  { %4974 = vmatmul.f32.vlgmr.msrb.gmra.mxu2 %v4476_v63  ;;  %v13039_v63 = vld [vmem:[#allocation162_spill] sm:$0xff]  ;;  %v4302_v46 = vmax.f32 %v3558_v7, 0.0 }
 0x645   :  { %5082 = vmatpush.msrb.mxu1 %v4335_v16  ;;  %5027 = vmatpush.msra.mxu2 %v4312_v29  ;;  %v4329_v16 = vmax.f32 %v3626_v1, 0.0  ;;  %v3778_v2 = vadd.f32 %v11602_v13, %v13039_v63  ;;  %v4608_v29 = vadd.f32 %v11619_v15, %v4585_v47  ;;  %v4305_v15 = vmax.f32 %v3566_v43, 0.0  ;;  %v13045_v1 = vld [vmem:[#allocation153_spill] sm:$0xff]  ;;  %v13049_v43 = vld [vmem:[#allocation148_spill] sm:$0xff] }
 0x646   :  { %v4303_v47 = vmax.f32 %v3561_v27, 0.0  ;;  %v3551_v63 = vadd.f32 %v11602_v13, %v13050_v42  ;;  %v3546_v27 = vadd.f32 %v11602_v13, %v13054_v50  ;;  %v13066_v50 = vld [vmem:[#allocation70_spill] sm:$0xff] }
 0x647   :  { %5083 = vmatpush.msrb.mxu1 %v4334_v12  ;;  %5028 = vmatpush.msra.mxu2 %v4311_v28  ;;  %v13040_v12 = vld [vmem:[#allocation200_spill] sm:$0xff]  ;;  %v13041_v28 = vld [vmem:[#allocation159_spill] sm:$0xff]  ;;  %v4390_v57 = vmax.f32 %v3778_v2, 0.0  ;;  %v4301_v2 = vmax.f32 %v3556_v19, 0.0 }
 0x648   :  { %v3563_v18 = vadd.f32 %v11602_v13, %v13040_v12  ;;  %v3776_v35 = vadd.f32 %v11602_v13, %v13041_v28  ;;  %v13052_v12 = vld [vmem:[#allocation185_spill] sm:$0xff]  ;;  %v13053_v28 = vld [vmem:[#allocation144_spill] sm:$0xff]  ;;  %v4297_v19 = vmax.f32 %v3546_v27, 0.0  ;;  %v3691_v27 = vadd.f32 %v11602_v13, %v13066_v50  ;;  %v13077_v50 = vld [vmem:[#allocation46_spill] sm:$0xff] }
 0x649   :  { %5084 = vmatpush.msrb.mxu1 %v4333_v33  ;;  %5029 = vmatpush.msra.mxu2 %v4310_v5  ;;  %v4391_v33 = vmax.f32 %v3781_v61, 0.0  ;;  %v3773_v5 = vadd.f32 %v11602_v13, %v13043_v62  ;;  %v3553_v61 = vadd.f32 %v11602_v13, %v13048_v17  ;;  %v13055_v62 = vld [vmem:[#allocation142_spill] sm:$0xff] }
 0x64b   :  { %5085 = vmatpush.msrb.mxu1 %v4332_v0  ;;  %5030 = vmatpush.msra.mxu2 %v4309_v54  ;;  %v4631_v0 = vadd.f32 %v11650_v9, %v4608_v29  ;;  %v4304_v54 = vmax.f32 %v3563_v18, 0.0  ;;  %v4388_v9 = vmax.f32 %v3773_v5, 0.0  ;;  %v4386_v29 = vmax.f32 %v3768_v23, 0.0 }
 0x64c   :  { %4977 = vmatmul.f32.gmra.mxu2 %v4508_v10  ;;  %v4389_v10 = vmax.f32 %v3776_v35, 0.0  ;;  %v3548_v18 = vadd.f32 %v11602_v13, %v13052_v12  ;;  %v3761_v35 = vadd.f32 %v11602_v13, %v13053_v28  ;;  %v3758_v5 = vadd.f32 %v11602_v13, %v13055_v62  ;;  %v4511_v62 = vld [vmem:[%s12798_s21 + $0x1b0] sm:$0xff] }
 0x64d   :  { %5086 = vmatpush.msrb.mxu1 %v4331_v25  ;;  %5031 = vmatpush.msra.mxu2 %v4308_v37  ;;  %v3771_v25 = vadd.f32 %v11602_v13, %v13045_v1  ;;  %v4654_v37 = vadd.f32 %v11660_v44, %v4631_v0  ;;  %v13051_v44 = vld [vmem:[#allocation146_spill] sm:$0xff]  ;;  %v13056_v0 = vld [vmem:[#allocation85_spill] sm:$0xff] }
 0x64e   :  { %v3703_v52 = vadd.f32 %v11602_v13, %v13056_v0  ;;  %v4298_v7 = vmax.f32 %v3548_v18, 0.0  ;;  %v4382_v23 = vmax.f32 %v3758_v5, 0.0 }
 0x64f   :  { %5087 = vmatpush.msrb.mxu1 %v4330_v59  ;;  %5032 = vmatpush.msra.mxu2 %v4307_v3  ;;  %v4513_v59 = vld [vmem:[%s12798_s21 + $0x1c0] sm:$0xff]  ;;  %v3766_v3 = vadd.f32 %v11602_v13, %v13049_v43 }
 0x650   :  { %v4360_v17 = vmax.f32 %v3703_v52, 0.0  ;;  %v3901_v52 = vadd.f32 %v11602_v13, %v11056_v51  ;;  %v4484_v51 = vld [vmem:[%s12798_s21 + $0xd8] sm:$0xff] }
 0x651   :  { %5088 = vmatpush.msrb.mxu1 %v4329_v16  ;;  %5033 = vmatpush.msra.mxu2 %v4306_v14  ;;  %v4387_v16 = vmax.f32 %v3771_v25, 0.0  ;;  %v4300_v14 = vmax.f32 %v3553_v61, 0.0  ;;  %v4383_v25 = vmax.f32 %v3761_v35, 0.0  ;;  %v13061_v61 = vld [vmem:[#allocation136_spill] sm:$0xff] }
 0x652   :  { %5089 = vmatmul.f32.vlgmr.msrb.gmra.mxu1 %v4481_v41  ;;  %v4677_v41 = vadd.f32 %v11679_v24, %v4654_v37  ;;  %v13060_v37 = vld [vmem:[#allocation79_spill] sm:$0xff] }
 0x653   :  { %5142 = vmatpush.msra.mxu1 %v4392_v56  ;;  %5034 = vmatpush.msra.mxu2 %v4305_v15  ;;  %v3763_v56 = vadd.f32 %v11602_v13, %v13051_v44  ;;  %v4299_v15 = vmax.f32 %v3551_v63, 0.0  ;;  %v13063_v63 = vld [vmem:[#allocation134_spill] sm:$0xff] }
 0x655   :  { %5143 = vmatpush.msra.mxu1 %v4391_v33  ;;  %5035 = vmatpush.msra.mxu2 %v4304_v54  ;;  %v4385_v33 = vmax.f32 %v3766_v3, 0.0  ;;  %v4384_v24 = vmax.f32 %v3763_v56, 0.0  ;;  %v13057_v54 = vld [vmem:[#allocation140_spill] sm:$0xff] }
 0x656   :  { %v3756_v1 = vadd.f32 %v11602_v13, %v13057_v54  ;;  %v13062_v3 = vld [vmem:[#allocation76_spill] sm:$0xff] }
 0x657   :  { %5144 = vmatpush.msra.mxu1 %v4390_v57  ;;  %5036 = vmatpush.msra.mxu2 %v4303_v47  ;;  %v4700_v57 = vadd.f32 %v11705_v31, %v4677_v41  ;;  %v4479_v31 = vld [vmem:[%s12798_s21 + $0xb0] sm:$0xff]  ;;  %v13059_v47 = vld [vmem:[#allocation138_spill] sm:$0xff] }
 0x658   :  { %v3753_v55 = vadd.f32 %v11602_v13, %v13059_v47  ;;  %v4381_v43 = vmax.f32 %v3756_v1, 0.0  ;;  %v13068_v54 = vld [vmem:[#allocation64_spill] sm:$0xff]  ;;  %v4355_v1 = vmax.f32 %v3691_v27, 0.0  ;;  %v3671_v27 = vadd.f32 %v11602_v13, %v13077_v50 }
 0x659   :  { %5145 = vmatpush.msra.mxu1 %v4389_v10  ;;  %5037 = vmatpush.msra.mxu2 %v4302_v46  ;;  %v13058_v10 = vld [vmem:[#allocation82_spill] sm:$0xff]  ;;  %v3751_v46 = vadd.f32 %v11602_v13, %v13061_v61  ;;  %v3893_v61 = vadd.f32 %v11602_v13, %v10973_v32 }
 0x65a   :  { %5092 = vmatmul.f32.gmra.mxu1 %v4513_v59  ;;  %v3701_v36 = vadd.f32 %v11602_v13, %v13058_v10  ;;  %v3698_v59 = vadd.f32 %v11602_v13, %v13060_v37  ;;  %v4380_v44 = vmax.f32 %v3753_v55, 0.0  ;;  %v3896_v55 = vadd.f32 %v11602_v13, %v10988_v4  ;;  %v13070_v37 = vld [vmem:[#allocation58_spill] sm:$0xff] }
 0x65b   :  { %5146 = vmatpush.msra.mxu1 %v4388_v9  ;;  %5038 = vmatpush.msra.mxu2 %v4301_v2  ;;  %v4723_v9 = vadd.f32 %v11718_v34, %v4700_v57  ;;  %v4483_v34 = vld [vmem:[%s12798_s21 + $0xd0] sm:$0xff]  ;;  %v3748_v2 = vadd.f32 %v11602_v13, %v13063_v63  ;;  %v4379_v35 = vmax.f32 %v3751_v46, 0.0 }
 0x65c   :  { %v4359_v42 = vmax.f32 %v3701_v36, 0.0  ;;  %5135 = vmatmul.f32.vlgmr.msrb.gmra.mxu3 %v4483_v34  ;;  %v4358_v12 = vmax.f32 %v3698_v59, 0.0  ;;  %v4515_v36 = vld [vmem:[%s12798_s21 + $0x1d0] sm:$0xff]  ;;  %v3681_v59 = vadd.f32 %v11602_v13, %v13070_v37 }
 0x65d   :  { %5147 = vmatpush.msra.mxu1 %v4387_v16  ;;  %5039 = vmatpush.msra.mxu2 %v4300_v14  ;;  %v3696_v16 = vadd.f32 %v11602_v13, %v13062_v3  ;;  %v4746_v56 = vadd.f32 %v11735_v30, %v4723_v9  ;;  %v13065_v14 = vld [vmem:[#allocation132_spill] sm:$0xff]  ;;  %v3903_v30 = vadd.f32 %v11602_v13, %v11101_v39  ;;  %v4378_v5 = vmax.f32 %v3748_v2, 0.0 }
 0x65e   :  { %v3746_v28 = vadd.f32 %v11602_v13, %v13065_v14  ;;  %v3686_v39 = vadd.f32 %v11602_v13, %v13068_v54  ;;  %v13073_v34 = vld [vmem:[#allocation52_spill] sm:$0xff]  ;;  %v4351_v2 = vmax.f32 %v3681_v59, 0.0  ;;  %v13076_v14 = vld [vmem:[#allocation249_spill] sm:$0xff]  ;;  %v13085_v59 = vld [vmem:[#allocation207_spill] sm:$0xff] }
 0x65f   :  { %5148 = vmatpush.msra.mxu1 %v4386_v29  ;;  %5040 = vmatpush.msra.mxu2 %v4299_v15  ;;  %v13064_v29 = vld [vmem:[#allocation73_spill] sm:$0xff]  ;;  %v4357_v15 = vmax.f32 %v3696_v16, 0.0  ;;  %v4440_v10 = vmax.f32 %v3903_v30, 0.0  ;;  %v13072_v16 = vld [vmem:[#allocation251_spill] sm:$0xff]  ;;  %v3676_v63 = vadd.f32 %v11602_v13, %v13073_v34 }
 0x660   :  { %v3693_v41 = vadd.f32 %v11602_v13, %v13064_v29  ;;  %v4516_v29 = vld [vmem:[%s12798_s21 + $0x1d8] sm:$0xff]  ;;  %v13078_v30 = vld [vmem:[#allocation247_spill] sm:$0xff] }
 0x661   :  { %5149 = vmatpush.msra.mxu1 %v4385_v33  ;;  %5041 = vmatpush.msra.mxu2 %v4298_v7  ;;  %v4377_v7 = vmax.f32 %v3746_v28, 0.0  ;;  %v3886_v28 = vadd.f32 %v11602_v13, %v13076_v14 }
 0x662   :  { %v4356_v0 = vmax.f32 %v3693_v41, 0.0  ;;  %v13075_v41 = vld [vmem:[#allocation49_spill] sm:$0xff] }
 0x663   :  { %5150 = vmatpush.msra.mxu1 %v4384_v24  ;;  %5042 = vmatpush.msra.mxu2 %v4297_v19  ;;  %v13067_v24 = vld [vmem:[#allocation67_spill] sm:$0xff]  ;;  %v13069_v19 = vld [vmem:[#allocation61_spill] sm:$0xff]  ;;  %v4433_v54 = vmax.f32 %v3886_v28, 0.0 }
 0x664   :  { %5043 = vmatmul.f32.vlgmr.msra.gmra.mxu2 %v4479_v31  ;;  %v3688_v57 = vadd.f32 %v11602_v13, %v13067_v24  ;;  %5138 = vmatmul.f32.gmra.mxu3 %v4515_v36  ;;  %v3683_v31 = vadd.f32 %v11602_v13, %v13069_v19  ;;  %v13079_v24 = vld [vmem:[#allocation43_spill] sm:$0xff] }
 0x665   :  { %5151 = vmatpush.msra.mxu1 %v4383_v25  ;;  %5096 = vmatpush.msrb.mxu2 %v4360_v17  ;;  %v3898_v25 = vadd.f32 %v11602_v13, %v11036_v26  ;;  %v4439_v26 = vmax.f32 %v3901_v52, 0.0  ;;  %v4353_v17 = vmax.f32 %v3686_v39, 0.0  ;;  %v13080_v52 = vld [vmem:[#allocation245_spill] sm:$0xff]  ;;  %v13081_v39 = vld [vmem:[#allocation40_spill] sm:$0xff] }
 0x666   :  { %v4768_v18 = vpop.f32.mrf.mxu2  ;;  %v4354_v47 = vmax.f32 %v3688_v57, 0.0  ;;  %v4352_v3 = vmax.f32 %v3683_v31, 0.0  ;;  %v3668_v57 = vadd.f32 %v11602_v13, %v13079_v24  ;;  %v13083_v31 = vld [vmem:[#allocation209_spill] sm:$0xff]  ;;  %v4514_v24 = vld [vmem:[%s12798_s21 + $0x1c8] sm:$0xff] }
 0x667   :  { %5152 = vmatpush.msra.mxu1 %v4382_v23  ;;  %5097 = vmatpush.msrb.mxu2 %v4359_v42  ;;  %v11883_v33 = vadd.f32 %v4768_v18, %v4746_v56  ;;  %v4438_v46 = vmax.f32 %v3898_v25, 0.0  ;;  %v3891_v42 = vadd.f32 %v11602_v13, %v13072_v16  ;;  %v4436_v56 = vmax.f32 %v3893_v61, 0.0  ;;  %v13086_v61 = vld [vmem:[#allocation239_spill] sm:$0xff] }
 0x668   :  { %v4347_v25 = vmax.f32 %v3671_v27, 0.0  ;;  %v4346_v19 = vmax.f32 %v3668_v57, 0.0  ;;  %v13094_v57 = vld [vmem:[#allocation197_spill] sm:$0xff] }
 0x669   :  { %5153 = vmatpush.msra.mxu1 %v4381_v43  ;;  %5098 = vmatpush.msrb.mxu2 %v4358_v12  ;;  %v13071_v43 = vld [vmem:[#allocation55_spill] sm:$0xff]  ;;  %v3673_v12 = vadd.f32 %v11602_v13, %v13075_v41 }
 0x66a   :  { %v3678_v4 = vadd.f32 %v11602_v13, %v13071_v43 }
 0x66b   :  { %5154 = vmatpush.msra.mxu1 %v4380_v44  ;;  %5099 = vmatpush.msrb.mxu2 %v4357_v15  ;;  %v13074_v44 = vld [vmem:[#allocation250_spill] sm:$0xff]  ;;  %v4349_v15 = vmax.f32 %v3676_v63, 0.0 }
 0x66c   :  { %5046 = vmatmul.f32.gmra.mxu2 %v4511_v62  ;;  %v3888_v32 = vadd.f32 %v11602_v13, %v13074_v44  ;;  %v4350_v18 = vmax.f32 %v3678_v4, 0.0  ;;  %v3883_v62 = vadd.f32 %v11602_v13, %v13078_v30  ;;  %v4482_v4 = vld [vmem:[%s12798_s21 + $0xc8] sm:$0xff] }
 0x66d   :  { %5155 = vmatpush.msra.mxu1 %v4379_v35  ;;  %5100 = vmatpush.msrb.mxu2 %v4356_v0  ;;  %v4435_v35 = vmax.f32 %v3891_v42, 0.0  ;;  %v4348_v0 = vmax.f32 %v3673_v12, 0.0  ;;  %v4486_v12 = vld [vmem:[%s12798_s21 + $0xe8] sm:$0xff] }
 0x66e   :  { %v4771_v23 = vpop.f32.mrf.mxu2  ;;  %5204 = vmatmul.f32.vlgmr.msra.gmra.mxu3 %v4486_v12 }
 0x66f   :  { %5156 = vmatpush.msra.mxu1 %v4378_v5  ;;  %5101 = vmatpush.msrb.mxu2 %v4355_v1  ;;  %v11911_v9 = vadd.f32 %v4771_v23, %v11760_v40  ;;  %v4437_v40 = vmax.f32 %v3896_v55, 0.0  ;;  %v4434_v5 = vmax.f32 %v3888_v32, 0.0  ;;  %v3666_v1 = vadd.f32 %v11602_v13, %v13081_v39  ;;  %v13084_v55 = vld [vmem:[#allocation241_spill] sm:$0xff] }
 0x671   :  { %5157 = vmatpush.msra.mxu1 %v4377_v7  ;;  %5102 = vmatpush.msrb.mxu2 %v4354_v47  ;;  %v3881_v7 = vadd.f32 %v11602_v13, %v13080_v52  ;;  %v3823_v47 = vadd.f32 %v11602_v13, %v13083_v31  ;;  %v4345_v37 = vmax.f32 %v3666_v1, 0.0  ;;  %v13097_v31 = vld [vmem:[#allocation189_spill] sm:$0xff] }
 0x672   :  { %5158 = vmatmul.f32.vlgmr.msra.gmra.mxu1 %v4484_v51  ;;  %v4432_v51 = vmax.f32 %v3883_v62, 0.0 }
 0x673   :  { %5211 = vmatpush.msrb.mxu1 %v4440_v10  ;;  %5103 = vmatpush.msrb.mxu2 %v4353_v17  ;;  %v13082_v10 = vld [vmem:[#allocation243_spill] sm:$0xff]  ;;  %v4431_v23 = vmax.f32 %v3881_v7, 0.0  ;;  %v3821_v17 = vadd.f32 %v11602_v13, %v13085_v59  ;;  %v4408_v42 = vmax.f32 %v3823_v47, 0.0  ;;  %v3801_v47 = vadd.f32 %v11602_v13, %v13097_v31  ;;  %v11994_v59 = vld [vmem:[%s12607_s29] ss:$0 sm:$0xff]  ;;  %v4488_v31 = vld [vmem:[%s12798_s21 + $0xf8] sm:$0xff] }
 0x674   :  { %v3878_v36 = vadd.f32 %v11602_v13, %v13082_v10  ;;  %v4487_v10 = vld [vmem:[%s12798_s21 + $0xf0] sm:$0xff]  ;;  %s8794_s29 = smov 96  }
 0x675   :  { %5212 = vmatpush.msrb.mxu1 %v4439_v26  ;;  %5104 = vmatpush.msrb.mxu2 %v4352_v3  ;;  %v3876_v26 = vadd.f32 %v11602_v13, %v13084_v55  ;;  %v13087_v3 = vld [vmem:[#allocation205_spill] sm:$0xff]  ;;  %v4407_v32 = vmax.f32 %v3821_v17, 0.0  ;;  %v13099_v17 = vld [vmem:[#allocation183_spill] sm:$0xff] }
 0x676   :  { %v4430_v43 = vmax.f32 %v3878_v36, 0.0  ;;  %v3818_v16 = vadd.f32 %v11602_v13, %v13087_v3  ;;  %v13096_v36 = vld [vmem:[#allocation192_spill] sm:$0xff] }
 0x677   :  { %5213 = vmatpush.msrb.mxu1 %v4438_v46  ;;  %5105 = vmatpush.msrb.mxu2 %v4351_v2  ;;  %v3873_v46 = vadd.f32 %v11602_v13, %v13086_v61  ;;  %v4429_v63 = vmax.f32 %v3876_v26, 0.0  ;;  %v13089_v2 = vld [vmem:[#allocation203_spill] sm:$0xff]  ;;  %v13098_v26 = vld [vmem:[#allocation186_spill] sm:$0xff]  ;;  %v3796_v61 = vadd.f32 %v11994_v59, %v13099_v17 }
 0x678   :  { %v3816_v44 = vadd.f32 %v11602_v13, %v13089_v2  ;;  %v4406_v28 = vmax.f32 %v3818_v16, 0.0  ;;  %v13101_v16 = vld [vmem:[#allocation177_spill] sm:$0xff] }
 0x679   :  { %5214 = vmatpush.msrb.mxu1 %v4437_v40  ;;  %5106 = vmatpush.msrb.mxu2 %v4350_v18  ;;  %v13088_v40 = vld [vmem:[#allocation237_spill] sm:$0xff]  ;;  %v4428_v41 = vmax.f32 %v3873_v46, 0.0  ;;  %v4399_v46 = vmax.f32 %v3801_v47, 0.0 }
 0x67a   :  { %5161 = vmatmul.f32.gmra.mxu1 %v4516_v29  ;;  %v3871_v34 = vadd.f32 %v11602_v13, %v13088_v40  ;;  %v13091_v18 = vld [vmem:[#allocation201_spill] sm:$0xff]  ;;  %v4405_v62 = vmax.f32 %v3816_v44, 0.0  ;;  %v4397_v40 = vmax.f32 %v3796_v61, 0.0  ;;  %v13103_v44 = vld [vmem:[#allocation171_spill] sm:$0xff] }
 0x67b   :  { %5215 = vmatpush.msrb.mxu1 %v4436_v56  ;;  %5107 = vmatpush.msrb.mxu2 %v4349_v15  ;;  %v13090_v56 = vld [vmem:[#allocation235_spill] sm:$0xff]  ;;  %v3813_v14 = vadd.f32 %v11602_v13, %v13091_v18  ;;  %v3941_v18 = vadd.f32 %v11994_v59, %v11512_v6  ;;  %v4520_v47 = vld [vmem:[%s12798_s21 + $0x1f8] sm:$0xff] }
 0x67c   :  { %v3868_v29 = vadd.f32 %v11602_v13, %v13090_v56  ;;  %v4427_v27 = vmax.f32 %v3871_v34, 0.0  ;;  %v13093_v15 = vld [vmem:[#allocation199_spill] sm:$0xff]  ;;  %v13102_v34 = vld [vmem:[#allocation174_spill] sm:$0xff] }
 0x67d   :  { %5216 = vmatpush.msrb.mxu1 %v4435_v35  ;;  %5108 = vmatpush.msrb.mxu2 %v4348_v0  ;;  %v13092_v35 = vld [vmem:[#allocation234_spill] sm:$0xff]  ;;  %v3811_v30 = vadd.f32 %v11602_v13, %v13093_v15  ;;  %v3808_v0 = vadd.f32 %v11602_v13, %v13094_v57  ;;  %v4404_v52 = vmax.f32 %v3813_v14, 0.0  ;;  %v3931_v15 = vadd.f32 %v11994_v59, %v11369_v20 }
 0x67e   :  { %v3866_v50 = vadd.f32 %v11602_v13, %v13092_v35  ;;  %v4485_v14 = vld [vmem:[%s12798_s21 + $0xe0] sm:$0xff]  ;;  %v3923_v20 = vadd.f32 %v11994_v59, %v11281_v48  ;;  %v3921_v57 = vadd.f32 %v11994_v59, %v11251_v49  ;;  %v3913_v48 = vadd.f32 %v11994_v59, %v11183_v8 }
 0x67f   :  { %5217 = vmatpush.msrb.mxu1 %v4434_v5  ;;  %5109 = vmatpush.msrb.mxu2 %v4347_v25  ;;  %v4426_v5 = vmax.f32 %v3868_v29, 0.0  ;;  %v4403_v1 = vmax.f32 %v3811_v30, 0.0  ;;  %v4518_v25 = vld [vmem:[%s12798_s21 + $0x1e8] sm:$0xff] }
 0x680   :  { %v4425_v7 = vmax.f32 %v3866_v50, 0.0  ;;  %5207 = vmatmul.f32.gmra.mxu3 %v4518_v25  ;;  %v3936_v50 = vadd.f32 %v11994_v59, %v11438_v60  ;;  %v13105_v25 = vld [vmem:[#allocation119_spill] sm:$0xff] }
 0x681   :  { %5218 = vmatpush.msrb.mxu1 %v4433_v54  ;;  %5110 = vmatpush.msrb.mxu2 %v4346_v19  ;;  %v13095_v54 = vld [vmem:[#allocation194_spill] sm:$0xff]  ;;  %v4402_v19 = vmax.f32 %v3808_v0, 0.0 }
 0x682   :  { %v3806_v39 = vadd.f32 %v11602_v13, %v13095_v54  ;;  %v4453_v30 = vmax.f32 %v3936_v50, 0.0 }
 0x683   :  { %5219 = vmatpush.msrb.mxu1 %v4432_v51  ;;  %5111 = vmatpush.msrb.mxu2 %v4345_v37  ;;  %v3803_v51 = vadd.f32 %v11602_v13, %v13096_v36  ;;  %v13106_v36 = vld [vmem:[#allocation122_spill] sm:$0xff] }
 0x684   :  { %5112 = vmatmul.f32.vlgmr.msrb.gmra.mxu2 %v4482_v4  ;;  %v4401_v55 = vmax.f32 %v3806_v39, 0.0  ;;  %v13100_v4 = vld [vmem:[#allocation180_spill] sm:$0xff] }
 0x685   :  { %5220 = vmatpush.msrb.mxu1 %v4431_v23  ;;  %5165 = vmatpush.msra.mxu2 %v4408_v42  ;;  %v3798_v23 = vadd.f32 %v11602_v13, %v13098_v26  ;;  %v4400_v37 = vmax.f32 %v3803_v51, 0.0  ;;  %v3793_v13 = vadd.f32 %v11994_v59, %v13100_v4  ;;  %v3791_v42 = vadd.f32 %v11994_v59, %v13101_v16  ;;  %v13104_v39 = vld [vmem:[#allocation116_spill] sm:$0xff]  ;;  %v4814_v26 = vpop.f32.mrf.mxu1 }
 0x686   :  { %v3911_v49 = vadd.f32 %v11994_v59, %v13104_v39 }
 0x687   :  { %5221 = vmatpush.msrb.mxu1 %v4430_v43  ;;  %5166 = vmatpush.msra.mxu2 %v4407_v32  ;;  %v4519_v43 = vld [vmem:[%s12798_s21 + $0x1f0] sm:$0xff]  ;;  %v4398_v3 = vmax.f32 %v3798_v23, 0.0  ;;  %v4396_v2 = vmax.f32 %v3793_v13, 0.0  ;;  %v3786_v32 = vadd.f32 %v11994_v59, %v13103_v44  ;;  %v4395_v56 = vmax.f32 %v3791_v42, 0.0 }
 0x688   :  { %v4443_v51 = vmax.f32 %v3911_v49, 0.0 }
 0x689   :  { %5222 = vmatpush.msrb.mxu1 %v4429_v63  ;;  %5167 = vmatpush.msra.mxu2 %v4406_v28  ;;  %v3788_v63 = vadd.f32 %v11994_v59, %v13102_v34  ;;  %v4393_v12 = vmax.f32 %v3786_v32, 0.0  ;;  %v3938_v28 = vadd.f32 %v11994_v59, %v11475_v38  ;;  %v4517_v38 = vld [vmem:[%s12798_s21 + $0x1e0] sm:$0xff] }
 0x68b   :  { %5223 = vmatpush.msrb.mxu1 %v4428_v41  ;;  %5168 = vmatpush.msra.mxu2 %v4405_v62  ;;  %v4394_v29 = vmax.f32 %v3788_v63, 0.0  ;;  %v3943_v41 = vadd.f32 %v11994_v59, %v11554_v22  ;;  %v4455_v22 = vmax.f32 %v3941_v18, 0.0  ;;  %v4454_v6 = vmax.f32 %v3938_v28, 0.0 }
 0x68c   :  { %5115 = vmatmul.f32.gmra.mxu2 %v4514_v24  ;;  %v3928_v62 = vadd.f32 %v11994_v59, %v11340_v45  ;;  %v3918_v45 = vadd.f32 %v11994_v59, %v11229_v11  ;;  %v3908_v11 = vadd.f32 %v11994_v59, %v13105_v25 }
 0x68d   :  { %5224 = vmatpush.msrb.mxu1 %v4427_v27  ;;  %5169 = vmatpush.msra.mxu2 %v4404_v52  ;;  %v4456_v35 = vmax.f32 %v3943_v41, 0.0  ;;  %v3933_v27 = vadd.f32 %v11994_v59, %v11401_v53  ;;  %v3926_v53 = vadd.f32 %v11994_v59, %v11311_v21  ;;  %v4448_v52 = vmax.f32 %v3923_v20, 0.0 }
 0x68e   :  { %v4450_v24 = vmax.f32 %v3928_v62, 0.0  ;;  %v3916_v21 = vadd.f32 %v11994_v59, %v11207_v58  ;;  %v4446_v54 = vmax.f32 %v3918_v45, 0.0  ;;  %v3906_v58 = vadd.f32 %v11994_v59, %v13106_v36  ;;  %v4817_v59 = vpop.f32.mrf.mxu1 }
 0x68f   :  { %5225 = vmatpush.msrb.mxu1 %v4426_v5  ;;  %5170 = vmatpush.msra.mxu2 %v4403_v1  ;;  %v4452_v60 = vmax.f32 %v3933_v27, 0.0  ;;  %v4451_v5 = vmax.f32 %v3931_v15, 0.0  ;;  %v4449_v0 = vmax.f32 %v3926_v53, 0.0  ;;  %v5258_v27 = vld [vmem:[%s13107_s26 + $0x8] sm:$0xff] }
 0x690   :  { %v4445_v1 = vmax.f32 %v3916_v21, 0.0  ;;  %v4441_v8 = vmax.f32 %v3906_v58, 0.0  ;;  %5284 = vmatpush.msrb.mxu3 %v5258_v27  ;;  %v5295_v27 = vld [vmem:[%s12580_s6] sm:$0xff] }
 0x691   :  { %5226 = vmatpush.msrb.mxu1 %v4425_v7  ;;  %5171 = vmatpush.msra.mxu2 %v4402_v19  ;;  %v4447_v7 = vmax.f32 %v3921_v57, 0.0  ;;  %v4442_v19 = vmax.f32 %v3908_v11, 0.0 }
 0x692   :  { %5227 = vmatmul.f32.vlgmr.msrb.gmra.mxu1 %v4487_v10  ;;  %v4444_v10 = vmax.f32 %v3913_v48, 0.0 }
 0x693   :  { %5172 = vmatpush.msra.mxu2 %v4401_v55  ;;  %v4791_v55 = vpop.f32.mrf.mxu3 }
 0x695   :  { %5173 = vmatpush.msra.mxu2 %v4400_v37  ;;  %v4837_v37 = vpop.f32.mrf.mxu2 }
 0x697   :  { %5174 = vmatpush.msra.mxu2 %v4399_v46  ;;  %v4883_v46 = vpop.f32.mrf.mxu1 }
 0x699   :  { %5175 = vmatpush.msra.mxu2 %v4398_v3 }
 0x69a   :  { %5230 = vmatmul.f32.gmra.mxu1 %v4519_v43 }
 0x69b   :  { %5176 = vmatpush.msra.mxu2 %v4397_v40  ;;  %v4794_v23 = vpop.f32.mrf.mxu3 }
 0x69d   :  { %5177 = vmatpush.msra.mxu2 %v4396_v2  ;;  %v4840_v61 = vpop.f32.mrf.mxu2  ;;  %v4792_v2 = vadd.f32 %v4791_v55, %v11883_v33  ;;  %v5257_v33 = vld [vmem:[%s13107_s26] sm:$0xff]  ;;  %v5297_v55 = vld [vmem:[%s12580_s6 + $0x10] sm:$0xff] }
 0x69e   :  { %5285 = vmatpush.msrb.mxu3 %v5257_v33  ;;  %v5296_v33 = vld [vmem:[%s12580_s6 + $0x8] sm:$0xff] }
 0x69f   :  { %5178 = vmatpush.msra.mxu2 %v4395_v56  ;;  %v4886_v13 = vpop.f32.mrf.mxu1  ;;  %v4815_v56 = vadd.f32 %v4814_v26, %v4792_v2 }
 0x6a1   :  { %5179 = vmatpush.msra.mxu2 %v4394_v29  ;;  %v4838_v41 = vadd.f32 %v4837_v37, %v4815_v56 }
 0x6a3   :  { %5180 = vmatpush.msra.mxu2 %v4393_v12  ;;  %v4860_v17 = vpop.f32.mrf.mxu3  ;;  %v4795_v12 = vadd.f32 %v4794_v23, %v11911_v9 }
 0x6a4   :  { %5181 = vmatmul.f32.vlgmr.msra.gmra.mxu2 %v4485_v14  ;;  %v4861_v18 = vadd.f32 %v4860_v17, %v4838_v41 }
 0x6a5   :  { %5234 = vmatpush.msrb.mxu2 %v4456_v35  ;;  %v4818_v35 = vadd.f32 %v4817_v59, %v4795_v12 }
 0x6a6   :  { %v4884_v50 = vadd.f32 %v4883_v46, %v4861_v18 }
 0x6a7   :  { %5235 = vmatpush.msrb.mxu2 %v4455_v22  ;;  %v4906_v4 = vpop.f32.mrf.mxu2  ;;  %v4952_v42 = vpop.f32.mrf.mxu1  ;;  %v4841_v22 = vadd.f32 %v4840_v61, %v4818_v35  ;;  %v12079_v35 = vld [vmem:[%s12582_s8 + $0x18] sm:$0xff] }
 0x6a8   :  { %v4907_v15 = vadd.f32 %v4906_v4, %v4884_v50  ;;  %v5298_v50 = vld [vmem:[%s12580_s6 + $0x18] sm:$0xff] }
 0x6a9   :  { %5236 = vmatpush.msrb.mxu2 %v4454_v6 }
 0x6ab   :  { %5237 = vmatpush.msrb.mxu2 %v4453_v30  ;;  %v4863_v43 = vpop.f32.mrf.mxu3 }
 0x6ac   :  { %5184 = vmatmul.f32.gmra.mxu2 %v4517_v38  ;;  %v4864_v30 = vadd.f32 %v4863_v43, %v4841_v22  ;;  %v12088_v22 = vld [vmem:[%s12582_s8 + $0x10] sm:$0xff] }
 0x6ad   :  { %5238 = vmatpush.msrb.mxu2 %v4452_v60 }
 0x6ae   :  { %v4887_v60 = vadd.f32 %v4886_v13, %v4864_v30  ;;  %v12111_v30 = vld [vmem:[%s12582_s8] sm:$0xff] }
 0x6af   :  { %5239 = vmatpush.msrb.mxu2 %v4451_v5  ;;  %v4909_v16 = vpop.f32.mrf.mxu2  ;;  %v4955_v63 = vpop.f32.mrf.mxu1 }
 0x6b0   :  { %v4910_v20 = vadd.f32 %v4909_v16, %v4887_v60  ;;  %v12135_v60 = vld [vmem:[%s12583_s9] sm:$0xff] }
 0x6b1   :  { %5240 = vmatpush.msrb.mxu2 %v4450_v24 }
 0x6b3   :  { %5241 = vmatpush.msrb.mxu2 %v4449_v0  ;;  %v4929_v3 = vpop.f32.mrf.mxu3 }
 0x6b4   :  { %v4930_v38 = vadd.f32 %v4929_v3, %v4907_v15  ;;  %v12106_v15 = vld [vmem:[%s12583_s9 + $0x18] sm:$0xff] }
 0x6b5   :  { %5242 = vmatpush.msrb.mxu2 %v4448_v52 }
 0x6b6   :  { %v4953_v5 = vadd.f32 %v4952_v42, %v4930_v38  ;;  %v12122_v38 = vld [vmem:[%s12583_s9 + $0x10] sm:$0xff] }
 0x6b7   :  { %5243 = vmatpush.msrb.mxu2 %v4447_v7  ;;  %v5021_v29 = vpop.f32.mrf.mxu1 }
 0x6b9   :  { %5244 = vmatpush.msrb.mxu2 %v4446_v54 }
 0x6bb   :  { %5245 = vmatpush.msrb.mxu2 %v4445_v1  ;;  %v4932_v40 = vpop.f32.mrf.mxu3 }
 0x6bc   :  { %v4933_v57 = vadd.f32 %v4932_v40, %v4910_v20 }
 0x6bd   :  { %5246 = vmatpush.msrb.mxu2 %v4444_v10 }
 0x6be   :  { %v4956_v21 = vadd.f32 %v4955_v63, %v4933_v57 }
 0x6bf   :  { %5247 = vmatpush.msrb.mxu2 %v4443_v51  ;;  %v5024_v6 = vpop.f32.mrf.mxu1 }
 0x6c1   :  { %5248 = vmatpush.msrb.mxu2 %v4442_v19  ;;  %v5301_v19 = vld [vmem:[%s12580_s6 + $0x30] sm:$0xff] }
 0x6c2   :  { %5328 = vmatpush.msra.mxu3 %v5301_v19 }
 0x6c3   :  { %5249 = vmatpush.msrb.mxu2 %v4441_v8  ;;  %v4998_v44 = vpop.f32.mrf.mxu3  ;;  %v5299_v8 = vld [vmem:[%s12580_s6 + $0x20] sm:$0xff] }
 0x6c4   :  { %5250 = vmatmul.f32.vlgmr.msrb.gmra.mxu2 %v4488_v31  ;;  %v5302_v31 = vld [vmem:[%s12580_s6 + $0x38] sm:$0xff]  ;;  %5329 = vmatpush.msra.mxu3 %v5299_v8 }
 0x6c5   :  { %5351 = vmatpush.msra.mxu1 %v5302_v31  ;;  %5385 = vmatpush.msra.mxu2 %v12079_v35 }
 0x6c6   :  { %5330 = vmatpush.msra.mxu3 %v5297_v55 }
 0x6c7   :  { %v4975_v34 = vpop.f32.mrf.mxu2  ;;  %5386 = vmatpush.msra.mxu2 %v12088_v22 }
 0x6c8   :  { %v4976_v24 = vadd.f32 %v4975_v34, %v4953_v5  ;;  %5331 = vmatpush.msra.mxu3 %v5295_v27 }
 0x6ca   :  { %v4999_v52 = vadd.f32 %v4998_v44, %v4976_v24 }
 0x6cb   :  { %v5001_v14 = vpop.f32.mrf.mxu3 }
 0x6cc   :  { %5253 = vmatmul.f32.gmra.mxu2 %v4520_v47  ;;  %v5022_v48 = vadd.f32 %v5021_v29, %v4999_v52  ;;  %v5303_v52 = vld [vmem:[%s12581_s7] sm:$0x3]  ;;  %s8792_s7 = smov 64  }
 0x6cf   :  { %v4978_v32 = vpop.f32.mrf.mxu2  ;;  %v5090_v53 = vpop.f32.mrf.mxu1 }
 0x6d0   :  { %v4979_v54 = vadd.f32 %v4978_v32, %v4956_v21  ;;  %v5306_v21 = vperm.slane %v5303_v52, 1 }
 0x6d2   :  { %v5002_v1 = vadd.f32 %v5001_v14, %v4979_v54 }
 0x6d3   :  { %v5067_v9 = vpop.f32.mrf.mxu3 }
 0x6d4   :  { %v5025_v36 = vadd.f32 %v5024_v6, %v5002_v1  ;;  %v12100_v6 = vld [vmem:[%s12582_s8 + $0x8] sm:$0xff] }
 0x6d5   :  { %5387 = vmatpush.msra.mxu2 %v12100_v6 }
 0x6d7   :  { %v5093_v7 = vpop.f32.mrf.mxu1  ;;  %5388 = vmatpush.msra.mxu2 %v12111_v30 }
 0x6d9   :  { %5509 = vmatpush.msrb.mxu2 %v12079_v35 }
 0x6db   :  { %v5070_v0 = vpop.f32.mrf.mxu3  ;;  %5510 = vmatpush.msrb.mxu2 %v12088_v22 }
 0x6dd   :  { %5511 = vmatpush.msrb.mxu2 %v12100_v6 }
 0x6df   :  { %5512 = vmatpush.msrb.mxu2 %v12111_v30 }
 0x6e3   :  { %v5136_v49 = vpop.f32.mrf.mxu3 }
 0x6e7   :  { %v5044_v28 = vpop.f32.mrf.mxu2 }
 0x6e8   :  { %v5045_v39 = vadd.f32 %v5044_v28, %v5022_v48  ;;  %v5300_v28 = vld [vmem:[%s12580_s6 + $0x28] sm:$0xff] }
 0x6e9   :  { %5352 = vmatpush.msra.mxu1 %v5300_v28 }
 0x6ea   :  { %v5068_v11 = vadd.f32 %v5067_v9, %v5045_v39  ;;  %v8791_v9 = vmov 0.0   ;;  %v5305_v39 = vperm.slane %v5303_v52, 0 }
 0x6eb   :  { %v5139_v26 = vpop.f32.mrf.mxu3  ;;  %5353 = vmatpush.msra.mxu1 %v5298_v50  ;;  %5389 = vmatmul.f32.vlgmr.msra.gmra.mxu2 %v8791_v9 }
 0x6ec   :  { %v5091_v58 = vadd.f32 %v5090_v53, %v5068_v11  ;;  %5719 = vmatpush.msra.mxu2 %v12106_v15  ;;  %v8604_v53 = vld [vmem:[%s12579_s5] ss:$0 sm:$0xff] }
 0x6ed   :  { %5354 = vmatpush.msra.mxu1 %v5296_v33 }
 0x6ee   :  { %5720 = vmatpush.msra.mxu2 %v12122_v38 }
 0x6ef   :  { %v5047_v62 = vpop.f32.mrf.mxu2  ;;  %v5159_v10 = vpop.f32.mrf.mxu1  ;;  %5649 = vmatpush.msrb.mxu1 %v12079_v35 }
 0x6f0   :  { %v5048_v51 = vadd.f32 %v5047_v62, %v5025_v36  ;;  %v12130_v62 = vld [vmem:[%s12583_s9 + $0x8] sm:$0xff] }
 0x6f1   :  { %5650 = vmatpush.msrb.mxu1 %v12088_v22  ;;  %5721 = vmatpush.msra.mxu2 %v12130_v62 }
 0x6f2   :  { %v5071_v37 = vadd.f32 %v5070_v0, %v5048_v51 }
 0x6f3   :  { %v5205_v4 = vpop.f32.mrf.mxu3  ;;  %5651 = vmatpush.msrb.mxu1 %v12100_v6  ;;  %5722 = vmatpush.msra.mxu2 %v12135_v60 }
 0x6f4   :  { %v5094_v61 = vadd.f32 %v5093_v7, %v5071_v37 }
 0x6f5   :  { %5652 = vmatpush.msrb.mxu1 %v12111_v30 }
 0x6f7   :  { %v5162_v17 = vpop.f32.mrf.mxu1 }
 0x703   :  { %v5208_v44 = vpop.f32.mrf.mxu3 }
 0x707   :  { %v5113_v45 = vpop.f32.mrf.mxu2 }
 0x708   :  { %v5114_v47 = vadd.f32 %v5113_v45, %v5091_v58 }
 0x70a   :  { %v5137_v59 = vadd.f32 %v5136_v49, %v5114_v47 }
 0x70c   :  { %v5160_v46 = vadd.f32 %v5159_v10, %v5137_v59 }
 0x70f   :  { %v5116_v25 = vpop.f32.mrf.mxu2  ;;  %v5228_v42 = vpop.f32.mrf.mxu1 }
 0x710   :  { %v5117_v43 = vadd.f32 %v5116_v25, %v5094_v61 }
 0x712   :  { %v5140_v16 = vadd.f32 %v5139_v26, %v5117_v43 }
 0x714   :  { %v5163_v34 = vadd.f32 %v5162_v17, %v5140_v16 }
 0x717   :  { %v5231_v41 = vpop.f32.mrf.mxu1 }
 0x727   :  { %v5182_v23 = vpop.f32.mrf.mxu2 }
 0x728   :  { %v5183_v13 = vadd.f32 %v5182_v23, %v5160_v46 }
 0x72a   :  { %v5206_v40 = vadd.f32 %v5205_v4, %v5183_v13 }
 0x72c   :  { %v5229_v63 = vadd.f32 %v5228_v42, %v5206_v40 }
 0x72f   :  { %v5185_v3 = vpop.f32.mrf.mxu2 }
 0x730   :  { %v5186_v2 = vadd.f32 %v5185_v3, %v5163_v34 }
 0x732   :  { %v5209_v29 = vadd.f32 %v5208_v44, %v5186_v2 }
 0x734   :  { %v5232_v12 = vadd.f32 %v5231_v41, %v5209_v29 }
 0x747   :  { %v5251_v32 = vpop.f32.mrf.mxu2 }
 0x748   :  { %v5252_v56 = vadd.f32 %v5251_v32, %v5229_v63 }
 0x74a   :  { %8289 = vmatmul.msk.f32.vlgmr.msrb.gmra.mxu3 %vm5263_vm3, %v5252_v56 }
 0x74b   :  { %5443 = vmatpush.msrb.mxu3 %v12106_v15 }
 0x74d   :  { %5444 = vmatpush.msrb.mxu3 %v12122_v38 }
 0x74f   :  { %v5254_v18 = vpop.f32.mrf.mxu2  ;;  %5445 = vmatpush.msrb.mxu3 %v12130_v62 }
 0x750   :  { %v5255_v14 = vadd.f32 %v5254_v18, %v5232_v12 }
 0x751   :  { %5446 = vmatpush.msrb.mxu3 %v12135_v60 }
 0x752   :  { %8290 = vmatmul.msk.f32.gmra.mxu3 %vm5263_vm3, %v5255_v14 }
 0x76e   :  { %v5390_v19 = vpop.f32.mrf.mxu2 }
 0x7cd   :  { %v5287_v5 = vpop.f32.mrf.mxu3 }
 0x7ce   :  { %v5288_v20 = vadd.f32 %v8604_v53, %v5287_v5 }
 0x7d0   :  { %v5293_v24 = vmax.f32 %v5288_v20, 0.0 }
 0x7d2   :  { %8291 = vmatmul.msk.f32.vlgmr.msra.gmra.mxu3 %vm5309_vm4, %v5293_v24  ;;  %8293 = vmatmul.msk.f32.vlgmr.msra.gmra.mxu1 %vm5309_vm4, %v5293_v24 }
 0x7d3   :  { %5579 = vmatpush.msra.mxu3 %v12106_v15  ;;  %5859 = vmatpush.msra.mxu1 %v12106_v15 }
 0x7d5   :  { %v5290_v57 = vpop.f32.mrf.mxu3  ;;  %5580 = vmatpush.msra.mxu3 %v12122_v38  ;;  %5860 = vmatpush.msra.mxu1 %v12122_v38 }
 0x7d6   :  { %v5291_v0 = vadd.f32 %v8604_v53, %v5290_v57 }
 0x7d7   :  { %5581 = vmatpush.msra.mxu3 %v12130_v62  ;;  %5861 = vmatpush.msra.mxu1 %v12130_v62 }
 0x7d8   :  { %v5294_v45 = vmax.f32 %v5291_v0, 0.0 }
 0x7d9   :  { %5582 = vmatpush.msra.mxu3 %v12135_v60  ;;  %5862 = vmatpush.msra.mxu1 %v12135_v60 }
 0x7da   :  { %8292 = vmatmul.msk.f32.gmra.mxu3 %vm5309_vm4, %v5294_v45  ;;  %8294 = vmatmul.msk.f32.gmra.mxu1 %vm5309_vm4, %v5294_v45 }
 0x7e2   :  { %5447 = vmatmul.f32.vlgmr.msrb.gmra.mxu3 %v8791_v9 }
 0x7e3   :  { %5789 = vmatpush.msrb.mxu3 %v12079_v35 }
 0x7e5   :  { %5790 = vmatpush.msrb.mxu3 %v12088_v22 }
 0x7e7   :  { %5791 = vmatpush.msrb.mxu3 %v12100_v6 }
 0x7e9   :  { %5792 = vmatpush.msrb.mxu3 %v12111_v30 }
 0x84f   :  { %v5356_v7 = vpop.f32.mrf.mxu1 }
 0x850   :  { %v12167_v48 = vadd.f32 %v5356_v7, %v5306_v21 }
 0x855   :  { %v5333_v54 = vpop.f32.mrf.mxu3 }
 0x856   :  { %v12174_v51 = vadd.f32 %v5333_v54, %v5305_v39 }
 0x857   :  { %v5359_v25 = vpop.f32.mrf.mxu1 }
 0x858   :  { %v12171_v10 = vadd.f32 %v5359_v25, %v5306_v21  ;;  %v5393_v8 = vadd.f32 %v5390_v19, %v12174_v51 }
 0x85a   :  { %v8295_v26 = vmul.f32 -1.442695, %v5393_v8 }
 0x85d   :  { %v5336_v49 = vpop.f32.mrf.mxu3 }
 0x85e   :  { %v12169_v1 = vadd.f32 %v5336_v49, %v5305_v39 }
 0x865   :  { %v5448_v11 = vpop.f32.mrf.mxu3 }
 0x866   :  { %v5452_v36 = vrot.slane %v5448_v11, 2 }
 0x868   :  { %v5454_v58 = vadd.f32 %v5452_v36, %v12171_v10 }
 0x86a   :  { %8611 = vtanh.f32 %v5454_v58  ;;  %v8296_v55 = vmul.f32 -1.442695, %v5454_v58 }
 0x86b   :  { %8613 = vtanh.f32 %v5393_v8 }
 0x86c   :  { %8615 = vpow2.f32 %v8296_v55 }
 0x86d   :  { %8617 = vpow2.f32 %v8295_v26 }
 0x870   :  { %v8612_v31 = vpop.eup %8611 }
 0x871   :  { %5477 = vrot.lane.b32.xlu0 %v8612_v31, %s8792_s7  ;;  %v8614_v47 = vpop.eup %8613 }
 0x872   :  { %v8616_v23 = vpop.eup %8615 }
 0x873   :  { %v5458_v37 = vadd.f32 1.0, %v8616_v23  ;;  %v8618_v59 = vpop.eup %8617 }
 0x874   :  { %v5397_v17 = vadd.f32 1.0, %v8618_v59 }
 0x875   :  { %8619 = vrcp.f32 %v5458_v37  ;;  %v5470_v40 = vand.u32 2147483648, %v5458_v37  ;;  %vm5464_vm6 = vweird.f32 %v5458_v37  ;;  %v5468_v34 = vand.u32 2147483647, %v5458_v37 }
 0x876   :  { %8621 = vrcp.f32 %v5397_v17  ;;  %v5409_v12 = vand.u32 2147483648, %v5397_v17  ;;  %vm5403_vm10 = vweird.f32 %v5397_v17  ;;  %v5407_v18 = vand.u32 2147483647, %v5397_v17 }
 0x877   :  { %v5471_v44 = vor.u32 1.1754944e-38, %v5470_v40  ;;  %vm5469_vm8 = vcmp.eq.f32.partialorder %v5468_v34, 8.507059e+37 }
 0x878   :  { %v5410_v28 = vor.u32 1.1754944e-38, %v5409_v12  ;;  %vm5408_vm12 = vcmp.eq.f32.partialorder %v5407_v18, 8.507059e+37 }
 0x879   :  { %5416 = vrot.lane.b32.xlu0 %v8614_v47, %s8792_s7 }
 0x87b   :  { %v8620_v61 = vpop.eup %8619 }
 0x87c   :  { %v5460_v46 = vmul.f32 %v8620_v61, %v5458_v37  ;;  %v8622_v4 = vpop.eup %8621  ;;  %vm5465_vm5 = vweird.f32 %v8620_v61 }
 0x87d   :  { %v5399_v3 = vmul.f32 %v8622_v4, %v5397_v17  ;;  %vm5466_vm7 = vmor %vm5464_vm6, %vm5465_vm5  ;;  %vm5404_vm9 = vweird.f32 %v8622_v4 }
 0x87e   :  { %v5461_v43 = vsub.f32 1.0, %v5460_v46  ;;  %vm5405_vm11 = vmor %vm5403_vm10, %vm5404_vm9 }
 0x87f   :  { %v5400_v42 = vsub.f32 1.0, %v5399_v3 }
 0x880   :  { %v5462_v13 = vmul.f32 %v8620_v61, %v5461_v43 }
 0x881   :  { %v5401_v2 = vmul.f32 %v8622_v4, %v5400_v42 }
 0x882   :  { %v5463_v16 = vadd.f32 %v8620_v61, %v5462_v13 }
 0x883   :  { %v5402_v41 = vadd.f32 %v8622_v4, %v5401_v2 }
 0x884   :  { %v5467_v63 = vsel %vm5466_vm7, %v8620_v61, %v5463_v16 }
 0x885   :  { %v5472_v56 = vsel %vm5469_vm8, %v5471_v44, %v5467_v63  ;;  %v5406_v14 = vsel %vm5405_vm11, %v8622_v4, %v5402_v41 }
 0x886   :  { %v5411_v50 = vsel %vm5408_vm12, %v5410_v28, %v5406_v14  ;;  %v5475_v9 = vmul.f32 0.0, %v5472_v56 }
 0x887   :  { %v5414_v20 = vmul.f32 0.0, %v5411_v50 }
 0x8e3   :  { %v5478_v32 = vpop.permute.xlu0 %5477 }
 0x8e4   :  { %v5480_v29 = vmul.f32 %v5478_v32, %v5472_v56 }
 0x8e6   :  { %5482 = vrot.lane.b32.xlu1 %v5480_v29, %s8793_s28 }
 0x8eb   :  { %v5417_v27 = vpop.permute.xlu0 %5416 }
 0x8ec   :  { %v5419_v33 = vmul.f32 %v5417_v27, %v5411_v50 }
 0x8ee   :  { %5421 = vrot.lane.b32.xlu1 %v5419_v33, %s8793_s28 }
 0x958   :  { %v5483_v53 = vpop.permute.xlu1 %5482 }
 0x959   :  { %v12181_v5 = vadd.f32 %v5483_v53, %v5475_v9 }
 0x95b   :  { %8623 = vtanh.f32 %v12181_v5  ;;  %v5612_v53 = vrot.slane %v12181_v5, 2 }
 0x960   :  { %v5422_v24 = vpop.permute.xlu1 %5421 }
 0x961   :  { %v8624_v57 = vpop.eup %8623  ;;  %v12184_v0 = vadd.f32 %v5422_v24, %v5414_v20 }
 0x962   :  { %5488 = vrot.lane.b32.xlu2 %v8624_v57, %s8792_s7 }
 0x963   :  { %8625 = vtanh.f32 %v12184_v0 }
 0x969   :  { %v8626_v45 = vpop.eup %8625 }
 0x96a   :  { %5427 = vrot.lane.b32.xlu2 %v8626_v45, %s8792_s7  ;;  %v5542_v45 = vrot.slane %v12184_v0, 6 }
 0x9bc   :  { %v5489_v52 = vpop.permute.xlu2 %5488 }
 0x9bd   :  { %v12189_v21 = vmul.f32 %v5489_v52, %v5472_v56 }
 0x9bf   :  { %v5562_v7 = vrot.slane %v12189_v21, 6 }
 0x9c1   :  { %5563 = vrot.lane.b32.xlu0 %v5562_v7, %s8793_s28 }
 0x9c4   :  { %v5428_v54 = vpop.permute.xlu2 %5427 }
 0x9c5   :  { %v12193_v39 = vmul.f32 %v5428_v54, %v5411_v50 }
 0x9c7   :  { %5493 = vrot.lane.b32.xlu1 %v12193_v39, %s8793_s28 }
 0xa33   :  { %v5564_v49 = vpop.permute.xlu0 %5563 }
 0xa34   :  { %8299 = vmatmul.msk.f32.vlgmr.msra.gmra.mxu3 %vm5309_vm4, %v5564_v49 }
 0xa35   :  { %5992 = vmatpush.msra.mxu3 %v12106_v15 }
 0xa37   :  { %5993 = vmatpush.msra.mxu3 %v12122_v38 }
 0xa39   :  { %v5494_v25 = vpop.permute.xlu1 %5493  ;;  %5994 = vmatpush.msra.mxu3 %v12130_v62 }
 0xa3a   :  { %8297 = vmatmul.msk.f32.vlgmr.msrb.gmra.mxu2 %vm5309_vm4, %v5494_v25 }
 0xa3b   :  { %5995 = vmatpush.msra.mxu3 %v12135_v60  ;;  %5926 = vmatpush.msrb.mxu2 %v12079_v35 }
 0xa3d   :  { %5927 = vmatpush.msrb.mxu2 %v12088_v22 }
 0xa3f   :  { %5928 = vmatpush.msrb.mxu2 %v12100_v6 }
 0xa41   :  { %5929 = vmatpush.msrb.mxu2 %v12111_v30 }
 0xab7   :  { %v5584_v11 = vpop.f32.mrf.mxu3 }
 0xab8   :  { %v5588_v36 = vrot.slane %v5584_v11, 4 }
 0xaba   :  { %v5590_v58 = vadd.f32 %v5588_v36, %v12171_v10 }
 0xabc   :  { %8627 = vtanh.f32 %v5590_v58  ;;  %v8300_v26 = vmul.f32 -1.442695, %v5590_v58 }
 0xabd   :  { %v5514_v19 = vpop.f32.mrf.mxu2 }
 0xabe   :  { %v5518_v8 = vrot.slane %v5514_v19, 6 }
 0xac0   :  { %v5520_v31 = vadd.f32 %v5518_v8, %v12174_v51 }
 0xac2   :  { %v8628_v47 = vpop.eup %8627  ;;  %8629 = vtanh.f32 %v5520_v31  ;;  %v8298_v61 = vmul.f32 -1.442695, %v5520_v31 }
 0xac3   :  { %5616 = vrot.lane.b32.xlu2 %v8628_v47, %s8792_s7  ;;  %8631 = vpow2.f32 %v8300_v26 }
 0xac8   :  { %v8630_v55 = vpop.eup %8629 }
 0xac9   :  { %5546 = vrot.lane.b32.xlu0 %v8630_v55, %s8792_s7  ;;  %v8632_v23 = vpop.eup %8631 }
 0xaca   :  { %v5594_v37 = vadd.f32 1.0, %v8632_v23 }
 0xacc   :  { %8633 = vrcp.f32 %v5594_v37  ;;  %v5606_v13 = vand.u32 2147483648, %v5594_v37  ;;  %vm5600_vm14 = vweird.f32 %v5594_v37  ;;  %v5604_v16 = vand.u32 2147483647, %v5594_v37 }
 0xacd   :  { %8635 = vpow2.f32 %v8298_v61 }
 0xace   :  { %v5607_v34 = vor.u32 1.1754944e-38, %v5606_v13  ;;  %vm5605_vm0 = vcmp.eq.f32.partialorder %v5604_v16, 8.507059e+37 }
 0xad2   :  { %v8634_v59 = vpop.eup %8633 }
 0xad3   :  { %v5596_v17 = vmul.f32 %v8634_v59, %v5594_v37  ;;  %vm5601_vm13 = vweird.f32 %v8634_v59  ;;  %v8636_v3 = vpop.eup %8635 }
 0xad4   :  { %vm5602_vm15 = vmor %vm5600_vm14, %vm5601_vm13  ;;  %v5524_v40 = vadd.f32 1.0, %v8636_v3 }
 0xad5   :  { %v5597_v46 = vsub.f32 1.0, %v5596_v17 }
 0xad6   :  { %8637 = vrcp.f32 %v5524_v40  ;;  %v5536_v18 = vand.u32 2147483648, %v5524_v40  ;;  %vm5530_vm2 = vweird.f32 %v5524_v40  ;;  %v5534_v14 = vand.u32 2147483647, %v5524_v40 }
 0xad7   :  { %v5598_v43 = vmul.f32 %v8634_v59, %v5597_v46 }
 0xad8   :  { %v5537_v50 = vor.u32 1.1754944e-38, %v5536_v18  ;;  %vm5535_vm5 = vcmp.eq.f32.partialorder %v5534_v14, 8.507059e+37 }
 0xad9   :  { %v5599_v4 = vadd.f32 %v8634_v59, %v5598_v43 }
 0xadb   :  { %v5603_v42 = vsel %vm5602_vm15, %v8634_v59, %v5599_v4 }
 0xadc   :  { %v5608_v63 = vsel %vm5605_vm0, %v5607_v34, %v5603_v42  ;;  %v8638_v32 = vpop.eup %8637 }
 0xadd   :  { %v5526_v56 = vmul.f32 %v8638_v32, %v5524_v40  ;;  %vm5531_vm1 = vweird.f32 %v8638_v32  ;;  %v5614_v20 = vmul.f32 %v5612_v53, %v5608_v63 }
 0xade   :  { %vm5532_vm3 = vmor %vm5530_vm2, %vm5531_vm1 }
 0xadf   :  { %v5527_v29 = vsub.f32 1.0, %v5526_v56 }
 0xae1   :  { %v5528_v41 = vmul.f32 %v8638_v32, %v5527_v29 }
 0xae3   :  { %v5529_v12 = vadd.f32 %v8638_v32, %v5528_v41 }
 0xae5   :  { %v5533_v28 = vsel %vm5532_vm3, %v8638_v32, %v5529_v12 }
 0xae6   :  { %v5538_v33 = vsel %vm5535_vm5, %v5537_v50, %v5533_v28 }
 0xae7   :  { %v5544_v52 = vmul.f32 %v5542_v45, %v5538_v33 }
 0xb1d   :  { %v5617_v2 = vpop.permute.xlu2 %5616 }
 0xb1e   :  { %v5619_v44 = vmul.f32 %v5617_v2, %v5608_v63 }
 0xb20   :  { %5621 = vrot.lane.b32.xlu1 %v5619_v44, %s8793_s28 }
 0xb3b   :  { %v5547_v27 = vpop.permute.xlu0 %5546 }
 0xb3c   :  { %v5549_v9 = vmul.f32 %v5547_v27, %v5538_v33 }
 0xb3e   :  { %5551 = vrot.lane.b32.xlu2 %v5549_v9, %s8793_s28 }
 0xb92   :  { %v5622_v24 = vpop.permute.xlu1 %5621 }
 0xb93   :  { %v12214_v57 = vadd.f32 %v5622_v24, %v5614_v20 }
 0xb95   :  { %8639 = vtanh.f32 %v12214_v57 }
 0xb98   :  { %v5552_v7 = vpop.permute.xlu2 %5551 }
 0xb99   :  { %v12218_v54 = vadd.f32 %v5552_v7, %v5544_v52 }
 0xb9b   :  { %v8640_v49 = vpop.eup %8639  ;;  %8641 = vtanh.f32 %v12218_v54 }
 0xb9c   :  { %5627 = vrot.lane.b32.xlu0 %v8640_v49, %s8792_s7  ;;  %v5752_v49 = vrot.slane %v12214_v57, 2 }
 0xba1   :  { %v8642_v25 = vpop.eup %8641 }
 0xba2   :  { %5557 = vrot.lane.b32.xlu1 %v8642_v25, %s8792_s7  ;;  %v5682_v25 = vrot.slane %v12218_v54, 6 }
 0xc0e   :  { %v5628_v5 = vpop.permute.xlu0 %5627 }
 0xc0f   :  { %v12223_v11 = vmul.f32 %v5628_v5, %v5608_v63 }
 0xc11   :  { %v5702_v36 = vrot.slane %v12223_v11, 4 }
 0xc13   :  { %5703 = vrot.lane.b32.xlu2 %v5702_v36, %s8793_s28 }
 0xc14   :  { %v5558_v0 = vpop.permute.xlu1 %5557 }
 0xc15   :  { %v12227_v58 = vmul.f32 %v5558_v0, %v5538_v33 }
 0xc17   :  { %v5632_v19 = vrot.slane %v12227_v58, 2 }
 0xc19   :  { %5633 = vrot.lane.b32.xlu0 %v5632_v19, %s8793_s28 }
 0xc6d   :  { %v5704_v8 = vpop.permute.xlu2 %5703 }
 0xc6e   :  { %8303 = vmatmul.msk.f32.vlgmr.msra.gmra.mxu2 %vm5309_vm4, %v5704_v8 }
 0xc6f   :  { %6131 = vmatpush.msra.mxu2 %v12106_v15 }
 0xc71   :  { %6132 = vmatpush.msra.mxu2 %v12122_v38 }
 0xc73   :  { %6133 = vmatpush.msra.mxu2 %v12130_v62 }
 0xc75   :  { %6134 = vmatpush.msra.mxu2 %v12135_v60 }
 0xc8b   :  { %v5634_v31 = vpop.permute.xlu0 %5633 }
 0xc8c   :  { %8301 = vmatmul.msk.f32.vlgmr.msrb.gmra.mxu1 %vm5309_vm4, %v5634_v31 }
 0xc8d   :  { %6061 = vmatpush.msrb.mxu1 %v12079_v35 }
 0xc8f   :  { %6062 = vmatpush.msrb.mxu1 %v12088_v22 }
 0xc91   :  { %6063 = vmatpush.msrb.mxu1 %v12100_v6 }
 0xc93   :  { %6064 = vmatpush.msrb.mxu1 %v12111_v30 }
 0xcf1   :  { %v5724_v47 = vpop.f32.mrf.mxu2 }
 0xcf2   :  { %v5728_v55 = vrot.slane %v5724_v47, 6 }
 0xcf4   :  { %v5730_v26 = vadd.f32 %v5728_v55, %v12171_v10 }
 0xcf6   :  { %8643 = vtanh.f32 %v5730_v26  ;;  %v8304_v46 = vmul.f32 -1.442695, %v5730_v26 }
 0xcfc   :  { %v8644_v23 = vpop.eup %8643 }
 0xcfd   :  { %5756 = vrot.lane.b32.xlu1 %v8644_v23, %s8792_s7 }
 0xd09   :  { %v5654_v37 = vpop.f32.mrf.mxu1 }
 0xd0a   :  { %v5658_v59 = vrot.slane %v5654_v37, 4 }
 0xd0c   :  { %v5660_v17 = vadd.f32 %v5658_v59, %v12174_v51 }
 0xd0e   :  { %8645 = vtanh.f32 %v5660_v17  ;;  %v8302_v43 = vmul.f32 -1.442695, %v5660_v17 }
 0xd0f   :  { %8647 = vpow2.f32 %v8304_v46 }
 0xd10   :  { %8649 = vpow2.f32 %v8302_v43 }
 0xd14   :  { %v8646_v61 = vpop.eup %8645 }
 0xd15   :  { %5686 = vrot.lane.b32.xlu2 %v8646_v61, %s8792_s7  ;;  %v8648_v4 = vpop.eup %8647 }
 0xd16   :  { %v8650_v13 = vpop.eup %8649  ;;  %v5734_v3 = vadd.f32 1.0, %v8648_v4 }
 0xd17   :  { %v5664_v16 = vadd.f32 1.0, %v8650_v13 }
 0xd18   :  { %8651 = vrcp.f32 %v5734_v3  ;;  %vm5740_vm8 = vweird.f32 %v5734_v3  ;;  %v5746_v12 = vand.u32 2147483648, %v5734_v3  ;;  %v5744_v14 = vand.u32 2147483647, %v5734_v3 }
 0xd19   :  { %8653 = vrcp.f32 %v5664_v16  ;;  %v5676_v18 = vand.u32 2147483648, %v5664_v16  ;;  %vm5670_vm10 = vweird.f32 %v5664_v16  ;;  %v5674_v28 = vand.u32 2147483647, %v5664_v16 }
 0xd1a   :  { %v5747_v33 = vor.u32 1.1754944e-38, %v5746_v12  ;;  %vm5745_vm12 = vcmp.eq.f32.partialorder %v5744_v14, 8.507059e+37 }
 0xd1b   :  { %v5677_v9 = vor.u32 1.1754944e-38, %v5676_v18  ;;  %vm5675_vm13 = vcmp.eq.f32.partialorder %v5674_v28, 8.507059e+37 }
 0xd1e   :  { %v8652_v42 = vpop.eup %8651 }
 0xd1f   :  { %v8654_v40 = vpop.eup %8653  ;;  %v5736_v34 = vmul.f32 %v8652_v42, %v5734_v3  ;;  %vm5741_vm6 = vweird.f32 %v8652_v42 }
 0xd20   :  { %v5666_v63 = vmul.f32 %v8654_v40, %v5664_v16  ;;  %vm5671_vm7 = vweird.f32 %v8654_v40  ;;  %vm5742_vm9 = vmor %vm5740_vm8, %vm5741_vm6 }
 0xd21   :  { %v5737_v2 = vsub.f32 1.0, %v5736_v34  ;;  %vm5672_vm11 = vmor %vm5670_vm10, %vm5671_vm7 }
 0xd22   :  { %v5667_v44 = vsub.f32 1.0, %v5666_v63 }
 0xd23   :  { %v5738_v32 = vmul.f32 %v8652_v42, %v5737_v2 }
 0xd24   :  { %v5668_v56 = vmul.f32 %v8654_v40, %v5667_v44 }
 0xd25   :  { %v5739_v29 = vadd.f32 %v8652_v42, %v5738_v32 }
 0xd26   :  { %v5669_v41 = vadd.f32 %v8654_v40, %v5668_v56 }
 0xd27   :  { %v5743_v50 = vsel %vm5742_vm9, %v8652_v42, %v5739_v29 }
 0xd28   :  { %v5673_v27 = vsel %vm5672_vm11, %v8654_v40, %v5669_v41  ;;  %v5748_v20 = vsel %vm5745_vm12, %v5747_v33, %v5743_v50 }
 0xd29   :  { %v5678_v24 = vsel %vm5675_vm13, %v5677_v9, %v5673_v27  ;;  %v5754_v5 = vmul.f32 %v5752_v49, %v5748_v20 }
 0xd2a   :  { %v5684_v36 = vmul.f32 %v5682_v25, %v5678_v24 }
 0xd6f   :  { %v5757_v53 = vpop.permute.xlu1 %5756  ;;  %v5687_v45 = vpop.permute.xlu2 %5686 }
 0xd70   :  { %v5759_v52 = vmul.f32 %v5757_v53, %v5748_v20  ;;  %v5689_v7 = vmul.f32 %v5687_v45, %v5678_v24 }
 0xd72   :  { %5761 = vrot.lane.b32.xlu0 %v5759_v52, %s8793_s28  ;;  %5691 = vrot.lane.b32.xlu1 %v5689_v7, %s8793_s28 }
 0xde4   :  { %v5762_v0 = vpop.permute.xlu0 %5761  ;;  %v5692_v19 = vpop.permute.xlu1 %5691 }
 0xde5   :  { %v12249_v8 = vadd.f32 %v5762_v0, %v5754_v5  ;;  %v12251_v31 = vadd.f32 %v5692_v19, %v5684_v36 }
 0xde7   :  { %8655 = vtanh.f32 %v12249_v8  ;;  %v5889_v19 = vrot.slane %v12249_v8, 2 }
 0xde8   :  { %8657 = vtanh.f32 %v12251_v31 }
 0xded   :  { %v8656_v47 = vpop.eup %8655 }
 0xdee   :  { %v8658_v55 = vpop.eup %8657  ;;  %5767 = vrot.lane.b32.xlu2 %v8656_v47, %s8792_s7 }
 0xdef   :  { %5697 = vrot.lane.b32.xlu0 %v8658_v55, %s8792_s7 }
 0xe48   :  { %v5768_v57 = vpop.permute.xlu2 %5767 }
 0xe49   :  { %v12257_v54 = vmul.f32 %v5768_v57, %v5748_v20 }
 0xe4b   :  { %v5842_v26 = vrot.slane %v12257_v54, 2 }
 0xe4d   :  { %5843 = vrot.lane.b32.xlu1 %v5842_v26, %s8793_s28 }
 0xe61   :  { %v5698_v23 = vpop.permute.xlu0 %5697 }
 0xe62   :  { %v12261_v37 = vmul.f32 %v5698_v23, %v5678_v24  ;;  %v5822_v23 = vrot.slane %v12251_v31, 6 }
 0xe64   :  { %v5772_v59 = vrot.slane %v12261_v37, 4 }
 0xe66   :  { %5773 = vrot.lane.b32.xlu2 %v5772_v59, %s8793_s28 }
 0xebf   :  { %v5844_v17 = vpop.permute.xlu1 %5843 }
 0xec0   :  { %v5774_v61 = vpop.permute.xlu2 %5773  ;;  %8307 = vmatmul.msk.f32.vlgmr.msra.gmra.mxu1 %vm5309_vm4, %v5844_v17 }
 0xec1   :  { %8305 = vmatmul.msk.f32.vlgmr.msrb.gmra.mxu3 %vm5309_vm4, %v5774_v61  ;;  %6271 = vmatpush.msra.mxu1 %v12106_v15 }
 0xec2   :  { %6201 = vmatpush.msrb.mxu3 %v12079_v35 }
 0xec3   :  { %6272 = vmatpush.msra.mxu1 %v12122_v38 }
 0xec4   :  { %6202 = vmatpush.msrb.mxu3 %v12088_v22 }
 0xec5   :  { %6273 = vmatpush.msra.mxu1 %v12130_v62 }
 0xec6   :  { %6203 = vmatpush.msrb.mxu3 %v12100_v6 }
 0xec7   :  { %6274 = vmatpush.msra.mxu1 %v12135_v60 }
 0xec8   :  { %6204 = vmatpush.msrb.mxu3 %v12111_v30 }
 0xf3d   :  { %v5864_v46 = vpop.f32.mrf.mxu1 }
 0xf3e   :  { %v5867_v43 = vadd.f32 %v5864_v46, %v12171_v10 }
 0xf40   :  { %8659 = vtanh.f32 %v5867_v43  ;;  %v8308_v40 = vmul.f32 -1.442695, %v5867_v43 }
 0xf44   :  { %v5794_v4 = vpop.f32.mrf.mxu3 }
 0xf45   :  { %v5798_v13 = vrot.slane %v5794_v4, 2 }
 0xf46   :  { %v8660_v3 = vpop.eup %8659 }
 0xf47   :  { %v5800_v16 = vadd.f32 %v5798_v13, %v12174_v51  ;;  %5893 = vrot.lane.b32.xlu0 %v8660_v3, %s8792_s7 }
 0xf49   :  { %8661 = vtanh.f32 %v5800_v16  ;;  %v8306_v34 = vmul.f32 -1.442695, %v5800_v16 }
 0xf4a   :  { %8663 = vpow2.f32 %v8308_v40 }
 0xf4b   :  { %8665 = vpow2.f32 %v8306_v34 }
 0xf4f   :  { %v8662_v42 = vpop.eup %8661 }
 0xf50   :  { %5826 = vrot.lane.b32.xlu1 %v8662_v42, %s8792_s7  ;;  %v8664_v63 = vpop.eup %8663 }
 0xf51   :  { %v5871_v2 = vadd.f32 1.0, %v8664_v63  ;;  %v8666_v10 = vpop.eup %8665 }
 0xf52   :  { %v5804_v44 = vadd.f32 1.0, %v8666_v10 }
 0xf53   :  { %8667 = vrcp.f32 %v5871_v2  ;;  %v5883_v14 = vand.u32 2147483648, %v5871_v2  ;;  %vm5877_vm15 = vweird.f32 %v5871_v2  ;;  %v5881_v50 = vand.u32 2147483647, %v5871_v2 }
 0xf54   :  { %8669 = vrcp.f32 %v5804_v44  ;;  %v5816_v52 = vand.u32 2147483648, %v5804_v44  ;;  %vm5810_vm3 = vweird.f32 %v5804_v44  ;;  %v5814_v7 = vand.u32 2147483647, %v5804_v44 }
 0xf55   :  { %v5884_v33 = vor.u32 1.1754944e-38, %v5883_v14  ;;  %vm5882_vm1 = vcmp.eq.f32.partialorder %v5881_v50, 8.507059e+37 }
 0xf56   :  { %v5817_v25 = vor.u32 1.1754944e-38, %v5816_v52  ;;  %vm5815_vm6 = vcmp.eq.f32.partialorder %v5814_v7, 8.507059e+37 }
 0xf59   :  { %v8668_v32 = vpop.eup %8667 }
 0xf5a   :  { %v5873_v56 = vmul.f32 %v8668_v32, %v5871_v2  ;;  %v8670_v51 = vpop.eup %8669  ;;  %vm5878_vm14 = vweird.f32 %v8668_v32 }
 0xf5b   :  { %v5806_v12 = vmul.f32 %v8670_v51, %v5804_v44  ;;  %vm5879_vm0 = vmor %vm5877_vm15, %vm5878_vm14  ;;  %vm5811_vm2 = vweird.f32 %v8670_v51 }
 0xf5c   :  { %v5874_v29 = vsub.f32 1.0, %v5873_v56  ;;  %vm5812_vm5 = vmor %vm5810_vm3, %vm5811_vm2 }
 0xf5d   :  { %v5807_v28 = vsub.f32 1.0, %v5806_v12 }
 0xf5e   :  { %v5875_v41 = vmul.f32 %v8668_v32, %v5874_v29 }
 0xf5f   :  { %v5808_v9 = vmul.f32 %v8670_v51, %v5807_v28 }
 0xf60   :  { %v5876_v18 = vadd.f32 %v8668_v32, %v5875_v41 }
 0xf61   :  { %v5809_v45 = vadd.f32 %v8670_v51, %v5808_v9 }
 0xf62   :  { %v5880_v27 = vsel %vm5879_vm0, %v8668_v32, %v5876_v18 }
 0xf63   :  { %v5885_v20 = vsel %vm5882_vm1, %v5884_v33, %v5880_v27  ;;  %v5813_v49 = vsel %vm5812_vm5, %v8670_v51, %v5809_v45 }
 0xf64   :  { %v5818_v36 = vsel %vm5815_vm6, %v5817_v25, %v5813_v49  ;;  %v5891_v47 = vmul.f32 %v5889_v19, %v5885_v20 }
 0xf65   :  { %v5824_v59 = vmul.f32 %v5822_v23, %v5818_v36 }
 0xfb9   :  { %v5894_v53 = vpop.permute.xlu0 %5893 }
 0xfba   :  { %v5896_v24 = vmul.f32 %v5894_v53, %v5885_v20 }
 0xfbc   :  { %5898 = vrot.lane.b32.xlu2 %v5896_v24, %s8793_s28 }
 0xfc2   :  { %v5827_v5 = vpop.permute.xlu1 %5826 }
 0xfc3   :  { %v5829_v0 = vmul.f32 %v5827_v5, %v5818_v36 }
 0xfc5   :  { %5831 = vrot.lane.b32.xlu0 %v5829_v0, %s8793_s28 }
0x1016   :  { %v5899_v55 = vpop.permute.xlu2 %5898 }
0x1017   :  { %v12282_v57 = vadd.f32 %v5899_v55, %v5891_v47 }
0x1019   :  { %8671 = vtanh.f32 %v12282_v57 }
0x101f   :  { %v8672_v26 = vpop.eup %8671 }
0x1020   :  { %5904 = vrot.lane.b32.xlu1 %v8672_v26, %s8792_s7 }
0x1037   :  { %v5832_v17 = vpop.permute.xlu0 %5831 }
0x1038   :  { %v12287_v61 = vadd.f32 %v5832_v17, %v5824_v59 }
0x103a   :  { %8673 = vtanh.f32 %v12287_v61  ;;  %v5956_v55 = vrot.slane %v12287_v61, 6 }
0x1040   :  { %v8674_v46 = vpop.eup %8673 }
0x1041   :  { %5837 = vrot.lane.b32.xlu2 %v8674_v46, %s8792_s7 }
0x1092   :  { %v5905_v8 = vpop.permute.xlu1 %5904 }
0x1093   :  { %v12291_v43 = vmul.f32 %v5905_v8, %v5885_v20 }
0x1095   :  { %5976 = vrot.lane.b32.xlu0 %v12291_v43, %s8793_s28 }
0x109b   :  { %v5838_v4 = vpop.permute.xlu2 %5837 }
0x109c   :  { %v12295_v13 = vmul.f32 %v5838_v4, %v5818_v36  ;;  %v6025_v36 = vrot.slane %v12282_v57, 2 }
0x109e   :  { %v5909_v31 = vrot.slane %v12295_v13, 6 }
0x10a0   :  { %5910 = vrot.lane.b32.xlu1 %v5909_v31, %s8793_s28 }
0x1107   :  { %v5977_v3 = vpop.permute.xlu0 %5976 }
0x1108   :  { %8311 = vmatmul.msk.f32.vlgmr.msra.gmra.mxu3 %vm5309_vm4, %v5977_v3 }
0x1109   :  { %6411 = vmatpush.msra.mxu3 %v12106_v15 }
0x110b   :  { %6412 = vmatpush.msra.mxu3 %v12122_v38 }
0x110d   :  { %6413 = vmatpush.msra.mxu3 %v12130_v62 }
0x110f   :  { %6414 = vmatpush.msra.mxu3 %v12135_v60 }
0x1112   :  { %v5911_v16 = vpop.permute.xlu1 %5910 }
0x1113   :  { %8309 = vmatmul.msk.f32.vlgmr.msrb.gmra.mxu2 %vm5309_vm4, %v5911_v16 }
0x1114   :  { %6341 = vmatpush.msrb.mxu2 %v12079_v35 }
0x1116   :  { %6342 = vmatpush.msrb.mxu2 %v12088_v22 }
0x1118   :  { %6343 = vmatpush.msrb.mxu2 %v12100_v6 }
0x111a   :  { %6344 = vmatpush.msrb.mxu2 %v12111_v30 }
0x118b   :  { %v5997_v42 = vpop.f32.mrf.mxu3 }
0x118c   :  { %v6001_v40 = vrot.slane %v5997_v42, 2 }
0x118e   :  { %v6003_v15 = vadd.f32 %v6001_v40, %v12167_v48 }
0x1190   :  { %8675 = vtanh.f32 %v6003_v15  ;;  %v8312_v35 = vmul.f32 -1.442695, %v6003_v15 }
0x1196   :  { %v8676_v38 = vpop.eup %8675  ;;  %v5931_v62 = vpop.f32.mrf.mxu2 }
0x1197   :  { %v5934_v60 = vadd.f32 %v5931_v62, %v12169_v1  ;;  %6029 = vrot.lane.b32.xlu2 %v8676_v38, %s8792_s7 }
0x1199   :  { %8677 = vtanh.f32 %v5934_v60  ;;  %v8310_v10 = vmul.f32 -1.442695, %v5934_v60 }
0x119a   :  { %8679 = vpow2.f32 %v8312_v35 }
0x119f   :  { %v8678_v34 = vpop.eup %8677 }
0x11a0   :  { %5960 = vrot.lane.b32.xlu0 %v8678_v34, %s8792_s7  ;;  %v8680_v22 = vpop.eup %8679 }
0x11a1   :  { %v6007_v6 = vadd.f32 1.0, %v8680_v22 }
0x11a3   :  { %8681 = vrcp.f32 %v6007_v6  ;;  %v6019_v56 = vand.u32 2147483648, %v6007_v6  ;;  %vm6013_vm8 = vweird.f32 %v6007_v6  ;;  %v6017_v29 = vand.u32 2147483647, %v6007_v6 }
0x11a4   :  { %8683 = vpow2.f32 %v8310_v10 }
0x11a5   :  { %v6020_v12 = vor.u32 1.1754944e-38, %v6019_v56  ;;  %vm6018_vm10 = vcmp.eq.f32.partialorder %v6017_v29, 8.507059e+37 }
0x11a9   :  { %v8682_v30 = vpop.eup %8681 }
0x11aa   :  { %v6009_v63 = vmul.f32 %v8682_v30, %v6007_v6  ;;  %vm6014_vm7 = vweird.f32 %v8682_v30  ;;  %v8684_v41 = vpop.eup %8683 }
0x11ab   :  { %vm6015_vm9 = vmor %vm6013_vm8, %vm6014_vm7  ;;  %v5938_v28 = vadd.f32 1.0, %v8684_v41 }
0x11ac   :  { %v6010_v2 = vsub.f32 1.0, %v6009_v63 }
0x11ad   :  { %8685 = vrcp.f32 %v5938_v28  ;;  %v5950_v24 = vand.u32 2147483648, %v5938_v28  ;;  %vm5944_vm12 = vweird.f32 %v5938_v28  ;;  %v5948_v45 = vand.u32 2147483647, %v5938_v28 }
0x11ae   :  { %v6011_v44 = vmul.f32 %v8682_v30, %v6010_v2 }
0x11af   :  { %v5951_v7 = vor.u32 1.1754944e-38, %v5950_v24  ;;  %vm5949_vm14 = vcmp.eq.f32.partialorder %v5948_v45, 8.507059e+37 }
0x11b0   :  { %v6012_v32 = vadd.f32 %v8682_v30, %v6011_v44 }
0x11b2   :  { %v6016_v51 = vsel %vm6015_vm9, %v8682_v30, %v6012_v32 }
0x11b3   :  { %v6021_v18 = vsel %vm6018_vm10, %v6020_v12, %v6016_v51  ;;  %v8686_v27 = vpop.eup %8685 }
0x11b4   :  { %v5940_v33 = vmul.f32 %v8686_v27, %v5938_v28  ;;  %vm5945_vm11 = vweird.f32 %v8686_v27  ;;  %v6027_v0 = vmul.f32 %v6025_v36, %v6021_v18 }
0x11b5   :  { %vm5946_vm13 = vmor %vm5944_vm12, %vm5945_vm11 }
0x11b6   :  { %v5941_v9 = vsub.f32 1.0, %v5940_v33 }
0x11b8   :  { %v5942_v53 = vmul.f32 %v8686_v27, %v5941_v9 }
0x11ba   :  { %v5943_v20 = vadd.f32 %v8686_v27, %v5942_v53 }
0x11bc   :  { %v5947_v52 = vsel %vm5946_vm13, %v8686_v27, %v5943_v20 }
0x11bd   :  { %v5952_v25 = vsel %vm5949_vm14, %v5951_v7, %v5947_v52 }
0x11be   :  { %v5958_v26 = vmul.f32 %v5956_v55, %v5952_v25 }
0x11f1   :  { %v6030_v14 = vpop.permute.xlu2 %6029 }
0x11f2   :  { %v6032_v50 = vmul.f32 %v6030_v14, %v6021_v18 }
0x11f4   :  { %6034 = vrot.lane.b32.xlu1 %v6032_v50, %s8793_s28 }
0x1212   :  { %v5961_v49 = vpop.permute.xlu0 %5960 }
0x1213   :  { %v5963_v5 = vmul.f32 %v5961_v49, %v5952_v25 }
0x1215   :  { %5965 = vrot.lane.b32.xlu2 %v5963_v5, %s8793_s28 }
0x1266   :  { %v6035_v19 = vpop.permute.xlu1 %6034 }
0x1267   :  { %v12316_v47 = vadd.f32 %v6035_v19, %v6027_v0 }
0x1269   :  { %8687 = vtanh.f32 %v12316_v47  ;;  %v6164_v0 = vrot.slane %v12316_v47, 2 }
0x126f   :  { %v8688_v23 = vpop.eup %8687  ;;  %v5966_v59 = vpop.permute.xlu2 %5965 }
0x1270   :  { %v12320_v17 = vadd.f32 %v5966_v59, %v5958_v26  ;;  %6040 = vrot.lane.b32.xlu0 %v8688_v23, %s8792_s7 }
0x1272   :  { %8689 = vtanh.f32 %v12320_v17  ;;  %v6094_v19 = vrot.slane %v12320_v17, 6 }
0x1278   :  { %v8690_v46 = vpop.eup %8689 }
0x1279   :  { %5971 = vrot.lane.b32.xlu1 %v8690_v46, %s8792_s7 }
0x12e2   :  { %v6041_v57 = vpop.permute.xlu0 %6040 }
0x12e3   :  { %v12325_v8 = vmul.f32 %v6041_v57, %v6021_v18 }
0x12e5   :  { %v6114_v4 = vrot.slane %v12325_v8, 6 }
0x12e7   :  { %6115 = vrot.lane.b32.xlu2 %v6114_v4, %s8793_s28 }
0x12eb   :  { %v5972_v61 = vpop.permute.xlu1 %5971 }
0x12ec   :  { %v12329_v31 = vmul.f32 %v5972_v61, %v5952_v25 }
0x12ee   :  { %6045 = vrot.lane.b32.xlu0 %v12329_v31, %s8793_s28 }
0x1341   :  { %v6116_v3 = vpop.permute.xlu2 %6115 }
0x1342   :  { %8315 = vmatmul.msk.f32.vlgmr.msra.gmra.mxu2 %vm5309_vm4, %v6116_v3 }
0x1360   :  { %v6046_v16 = vpop.permute.xlu0 %6045 }
0x1361   :  { %8313 = vmatmul.msk.f32.vlgmr.msrb.gmra.mxu1 %vm5309_vm4, %v6046_v16 }
0x13c5   :  { %v6136_v42 = vpop.f32.mrf.mxu2 }
0x13c6   :  { %v6140_v40 = vrot.slane %v6136_v42, 4 }
0x13c8   :  { %v6142_v15 = vadd.f32 %v6140_v40, %v12167_v48 }
0x13ca   :  { %8691 = vtanh.f32 %v6142_v15  ;;  %v8316_v22 = vmul.f32 -1.442695, %v6142_v15 }
0x13d0   :  { %v8692_v38 = vpop.eup %8691 }
0x13d1   :  { %6168 = vrot.lane.b32.xlu1 %v8692_v38, %s8792_s7 }
0x13de   :  { %v6066_v62 = vpop.f32.mrf.mxu1 }
0x13df   :  { %v6070_v60 = vrot.slane %v6066_v62, 6 }
0x13e1   :  { %v6072_v34 = vadd.f32 %v6070_v60, %v12169_v1 }
0x13e3   :  { %8693 = vtanh.f32 %v6072_v34  ;;  %v8314_v6 = vmul.f32 -1.442695, %v6072_v34 }
0x13e4   :  { %8695 = vpow2.f32 %v8316_v22 }
0x13e5   :  { %8697 = vpow2.f32 %v8314_v6 }
0x13e9   :  { %v8694_v35 = vpop.eup %8693 }
0x13ea   :  { %6098 = vrot.lane.b32.xlu2 %v8694_v35, %s8792_s7  ;;  %v8696_v30 = vpop.eup %8695 }
0x13eb   :  { %v8698_v63 = vpop.eup %8697  ;;  %v6146_v2 = vadd.f32 1.0, %v8696_v30 }
0x13ec   :  { %v6076_v10 = vadd.f32 1.0, %v8698_v63 }
0x13ed   :  { %8699 = vrcp.f32 %v6146_v2  ;;  %v6158_v50 = vand.u32 2147483648, %v6146_v2  ;;  %vm6152_vm1 = vweird.f32 %v6146_v2  ;;  %v6156_v33 = vand.u32 2147483647, %v6146_v2 }
0x13ee   :  { %8701 = vrcp.f32 %v6076_v10  ;;  %v6088_v27 = vand.u32 2147483648, %v6076_v10  ;;  %vm6082_vm2 = vweird.f32 %v6076_v10  ;;  %v6086_v9 = vand.u32 2147483647, %v6076_v10 }
0x13ef   :  { %v6159_v24 = vor.u32 1.1754944e-38, %v6158_v50  ;;  %vm6157_vm6 = vcmp.eq.f32.partialorder %v6156_v33, 8.507059e+37 }
0x13f0   :  { %v6089_v45 = vor.u32 1.1754944e-38, %v6088_v27  ;;  %vm6087_vm7 = vcmp.eq.f32.partialorder %v6086_v9, 8.507059e+37 }
0x13f3   :  { %v8700_v44 = vpop.eup %8699 }
0x13f4   :  { %v8702_v32 = vpop.eup %8701  ;;  %v6148_v56 = vmul.f32 %v8700_v44, %v6146_v2  ;;  %vm6153_vm15 = vweird.f32 %v8700_v44 }
0x13f5   :  { %v6078_v29 = vmul.f32 %v8702_v32, %v6076_v10  ;;  %vm6083_vm0 = vweird.f32 %v8702_v32  ;;  %vm6154_vm3 = vmor %vm6152_vm1, %vm6153_vm15 }
0x13f6   :  { %v6149_v51 = vsub.f32 1.0, %v6148_v56  ;;  %vm6084_vm5 = vmor %vm6082_vm2, %vm6083_vm0 }
0x13f7   :  { %v6079_v41 = vsub.f32 1.0, %v6078_v29 }
0x13f8   :  { %v6150_v12 = vmul.f32 %v8700_v44, %v6149_v51 }
0x13f9   :  { %v6080_v18 = vmul.f32 %v8702_v32, %v6079_v41 }
0x13fa   :  { %v6151_v14 = vadd.f32 %v8700_v44, %v6150_v12 }
0x13fb   :  { %v6081_v28 = vadd.f32 %v8702_v32, %v6080_v18 }
0x13fc   :  { %v6155_v53 = vsel %vm6154_vm3, %v8700_v44, %v6151_v14 }
0x13fd   :  { %v6085_v20 = vsel %vm6084_vm5, %v8702_v32, %v6081_v28  ;;  %v6160_v52 = vsel %vm6157_vm6, %v6159_v24, %v6155_v53 }
0x13fe   :  { %v6090_v25 = vsel %vm6087_vm7, %v6089_v45, %v6085_v20  ;;  %v6166_v55 = vmul.f32 %v6164_v0, %v6160_v52 }
0x13ff   :  { %v6096_v23 = vmul.f32 %v6094_v19, %v6090_v25 }
0x1443   :  { %v6169_v7 = vpop.permute.xlu1 %6168 }
0x1444   :  { %v6099_v49 = vpop.permute.xlu2 %6098  ;;  %v6171_v5 = vmul.f32 %v6169_v7, %v6160_v52 }
0x1445   :  { %v6101_v36 = vmul.f32 %v6099_v49, %v6090_v25 }
0x1446   :  { %6173 = vrot.lane.b32.xlu0 %v6171_v5, %s8793_s28 }
0x1447   :  { %6103 = vrot.lane.b32.xlu1 %v6101_v36, %s8793_s28 }
0x14b8   :  { %v6174_v26 = vpop.permute.xlu0 %6173 }
0x14b9   :  { %v12343_v59 = vadd.f32 %v6174_v26, %v6166_v55  ;;  %v6104_v46 = vpop.permute.xlu1 %6103 }
0x14ba   :  { %v12345_v57 = vadd.f32 %v6104_v46, %v6096_v23 }
0x14bb   :  { %8703 = vtanh.f32 %v12343_v59  ;;  %v6304_v23 = vrot.slane %v12343_v59, 2 }
0x14bc   :  { %8705 = vtanh.f32 %v12345_v57 }
0x14c1   :  { %v8704_v4 = vpop.eup %8703 }
0x14c2   :  { %v8706_v61 = vpop.eup %8705  ;;  %6179 = vrot.lane.b32.xlu2 %v8704_v4, %s8792_s7 }
0x14c3   :  { %6109 = vrot.lane.b32.xlu0 %v8706_v61, %s8792_s7 }
0x151c   :  { %v6180_v47 = vpop.permute.xlu2 %6179 }
0x151d   :  { %v12351_v17 = vmul.f32 %v6180_v47, %v6160_v52 }
0x151f   :  { %v6254_v3 = vrot.slane %v12351_v17, 4 }
0x1521   :  { %6255 = vrot.lane.b32.xlu1 %v6254_v3, %s8793_s28  ;;  %v6234_v3 = vrot.slane %v12345_v57, 6 }
0x1535   :  { %v6110_v16 = vpop.permute.xlu0 %6109 }
0x1536   :  { %v12355_v42 = vmul.f32 %v6110_v16, %v6090_v25 }
0x1538   :  { %v6184_v40 = vrot.slane %v12355_v42, 2 }
0x153a   :  { %6185 = vrot.lane.b32.xlu2 %v6184_v40, %s8793_s28 }
0x1593   :  { %v6256_v15 = vpop.permute.xlu1 %6255 }
0x1594   :  { %v6186_v38 = vpop.permute.xlu2 %6185  ;;  %8319 = vmatmul.msk.f32.vlgmr.msra.gmra.mxu1 %vm5309_vm4, %v6256_v15 }
0x1595   :  { %8317 = vmatmul.msk.f32.vlgmr.msrb.gmra.mxu3 %vm5309_vm4, %v6186_v38 }
0x1611   :  { %v6276_v62 = vpop.f32.mrf.mxu1 }
0x1612   :  { %v6280_v60 = vrot.slane %v6276_v62, 6 }
0x1614   :  { %v6282_v34 = vadd.f32 %v6280_v60, %v12167_v48 }
0x1616   :  { %8707 = vtanh.f32 %v6282_v34  ;;  %v8320_v2 = vmul.f32 -1.442695, %v6282_v34 }
0x1618   :  { %v6206_v35 = vpop.f32.mrf.mxu3 }
0x1619   :  { %v6210_v22 = vrot.slane %v6206_v35, 4 }
0x161b   :  { %v6212_v6 = vadd.f32 %v6210_v22, %v12169_v1 }
0x161c   :  { %v8708_v30 = vpop.eup %8707 }
0x161d   :  { %8709 = vtanh.f32 %v6212_v6  ;;  %6308 = vrot.lane.b32.xlu0 %v8708_v30, %s8792_s7  ;;  %v8318_v10 = vmul.f32 -1.442695, %v6212_v6 }
0x161e   :  { %8711 = vpow2.f32 %v8320_v2 }
0x161f   :  { %8713 = vpow2.f32 %v8318_v10 }
0x1623   :  { %v8710_v63 = vpop.eup %8709 }
0x1624   :  { %6238 = vrot.lane.b32.xlu1 %v8710_v63, %s8792_s7  ;;  %v8712_v44 = vpop.eup %8711 }
0x1625   :  { %v6286_v32 = vadd.f32 1.0, %v8712_v44  ;;  %v8714_v56 = vpop.eup %8713 }
0x1626   :  { %v6216_v29 = vadd.f32 1.0, %v8714_v56 }
0x1627   :  { %8715 = vrcp.f32 %v6286_v32  ;;  %v6298_v33 = vand.u32 2147483648, %v6286_v32  ;;  %vm6292_vm9 = vweird.f32 %v6286_v32  ;;  %v6296_v9 = vand.u32 2147483647, %v6286_v32 }
0x1628   :  { %8717 = vrcp.f32 %v6216_v29  ;;  %v6228_v25 = vand.u32 2147483648, %v6216_v29  ;;  %vm6222_vm13 = vweird.f32 %v6216_v29  ;;  %v6226_v5 = vand.u32 2147483647, %v6216_v29 }
0x1629   :  { %v6299_v24 = vor.u32 1.1754944e-38, %v6298_v33  ;;  %vm6297_vm11 = vcmp.eq.f32.partialorder %v6296_v9, 8.507059e+37 }
0x162a   :  { %v6229_v0 = vor.u32 1.1754944e-38, %v6228_v25  ;;  %vm6227_vm15 = vcmp.eq.f32.partialorder %v6226_v5, 8.507059e+37 }
0x162d   :  { %v8716_v51 = vpop.eup %8715 }
0x162e   :  { %v6288_v41 = vmul.f32 %v8716_v51, %v6286_v32  ;;  %v8718_v12 = vpop.eup %8717  ;;  %vm6293_vm8 = vweird.f32 %v8716_v51 }
0x162f   :  { %v6218_v14 = vmul.f32 %v8718_v12, %v6216_v29  ;;  %vm6294_vm10 = vmor %vm6292_vm9, %vm6293_vm8  ;;  %vm6223_vm12 = vweird.f32 %v8718_v12  ;;  %vm6497_vm9 = vcmask 257026  }
0x1630   :  { %v6289_v18 = vsub.f32 1.0, %v6288_v41  ;;  %vm6224_vm14 = vmor %vm6222_vm13, %vm6223_vm12  ;;  %vm6472_vm12 = vcmask 254976  }
0x1631   :  { %v6219_v50 = vsub.f32 1.0, %v6218_v14 }
0x1632   :  { %v6290_v28 = vmul.f32 %v8716_v51, %v6289_v18 }
0x1633   :  { %v6220_v53 = vmul.f32 %v8718_v12, %v6219_v50 }
0x1634   :  { %v6291_v27 = vadd.f32 %v8716_v51, %v6290_v28 }
0x1635   :  { %v6221_v7 = vadd.f32 %v8718_v12, %v6220_v53 }
0x1636   :  { %v6295_v20 = vsel %vm6294_vm10, %v8716_v51, %v6291_v27  ;;  %vm6516_vm10 = vcmask 259076  }
0x1637   :  { %v6300_v52 = vsel %vm6297_vm11, %v6299_v24, %v6295_v20  ;;  %v6225_v36 = vsel %vm6224_vm14, %v8718_v12, %v6221_v7  ;;  %v8605_v7 = vld [vmem:[%s12584_s10] ss:$0 sm:$0xff]  ;;  %vm6535_vm11 = vcmask 261126  }
0x1638   :  { %v6230_v19 = vsel %vm6227_vm15, %v6229_v0, %v6225_v36  ;;  %v6306_v46 = vmul.f32 %v6304_v23, %v6300_v52 }
0x1639   :  { %v6236_v16 = vmul.f32 %v6234_v3, %v6230_v19 }
0x168f   :  { %v6309_v45 = vpop.permute.xlu0 %6308 }
0x1690   :  { %v6311_v49 = vmul.f32 %v6309_v45, %v6300_v52 }
0x1692   :  { %6313 = vrot.lane.b32.xlu2 %v6311_v49, %s8793_s28 }
0x1696   :  { %v6239_v55 = vpop.permute.xlu1 %6238 }
0x1697   :  { %v6241_v26 = vmul.f32 %v6239_v55, %v6230_v19 }
0x1699   :  { %6243 = vrot.lane.b32.xlu0 %v6241_v26, %s8793_s28 }
0x16ec   :  { %v6314_v4 = vpop.permute.xlu2 %6313 }
0x16ed   :  { %v12368_v61 = vadd.f32 %v6314_v4, %v6306_v46 }
0x16ef   :  { %8719 = vtanh.f32 %v12368_v61 }
0x16f5   :  { %v8720_v47 = vpop.eup %8719 }
0x16f6   :  { %6319 = vrot.lane.b32.xlu1 %v8720_v47, %s8792_s7 }
0x170b   :  { %v6244_v40 = vpop.permute.xlu0 %6243 }
0x170c   :  { %v12373_v15 = vadd.f32 %v6244_v40, %v6236_v16 }
0x170e   :  { %8721 = vtanh.f32 %v12373_v15 }
0x1714   :  { %v8722_v38 = vpop.eup %8721 }
0x1715   :  { %6249 = vrot.lane.b32.xlu2 %v8722_v38, %s8792_s7 }
0x1768   :  { %v6320_v59 = vpop.permute.xlu1 %6319 }
0x1769   :  { %v12377_v62 = vmul.f32 %v6320_v59, %v6300_v52 }
0x176b   :  { %v6394_v60 = vrot.slane %v12377_v62, 2 }
0x176d   :  { %6395 = vrot.lane.b32.xlu0 %v6394_v60, %s8793_s28 }
0x176f   :  { %v6250_v34 = vpop.permute.xlu2 %6249 }
0x1770   :  { %v12381_v35 = vmul.f32 %v6250_v34, %v6230_v19 }
0x1772   :  { %v6324_v57 = vrot.slane %v12381_v35, 4 }
0x1774   :  { %6325 = vrot.lane.b32.xlu1 %v6324_v57, %s8793_s28 }
0x17df   :  { %v6396_v22 = vpop.permute.xlu0 %6395 }
0x17e0   :  { %8323 = vmatmul.msk.f32.vlgmr.msra.gmra.mxu3 %vm5309_vm4, %v6396_v22 }
0x17e6   :  { %v6326_v6 = vpop.permute.xlu1 %6325 }
0x17e7   :  { %8321 = vmatmul.msk.f32.vlgmr.msrb.gmra.mxu2 %vm5309_vm4, %v6326_v6 }
0x1863   :  { %v6416_v30 = vpop.f32.mrf.mxu3 }
0x1864   :  { %v6419_v63 = vadd.f32 %v6416_v30, %v12167_v48 }
0x1866   :  { %8723 = vtanh.f32 %v6419_v63  ;;  %v8324_v29 = vmul.f32 -1.442695, %v6419_v63 }
0x186a   :  { %v6346_v2 = vpop.f32.mrf.mxu2 }
0x186b   :  { %v6350_v10 = vrot.slane %v6346_v2, 2  ;;  %v6374_v2 = vrot.slane %v12373_v15, 6  ;;  %v6441_v15 = vrot.slane %v12368_v61, 2 }
0x186c   :  { %v8724_v44 = vpop.eup %8723 }
0x186d   :  { %v6352_v32 = vadd.f32 %v6350_v10, %v12169_v1  ;;  %6445 = vrot.lane.b32.xlu2 %v8724_v44, %s8792_s7 }
0x186f   :  { %8725 = vtanh.f32 %v6352_v32  ;;  %v8322_v14 = vmul.f32 -1.442695, %v6352_v32 }
0x1870   :  { %8727 = vpow2.f32 %v8324_v29 }
0x1875   :  { %v8726_v56 = vpop.eup %8725 }
0x1876   :  { %6378 = vrot.lane.b32.xlu0 %v8726_v56, %s8792_s7  ;;  %v8728_v51 = vpop.eup %8727 }
0x1877   :  { %v6423_v41 = vadd.f32 1.0, %v8728_v51 }
0x1879   :  { %8729 = vrcp.f32 %v6423_v41  ;;  %v6435_v1 = vand.u32 2147483648, %v6423_v41  ;;  %vm6429_vm1 = vweird.f32 %v6423_v41  ;;  %v6433_v27 = vand.u32 2147483647, %v6423_v41 }
0x187a   :  { %8731 = vpow2.f32 %v8322_v14 }
0x187b   :  { %v6436_v53 = vor.u32 1.1754944e-38, %v6435_v1  ;;  %vm6434_vm3 = vcmp.eq.f32.partialorder %v6433_v27, 8.507059e+37 }
0x187f   :  { %v8730_v12 = vpop.eup %8729 }
0x1880   :  { %v6425_v18 = vmul.f32 %v8730_v12, %v6423_v41  ;;  %vm6430_vm0 = vweird.f32 %v8730_v12  ;;  %v8732_v9 = vpop.eup %8731 }
0x1881   :  { %vm6431_vm2 = vmor %vm6429_vm1, %vm6430_vm0  ;;  %v6356_v45 = vadd.f32 1.0, %v8732_v9  ;;  %vm6981_vm0 = vcmask 1041408  }
0x1882   :  { %v6426_v48 = vsub.f32 1.0, %v6425_v18 }
0x1883   :  { %8733 = vrcp.f32 %v6356_v45  ;;  %v6368_v19 = vand.u32 2147483648, %v6356_v45  ;;  %vm6362_vm6 = vweird.f32 %v6356_v45  ;;  %v6366_v55 = vand.u32 2147483647, %v6356_v45 }
0x1884   :  { %v6427_v28 = vmul.f32 %v8730_v12, %v6426_v48 }
0x1885   :  { %v6369_v23 = vor.u32 1.1754944e-38, %v6368_v19  ;;  %vm6367_vm8 = vcmp.eq.f32.partialorder %v6366_v55, 8.507059e+37 }
0x1886   :  { %v6428_v50 = vadd.f32 %v8730_v12, %v6427_v28 }
0x1888   :  { %v6432_v33 = vsel %vm6431_vm2, %v8730_v12, %v6428_v50 }
0x1889   :  { %v12391_v24 = vsel %vm6434_vm3, %v6436_v53, %v6432_v33  ;;  %v8734_v49 = vpop.eup %8733 }
0x188a   :  { %v6358_v25 = vmul.f32 %v8734_v49, %v6356_v45  ;;  %vm6363_vm5 = vweird.f32 %v8734_v49  ;;  %v6443_v51 = vmul.f32 %v6441_v15, %v12391_v24 }
0x188b   :  { %vm6364_vm7 = vmor %vm6362_vm6, %vm6363_vm5 }
0x188c   :  { %v6359_v5 = vsub.f32 1.0, %v6358_v25 }
0x188e   :  { %v6360_v36 = vmul.f32 %v8734_v49, %v6359_v5 }
0x1890   :  { %v6361_v0 = vadd.f32 %v8734_v49, %v6360_v36 }
0x1892   :  { %v6365_v26 = vsel %vm6364_vm7, %v8734_v49, %v6361_v0 }
0x1893   :  { %v12398_v4 = vsel %vm6367_vm8, %v6369_v23, %v6365_v26 }
0x1894   :  { %v6376_v10 = vmul.f32 %v6374_v2, %v12398_v4 }
0x18c7   :  { %v6446_v20 = vpop.permute.xlu2 %6445 }
0x18c8   :  { %v6448_v52 = vmul.f32 %v6446_v20, %v12391_v24 }
0x18ca   :  { %6450 = vrot.lane.b32.xlu1 %v6448_v52, %s8793_s28 }
0x18d2   :  { %6464 = vrot.lane.b32.xlu1 %v8605_v7, %s8794_s29 }
0x18e8   :  { %v6379_v46 = vpop.permute.xlu0 %6378 }
0x18e9   :  { %v6381_v47 = vmul.f32 %v6379_v46, %v12398_v4 }
0x18eb   :  { %6383 = vrot.lane.b32.xlu2 %v6381_v47, %s8793_s28 }
0x18f3   :  { %6476 = vrot.lane.b32.xlu2 %v8605_v7, %s8792_s7 }
0x193c   :  { %v6451_v3 = vpop.permute.xlu1 %6450 }
0x193d   :  { %v6453_v41 = vadd.f32 %v6451_v3, %v6443_v51 }
0x1944   :  { %v12403_v16 = vpop.permute.xlu1 %6464 }
0x1945   :  { %v6384_v40 = vpop.permute.xlu2 %6383  ;;  %v6492_v38 = vmul.f32 %v12403_v16, %v12227_v58  ;;  %v6467_v59 = vmul.f32 %v12403_v16, %v12193_v39  ;;  %v6530_v34 = vmul.f32 %v12403_v16, %v12295_v13  ;;  %v6511_v30 = vmul.f32 %v12403_v16, %v12261_v37 }
0x1946   :  { %v6549_v63 = vmul.f32 %v12403_v16, %v12329_v31  ;;  %v6386_v44 = vadd.f32 %v6384_v40, %v6376_v10  ;;  %v6585_v32 = vmul.f32 %v12403_v16, %v12381_v35  ;;  %v6567_v18 = vmul.f32 %v12403_v16, %v12355_v42 }
0x1947   :  { %6494 = vrot.lane.b32.xlu1 %v6492_v38, %s8793_s28  ;;  %6469 = vrot.lane.b32.xlu0 %v6467_v59, %s8793_s28 }
0x1948   :  { %8735 = vtanh.f32 %v6386_v44 }
0x1949   :  { %8737 = vtanh.f32 %v6453_v41 }
0x194d   :  { %v12411_v60 = vpop.permute.xlu2 %6476 }
0x194e   :  { %v6501_v57 = vmul.f32 %v12411_v60, %v12377_v62  ;;  %v6520_v22 = vmul.f32 %v12411_v60, %v12351_v17  ;;  %v6557_v6 = vmul.f32 %v12411_v60, %v12291_v43  ;;  %v6539_v56 = vmul.f32 %v12411_v60, %v12325_v8  ;;  %v8736_v48 = vpop.eup %8735 }
0x194f   :  { %6532 = vrot.lane.b32.xlu1 %v6530_v34, %s8793_s28  ;;  %v6575_v29 = vmul.f32 %v12411_v60, %v12257_v54  ;;  %v6611_v12 = vmul.f32 %v12411_v60, %v12189_v21  ;;  %v6593_v61 = vmul.f32 %v12411_v60, %v12223_v11  ;;  %v8738_v14 = vpop.eup %8737 }
0x1950   :  { %6503 = vrot.lane.b32.xlu2 %v6501_v57, %s8793_s28  ;;  %6522 = vrot.lane.b32.xlu0 %v6520_v22, %s8793_s28 }
0x1957   :  { %6559 = vrot.lane.b32.xlu1 %v6557_v6, %s8793_s28 }
0x1958   :  { %6513 = vrot.lane.b32.xlu2 %v6511_v30, %s8793_s28  ;;  %6551 = vrot.lane.b32.xlu0 %v6549_v63, %s8793_s28 }
0x195f   :  { %6587 = vrot.lane.b32.xlu1 %v6585_v32, %s8793_s28 }
0x1960   :  { %6541 = vrot.lane.b32.xlu2 %v6539_v56, %s8793_s28  ;;  %6577 = vrot.lane.b32.xlu0 %v6575_v29, %s8793_s28 }
0x1967   :  { %6613 = vrot.lane.b32.xlu1 %v6611_v12, %s8793_s28 }
0x1968   :  { %6569 = vrot.lane.b32.xlu2 %v6567_v18, %s8793_s28  ;;  %6389 = vrot.lane.b32.xlu0 %v8736_v48, %s8792_s7 }
0x1970   :  { %6595 = vrot.lane.b32.xlu2 %v6593_v61, %s8793_s28  ;;  %6456 = vrot.lane.b32.xlu0 %v8738_v14, %s8792_s7  ;;  %v8606_v61 = vld [vmem:[#allocation2] ss:$0 sm:$0xff] }
0x19aa   :  { %v6504_v28 = vpop.permute.xlu2 %6503 }
0x19ab   :  { %v6506_v50 = vsel %vm6497_vm9, %v6504_v28, 0.0 }
0x19ac   :  { %6507 = vadd.xlane.f32.xlu0 %v6506_v50 }
0x19b2   :  { %v6514_v9 = vpop.permute.xlu2 %6513 }
0x19b3   :  { %v6517_v20 = vsel %vm6516_vm10, %v6514_v9, 0.0 }
0x19b9   :  { %v6495_v1 = vpop.permute.xlu1 %6494  ;;  %v6470_v27 = vpop.permute.xlu0 %6469 }
0x19ba   :  { %v6498_v33 = vsel %vm6497_vm9, %v6495_v1, 0.0  ;;  %v6542_v52 = vpop.permute.xlu2 %6541  ;;  %v6473_v40 = vsel %vm6472_vm12, %v6470_v27, 0.0 }
0x19bb   :  { %6499 = vadd.xlane.f32.xlu2 %v6498_v33  ;;  %v6544_v49 = vsel %vm6535_vm11, %v6542_v52, 0.0 }
0x19c1   :  { %v6533_v3 = vpop.permute.xlu1 %6532 }
0x19c2   :  { %v6523_v53 = vpop.permute.xlu0 %6522  ;;  %v6570_v25 = vpop.permute.xlu2 %6569 }
0x19c3   :  { %6518 = vadd.xlane.f32.xlu2 %v6517_v20  ;;  %v6525_v45 = vsel %vm6516_vm10, %v6523_v53, 0.0  ;;  %v6572_v36 = vsel %vm6497_vm9, %v6570_v25, 0.0 }
0x19c9   :  { %v6560_v38 = vpop.permute.xlu1 %6559 }
0x19ca   :  { %v6552_v7 = vpop.permute.xlu0 %6551  ;;  %v6596_v10 = vpop.permute.xlu2 %6595 }
0x19cb   :  { %6545 = vadd.xlane.f32.xlu2 %v6544_v49  ;;  %v6598_v44 = vsel %vm6516_vm10, %v6596_v10, 0.0 }
0x19d1   :  { %v6588_v59 = vpop.permute.xlu1 %6587 }
0x19d2   :  { %v6578_v5 = vpop.permute.xlu0 %6577 }
0x19d3   :  { %6573 = vadd.xlane.f32.xlu2 %v6572_v36  ;;  %v6580_v0 = vsel %vm6497_vm9, %v6578_v5, 0.0 }
0x19d9   :  { %v6614_v34 = vpop.permute.xlu1 %6613 }
0x19da   :  { %v6390_v19 = vpop.permute.xlu0 %6389  ;;  %v6616_v57 = vsel %vm6535_vm11, %v6614_v34, 0.0 }
0x19db   :  { %v12463_v55 = vmul.f32 %v6390_v19, %v12398_v4  ;;  %v6554_v4 = vsel %vm6472_vm12, %v6552_v7, 0.0  ;;  %v8795_v19 = vmov 0  }
0x19dc   :  { %8601 = vset.pattern.permute.xlu1 %v8795_v19  ;;  %8600 = vset.pattern.permute.xlu0 %v8795_v19 }
0x19dd   :  { %v6603_v26 = vmul.f32 %v12403_v16, %v12463_v55  ;;  %v6536_v16 = vsel %vm6535_vm11, %v6533_v3, 0.0  ;;  %8602 = vset.pattern.permute.xlu2 %v8795_v19 }
0x19df   :  { %6605 = vrot.lane.b32.xlu0 %v6603_v26, %s8793_s28 }
0x19e2   :  { %v6457_v23 = vpop.permute.xlu0 %6456 }
0x19e3   :  { %v12469_v46 = vmul.f32 %v6457_v23, %v12391_v24  ;;  %v6562_v24 = vsel %vm6472_vm12, %v6560_v38, 0.0 }
0x19e5   :  { %v6479_v47 = vmul.f32 %v12411_v60, %v12469_v46  ;;  %v6590_v60 = vsel %vm6516_vm10, %v6588_v59, 0.0 }
0x19e7   :  { %6481 = vrot.lane.b32.xlu1 %v6479_v47, %s8793_s28 }
0x1a09   :  { %6526 = vadd.xlane.f32.xlu0 %v6525_v45 }
0x1a11   :  { %6555 = vadd.xlane.f32.xlu0 %v6554_v4  ;;  %6474 = vadd.xlane.f32.xlu1 %v6473_v40 }
0x1a19   :  { %6581 = vadd.xlane.f32.xlu0 %v6580_v0  ;;  %6537 = vadd.xlane.f32.xlu1 %v6536_v16 }
0x1a1f   :  { %v6508_v22 = vpop.xlane.xlu0 %6507 }
0x1a21   :  { %6563 = vadd.xlane.f32.xlu1 %v6562_v24 }
0x1a29   :  { %6591 = vadd.xlane.f32.xlu1 %v6590_v60 }
0x1a2e   :  { %v6500_v32 = vpop.xlane.xlu2 %6499 }
0x1a2f   :  { %v6509_v14 = vadd.f32 %v6508_v22, %v6500_v32 }
0x1a31   :  { %6617 = vadd.xlane.f32.xlu1 %v6616_v57  ;;  %v6510_v27 = vadd.f32 %v8606_v61, %v6509_v14 }
0x1a33   :  { %v6622_v45 = vrot.slane %v6510_v27, 2 }
0x1a36   :  { %v6519_v29 = vpop.xlane.xlu2 %6518 }
0x1a3e   :  { %v6546_v41 = vpop.xlane.xlu2 %6545 }
0x1a46   :  { %v6574_v48 = vpop.xlane.xlu2 %6573 }
0x1a51   :  { %v6606_v6 = vpop.permute.xlu0 %6605 }
0x1a52   :  { %v6608_v30 = vsel %vm6535_vm11, %v6606_v6, 0.0 }
0x1a53   :  { %6609 = vadd.xlane.f32.xlu0 %v6608_v30 }
0x1a59   :  { %v6482_v63 = vpop.permute.xlu1 %6481 }
0x1a5a   :  { %v6484_v2 = vsel %vm6472_vm12, %v6482_v63, 0.0 }
0x1a5b   :  { %6485 = vadd.xlane.f32.xlu2 %v6484_v2 }
0x1a63   :  { %6599 = vadd.xlane.f32.xlu2 %v6598_v44 }
0x1a7c   :  { %v6527_v15 = vpop.xlane.xlu0 %6526 }
0x1a7d   :  { %v6528_v1 = vadd.f32 %v6527_v15, %v6519_v29 }
0x1a7f   :  { %v6529_v53 = vadd.f32 %v8606_v61, %v6528_v1 }
0x1a81   :  { %v6626_v5 = vrot.slane %v6529_v53, 4 }
0x1a84   :  { %v6475_v56 = vpop.xlane.xlu1 %6474  ;;  %v6556_v12 = vpop.xlane.xlu0 %6555 }
0x1a8c   :  { %v6538_v51 = vpop.xlane.xlu1 %6537  ;;  %v6582_v28 = vpop.xlane.xlu0 %6581 }
0x1a8d   :  { %v6547_v33 = vadd.f32 %v6546_v41, %v6538_v51  ;;  %v6583_v7 = vadd.f32 %v6582_v28, %v6574_v48 }
0x1a8f   :  { %v6548_v52 = vadd.f32 %v8606_v61, %v6547_v33  ;;  %v6584_v47 = vadd.f32 %v8606_v61, %v6583_v7 }
0x1a91   :  { %v6630_v23 = vrot.slane %v6548_v52, 6  ;;  %v6635_v59 = vrot.slane %v6584_v47, 2 }
0x1a94   :  { %v6564_v18 = vpop.xlane.xlu1 %6563 }
0x1a95   :  { %v6565_v36 = vadd.f32 %v6564_v18, %v6556_v12 }
0x1a97   :  { %v6566_v16 = vadd.f32 %v8606_v61, %v6565_v36 }
0x1a9c   :  { %v6592_v50 = vpop.xlane.xlu1 %6591 }
0x1aa4   :  { %v6618_v26 = vpop.xlane.xlu1 %6617 }
0x1ac6   :  { %v6610_v25 = vpop.xlane.xlu0 %6609 }
0x1ac7   :  { %v6619_v3 = vadd.f32 %v6618_v26, %v6610_v25 }
0x1ac9   :  { %v6620_v60 = vadd.f32 %v8606_v61, %v6619_v3 }
0x1acb   :  { %v6643_v30 = vrot.slane %v6620_v60, 6 }
0x1ace   :  { %v6486_v9 = vpop.xlane.xlu2 %6485 }
0x1acf   :  { %v6487_v20 = vadd.f32 %v6486_v9, %v6475_v56 }
0x1ad1   :  { %v6491_v49 = vadd.f32 %v8606_v61, %v6487_v20 }
0x1ad3   :  { %v6624_v0 = vmax.f32 %v6491_v49, %v6622_v45 }
0x1ad5   :  { %v6628_v4 = vmax.f32 %v6624_v0, %v6626_v5 }
0x1ad6   :  { %v6600_v40 = vpop.xlane.xlu2 %6599 }
0x1ad7   :  { %v6632_v38 = vmax.f32 %v6628_v4, %v6630_v23  ;;  %v6601_v24 = vadd.f32 %v6600_v40, %v6592_v50 }
0x1ad9   :  { %v6602_v34 = vadd.f32 %v8606_v61, %v6601_v24  ;;  %v6633_v57 = vmax.f32 %v6632_v38, %v6566_v16 }
0x1adb   :  { %v6637_v22 = vmax.f32 %v6633_v57, %v6635_v59  ;;  %v6639_v6 = vrot.slane %v6602_v34, 4 }
0x1add   :  { %v6641_v63 = vmax.f32 %v6637_v22, %v6639_v6 }
0x1adf   :  { %v6645_v2 = vmax.f32 %v6641_v63, %v6643_v30 }
0x1ae1   :  { %v6646_v10 = vsub.f32 %v6491_v49, %v6645_v2  ;;  %v6650_v44 = vrot.slane %v6645_v2, 6  ;;  %v6655_v32 = vrot.slane %v6645_v2, 4  ;;  %v6660_v56 = vrot.slane %v6645_v2, 2 }
0x1ae2   :  { %v6665_v61 = vsub.f32 %v6566_v16, %v6645_v2 }
0x1ae3   :  { %v6647_v29 = vmul.f32 1.442695, %v6646_v10  ;;  %v6652_v15 = vsub.f32 %v6510_v27, %v6650_v44  ;;  %v6657_v51 = vsub.f32 %v6529_v53, %v6655_v32  ;;  %v6662_v41 = vsub.f32 %v6548_v52, %v6660_v56 }
0x1ae4   :  { %v6668_v14 = vsub.f32 %v6584_v47, %v6650_v44  ;;  %v6671_v28 = vsub.f32 %v6602_v34, %v6655_v32  ;;  %v6674_v1 = vsub.f32 %v6620_v60, %v6660_v56  ;;  %v6666_v33 = vmul.f32 1.442695, %v6665_v61  ;;  %v6826_v61 = vld [vmem:[%s12586_s12] sm:$0xff] }
0x1ae5   :  { %v6653_v12 = vmul.f32 1.442695, %v6652_v15  ;;  %v6658_v18 = vmul.f32 1.442695, %v6657_v51  ;;  %v6663_v48 = vmul.f32 1.442695, %v6662_v41  ;;  %8739 = vpow2.f32 %v6647_v29 }
0x1ae6   :  { %v6669_v50 = vmul.f32 1.442695, %v6668_v14  ;;  %v6672_v9 = vmul.f32 1.442695, %v6671_v28  ;;  %v6675_v27 = vmul.f32 1.442695, %v6674_v1 }
0x1ae7   :  { %8741 = vpow2.f32 %v6653_v12  ;;  %v6829_v51 = vld [vmem:[%s12586_s12 + $0x18] sm:$0xff]  ;;  %v6828_v12 = vld [vmem:[%s12586_s12 + $0x10] sm:$0xff]  ;;  %v6831_v14 = vld [vmem:[%s12586_s12 + $0x28] sm:$0xff] }
0x1ae8   :  { %8743 = vpow2.f32 %v6658_v18  ;;  %v6833_v41 = vld [vmem:[%s12586_s12 + $0x38] sm:$0xff]  ;;  %6876 = vmatpush.msra.mxu2 %v6829_v51  ;;  %v6832_v18 = vld [vmem:[%s12586_s12 + $0x30] sm:$0xff]  ;;  %v6830_v28 = vld [vmem:[%s12586_s12 + $0x20] sm:$0xff] }
0x1ae9   :  { %8745 = vpow2.f32 %v6663_v48  ;;  %6851 = vmatpush.msrb.mxu1 %v6833_v41  ;;  %v6827_v48 = vld [vmem:[%s12586_s12 + $0x8] sm:$0xff] }
0x1aea   :  { %8747 = vpow2.f32 %v6669_v50  ;;  %6877 = vmatpush.msra.mxu2 %v6828_v12  ;;  %v6926_v51 = vld [vmem:[%s12592_s18 + $0x28] sm:$0xff]  ;;  %v6923_v12 = vld [vmem:[%s12592_s18 + $0x10] sm:$0xff] }
0x1aeb   :  { %v8740_v20 = vpop.eup %8739  ;;  %8749 = vpow2.f32 %v6666_v33  ;;  %6852 = vmatpush.msrb.mxu1 %v6832_v18  ;;  %v6924_v18 = vld [vmem:[%s12592_s18 + $0x18] sm:$0xff] }
0x1aec   :  { %8751 = vpow2.f32 %v6672_v9  ;;  %6878 = vmatpush.msra.mxu2 %v6827_v48  ;;  %v6921_v48 = vld [vmem:[%s12592_s18] sm:$0xff] }
0x1aed   :  { %v8742_v45 = vpop.eup %8741  ;;  %8753 = vpow2.f32 %v6675_v27  ;;  %6853 = vmatpush.msrb.mxu1 %v6831_v14  ;;  %v6922_v14 = vld [vmem:[%s12592_s18 + $0x8] sm:$0xff] }
0x1aee   :  { %v8744_v53 = vpop.eup %8743  ;;  %v6678_v52 = vrot.slane %v8742_v45, 2  ;;  %6879 = vmatpush.msra.mxu2 %v6826_v61 }
0x1aef   :  { %v8746_v7 = vpop.eup %8745  ;;  %v6682_v25 = vrot.slane %v8744_v53, 4  ;;  %6854 = vmatpush.msrb.mxu1 %v6830_v28 }
0x1af0   :  { %v6680_v49 = vadd.f32 %v8740_v20, %v6678_v52  ;;  %v6686_v36 = vrot.slane %v8746_v7, 6  ;;  %v8748_v0 = vpop.eup %8747 }
0x1af1   :  { %v8750_v19 = vpop.eup %8749  ;;  %v6691_v3 = vrot.slane %v8748_v0, 2 }
0x1af2   :  { %v6684_v5 = vadd.f32 %v6682_v25, %v6680_v49  ;;  %v8752_v23 = vpop.eup %8751 }
0x1af3   :  { %v8754_v4 = vpop.eup %8753  ;;  %v6695_v40 = vrot.slane %v8752_v23, 4 }
0x1af4   :  { %v6688_v26 = vadd.f32 %v6686_v36, %v6684_v5  ;;  %v6699_v24 = vrot.slane %v8754_v4, 6 }
0x1af6   :  { %v6689_v47 = vadd.f32 %v8750_v19, %v6688_v26 }
0x1af8   :  { %v6693_v16 = vadd.f32 %v6691_v3, %v6689_v47 }
0x1afa   :  { %v6697_v38 = vadd.f32 %v6695_v40, %v6693_v16 }
0x1afc   :  { %v6701_v59 = vadd.f32 %v6699_v24, %v6697_v38 }
0x1afe   :  { %8755 = vrcp.f32 %v6701_v59 }
0x1b04   :  { %v8756_v60 = vpop.eup %8755 }
0x1b05   :  { %v6768_v34 = vmul.f32 %v8756_v60, %v8750_v19  ;;  %v6703_v57 = vmul.f32 %v8756_v60, %v8740_v20  ;;  %v6714_v22 = vrot.slane %v8756_v60, 6  ;;  %v6732_v30 = vrot.slane %v8756_v60, 4 }
0x1b06   :  { %v6750_v63 = vrot.slane %v8756_v60, 2 }
0x1b07   :  { %6771 = vperm.xlu1 %8601, %v6768_v34   ;;  %6706 = vperm.xlu0 %8600, %v6703_v57   ;;  %v6716_v6 = vmul.f32 %v8742_v45, %v6714_v22  ;;  %v6734_v2 = vmul.f32 %v8744_v53, %v6732_v30  ;;  %v6794_v44 = vmul.f32 %v8752_v23, %v6732_v30 }
0x1b08   :  { %v6752_v10 = vmul.f32 %v8746_v7, %v6750_v63  ;;  %v6778_v32 = vmul.f32 %v8748_v0, %v6714_v22  ;;  %v6810_v56 = vmul.f32 %v8754_v4, %v6750_v63 }
0x1b09   :  { %6719 = vperm.xlu2 %8602, %v6716_v6  }
0x1b0f   :  { %6737 = vperm.xlu1 %8601, %v6734_v2  }
0x1b11   :  { %6755 = vperm.xlu2 %8602, %v6752_v10  }
0x1b17   :  { %6797 = vperm.xlu1 %8601, %v6794_v44  }
0x1b19   :  { %6781 = vperm.xlu2 %8602, %v6778_v32  }
0x1b21   :  { %6813 = vperm.xlu2 %8602, %v6810_v56   ;;  %v6927_v56 = vld [vmem:[%s12592_s18 + $0x30] sm:$0xff] }
0x1b22   :  { %6950 = vmatpush.msrb.mxu3 %v6927_v56 }
0x1b63   :  { %v6720_v29 = vpop.permute.xlu2 %6719 }
0x1b64   :  { %v6722_v33 = vmul.f32 %v6720_v29, %v12227_v58  ;;  %v6727_v9 = vmul.f32 %v6720_v29, %v12377_v62  ;;  %v6928_v29 = vld [vmem:[%s12592_s18 + $0x38] sm:$0xff] }
0x1b65   :  { %6970 = vmatpush.msra.mxu1 %v6928_v29 }
0x1b66   :  { %v6724_v53 = vrot.slane %v6722_v33, 2  ;;  %v6729_v52 = vrot.slane %v6727_v9, 2  ;;  %v8607_v33 = vld [vmem:[%s12587_s13] ss:$0 sm:$0xff] }
0x1b67   :  { %6971 = vmatpush.msra.mxu1 %v6926_v51 }
0x1b69   :  { %6972 = vmatpush.msra.mxu1 %v6924_v18 }
0x1b6b   :  { %v6756_v15 = vpop.permute.xlu2 %6755  ;;  %6973 = vmatpush.msra.mxu1 %v6922_v14 }
0x1b6c   :  { %v6758_v49 = vmul.f32 %v6756_v15, %v12295_v13  ;;  %v6763_v25 = vmul.f32 %v6756_v15, %v12325_v8  ;;  %v6925_v15 = vld [vmem:[%s12592_s18 + $0x20] sm:$0xff] }
0x1b6d   :  { %6951 = vmatpush.msrb.mxu3 %v6925_v15 }
0x1b6e   :  { %v6765_v23 = vrot.slane %v6763_v25, 6 }
0x1b6f   :  { %6952 = vmatpush.msrb.mxu3 %v6923_v12 }
0x1b71   :  { %6953 = vmatpush.msrb.mxu3 %v6921_v48 }
0x1b73   :  { %v6782_v1 = vpop.permute.xlu2 %6781 }
0x1b74   :  { %v6784_v26 = vmul.f32 %v6782_v1, %v12355_v42 }
0x1b79   :  { %v6772_v50 = vpop.permute.xlu1 %6771  ;;  %v6707_v20 = vpop.permute.xlu0 %6706 }
0x1b7a   :  { %v6709_v45 = vmul.f32 %v6707_v20, %v12193_v39  ;;  %v6711_v27 = vmul.f32 %v6707_v20, %v12469_v46  ;;  %v6789_v39 = vmul.f32 %v6782_v1, %v12257_v54  ;;  %v6760_v46 = vrot.slane %v6758_v49, 6 }
0x1b7b   :  { %v6814_v47 = vpop.permute.xlu2 %6813  ;;  %v6774_v13 = vmul.f32 %v6772_v50, %v12329_v31  ;;  %v6776_v8 = vmul.f32 %v6772_v50, %v12291_v43 }
0x1b7c   :  { %v6726_v0 = vadd.f32 %v6724_v53, %v6709_v45  ;;  %v6731_v58 = vadd.f32 %v6729_v52, %v6711_v27  ;;  %v6791_v16 = vrot.slane %v6789_v39, 2  ;;  %v6816_v38 = vmul.f32 %v6814_v47, %v12463_v55  ;;  %v8608_v27 = vld [vmem:[%s12590_s16] ss:$0 sm:$0xff] }
0x1b7d   :  { %v6821_v24 = vmul.f32 %v6814_v47, %v12189_v21 }
0x1b7e   :  { %v6818_v43 = vrot.slane %v6816_v38, 6 }
0x1b7f   :  { %v6823_v30 = vrot.slane %v6821_v24, 6 }
0x1b81   :  { %v6738_v7 = vpop.permute.xlu1 %6737 }
0x1b82   :  { %v6740_v5 = vmul.f32 %v6738_v7, %v12261_v37  ;;  %v6745_v36 = vmul.f32 %v6738_v7, %v12351_v17  ;;  %v6786_v17 = vrot.slane %v6784_v26, 2  ;;  %v8609_v7 = vld [vmem:[%s12588_s14] ss:$0 sm:$0xff]  ;;  %s8796_s14 = smov [#allocation3]  }
0x1b83   :  { %s6990_s9 = sshll.u32 %s8796_s14, 4  ;;  %s6991_s9 = int_to_ptr.vmem [resolvable:$true] %s6990_s9 }
0x1b84   :  { %v6742_v19 = vrot.slane %v6740_v5, 4  ;;  %v6747_v62 = vrot.slane %v6745_v36, 4  ;;  %v8610_v36 = vld [vmem:[%s12589_s15] ss:$0 sm:$0xff]  ;;  %s6992_s15 = sshll.u32 %s12594_s20, 4  ;;  %s6993_s15 = int_to_ptr.hbm [resolvable:$true] %s6992_s15 }
0x1b86   :  { %v6744_v3 = vadd.f32 %v6742_v19, %v6726_v0  ;;  %v6749_v4 = vadd.f32 %v6747_v62, %v6731_v58  ;;  %v6929_v62 = vld [vmem:[%s12593_s19] sm:$0x3] }
0x1b87   :  { %v6932_v26 = vperm.slane %v6929_v62, 1 }
0x1b88   :  { %v6762_v37 = vadd.f32 %v6760_v46, %v6744_v3  ;;  %v6767_v40 = vadd.f32 %v6765_v23, %v6749_v4  ;;  %v6931_v23 = vperm.slane %v6929_v62, 0 }
0x1b89   :  { %v6798_v42 = vpop.permute.xlu1 %6797 }
0x1b8a   :  { %v6775_v59 = vadd.f32 %v6774_v13, %v6762_v37  ;;  %v6777_v54 = vadd.f32 %v6776_v8, %v6767_v40  ;;  %v6800_v60 = vmul.f32 %v6798_v42, %v12381_v35  ;;  %v6805_v34 = vmul.f32 %v6798_v42, %v12223_v11  ;;  %v6899_v11 = vld [vmem:[%s12591_s17] sm:$0x1] }
0x1b8b   :  { %v6900_v35 = vadd.f32 1e-05, %v6899_v11 }
0x1b8c   :  { %v6788_v57 = vadd.f32 %v6786_v17, %v6775_v59  ;;  %v6793_v22 = vadd.f32 %v6791_v16, %v6777_v54  ;;  %v6802_v31 = vrot.slane %v6800_v60, 4  ;;  %v6807_v6 = vrot.slane %v6805_v34, 4 }
0x1b8d   :  { %8757 = vrsqrt.f32 %v6900_v35  ;;  %vm6907_vm13 = vweird.f32 %v6900_v35 }
0x1b8e   :  { %v6804_v63 = vadd.f32 %v6802_v31, %v6788_v57  ;;  %v6809_v2 = vadd.f32 %v6807_v6, %v6793_v22 }
0x1b90   :  { %v6825_v10 = vadd.f32 %v6823_v30, %v6809_v2  ;;  %v6820_v44 = vadd.f32 %v6818_v43, %v6804_v63 }
0x1b92   :  { %6835 = vrot.lane.b32.xlu1 %v6825_v10, %s8793_s28  ;;  %6860 = vrot.lane.b32.xlu0 %v6820_v44, %s8793_s28 }
0x1b93   :  { %v8758_v32 = vpop.eup %8757 }
0x1b94   :  { %v6902_v41 = vmul.f32 %v8758_v32, %v6900_v35  ;;  %vm6908_vm14 = vweird.f32 %v8758_v32 }
0x1b95   :  { %vm6909_vm15 = vmor %vm6907_vm13, %vm6908_vm14 }
0x1b96   :  { %v6903_v61 = vmul.f32 %v8758_v32, %v6902_v41 }
0x1b98   :  { %v6904_v28 = vmul.f32 0.5, %v6903_v61 }
0x1b9a   :  { %v6905_v50 = vsub.f32 1.5, %v6904_v28 }
0x1b9c   :  { %v6906_v1 = vmul.f32 %v8758_v32, %v6905_v50 }
0x1b9e   :  { %v6910_v53 = vsel %vm6909_vm15, %v8758_v32, %v6906_v1 }
0x1b9f   :  { %v6912_v25 = vperm.slane %v6910_v53, 0 }
0x1c04   :  { %v6836_v21 = vpop.permute.xlu1 %6835  ;;  %v6861_v55 = vpop.permute.xlu0 %6860 }
0x1c05   :  { %8325 = vmatmul.msk.f32.vlgmr.msrb.gmra.mxu1 %vm5309_vm4, %v6836_v21  ;;  %8326 = vmatmul.msk.f32.vlgmr.msra.gmra.mxu2 %vm5309_vm4, %v6861_v55 }
0x1c82   :  { %v6856_v9 = vpop.f32.mrf.mxu1 }
0x1c88   :  { %v6881_v20 = vpop.f32.mrf.mxu2 }
0x1c89   :  { %v6882_v45 = vadd.f32 %v6881_v20, %v6856_v9 }
0x1c8b   :  { %v6888_v52 = vadd.f32 %v8607_v33, %v6882_v45 }
0x1c8d   :  { %v6894_v49 = vsub.f32 %v6888_v52, %v8608_v27 }
0x1c8f   :  { %v6898_v5 = vmul.f32 %v8609_v7, %v6894_v49 }
0x1c91   :  { %v6914_v0 = vmul.f32 %v6912_v25, %v6898_v5 }
0x1c93   :  { %v6919_v58 = vadd.f32 %v8610_v36, %v6914_v0 }
0x1c95   :  { %v6920_v19 = vmax.f32 %v6919_v58, 0.0 }
0x1c97   :  { %8327 = vmatmul.msk.f32.vlgmr.msrb.gmra.mxu3 %vm5309_vm4, %v6920_v19  ;;  %8328 = vmatmul.msk.f32.vlgmr.msra.gmra.mxu1 %vm5309_vm4, %v6920_v19 }
0x1d14   :  { %v6975_v39 = vpop.f32.mrf.mxu1 }
0x1d15   :  { %v6976_v46 = vadd.f32 %v6975_v39, %v6932_v26 }
0x1d17   :  { %v6980_v3 = vrot.slane %v6976_v46, 6 }
0x1d1a   :  { %v6955_v47 = vpop.f32.mrf.mxu3 }
0x1d1b   :  { %v6956_v4 = vadd.f32 %v6955_v47, %v6931_v23 }
0x1d1d   :  { %v6982_v13 = vsel %vm6981_vm0, %v6956_v4, %v6980_v3 }
0x1d1e   :  { %6984 = vst [vmem:[#allocation3] sm:$0xf] %v6982_v13 }
0x1d1f   :  { %6995 = dma.vmem_to_hbm [thread:$0]  %s6991_s9, 64, %s6993_s15, [#allocation4]  }
0x1d20   :  { %8788 = dma.done.wait [#allocation4], 64  }
0x1d21   :  { %8789 = vsyncadd [#allocation4], 4294967232 }
0x1d22   :  { %7000 = vsyncpa [#allocation4], 1 }

</bundles_post_ra>
